<compile_context>
chip_gen: v7x
topology: tpu7x:2x2x1
jax: 0.10.0
libtpu: 0.0.40
codegen_flags: <defaults>
</compile_context>

<pallas_src>
import math

import jax
import jax.numpy as jnp
from jax.experimental import pallas as pl
from jax.experimental.pallas import tpu as pltpu


H0_PAD = 512        # padded width of layer 1 (500 -> 512)
HIDDEN_PAD = 128    # padded width of layers 2..4 and of the head input
BPACK_LANES = 512   # lane width of the bias pack (== H0_PAD)


def _round_up(x, m):
    return ((x + m - 1) // m) * m


# ----------------------------- Pallas kernel ------------------------------ #
def qnetwork_kernel(state_ref, da_ref, w1_ref, w2_ref, wpack_ref, bpack_ref,
                    out_ref):
    """Whole forward pass: 4x (Linear + ReLU) + fused concat-head Linear."""
    f32, bf16 = jnp.float32, jnp.bfloat16
    H = HIDDEN_PAD

    # Static views into the packed parameter buffers (no extra DMAs).
    w3 = wpack_ref[0 * H:1 * H, :]            # (128, 128) bf16
    w4 = wpack_ref[1 * H:2 * H, :]            # (128, 128) bf16
    w5 = wpack_ref[2 * H:3 * H, :]            # (128, 128) bf16, only col 0 real
    b1 = bpack_ref[0:1, :]                    # (1, 512) f32
    b2 = bpack_ref[1:2, 0 * H:1 * H]          # (1, 128) f32
    b3 = bpack_ref[1:2, 1 * H:2 * H]
    b4 = bpack_ref[1:2, 2 * H:3 * H]
    b5 = bpack_ref[1:2, 3 * H:4 * H]          # b5 at lane 0, rest zero

    # Layers 1-2: bf16 MXU matmuls with f32 accumulation; activations stay f32
    # (bias add / ReLU are f32 VPU ops -> v5e-safe).
    x = jnp.dot(state_ref[...].astype(bf16), w1_ref[...],
                preferred_element_type=f32)
    x = jnp.maximum(x + b1, 0.0)                                  # (tb, 512)
    x = jnp.dot(x.astype(bf16), w2_ref[...], preferred_element_type=f32)
    x = jnp.maximum(x + b2, 0.0)                                  # (tb, 128)

    # Layers 3-4: bf16 operands, f32 accumulation.
    x = jnp.maximum(jnp.dot(x.astype(bf16), w3, preferred_element_type=f32)
                    + b3, 0.0)
    x = jnp.maximum(jnp.dot(x.astype(bf16), w4, preferred_element_type=f32)
                    + b4, 0.0)
    # x columns >= 9 are exactly zero (zero-padded W4 columns, zero bias).

    # Head: cat([x, dim, action]) @ W5 as one lane-dense matmul.  dim/action
    # were placed host-side into the (exactly zero) tail columns of x.
    z = x + da_ref[...].astype(f32)
    out = jnp.dot(z.astype(bf16), w5, preferred_element_type=f32) + b5
    out_ref[...] = out.astype(out_ref.dtype)


# ------------------------------ JAX wrapper -------------------------------- #
def pack_dim_action(dim, action, batch, h3):
    """Place dim/action into the zero tail columns of the padded L4 output."""
    da = jnp.zeros((batch, HIDDEN_PAD), jnp.bfloat16)
    da = da.at[:, h3:h3 + dim.shape[1]].set(dim.astype(jnp.bfloat16))
    da = da.at[:, h3 + dim.shape[1]:h3 + dim.shape[1] + action.shape[1]].set(
        action.astype(jnp.bfloat16))
    return da


def make_qnetwork_forward(*, batch_tile=512, h3=9, single_buffer_weights=True):
    """Builds a jitted forward; single_buffer_weights toggles pl.Buffered(1)."""

    def fwd(state, dim, action, w1, w2, wpack, bpack):
        B, K = state.shape
        H0 = w1.shape[1]            # 512
        H = wpack.shape[1]          # 128

        da = pack_dim_action(dim, action, B, h3)

        # Batch tiling: amortizes the VMEM-resident weight stream over large
        # batches; the "parallel" axis splits across TensorCores on v7x when
        # there are >= 2 blocks.
        tb = min(batch_tile, _round_up(B, 16))
        n_blocks = pl.cdiv(B, tb)
        Bp = n_blocks * tb
        if Bp != B:
            state = jnp.pad(state, ((0, Bp - B), (0, 0)))
            da = jnp.pad(da, ((0, Bp - B), (0, 0)))

        # Weights never change across the grid: single-buffer them (no reason
        # to double-buffer a constant block); fall back to default if the
        # installed jax does not support pipeline_mode=pl.Buffered(1).
        weight_kw = ({"pipeline_mode": pl.Buffered(1)}
                     if single_buffer_weights else {})

        # VMEM budget derived from the actual footprint, capped for v7x.
        wbuf = 1 if single_buffer_weights else 2
        tile_bytes = tb * K * 4 + tb * H * 2 + tb * H * 2      # state + da + out
        weight_bytes = (w1.size * 2 + w2.size * 2
                        + wpack.size * 2 + bpack.size * 4)
        vmem_est = 2 * tile_bytes + wbuf * weight_bytes + (6 << 20)
        vmem_limit = int(min(max(32 << 20, vmem_est), 48 << 20))

        flops = 2 * Bp * (K * H0 + H0 * H + 3 * H * H)
        bytes_accessed = int(
            Bp * K * 4 + Bp * H * 2                 # state + da
            + w1.size * 2 + w2.size * 2             # bf16 big weights
            + wpack.size * 2 + bpack.size * 4       # bf16 pack + f32 biases
            + Bp * H * 2)                           # bf16 output block

        out = pl.pallas_call(
            qnetwork_kernel,
            out_shape=jax.ShapeDtypeStruct((Bp, H), jnp.bfloat16),
            grid_spec=pltpu.PrefetchScalarGridSpec(
                num_scalar_prefetch=0,
                grid=(n_blocks,),
                in_specs=[
                    pl.BlockSpec((tb, K), lambda i: (i, 0)),    # state
                    pl.BlockSpec((tb, H), lambda i: (i, 0)),    # dim/action pack
                    pl.BlockSpec((K, H0), lambda i: (0, 0), **weight_kw),   # W1
                    pl.BlockSpec((H0, H), lambda i: (0, 0), **weight_kw),   # W2
                    pl.BlockSpec(wpack.shape, lambda i: (0, 0), **weight_kw),
                    pl.BlockSpec(bpack.shape, lambda i: (0, 0), **weight_kw),
                ],
                out_specs=pl.BlockSpec((tb, H), lambda i: (i, 0)),
            ),
            compiler_params=pltpu.CompilerParams(
                dimension_semantics=("parallel",),
                vmem_limit_bytes=vmem_limit,
            ),
            cost_estimate=pl.CostEstimate(
                flops=flops, transcendentals=0, bytes_accessed=bytes_accessed),
        )(state, da, w1, w2, wpack, bpack)

        # Lane-dense (Bp, 128) block; column 0 is the Q value.
        return out[:B, :1].astype(jnp.float32)

    return jax.jit(fwd)


# --------------------------- parameter creation ---------------------------- #
def xavier_uniform(key, fan_in, fan_out, dtype=jnp.float32):
    """Matches nn.init.xavier_uniform_(gain=1); stored as [in, out]."""
    bound = math.sqrt(6.0 / (fan_in + fan_out))
    return jax.random.uniform(key, (fan_in, fan_out), dtype,
                              minval=-bound, maxval=bound)


def init_qnetwork_params(key, input_size, num_actions,
                         hidden_arr=(500, 100, 50, 9)):
    h0, h1, h2, h3 = hidden_arr
    cat_in = h3 + 3 + num_actions                      # 9 + 3 + 2 = 14
    assert h0 <= H0_PAD and max(h1, h2, cat_in) <= HIDDEN_PAD
    assert H0_PAD == BPACK_LANES
    keys = jax.random.split(key, 5)

    w1 = xavier_uniform(keys[0], input_size, h0)
    w2 = xavier_uniform(keys[1], h0, h1)
    w3 = xavier_uniform(keys[2], h1, h2)
    w4 = xavier_uniform(keys[3], h2, h3)
    w5 = xavier_uniform(keys[4], cat_in, 1)
    b1 = jnp.zeros((1, h0), jnp.float32)               # nn.init.constant_(b, 0)
    b2 = jnp.zeros((1, h1), jnp.float32)
    b3 = jnp.zeros((1, h2), jnp.float32)
    b4 = jnp.zeros((1, h3), jnp.float32)
    b5 = jnp.zeros((1, 1), jnp.float32)

    raw = (w1, b1, w2, b2, w3, b3, w4, b4, w5, b5)

    # ---- packed / padded kernel parameters ----
    # Big weights: zero-pad to lane-dense shapes, store as bf16.
    w1p = (jnp.zeros((input_size, H0_PAD), jnp.float32)
           .at[:, :h0].set(w1).astype(jnp.bfloat16))
    w2p = (jnp.zeros((H0_PAD, HIDDEN_PAD), jnp.float32)
           .at[:h0, :h1].set(w2).astype(jnp.bfloat16))

    # Small weights: zero-pad each to (128, 128), stack, store as bf16.
    w3p = jnp.zeros((HIDDEN_PAD, HIDDEN_PAD), jnp.float32).at[:h1, :h2].set(w3)
    w4p = jnp.zeros((HIDDEN_PAD, HIDDEN_PAD), jnp.float32).at[:h2, :h3].set(w4)
    # Head weight rows follow the z layout: [x(0..8) | dim(9..11) | act(12..13)].
    w5p = (jnp.zeros((HIDDEN_PAD, HIDDEN_PAD), jnp.float32)
           .at[:cat_in, 0].set(w5[:, 0]))
    wpack = jnp.concatenate([w3p, w4p, w5p], axis=0).astype(jnp.bfloat16)

    # Biases: one (8, 512) f32 buffer. row 0 = b1; row 1 = [b2 | b3 | b4 | b5].
    H = HIDDEN_PAD
    bpack = jnp.zeros((8, BPACK_LANES), jnp.float32)
    bpack = bpack.at[0, :h0].set(b1[0])
    bpack = bpack.at[1, 0:h1].set(b2[0])
    bpack = bpack.at[1, H:H + h2].set(b3[0])
    bpack = bpack.at[1, 2 * H:2 * H + h3].set(b4[0])
    bpack = bpack.at[1, 3 * H].set(b5[0, 0])

    # Guard (review concern): the concat-head trick requires the padded W4
    # output columns / bias lanes to be EXACTLY zero.  Any repack after
    # training must re-zero these or the head is silently corrupted.
    assert bool(jnp.all(w4p[:, h3:] == 0.0))
    assert bool(jnp.all(bpack[1, 2 * H + h3:3 * H] == 0.0))

    packed = (w1p, w2p, wpack, bpack)
    return raw, packed


# --------------------------- references (pure JAX) -------------------------- #
def qnetwork_reference(state, dim, action, raw_params):
    """Original PyTorch-module semantics, full f32."""
    (w1, b1, w2, b2, w3, b3, w4, b4, w5, b5) = raw_params
    x = jnp.maximum(state @ w1 + b1, 0.0)
    x = jnp.maximum(x @ w2 + b2, 0.0)
    x = jnp.maximum(x @ w3 + b3, 0.0)
    x = jnp.maximum(x @ w4 + b4, 0.0)
    z = jnp.concatenate([x, dim, action], axis=1)
    return z @ w5 + b5


def qnetwork_reference_bf16(state, dim, action, raw_params):
    """Mirror of the kernel math: bf16 matmul operands, f32 accumulation."""
    (w1, b1, w2, b2, w3, b3, w4, b4, w5, b5) = raw_params
    f32, bf16 = jnp.float32, jnp.bfloat16
    x = jnp.dot(state.astype(bf16), w1.astype(bf16), preferred_element_type=f32)
    x = jnp.maximum(x + b1, 0.0)
    x = jnp.dot(x.astype(bf16), w2.astype(bf16), preferred_element_type=f32)
    x = jnp.maximum(x + b2, 0.0)
    x = jnp.maximum(jnp.dot(x.astype(bf16), w3.astype(bf16),
                            preferred_element_type=f32) + b3, 0.0)
    x = jnp.maximum(jnp.dot(x.astype(bf16), w4.astype(bf16),
                            preferred_element_type=f32) + b4, 0.0)
    z = jnp.concatenate([x,
                         dim.astype(bf16).astype(f32),
                         action.astype(bf16).astype(f32)], axis=1)
    out = jnp.dot(z.astype(bf16), w5.astype(bf16),
                  preferred_element_type=f32) + b5
    return out.astype(bf16).astype(f32)


# ---------------------------------- main ----------------------------------- #
if __name__ == "__main__":
    batch = 4
    input_size = 45 * 80      # 3600, per the module docstring
    num_actions = 2

    key = jax.random.PRNGKey(0)
    k_params, k_state, k_dim, k_action = jax.random.split(key, 4)

    raw_params, packed_params = init_qnetwork_params(
        k_params, input_size, num_actions)

    state = jax.random.normal(k_state, (batch, input_size), jnp.float32)
    dim = jax.random.normal(k_dim, (batch, 3), jnp.float32)
    action = jax.random.normal(k_action, (batch, num_actions), jnp.float32)

    try:
        fwd = make_qnetwork_forward(single_buffer_weights=True)
        out = jax.block_until_ready(
            fwd(state, dim, action, *packed_params))
    except Exception:
        # pl.Buffered(1) unsupported on this jax build: fall back to the
        # default double-buffered weight pipeline (identical semantics).
        fwd = make_qnetwork_forward(single_buffer_weights=False)
        out = jax.block_until_ready(
            fwd(state, dim, action, *packed_params))

    assert out.shape == (batch, 1), out.shape

    ref_bf16 = qnetwork_reference_bf16(state, dim, action, raw_params)
    ref_f32 = qnetwork_reference(state, dim, action, raw_params)
    assert jnp.allclose(out, ref_bf16, atol=1e-2, rtol=1e-2), (out, ref_bf16)
    assert jnp.allclose(out, ref_f32, atol=5e-2, rtol=5e-2), (out, ref_f32)

    print("KERNEL_OK")
</pallas_src>

<mosaic_0001>
module attributes {stable_mosaic.version = 11 : i64} {
  func.func @qnetwork_kernel(%arg0: i32, %arg1: memref<16x3600xf32, #tpu.memory_space<vmem>>, %arg2: memref<16x128xbf16, #tpu.memory_space<vmem>>, %arg3: memref<3600x512xbf16, #tpu.memory_space<vmem>>, %arg4: memref<512x128xbf16, #tpu.memory_space<vmem>>, %arg5: memref<384x128xbf16, #tpu.memory_space<vmem>>, %arg6: memref<8x512xf32, #tpu.memory_space<vmem>>, %arg7: memref<16x128xbf16, #tpu.memory_space<vmem>>) attributes {dimension_semantics = [#tpu.dimension_semantics<parallel>], iteration_bounds = array<i64: 1>, scalar_prefetch = 0 : i64, scratch_operands = 0 : i64, tpu.core_type = #tpu.core_type<tc>, window_params = [{transform_indices = @transform_0, window_bounds = array<i64: 16, 3600>}, {transform_indices = @transform_1, window_bounds = array<i64: 16, 128>}, {pipeline_mode = #tpu.pipeline_mode<synchronous>, transform_indices = @transform_2, window_bounds = array<i64: 3600, 512>}, {pipeline_mode = #tpu.pipeline_mode<synchronous>, transform_indices = @transform_3, window_bounds = array<i64: 512, 128>}, {pipeline_mode = #tpu.pipeline_mode<synchronous>, transform_indices = @transform_4, window_bounds = array<i64: 384, 128>}, {pipeline_mode = #tpu.pipeline_mode<synchronous>, transform_indices = @transform_5, window_bounds = array<i64: 8, 512>}, {transform_indices = @transform_6, window_bounds = array<i64: 16, 128>}]} {
    %c0 = arith.constant 0 : index
    %c0_0 = arith.constant 0 : index
    %0 = vector.load %arg5[%c0, %c0_0] : memref<384x128xbf16, #tpu.memory_space<vmem>>, vector<128x128xbf16>
    %c128 = arith.constant 128 : index
    %c0_1 = arith.constant 0 : index
    %1 = vector.load %arg5[%c128, %c0_1] : memref<384x128xbf16, #tpu.memory_space<vmem>>, vector<128x128xbf16>
    %c256 = arith.constant 256 : index
    %c0_2 = arith.constant 0 : index
    %2 = vector.load %arg5[%c256, %c0_2] : memref<384x128xbf16, #tpu.memory_space<vmem>>, vector<128x128xbf16>
    %c0_3 = arith.constant 0 : index
    %c0_4 = arith.constant 0 : index
    %3 = vector.load %arg6[%c0_3, %c0_4] : memref<8x512xf32, #tpu.memory_space<vmem>>, vector<1x512xf32>
    %c1 = arith.constant 1 : index
    %c0_5 = arith.constant 0 : index
    %4 = vector.load %arg6[%c1, %c0_5] : memref<8x512xf32, #tpu.memory_space<vmem>>, vector<1x128xf32>
    %c1_6 = arith.constant 1 : index
    %c128_7 = arith.constant 128 : index
    %5 = vector.load %arg6[%c1_6, %c128_7] : memref<8x512xf32, #tpu.memory_space<vmem>>, vector<1x128xf32>
    %c1_8 = arith.constant 1 : index
    %c256_9 = arith.constant 256 : index
    %6 = vector.load %arg6[%c1_8, %c256_9] : memref<8x512xf32, #tpu.memory_space<vmem>>, vector<1x128xf32>
    %c1_10 = arith.constant 1 : index
    %c384 = arith.constant 384 : index
    %7 = vector.load %arg6[%c1_10, %c384] : memref<8x512xf32, #tpu.memory_space<vmem>>, vector<1x128xf32>
    %c0_11 = arith.constant 0 : index
    %c0_12 = arith.constant 0 : index
    %8 = vector.load %arg1[%c0_11, %c0_12] : memref<16x3600xf32, #tpu.memory_space<vmem>>, vector<16x3600xf32>
    %9 = arith.truncf %8 : vector<16x3600xf32> to vector<16x3600xbf16>
    %c0_13 = arith.constant 0 : index
    %c0_14 = arith.constant 0 : index
    %10 = vector.load %arg3[%c0_13, %c0_14] : memref<3600x512xbf16, #tpu.memory_space<vmem>>, vector<3600x512xbf16>
    %cst = arith.constant dense<0.000000e+00> : vector<16x512xf32>
    %11 = tpu.matmul %9, %10, %cst {dimension_numbers = #tpu.dot_dimension_numbers<[1], [0], [0], [1], [0, 0, 1, 1], [], []>} : vector<16x3600xbf16>, vector<3600x512xbf16>, vector<16x512xf32> -> vector<16x512xf32>
    %12 = vector.broadcast %3 : vector<1x512xf32> to vector<16x512xf32>
    %13 = arith.addf %11, %12 : vector<16x512xf32>
    %cst_15 = arith.constant 0.000000e+00 : f32
    %14 = vector.broadcast %cst_15 : f32 to vector<16x512xf32>
    %15 = arith.maximumf %13, %14 : vector<16x512xf32>
    %16 = arith.truncf %15 : vector<16x512xf32> to vector<16x512xbf16>
    %c0_16 = arith.constant 0 : index
    %c0_17 = arith.constant 0 : index
    %17 = vector.load %arg4[%c0_16, %c0_17] : memref<512x128xbf16, #tpu.memory_space<vmem>>, vector<512x128xbf16>
    %cst_18 = arith.constant dense<0.000000e+00> : vector<16x128xf32>
    %18 = tpu.matmul %16, %17, %cst_18 {dimension_numbers = #tpu.dot_dimension_numbers<[1], [0], [0], [1], [0, 0, 1, 1], [], []>} : vector<16x512xbf16>, vector<512x128xbf16>, vector<16x128xf32> -> vector<16x128xf32>
    %19 = vector.broadcast %4 : vector<1x128xf32> to vector<16x128xf32>
    %20 = arith.addf %18, %19 : vector<16x128xf32>
    %cst_19 = arith.constant 0.000000e+00 : f32
    %21 = vector.broadcast %cst_19 : f32 to vector<16x128xf32>
    %22 = arith.maximumf %20, %21 : vector<16x128xf32>
    %23 = arith.truncf %22 : vector<16x128xf32> to vector<16x128xbf16>
    %cst_20 = arith.constant dense<0.000000e+00> : vector<16x128xf32>
    %24 = tpu.matmul %23, %0, %cst_20 {dimension_numbers = #tpu.dot_dimension_numbers<[1], [0], [0], [1], [0, 0, 1, 1], [], []>} : vector<16x128xbf16>, vector<128x128xbf16>, vector<16x128xf32> -> vector<16x128xf32>
    %25 = vector.broadcast %5 : vector<1x128xf32> to vector<16x128xf32>
    %26 = arith.addf %24, %25 : vector<16x128xf32>
    %cst_21 = arith.constant 0.000000e+00 : f32
    %27 = vector.broadcast %cst_21 : f32 to vector<16x128xf32>
    %28 = arith.maximumf %26, %27 : vector<16x128xf32>
    %29 = arith.truncf %28 : vector<16x128xf32> to vector<16x128xbf16>
    %cst_22 = arith.constant dense<0.000000e+00> : vector<16x128xf32>
    %30 = tpu.matmul %29, %1, %cst_22 {dimension_numbers = #tpu.dot_dimension_numbers<[1], [0], [0], [1], [0, 0, 1, 1], [], []>} : vector<16x128xbf16>, vector<128x128xbf16>, vector<16x128xf32> -> vector<16x128xf32>
    %31 = vector.broadcast %6 : vector<1x128xf32> to vector<16x128xf32>
    %32 = arith.addf %30, %31 : vector<16x128xf32>
    %cst_23 = arith.constant 0.000000e+00 : f32
    %33 = vector.broadcast %cst_23 : f32 to vector<16x128xf32>
    %34 = arith.maximumf %32, %33 : vector<16x128xf32>
    %c0_24 = arith.constant 0 : index
    %c0_25 = arith.constant 0 : index
    %35 = vector.load %arg2[%c0_24, %c0_25] : memref<16x128xbf16, #tpu.memory_space<vmem>>, vector<16x128xbf16>
    %36 = arith.extf %35 : vector<16x128xbf16> to vector<16x128xf32>
    %37 = arith.addf %34, %36 : vector<16x128xf32>
    %38 = arith.truncf %37 : vector<16x128xf32> to vector<16x128xbf16>
    %cst_26 = arith.constant dense<0.000000e+00> : vector<16x128xf32>
    %39 = tpu.matmul %38, %2, %cst_26 {dimension_numbers = #tpu.dot_dimension_numbers<[1], [0], [0], [1], [0, 0, 1, 1], [], []>} : vector<16x128xbf16>, vector<128x128xbf16>, vector<16x128xf32> -> vector<16x128xf32>
    %40 = vector.broadcast %7 : vector<1x128xf32> to vector<16x128xf32>
    %41 = arith.addf %39, %40 : vector<16x128xf32>
    %42 = arith.truncf %41 : vector<16x128xf32> to vector<16x128xbf16>
    %c0_27 = arith.constant 0 : index
    %c0_28 = arith.constant 0 : index
    %43 = vector.load %arg7[%c0_27, %c0_28] : memref<16x128xbf16, #tpu.memory_space<vmem>>, vector<16x128xbf16>
    tpu.vector_store %arg7[%c0_27, %c0_28], %42 {strides = array<i32>} : memref<16x128xbf16, #tpu.memory_space<vmem>>, vector<16x128xbf16>,
    return
  }
  func.func @transform_0(%arg0: i32) -> (i32, i32) {
    %c0_i32 = arith.constant 0 : i32
    %c0_i32_0 = arith.constant 0 : i32
    return %arg0, %c0_i32 : i32, i32
  }
  func.func @transform_1(%arg0: i32) -> (i32, i32) {
    %c0_i32 = arith.constant 0 : i32
    %c0_i32_0 = arith.constant 0 : i32
    return %arg0, %c0_i32 : i32, i32
  }
  func.func @transform_2(%arg0: i32) -> (i32, i32) {
    %c0_i32 = arith.constant 0 : i32
    %c0_i32_0 = arith.constant 0 : i32
    %c0_i32_1 = arith.constant 0 : i32
    return %c0_i32, %c0_i32_0 : i32, i32
  }
  func.func @transform_3(%arg0: i32) -> (i32, i32) {
    %c0_i32 = arith.constant 0 : i32
    %c0_i32_0 = arith.constant 0 : i32
    %c0_i32_1 = arith.constant 0 : i32
    return %c0_i32, %c0_i32_0 : i32, i32
  }
  func.func @transform_4(%arg0: i32) -> (i32, i32) {
    %c0_i32 = arith.constant 0 : i32
    %c0_i32_0 = arith.constant 0 : i32
    %c0_i32_1 = arith.constant 0 : i32
    return %c0_i32, %c0_i32_0 : i32, i32
  }
  func.func @transform_5(%arg0: i32) -> (i32, i32) {
    %c0_i32 = arith.constant 0 : i32
    %c0_i32_0 = arith.constant 0 : i32
    %c0_i32_1 = arith.constant 0 : i32
    return %c0_i32, %c0_i32_0 : i32, i32
  }
  func.func @transform_6(%arg0: i32) -> (i32, i32) {
    %c0_i32 = arith.constant 0 : i32
    %c0_i32_0 = arith.constant 0 : i32
    return %arg0, %c0_i32 : i32, i32
  }
}

module attributes {stable_mosaic.version = 11 : i64} {
  func.func @qnetwork_kernel(%arg0: i32, %arg1: memref<16x3600xf32, #tpu.memory_space<vmem>>, %arg2: memref<16x128xbf16, #tpu.memory_space<vmem>>, %arg3: memref<3600x512xbf16, #tpu.memory_space<vmem>>, %arg4: memref<512x128xbf16, #tpu.memory_space<vmem>>, %arg5: memref<384x128xbf16, #tpu.memory_space<vmem>>, %arg6: memref<8x512xf32, #tpu.memory_space<vmem>>, %arg7: memref<16x128xbf16, #tpu.memory_space<vmem>>) attributes {dimension_semantics = [#tpu.dimension_semantics<parallel>], iteration_bounds = array<i64: 1>, scalar_prefetch = 0 : i64, scratch_operands = 0 : i64, tpu.core_type = #tpu.core_type<tc>, window_params = [{transform_indices = @transform_0, window_bounds = array<i64: 16, 3600>}, {transform_indices = @transform_1, window_bounds = array<i64: 16, 128>}, {pipeline_mode = #tpu.pipeline_mode<synchronous>, transform_indices = @transform_2, window_bounds = array<i64: 3600, 512>}, {pipeline_mode = #tpu.pipeline_mode<synchronous>, transform_indices = @transform_3, window_bounds = array<i64: 512, 128>}, {pipeline_mode = #tpu.pipeline_mode<synchronous>, transform_indices = @transform_4, window_bounds = array<i64: 384, 128>}, {pipeline_mode = #tpu.pipeline_mode<synchronous>, transform_indices = @transform_5, window_bounds = array<i64: 8, 512>}, {transform_indices = @transform_6, window_bounds = array<i64: 16, 128>}]} {
    %c0 = arith.constant 0 : index
    %c0_0 = arith.constant 0 : index
    %0 = vector.load %arg5[%c0, %c0_0] : memref<384x128xbf16, #tpu.memory_space<vmem>>, vector<128x128xbf16>
    %c128 = arith.constant 128 : index
    %c0_1 = arith.constant 0 : index
    %1 = vector.load %arg5[%c128, %c0_1] : memref<384x128xbf16, #tpu.memory_space<vmem>>, vector<128x128xbf16>
    %c256 = arith.constant 256 : index
    %c0_2 = arith.constant 0 : index
    %2 = vector.load %arg5[%c256, %c0_2] : memref<384x128xbf16, #tpu.memory_space<vmem>>, vector<128x128xbf16>
    %c0_3 = arith.constant 0 : index
    %c0_4 = arith.constant 0 : index
    %3 = vector.load %arg6[%c0_3, %c0_4] : memref<8x512xf32, #tpu.memory_space<vmem>>, vector<1x512xf32>
    %c1 = arith.constant 1 : index
    %c0_5 = arith.constant 0 : index
    %4 = vector.load %arg6[%c1, %c0_5] : memref<8x512xf32, #tpu.memory_space<vmem>>, vector<1x128xf32>
    %c1_6 = arith.constant 1 : index
    %c128_7 = arith.constant 128 : index
    %5 = vector.load %arg6[%c1_6, %c128_7] : memref<8x512xf32, #tpu.memory_space<vmem>>, vector<1x128xf32>
    %c1_8 = arith.constant 1 : index
    %c256_9 = arith.constant 256 : index
    %6 = vector.load %arg6[%c1_8, %c256_9] : memref<8x512xf32, #tpu.memory_space<vmem>>, vector<1x128xf32>
    %c1_10 = arith.constant 1 : index
    %c384 = arith.constant 384 : index
    %7 = vector.load %arg6[%c1_10, %c384] : memref<8x512xf32, #tpu.memory_space<vmem>>, vector<1x128xf32>
    %c0_11 = arith.constant 0 : index
    %c0_12 = arith.constant 0 : index
    %8 = vector.load %arg1[%c0_11, %c0_12] : memref<16x3600xf32, #tpu.memory_space<vmem>>, vector<16x3600xf32>
    %9 = arith.truncf %8 : vector<16x3600xf32> to vector<16x3600xbf16>
    %c0_13 = arith.constant 0 : index
    %c0_14 = arith.constant 0 : index
    %10 = vector.load %arg3[%c0_13, %c0_14] : memref<3600x512xbf16, #tpu.memory_space<vmem>>, vector<3600x512xbf16>
    %cst = arith.constant dense<0.000000e+00> : vector<16x512xf32>
    %11 = tpu.matmul %9, %10, %cst {dimension_numbers = #tpu.dot_dimension_numbers<[1], [0], [0], [1], [0, 0, 1, 1], [], []>} : vector<16x3600xbf16>, vector<3600x512xbf16>, vector<16x512xf32> -> vector<16x512xf32>
    %12 = vector.broadcast %3 : vector<1x512xf32> to vector<16x512xf32>
    %13 = arith.addf %11, %12 : vector<16x512xf32>
    %cst_15 = arith.constant 0.000000e+00 : f32
    %14 = vector.broadcast %cst_15 : f32 to vector<16x512xf32>
    %15 = arith.maximumf %13, %14 : vector<16x512xf32>
    %16 = arith.truncf %15 : vector<16x512xf32> to vector<16x512xbf16>
    %c0_16 = arith.constant 0 : index
    %c0_17 = arith.constant 0 : index
    %17 = vector.load %arg4[%c0_16, %c0_17] : memref<512x128xbf16, #tpu.memory_space<vmem>>, vector<512x128xbf16>
    %cst_18 = arith.constant dense<0.000000e+00> : vector<16x128xf32>
    %18 = tpu.matmul %16, %17, %cst_18 {dimension_numbers = #tpu.dot_dimension_numbers<[1], [0], [0], [1], [0, 0, 1, 1], [], []>} : vector<16x512xbf16>, vector<512x128xbf16>, vector<16x128xf32> -> vector<16x128xf32>
    %19 = vector.broadcast %4 : vector<1x128xf32> to vector<16x128xf32>
    %20 = arith.addf %18, %19 : vector<16x128xf32>
    %cst_19 = arith.constant 0.000000e+00 : f32
    %21 = vector.broadcast %cst_19 : f32 to vector<16x128xf32>
    %22 = arith.maximumf %20, %21 : vector<16x128xf32>
    %23 = arith.truncf %22 : vector<16x128xf32> to vector<16x128xbf16>
    %cst_20 = arith.constant dense<0.000000e+00> : vector<16x128xf32>
    %24 = tpu.matmul %23, %0, %cst_20 {dimension_numbers = #tpu.dot_dimension_numbers<[1], [0], [0], [1], [0, 0, 1, 1], [], []>} : vector<16x128xbf16>, vector<128x128xbf16>, vector<16x128xf32> -> vector<16x128xf32>
    %25 = vector.broadcast %5 : vector<1x128xf32> to vector<16x128xf32>
    %26 = arith.addf %24, %25 : vector<16x128xf32>
    %cst_21 = arith.constant 0.000000e+00 : f32
    %27 = vector.broadcast %cst_21 : f32 to vector<16x128xf32>
    %28 = arith.maximumf %26, %27 : vector<16x128xf32>
    %29 = arith.truncf %28 : vector<16x128xf32> to vector<16x128xbf16>
    %cst_22 = arith.constant dense<0.000000e+00> : vector<16x128xf32>
    %30 = tpu.matmul %29, %1, %cst_22 {dimension_numbers = #tpu.dot_dimension_numbers<[1], [0], [0], [1], [0, 0, 1, 1], [], []>} : vector<16x128xbf16>, vector<128x128xbf16>, vector<16x128xf32> -> vector<16x128xf32>
    %31 = vector.broadcast %6 : vector<1x128xf32> to vector<16x128xf32>
    %32 = arith.addf %30, %31 : vector<16x128xf32>
    %cst_23 = arith.constant 0.000000e+00 : f32
    %33 = vector.broadcast %cst_23 : f32 to vector<16x128xf32>
    %34 = arith.maximumf %32, %33 : vector<16x128xf32>
    %c0_24 = arith.constant 0 : index
    %c0_25 = arith.constant 0 : index
    %35 = vector.load %arg2[%c0_24, %c0_25] : memref<16x128xbf16, #tpu.memory_space<vmem>>, vector<16x128xbf16>
    %36 = arith.extf %35 : vector<16x128xbf16> to vector<16x128xf32>
    %37 = arith.addf %34, %36 : vector<16x128xf32>
    %38 = arith.truncf %37 : vector<16x128xf32> to vector<16x128xbf16>
    %cst_26 = arith.constant dense<0.000000e+00> : vector<16x128xf32>
    %39 = tpu.matmul %38, %2, %cst_26 {dimension_numbers = #tpu.dot_dimension_numbers<[1], [0], [0], [1], [0, 0, 1, 1], [], []>} : vector<16x128xbf16>, vector<128x128xbf16>, vector<16x128xf32> -> vector<16x128xf32>
    %40 = vector.broadcast %7 : vector<1x128xf32> to vector<16x128xf32>
    %41 = arith.addf %39, %40 : vector<16x128xf32>
    %42 = arith.truncf %41 : vector<16x128xf32> to vector<16x128xbf16>
    %c0_27 = arith.constant 0 : index
    %c0_28 = arith.constant 0 : index
    %43 = vector.load %arg7[%c0_27, %c0_28] : memref<16x128xbf16, #tpu.memory_space<vmem>>, vector<16x128xbf16>
    tpu.vector_store %arg7[%c0_27, %c0_28], %42 {strides = array<i32>} : memref<16x128xbf16, #tpu.memory_space<vmem>>, vector<16x128xbf16>,
    return
  }
  func.func @transform_0(%arg0: i32) -> (i32, i32) {
    %c0_i32 = arith.constant 0 : i32
    %c0_i32_0 = arith.constant 0 : i32
    return %arg0, %c0_i32 : i32, i32
  }
  func.func @transform_1(%arg0: i32) -> (i32, i32) {
    %c0_i32 = arith.constant 0 : i32
    %c0_i32_0 = arith.constant 0 : i32
    return %arg0, %c0_i32 : i32, i32
  }
  func.func @transform_2(%arg0: i32) -> (i32, i32) {
    %c0_i32 = arith.constant 0 : i32
    %c0_i32_0 = arith.constant 0 : i32
    %c0_i32_1 = arith.constant 0 : i32
    return %c0_i32, %c0_i32_0 : i32, i32
  }
  func.func @transform_3(%arg0: i32) -> (i32, i32) {
    %c0_i32 = arith.constant 0 : i32
    %c0_i32_0 = arith.constant 0 : i32
    %c0_i32_1 = arith.constant 0 : i32
    return %c0_i32, %c0_i32_0 : i32, i32
  }
  func.func @transform_4(%arg0: i32) -> (i32, i32) {
    %c0_i32 = arith.constant 0 : i32
    %c0_i32_0 = arith.constant 0 : i32
    %c0_i32_1 = arith.constant 0 : i32
    return %c0_i32, %c0_i32_0 : i32, i32
  }
  func.func @transform_5(%arg0: i32) -> (i32, i32) {
    %c0_i32 = arith.constant 0 : i32
    %c0_i32_0 = arith.constant 0 : i32
    %c0_i32_1 = arith.constant 0 : i32
    return %c0_i32, %c0_i32_0 : i32, i32
  }
  func.func @transform_6(%arg0: i32) -> (i32, i32) {
    %c0_i32 = arith.constant 0 : i32
    %c0_i32_0 = arith.constant 0 : i32
    return %arg0, %c0_i32 : i32, i32
  }
}

</mosaic_0001>

<bundles_post_ra>
// kernel: fwd.1
= control target key start
LH: loop header
LB: loop body
LE: loop exit
PB: predicated region body
PF: predicated region fallthrough
CT: control target
= control target key end

     0   :  { %11 = vsyncpa [#allocation3], 0  ;;  %s10644_s0 = inlined_call_operand.vmem [shape: f32[16,3600], index: 0, kind: input, shape index: {}]   ;;  %s10645_s1 = inlined_call_operand.vmem [shape: bf16[16,128], index: 1, kind: input, shape index: {}]   ;;  %s10646_s2 = inlined_call_operand.hbm [shape: bf16[3600,512], index: 2, kind: input, shape index: {}]   ;;  %s10647_s3 = inlined_call_operand.hbm [shape: bf16[512,128], index: 3, kind: input, shape index: {}]   ;;  %s10648_s4 = inlined_call_operand.hbm [shape: bf16[384,128], index: 4, kind: input, shape index: {}]   ;;  %s10649_s5 = inlined_call_operand.hbm [shape: f32[8,512], index: 5, kind: input, shape index: {}]   ;;  %s10650_s6 = inlined_call_operand.vmem [shape: bf16[16,128], index: 6, kind: output, shape index: {}]  }
   0x1   :  { %12 = vsyncpa [#allocation5], 0 }
   0x2   :  { %13 = vsyncpa [#allocation8], 0  ;;  %s10314_s21 = smov [#allocation4]   ;;  %s10220_s25 = scalar_lea.hbm %s10647_s3, 4096 }
   0x3   :  { %s35_s22 = sshll.u32 %s10314_s21, 4  ;;  %p10221_p0 = scmp.ne.s32.totalorder %s10647_s3, %s10220_s25  ;;  %s36_s22 = int_to_ptr.vmem [resolvable:$true] %s35_s22 }
   0x4   :  { %p10224_p1 = scmp.lt.u32.totalorder %s10220_s25, %s10647_s3 }
   0x6   :  { %p10226_p2 = pnand %p10224_p1, %p10221_p0 }
   0x8   :  { %10229 = shalt.err (!%p10226_p2)
}
   0x9   :  { %s10230_s30 = scalar_lea.vmem %s36_s22, 4096  ;;  %p10235_p4 = scmp.lt.s32.totalorder %s36_s22, %s36_s22 }
   0xa   :  { %p10231_p3 = scmp.ne.s32.totalorder %s36_s22, %s10230_s30  ;;  %p10236_p5 = scmp.lt.s32.totalorder %s10230_s30, %s10230_s30 }
   0xc   :  { %p10237_p6 = por %p10236_p5, %p10235_p4 }
   0xe   :  { %p10238_p7 = pnand %p10237_p6, %p10231_p3 }
  0x10   :  { %10241 = shalt.err (!%p10238_p7)
}
  0x11   :  { %s10315_s7 = smov 64   ;;  %s10316_s8 = smov 4  }
  0x12   :  { %41 = dma.hbm_to_vmem [thread:$0]  %s10647_s3, 4096, %s36_s22, [#allocation5], %s10315_s7, %s10315_s7, %s10316_s8  }
  0x13   :  { %s10317_s11 = smov [#allocation2]   ;;  %s10242_s15 = scalar_lea.hbm %s10646_s2, 115200 }
  0x14   :  { %s23_s12 = sshll.u32 %s10317_s11, 4  ;;  %p10243_p8 = scmp.ne.s32.totalorder %s10646_s2, %s10242_s15  ;;  %s24_s12 = int_to_ptr.vmem [resolvable:$true] %s23_s12 }
  0x15   :  { %p10246_p9 = scmp.lt.u32.totalorder %s10242_s15, %s10646_s2 }
  0x17   :  { %p10248_p10 = pnand %p10246_p9, %p10243_p8 }
  0x19   :  { %10251 = shalt.err (!%p10248_p10)
}
  0x1a   :  { %s10252_s20 = scalar_lea.vmem %s24_s12, 115200  ;;  %p10257_p12 = scmp.lt.s32.totalorder %s24_s12, %s24_s12 }
  0x1b   :  { %p10253_p11 = scmp.ne.s32.totalorder %s24_s12, %s10252_s20  ;;  %p10258_p13 = scmp.lt.s32.totalorder %s10252_s20, %s10252_s20 }
  0x1d   :  { %p10259_p0 = por %p10258_p13, %p10257_p12 }
  0x1f   :  { %p10260_p1 = pnand %p10259_p0, %p10253_p11 }
  0x21   :  { %10263 = shalt.err (!%p10260_p1)
}
  0x22   :  { %s10318_s3 = smov 256   ;;  %s10319_s21 = smov 16  }
  0x23   :  { %29 = dma.hbm_to_vmem [thread:$0]  %s10646_s2, 115200, %s24_s12, [#allocation3], %s10318_s3, %s10318_s3, %s10319_s21  }
  0x24   :  { %s10320_s24 = smov [#allocation6]   ;;  %s10321_s26 = smov [#allocation7]  }
  0x25   :  { %s47_s25 = sshll.u32 %s10320_s24, 4  ;;  %s60_s27 = sshll.u32 %s10321_s26, 4  ;;  %s48_s25 = int_to_ptr.vmem [resolvable:$true] %s47_s25  ;;  %s61_s27 = int_to_ptr.vmem [resolvable:$true] %s60_s27 }
  0x26   :  { %s10264_s30 = scalar_lea.hbm %s10648_s4, 3072 }
  0x27   :  { %p10265_p2 = scmp.ne.s32.totalorder %s10648_s4, %s10264_s30  ;;  %p10268_p3 = scmp.lt.u32.totalorder %s10264_s30, %s10648_s4 }
  0x29   :  { %p10270_p4 = pnand %p10268_p3, %p10265_p2 }
  0x2b   :  { %10273 = shalt.err (!%p10270_p4)
}
  0x2c   :  { %s10274_s2 = scalar_lea.vmem %s48_s25, 3072  ;;  %p10279_p6 = scmp.lt.s32.totalorder %s48_s25, %s48_s25 }
  0x2d   :  { %p10275_p5 = scmp.ne.s32.totalorder %s48_s25, %s10274_s2  ;;  %p10280_p7 = scmp.lt.s32.totalorder %s10274_s2, %s10274_s2 }
  0x2f   :  { %p10281_p8 = por %p10280_p7, %p10279_p6 }
  0x31   :  { %p10282_p9 = pnand %p10281_p8, %p10275_p5 }
  0x33   :  { %10285 = shalt.err (!%p10282_p9)
}
  0x34   :  { %53 = dma.hbm_to_vmem [thread:$0]  %s10648_s4, 3072, %s48_s25, [#allocation5], %s10315_s7, %s10315_s7, %s10316_s8  }
  0x35   :  { %s10286_s17 = scalar_lea.hbm %s10649_s5, 512 }
  0x36   :  { %p10287_p10 = scmp.ne.s32.totalorder %s10649_s5, %s10286_s17  ;;  %p10290_p11 = scmp.lt.u32.totalorder %s10286_s17, %s10649_s5 }
  0x38   :  { %p10292_p12 = pnand %p10290_p11, %p10287_p10 }
  0x3a   :  { %10295 = shalt.err (!%p10292_p12)
}
  0x3b   :  { %s10296_s21 = scalar_lea.vmem %s61_s27, 512  ;;  %p10301_p0 = scmp.lt.s32.totalorder %s61_s27, %s61_s27 }
  0x3c   :  { %p10297_p13 = scmp.ne.s32.totalorder %s61_s27, %s10296_s21  ;;  %p10302_p1 = scmp.lt.s32.totalorder %s10296_s21, %s10296_s21 }
  0x3e   :  { %p10303_p2 = por %p10302_p1, %p10301_p0 }
  0x40   :  { %p10304_p3 = pnand %p10303_p2, %p10297_p13 }
  0x42   :  { %10307 = shalt.err (!%p10304_p3)
}
  0x43   :  { %63 = dma.hbm_to_vmem [thread:$0]  %s10649_s5, 512, %s61_s27, [#allocation8]  }
  0x44   :  { %10308 = dma.done.wait [#allocation3], 115200  }
  0x45   :  { %10309 = vsyncadd [#allocation3], 4294852096 }
  0x46   :  { %10310 = dma.done.wait [#allocation5], 7168  }
  0x47   :  { %10311 = vsyncadd [#allocation5], 4294960128 }
  0x48   :  { %10312 = dma.done.wait [#allocation8], 512  }
  0x49   :  { %10313 = vsyncadd [#allocation8], 4294966784  ;;  %v10322_v0 = vmov 0   ;;  %v8814_v1 = vld [vmem:[#allocation2 + $0x4] ss:$16 sps:$4 sm:$0xff]   ;;  %v187_v7 = vld [vmem:[%s10644_s0 + $0x1c8] sm:$0xff] }
  0x4a   :  { %6276 = vmatprep.mubr.bf16.mxu1 %v10322_v0  ;;  %v8816_v2 = vld [vmem:[#allocation2 + $0x1c04] ss:$16 sps:$4 sm:$0xff]   ;;  %5642 = vmatprep.subr.bf16.mxu0 %v8814_v1  ;;  %v8818_v3 = vld [vmem:[#allocation2] ss:$16 sps:$4 sm:$0xff]   ;;  %vm5638_vm0 = vcmask 130048   ;;  %v131_v52 = vld [vmem:[%s10644_s0 + $0x8] sm:$0xff] }
  0x4b   :  { %v8819_v4 = vld [vmem:[#allocation2 + $0x1c00] ss:$16 sps:$4 sm:$0xff]   ;;  %6244 = vmatprep.subr.bf16.mxu1 %v8816_v2  ;;  %v8820_v5 = vld [vmem:[#allocation2 + $0x24] ss:$16 sps:$4 sm:$0xff]   ;;  %5643 = vmatpush1.bf16.msra.mxu0 %v8818_v3  ;;  %v8822_v9 = vld [vmem:[#allocation2 + $0x8] ss:$16 sps:$4 sm:$0xff]  }
  0x4c   :  { %v158_v6 = vld [vmem:[%s10644_s0 + $0xe0] sm:$0xff]  ;;  %6245 = vmatpush1.bf16.msra.mxu1 %v8819_v4  ;;  %5644 = vmatprep.subr.bf16.mxu0 %v8820_v5  ;;  %v8824_v10 = vld [vmem:[#allocation2 + $0xc] ss:$16 sps:$4 sm:$0xff]   ;;  %v8828_v13 = vld [vmem:[#allocation2 + $0x28] ss:$16 sps:$4 sm:$0xff]   ;;  %vm10324_vm1 = vmmov 0  }
  0x4d   :  { %v10421_v8 = vpack.c.bf16 %v187_v7, %v158_v6  ;;  %v8825_v11 = vld [vmem:[#allocation2 + $0x20] ss:$16 sps:$4 sm:$0xff]   ;;  %v8826_v12 = vld [vmem:[#allocation2 + $0x44] ss:$16 sps:$4 sm:$0xff]   ;;  %6287 = vmatprep.subr.bf16.mxu1 %v8824_v10  ;;  %v8830_v14 = vld [vmem:[#allocation2 + $0x2c] ss:$16 sps:$4 sm:$0xff]  }
  0x4e   :  { %v8831_v15 = vld [vmem:[#allocation2 + $0x40] ss:$16 sps:$4 sm:$0xff]   ;;  %v8832_v16 = vld [vmem:[#allocation2 + $0x64] ss:$16 sps:$4 sm:$0xff]   ;;  %v8836_v17 = vld [vmem:[#allocation2 + $0x4c] ss:$16 sps:$4 sm:$0xff]  }
  0x4f   :  { %8481 = vmatmul.mubr.msk.bf16.vlgmr.msra.gmra.mrb[0].mxu1 %vm5638_vm0, %v10421_v8  ;;  %5645 = vmatpush1.bf16.msra.mxu0 %v8825_v11  ;;  %v8834_v18 = vld [vmem:[#allocation2 + $0x48] ss:$16 sps:$4 sm:$0xff]   ;;  %v8837_v19 = vld [vmem:[#allocation2 + $0x60] ss:$16 sps:$4 sm:$0xff]   ;;  %v8838_v20 = vld [vmem:[#allocation2 + $0x84] ss:$16 sps:$4 sm:$0xff]  }
  0x50   :  { %6288 = vmatpush1.bf16.msra.mxu1 %v8822_v9  ;;  %5646 = vmatprep.subr.bf16.mxu0 %v8826_v12  ;;  %v8842_v21 = vld [vmem:[#allocation2 + $0x6c] ss:$16 sps:$4 sm:$0xff]   ;;  %v8840_v22 = vld [vmem:[#allocation2 + $0x68] ss:$16 sps:$4 sm:$0xff]   ;;  %v8843_v23 = vld [vmem:[#allocation2 + $0x80] ss:$16 sps:$4 sm:$0xff]  }
  0x51   :  { %6289 = vmatprep.subr.bf16.mxu1 %v8830_v14  ;;  %v8844_v24 = vld [vmem:[#allocation2 + $0xa4] ss:$16 sps:$4 sm:$0xff]   ;;  %v8848_v25 = vld [vmem:[#allocation2 + $0x8c] ss:$16 sps:$4 sm:$0xff]   ;;  %v8846_v26 = vld [vmem:[#allocation2 + $0x88] ss:$16 sps:$4 sm:$0xff]  }
  0x52   :  { %v8849_v27 = vld [vmem:[#allocation2 + $0xa0] ss:$16 sps:$4 sm:$0xff]   ;;  %v8850_v28 = vld [vmem:[#allocation2 + $0xc4] ss:$16 sps:$4 sm:$0xff]   ;;  %v8854_v29 = vld [vmem:[#allocation2 + $0xac] ss:$16 sps:$4 sm:$0xff]  }
  0x53   :  { %5647 = vmatpush1.bf16.msra.mxu0 %v8831_v15  ;;  %v8852_v30 = vld [vmem:[#allocation2 + $0xa8] ss:$16 sps:$4 sm:$0xff]   ;;  %v8855_v31 = vld [vmem:[#allocation2 + $0xc0] ss:$16 sps:$4 sm:$0xff]   ;;  %v8856_v32 = vld [vmem:[#allocation2 + $0xe4] ss:$16 sps:$4 sm:$0xff]  }
  0x54   :  { %6290 = vmatpush1.bf16.msra.mxu1 %v8828_v13  ;;  %5648 = vmatprep.subr.bf16.mxu0 %v8832_v16  ;;  %v8860_v33 = vld [vmem:[#allocation2 + $0xcc] ss:$16 sps:$4 sm:$0xff]   ;;  %v8858_v34 = vld [vmem:[#allocation2 + $0xc8] ss:$16 sps:$4 sm:$0xff]   ;;  %v8861_v35 = vld [vmem:[#allocation2 + $0xe0] ss:$16 sps:$4 sm:$0xff]  }
  0x55   :  { %6291 = vmatprep.subr.bf16.mxu1 %v8836_v17  ;;  %v8862_v36 = vld [vmem:[#allocation2 + $0x104] ss:$16 sps:$4 sm:$0xff]   ;;  %v8866_v37 = vld [vmem:[#allocation2 + $0xec] ss:$16 sps:$4 sm:$0xff]   ;;  %v8864_v38 = vld [vmem:[#allocation2 + $0xe8] ss:$16 sps:$4 sm:$0xff]  }
  0x56   :  { %v8867_v39 = vld [vmem:[#allocation2 + $0x100] ss:$16 sps:$4 sm:$0xff]   ;;  %v8868_v40 = vld [vmem:[#allocation2 + $0x124] ss:$16 sps:$4 sm:$0xff]   ;;  %v8872_v41 = vld [vmem:[#allocation2 + $0x10c] ss:$16 sps:$4 sm:$0xff]  }
  0x57   :  { %5649 = vmatpush1.bf16.msra.mxu0 %v8837_v19  ;;  %v8870_v42 = vld [vmem:[#allocation2 + $0x108] ss:$16 sps:$4 sm:$0xff]   ;;  %v8873_v43 = vld [vmem:[#allocation2 + $0x120] ss:$16 sps:$4 sm:$0xff]   ;;  %v8874_v44 = vld [vmem:[#allocation2 + $0x144] ss:$16 sps:$4 sm:$0xff]  }
  0x58   :  { %6292 = vmatpush1.bf16.msra.mxu1 %v8834_v18  ;;  %5650 = vmatprep.subr.bf16.mxu0 %v8838_v20  ;;  %v8878_v45 = vld [vmem:[#allocation2 + $0x12c] ss:$16 sps:$4 sm:$0xff]   ;;  %v8876_v46 = vld [vmem:[#allocation2 + $0x128] ss:$16 sps:$4 sm:$0xff]   ;;  %v8879_v47 = vld [vmem:[#allocation2 + $0x140] ss:$16 sps:$4 sm:$0xff]  }
  0x59   :  { %6293 = vmatprep.subr.bf16.mxu1 %v8842_v21  ;;  %v8880_v48 = vld [vmem:[#allocation2 + $0x164] ss:$16 sps:$4 sm:$0xff]   ;;  %v8884_v49 = vld [vmem:[#allocation2 + $0x14c] ss:$16 sps:$4 sm:$0xff]   ;;  %v8882_v50 = vld [vmem:[#allocation2 + $0x148] ss:$16 sps:$4 sm:$0xff]  }
  0x5a   :  { %v8885_v51 = vld [vmem:[#allocation2 + $0x160] ss:$16 sps:$4 sm:$0xff]   ;;  %v8886_v54 = vld [vmem:[#allocation2 + $0x184] ss:$16 sps:$4 sm:$0xff]   ;;  %v8890_v56 = vld [vmem:[#allocation2 + $0x16c] ss:$16 sps:$4 sm:$0xff]  }
  0x5b   :  { %5651 = vmatpush1.bf16.msra.mxu0 %v8843_v23  ;;  %v160_v53 = vld [vmem:[%s10644_s0 + $0xf0] sm:$0xff]  ;;  %v8888_v57 = vld [vmem:[#allocation2 + $0x168] ss:$16 sps:$4 sm:$0xff]   ;;  %v8896_v60 = vld [vmem:[#allocation2 + $0x18c] ss:$16 sps:$4 sm:$0xff]  }
  0x5c   :  { %6294 = vmatpush1.bf16.msra.mxu1 %v8840_v22  ;;  %5652 = vmatprep.subr.bf16.mxu0 %v8844_v24  ;;  %v189_v55 = vpack.c.bf16 %v160_v53, %v131_v52  ;;  %v8891_v58 = vld [vmem:[#allocation2 + $0x180] ss:$16 sps:$4 sm:$0xff]   ;;  %v8892_v59 = vld [vmem:[#allocation2 + $0x1a4] ss:$16 sps:$4 sm:$0xff]   ;;  %v8894_v61 = vld [vmem:[#allocation2 + $0x188] ss:$16 sps:$4 sm:$0xff]  }
  0x5d   :  { %6295 = vmatprep.subr.bf16.mxu1 %v8848_v25  ;;  %v8897_v62 = vld [vmem:[#allocation2 + $0x1a0] ss:$16 sps:$4 sm:$0xff]   ;;  %v8898_v63 = vld [vmem:[#allocation2 + $0x1c4] ss:$16 sps:$4 sm:$0xff]   ;;  %v8902_v1 = vld [vmem:[#allocation2 + $0x1ac] ss:$16 sps:$4 sm:$0xff]  }
  0x5e   :  { %5674 = vmatprep.mubr.bf16.mxu0 %v189_v55  ;;  %6319 = vmatprep.mubr.bf16.mxu1 %v189_v55  ;;  %v8900_v2 = vld [vmem:[#allocation2 + $0x1a8] ss:$16 sps:$4 sm:$0xff]   ;;  %v8903_v3 = vld [vmem:[#allocation2 + $0x1c0] ss:$16 sps:$4 sm:$0xff]   ;;  %v8904_v4 = vld [vmem:[#allocation2 + $0x1e4] ss:$16 sps:$4 sm:$0xff]  }
  0x5f   :  { %5653 = vmatpush1.bf16.msra.mxu0 %v8849_v27  ;;  %v8908_v5 = vld [vmem:[#allocation2 + $0x1cc] ss:$16 sps:$4 sm:$0xff]   ;;  %v8906_v6 = vld [vmem:[#allocation2 + $0x1c8] ss:$16 sps:$4 sm:$0xff]   ;;  %v8909_v7 = vld [vmem:[#allocation2 + $0x1e0] ss:$16 sps:$4 sm:$0xff]  }
  0x60   :  { %6296 = vmatpush1.bf16.msra.mxu1 %v8846_v26  ;;  %5654 = vmatprep.subr.bf16.mxu0 %v8850_v28  ;;  %v130_v9 = vld [vmem:[%s10644_s0] sm:$0xff]  ;;  %v159_v10 = vld [vmem:[%s10644_s0 + $0xe8] sm:$0xff] }
  0x61   :  { %6297 = vmatprep.subr.bf16.mxu1 %v8854_v29  ;;  %v8912_v11 = vld [vmem:[#allocation2 + $0x204] ss:$16 sps:$4 sm:$0xff]   ;;  %v8915_v12 = vld [vmem:[#allocation2 + $0x1ec] ss:$16 sps:$4 sm:$0xff]   ;;  %v188_v13 = vpack.c.bf16 %v159_v10, %v130_v9  ;;  %v8910_v14 = vld [vmem:[#allocation2 + $0x200] ss:$16 sps:$4 sm:$0xff]  }
  0x62   :  { %v8913_v15 = vld [vmem:[#allocation2 + $0x1e8] ss:$16 sps:$4 sm:$0xff]   ;;  %v8918_v16 = vld [vmem:[#allocation2 + $0x224] ss:$16 sps:$4 sm:$0xff]   ;;  %v8921_v17 = vld [vmem:[#allocation2 + $0x20c] ss:$16 sps:$4 sm:$0xff]  }
  0x63   :  { %5655 = vmatpush1.bf16.msra.mxu0 %v8855_v31  ;;  %v8916_v18 = vld [vmem:[#allocation2 + $0x220] ss:$16 sps:$4 sm:$0xff]   ;;  %v8919_v19 = vld [vmem:[#allocation2 + $0x208] ss:$16 sps:$4 sm:$0xff]   ;;  %v8924_v20 = vld [vmem:[#allocation2 + $0x244] ss:$16 sps:$4 sm:$0xff]  }
  0x64   :  { %6298 = vmatpush1.bf16.msra.mxu1 %v8852_v30  ;;  %5656 = vmatprep.subr.bf16.mxu0 %v8856_v32  ;;  %v8927_v21 = vld [vmem:[#allocation2 + $0x22c] ss:$16 sps:$4 sm:$0xff]   ;;  %v8922_v22 = vld [vmem:[#allocation2 + $0x240] ss:$16 sps:$4 sm:$0xff]   ;;  %v8925_v23 = vld [vmem:[#allocation2 + $0x228] ss:$16 sps:$4 sm:$0xff]  }
  0x65   :  { %6299 = vmatprep.subr.bf16.mxu1 %v8860_v33  ;;  %v8930_v24 = vld [vmem:[#allocation2 + $0x264] ss:$16 sps:$4 sm:$0xff]   ;;  %v8933_v25 = vld [vmem:[#allocation2 + $0x24c] ss:$16 sps:$4 sm:$0xff]   ;;  %v8928_v26 = vld [vmem:[#allocation2 + $0x260] ss:$16 sps:$4 sm:$0xff]  }
  0x66   :  { %v8931_v27 = vld [vmem:[#allocation2 + $0x248] ss:$16 sps:$4 sm:$0xff]   ;;  %v8936_v28 = vld [vmem:[#allocation2 + $0x284] ss:$16 sps:$4 sm:$0xff]   ;;  %v8939_v29 = vld [vmem:[#allocation2 + $0x26c] ss:$16 sps:$4 sm:$0xff]  }
  0x67   :  { %5657 = vmatpush1.bf16.msra.mxu0 %v8861_v35  ;;  %v8934_v30 = vld [vmem:[#allocation2 + $0x280] ss:$16 sps:$4 sm:$0xff]   ;;  %v8937_v31 = vld [vmem:[#allocation2 + $0x268] ss:$16 sps:$4 sm:$0xff]   ;;  %v8942_v32 = vld [vmem:[#allocation2 + $0x2a4] ss:$16 sps:$4 sm:$0xff]  }
  0x68   :  { %6300 = vmatpush1.bf16.msra.mxu1 %v8858_v34  ;;  %5658 = vmatprep.subr.bf16.mxu0 %v8862_v36  ;;  %v8945_v33 = vld [vmem:[#allocation2 + $0x28c] ss:$16 sps:$4 sm:$0xff]   ;;  %v8940_v34 = vld [vmem:[#allocation2 + $0x2a0] ss:$16 sps:$4 sm:$0xff]   ;;  %v8943_v35 = vld [vmem:[#allocation2 + $0x288] ss:$16 sps:$4 sm:$0xff]  }
  0x69   :  { %6301 = vmatprep.subr.bf16.mxu1 %v8866_v37  ;;  %v8948_v36 = vld [vmem:[#allocation2 + $0x2c4] ss:$16 sps:$4 sm:$0xff]   ;;  %v8951_v37 = vld [vmem:[#allocation2 + $0x2ac] ss:$16 sps:$4 sm:$0xff]   ;;  %v8964_v53 = vld [vmem:[#allocation2 + $0x320] ss:$16 sps:$4 sm:$0xff]  }
  0x6a   :  { %v8969_v52 = vld [vmem:[#allocation2 + $0x30c] ss:$16 sps:$4 sm:$0xff]   ;;  %v8972_v55 = vld [vmem:[#allocation2 + $0x344] ss:$16 sps:$4 sm:$0xff]  }
  0x6b   :  { %5659 = vmatpush1.bf16.msra.mxu0 %v8867_v39  ;;  %v8949_v39 = vld [vmem:[#allocation2 + $0x2a8] ss:$16 sps:$4 sm:$0xff]   ;;  %v8996_v9 = vld [vmem:[#allocation2 + $0x3c4] ss:$16 sps:$4 sm:$0xff]   ;;  %v8999_v10 = vld [vmem:[#allocation2 + $0x3ac] ss:$16 sps:$4 sm:$0xff]  }
  0x6c   :  { %6302 = vmatpush1.bf16.msra.mxu1 %v8864_v38  ;;  %5660 = vmatprep.subr.bf16.mxu0 %v8868_v40  ;;  %v8946_v38 = vld [vmem:[#allocation2 + $0x2c0] ss:$16 sps:$4 sm:$0xff]   ;;  %v133_v40 = vld [vmem:[%s10644_s0 + $0x18] sm:$0xff] }
  0x6d   :  { %6303 = vmatprep.subr.bf16.mxu1 %v8872_v41  ;;  %v162_v41 = vld [vmem:[%s10644_s0 + $0x100] sm:$0xff] }
  0x6f   :  { %5661 = vmatpush1.bf16.msra.mxu0 %v8873_v43  ;;  %v191_v43 = vpack.c.bf16 %v162_v41, %v133_v40  ;;  %v9035_v40 = vld [vmem:[#allocation2 + $0x46c] ss:$16 sps:$4 sm:$0xff]   ;;  %v9030_v41 = vld [vmem:[#allocation2 + $0x480] ss:$16 sps:$4 sm:$0xff]  }
  0x70   :  { %6304 = vmatpush1.bf16.msra.mxu1 %v8870_v42  ;;  %5662 = vmatprep.subr.bf16.mxu0 %v8874_v44  ;;  %v8954_v42 = vld [vmem:[#allocation2 + $0x2e4] ss:$16 sps:$4 sm:$0xff]   ;;  %v8957_v44 = vld [vmem:[#allocation2 + $0x2cc] ss:$16 sps:$4 sm:$0xff]  }
  0x71   :  { %6305 = vmatprep.subr.bf16.mxu1 %v8878_v45  ;;  %v8952_v45 = vld [vmem:[#allocation2 + $0x2e0] ss:$16 sps:$4 sm:$0xff]  }
  0x73   :  { %5663 = vmatpush1.bf16.msra.mxu0 %v8879_v47  ;;  %v8960_v47 = vld [vmem:[#allocation2 + $0x304] ss:$16 sps:$4 sm:$0xff]  }
  0x74   :  { %6306 = vmatpush1.bf16.msra.mxu1 %v8876_v46  ;;  %5664 = vmatprep.subr.bf16.mxu0 %v8880_v48  ;;  %v8955_v46 = vld [vmem:[#allocation2 + $0x2c8] ss:$16 sps:$4 sm:$0xff]   ;;  %v8963_v48 = vld [vmem:[#allocation2 + $0x2ec] ss:$16 sps:$4 sm:$0xff]  }
  0x75   :  { %6307 = vmatprep.subr.bf16.mxu1 %v8884_v49  ;;  %v8958_v49 = vld [vmem:[#allocation2 + $0x300] ss:$16 sps:$4 sm:$0xff]  }
  0x77   :  { %5665 = vmatpush1.bf16.msra.mxu0 %v8885_v51  ;;  %v8966_v51 = vld [vmem:[#allocation2 + $0x324] ss:$16 sps:$4 sm:$0xff]  }
  0x78   :  { %6308 = vmatpush1.bf16.msra.mxu1 %v8882_v50  ;;  %5666 = vmatprep.subr.bf16.mxu0 %v8886_v54  ;;  %v8961_v50 = vld [vmem:[#allocation2 + $0x2e8] ss:$16 sps:$4 sm:$0xff]  }
  0x79   :  { %6309 = vmatprep.subr.bf16.mxu1 %v8890_v56  ;;  %v8967_v54 = vld [vmem:[#allocation2 + $0x308] ss:$16 sps:$4 sm:$0xff]   ;;  %v8975_v56 = vld [vmem:[#allocation2 + $0x32c] ss:$16 sps:$4 sm:$0xff]  }
  0x7b   :  { %5667 = vmatpush1.bf16.msra.mxu0 %v8891_v58  ;;  %v8973_v58 = vld [vmem:[#allocation2 + $0x328] ss:$16 sps:$4 sm:$0xff]  }
  0x7c   :  { %6310 = vmatpush1.bf16.msra.mxu1 %v8888_v57  ;;  %5668 = vmatprep.subr.bf16.mxu0 %v8892_v59  ;;  %v8970_v57 = vld [vmem:[#allocation2 + $0x340] ss:$16 sps:$4 sm:$0xff]   ;;  %v8978_v59 = vld [vmem:[#allocation2 + $0x364] ss:$16 sps:$4 sm:$0xff]  }
  0x7d   :  { %6311 = vmatprep.subr.bf16.mxu1 %v8896_v60  ;;  %v8981_v60 = vld [vmem:[#allocation2 + $0x34c] ss:$16 sps:$4 sm:$0xff]  }
  0x7f   :  { %5669 = vmatpush1.bf16.msra.mxu0 %v8897_v62  ;;  %v8979_v62 = vld [vmem:[#allocation2 + $0x348] ss:$16 sps:$4 sm:$0xff]  }
  0x80   :  { %6312 = vmatpush1.bf16.msra.mxu1 %v8894_v61  ;;  %5670 = vmatprep.subr.bf16.mxu0 %v8898_v63  ;;  %v8976_v61 = vld [vmem:[#allocation2 + $0x360] ss:$16 sps:$4 sm:$0xff]   ;;  %v8984_v63 = vld [vmem:[#allocation2 + $0x384] ss:$16 sps:$4 sm:$0xff]  }
  0x81   :  { %6313 = vmatprep.subr.bf16.mxu1 %v8902_v1  ;;  %v8987_v1 = vld [vmem:[#allocation2 + $0x36c] ss:$16 sps:$4 sm:$0xff]  }
  0x83   :  { %5671 = vmatpush1.bf16.msra.mxu0 %v8903_v3  ;;  %v8985_v3 = vld [vmem:[#allocation2 + $0x368] ss:$16 sps:$4 sm:$0xff]  }
  0x84   :  { %6314 = vmatpush1.bf16.msra.mxu1 %v8900_v2  ;;  %5672 = vmatprep.subr.bf16.mxu0 %v8904_v4  ;;  %v8982_v2 = vld [vmem:[#allocation2 + $0x380] ss:$16 sps:$4 sm:$0xff]   ;;  %v8990_v4 = vld [vmem:[#allocation2 + $0x3a4] ss:$16 sps:$4 sm:$0xff]  }
  0x85   :  { %6315 = vmatprep.subr.bf16.mxu1 %v8908_v5  ;;  %v8993_v5 = vld [vmem:[#allocation2 + $0x38c] ss:$16 sps:$4 sm:$0xff]  }
  0x87   :  { %5673 = vmatpush1.bf16.msra.mxu0 %v8909_v7  ;;  %v8991_v7 = vld [vmem:[#allocation2 + $0x388] ss:$16 sps:$4 sm:$0xff]  }
  0x88   :  { %6316 = vmatpush1.bf16.msra.mxu1 %v8906_v6  ;;  %5685 = vmatprep.subr.bf16.mxu0 %v8912_v11  ;;  %v8988_v6 = vld [vmem:[#allocation2 + $0x3a0] ss:$16 sps:$4 sm:$0xff]  }
  0x89   :  { %6317 = vmatprep.subr.bf16.mxu1 %v8915_v12  ;;  %v8994_v11 = vld [vmem:[#allocation2 + $0x3c0] ss:$16 sps:$4 sm:$0xff]   ;;  %v8997_v12 = vld [vmem:[#allocation2 + $0x3a8] ss:$16 sps:$4 sm:$0xff]  }
  0x8a   :  { %5675 = vmatmul.mubr.bf16.vlgmr.msra.gmra.mrb[0].mxu0 %v188_v13 }
  0x8b   :  { %5686 = vmatpush1.bf16.msra.mxu0 %v8910_v14  ;;  %5717 = vmatprep.mubr.bf16.mxu0 %v191_v43  ;;  %v9005_v14 = vld [vmem:[#allocation2 + $0x3cc] ss:$16 sps:$4 sm:$0xff]  }
  0x8c   :  { %6318 = vmatpush1.bf16.msra.mxu1 %v8913_v15  ;;  %5687 = vmatprep.subr.bf16.mxu0 %v8918_v16  ;;  %v9000_v15 = vld [vmem:[#allocation2 + $0x3e0] ss:$16 sps:$4 sm:$0xff]   ;;  %v9003_v16 = vld [vmem:[#allocation2 + $0x3c8] ss:$16 sps:$4 sm:$0xff]  }
  0x8d   :  { %6330 = vmatprep.subr.bf16.mxu1 %v8921_v17  ;;  %v132_v17 = vld [vmem:[%s10644_s0 + $0x10] sm:$0xff] }
  0x8f   :  { %6320 = vmatmul.mubr.bf16.vlgmr.msra.gmra.mrb[4].mxu1 %v188_v13  ;;  %5688 = vmatpush1.bf16.msra.mxu0 %v8916_v18  ;;  %v9002_v13 = vld [vmem:[#allocation2 + $0x3e4] ss:$16 sps:$4 sm:$0xff]   ;;  %v161_v18 = vld [vmem:[%s10644_s0 + $0xf8] sm:$0xff] }
  0x90   :  { %6331 = vmatpush1.bf16.msra.mxu1 %v8919_v19  ;;  %5689 = vmatprep.subr.bf16.mxu0 %v8924_v20  ;;  %v9008_v19 = vld [vmem:[#allocation2 + $0x404] ss:$16 sps:$4 sm:$0xff]   ;;  %v9011_v20 = vld [vmem:[#allocation2 + $0x3ec] ss:$16 sps:$4 sm:$0xff]  }
  0x91   :  { %6332 = vmatprep.subr.bf16.mxu1 %v8927_v21  ;;  %6362 = vmatprep.mubr.bf16.mxu1 %v191_v43  ;;  %v190_v21 = vpack.c.bf16 %v161_v18, %v132_v17  ;;  %v9038_v43 = vld [vmem:[#allocation2 + $0x4a4] ss:$16 sps:$4 sm:$0xff]   ;;  %v9095_v18 = vld [vmem:[#allocation2 + $0x5ac] ss:$16 sps:$4 sm:$0xff]  }
  0x92   :  { %v9092_v17 = vld [vmem:[#allocation2 + $0x5c4] ss:$16 sps:$4 sm:$0xff]  }
  0x93   :  { %5690 = vmatpush1.bf16.msra.mxu0 %v8922_v22  ;;  %v9006_v22 = vld [vmem:[#allocation2 + $0x400] ss:$16 sps:$4 sm:$0xff]  }
  0x94   :  { %6333 = vmatpush1.bf16.msra.mxu1 %v8925_v23  ;;  %5691 = vmatprep.subr.bf16.mxu0 %v8930_v24  ;;  %v9009_v23 = vld [vmem:[#allocation2 + $0x3e8] ss:$16 sps:$4 sm:$0xff]   ;;  %v9014_v24 = vld [vmem:[#allocation2 + $0x424] ss:$16 sps:$4 sm:$0xff]  }
  0x95   :  { %6334 = vmatprep.subr.bf16.mxu1 %v8933_v25  ;;  %v9017_v25 = vld [vmem:[#allocation2 + $0x40c] ss:$16 sps:$4 sm:$0xff]  }
  0x97   :  { %5692 = vmatpush1.bf16.msra.mxu0 %v8928_v26  ;;  %v9012_v26 = vld [vmem:[#allocation2 + $0x420] ss:$16 sps:$4 sm:$0xff]  }
  0x98   :  { %6335 = vmatpush1.bf16.msra.mxu1 %v8931_v27  ;;  %5693 = vmatprep.subr.bf16.mxu0 %v8936_v28  ;;  %v9015_v27 = vld [vmem:[#allocation2 + $0x408] ss:$16 sps:$4 sm:$0xff]  }
  0x99   :  { %6336 = vmatprep.subr.bf16.mxu1 %v8939_v29  ;;  %v135_v28 = vld [vmem:[%s10644_s0 + $0x28] sm:$0xff]  ;;  %v164_v29 = vld [vmem:[%s10644_s0 + $0x110] sm:$0xff] }
  0x9b   :  { %5694 = vmatpush1.bf16.msra.mxu0 %v8934_v30  ;;  %v9020_v30 = vld [vmem:[#allocation2 + $0x444] ss:$16 sps:$4 sm:$0xff]  }
  0x9c   :  { %6337 = vmatpush1.bf16.msra.mxu1 %v8937_v31  ;;  %5695 = vmatprep.subr.bf16.mxu0 %v8942_v32  ;;  %v193_v31 = vpack.c.bf16 %v164_v29, %v135_v28  ;;  %v9023_v32 = vld [vmem:[#allocation2 + $0x42c] ss:$16 sps:$4 sm:$0xff]  }
  0x9d   :  { %6338 = vmatprep.subr.bf16.mxu1 %v8945_v33  ;;  %v9018_v33 = vld [vmem:[#allocation2 + $0x440] ss:$16 sps:$4 sm:$0xff]   ;;  %v9107_v28 = vld [vmem:[#allocation2 + $0x5ec] ss:$16 sps:$4 sm:$0xff]  }
  0x9e   :  { %v137_v29 = vld [vmem:[%s10644_s0 + $0x38] sm:$0xff] }
  0x9f   :  { %5696 = vmatpush1.bf16.msra.mxu0 %v8940_v34  ;;  %v9021_v34 = vld [vmem:[#allocation2 + $0x428] ss:$16 sps:$4 sm:$0xff]  }
  0xa0   :  { %6339 = vmatpush1.bf16.msra.mxu1 %v8943_v35  ;;  %5697 = vmatprep.subr.bf16.mxu0 %v8948_v36  ;;  %v9026_v35 = vld [vmem:[#allocation2 + $0x464] ss:$16 sps:$4 sm:$0xff]   ;;  %v9029_v36 = vld [vmem:[#allocation2 + $0x44c] ss:$16 sps:$4 sm:$0xff]  }
  0xa1   :  { %6340 = vmatprep.subr.bf16.mxu1 %v8951_v37  ;;  %v9024_v37 = vld [vmem:[#allocation2 + $0x460] ss:$16 sps:$4 sm:$0xff]  }
  0xa3   :  { %5698 = vmatpush1.bf16.msra.mxu0 %v8946_v38  ;;  %v9027_v38 = vld [vmem:[#allocation2 + $0x448] ss:$16 sps:$4 sm:$0xff]  }
  0xa4   :  { %6341 = vmatpush1.bf16.msra.mxu1 %v8949_v39  ;;  %5699 = vmatprep.subr.bf16.mxu0 %v8954_v42  ;;  %v9032_v39 = vld [vmem:[#allocation2 + $0x484] ss:$16 sps:$4 sm:$0xff]   ;;  %v9033_v42 = vld [vmem:[#allocation2 + $0x468] ss:$16 sps:$4 sm:$0xff]  }
  0xa5   :  { %6342 = vmatprep.subr.bf16.mxu1 %v8957_v44  ;;  %v9041_v44 = vld [vmem:[#allocation2 + $0x48c] ss:$16 sps:$4 sm:$0xff]  }
  0xa7   :  { %5700 = vmatpush1.bf16.msra.mxu0 %v8952_v45  ;;  %v9036_v45 = vld [vmem:[#allocation2 + $0x4a0] ss:$16 sps:$4 sm:$0xff]  }
  0xa8   :  { %6343 = vmatpush1.bf16.msra.mxu1 %v8955_v46  ;;  %5701 = vmatprep.subr.bf16.mxu0 %v8960_v47  ;;  %v9039_v46 = vld [vmem:[#allocation2 + $0x488] ss:$16 sps:$4 sm:$0xff]   ;;  %v9044_v47 = vld [vmem:[#allocation2 + $0x4c4] ss:$16 sps:$4 sm:$0xff]  }
  0xa9   :  { %6344 = vmatprep.subr.bf16.mxu1 %v8963_v48  ;;  %v9047_v48 = vld [vmem:[#allocation2 + $0x4ac] ss:$16 sps:$4 sm:$0xff]  }
  0xab   :  { %5702 = vmatpush1.bf16.msra.mxu0 %v8958_v49  ;;  %v9042_v49 = vld [vmem:[#allocation2 + $0x4c0] ss:$16 sps:$4 sm:$0xff]  }
  0xac   :  { %6345 = vmatpush1.bf16.msra.mxu1 %v8961_v50  ;;  %5703 = vmatprep.subr.bf16.mxu0 %v8966_v51  ;;  %v9045_v50 = vld [vmem:[#allocation2 + $0x4a8] ss:$16 sps:$4 sm:$0xff]   ;;  %v9050_v51 = vld [vmem:[#allocation2 + $0x4e4] ss:$16 sps:$4 sm:$0xff]  }
  0xad   :  { %6346 = vmatprep.subr.bf16.mxu1 %v8969_v52  ;;  %v9053_v52 = vld [vmem:[#allocation2 + $0x4cc] ss:$16 sps:$4 sm:$0xff]  }
  0xaf   :  { %5704 = vmatpush1.bf16.msra.mxu0 %v8964_v53  ;;  %v9048_v53 = vld [vmem:[#allocation2 + $0x4e0] ss:$16 sps:$4 sm:$0xff]  }
  0xb0   :  { %6347 = vmatpush1.bf16.msra.mxu1 %v8967_v54  ;;  %5705 = vmatprep.subr.bf16.mxu0 %v8972_v55  ;;  %v9051_v54 = vld [vmem:[#allocation2 + $0x4c8] ss:$16 sps:$4 sm:$0xff]   ;;  %v9056_v55 = vld [vmem:[#allocation2 + $0x504] ss:$16 sps:$4 sm:$0xff]  }
  0xb1   :  { %6348 = vmatprep.subr.bf16.mxu1 %v8975_v56  ;;  %v9059_v56 = vld [vmem:[#allocation2 + $0x4ec] ss:$16 sps:$4 sm:$0xff]  }
  0xb3   :  { %5706 = vmatpush1.bf16.msra.mxu0 %v8970_v57  ;;  %v9054_v57 = vld [vmem:[#allocation2 + $0x500] ss:$16 sps:$4 sm:$0xff]  }
  0xb4   :  { %6349 = vmatpush1.bf16.msra.mxu1 %v8973_v58  ;;  %5707 = vmatprep.subr.bf16.mxu0 %v8978_v59  ;;  %v9057_v58 = vld [vmem:[#allocation2 + $0x4e8] ss:$16 sps:$4 sm:$0xff]   ;;  %v9062_v59 = vld [vmem:[#allocation2 + $0x524] ss:$16 sps:$4 sm:$0xff]  }
  0xb5   :  { %6350 = vmatprep.subr.bf16.mxu1 %v8981_v60  ;;  %v9065_v60 = vld [vmem:[#allocation2 + $0x50c] ss:$16 sps:$4 sm:$0xff]  }
  0xb7   :  { %5708 = vmatpush1.bf16.msra.mxu0 %v8976_v61  ;;  %v9060_v61 = vld [vmem:[#allocation2 + $0x520] ss:$16 sps:$4 sm:$0xff]  }
  0xb8   :  { %6351 = vmatpush1.bf16.msra.mxu1 %v8979_v62  ;;  %5709 = vmatprep.subr.bf16.mxu0 %v8984_v63  ;;  %v9063_v62 = vld [vmem:[#allocation2 + $0x508] ss:$16 sps:$4 sm:$0xff]   ;;  %v9068_v63 = vld [vmem:[#allocation2 + $0x544] ss:$16 sps:$4 sm:$0xff]  }
  0xb9   :  { %6352 = vmatprep.subr.bf16.mxu1 %v8987_v1  ;;  %v9071_v1 = vld [vmem:[#allocation2 + $0x52c] ss:$16 sps:$4 sm:$0xff]  }
  0xbb   :  { %5710 = vmatpush1.bf16.msra.mxu0 %v8982_v2  ;;  %v9066_v2 = vld [vmem:[#allocation2 + $0x540] ss:$16 sps:$4 sm:$0xff]  }
  0xbc   :  { %6353 = vmatpush1.bf16.msra.mxu1 %v8985_v3  ;;  %5711 = vmatprep.subr.bf16.mxu0 %v8990_v4  ;;  %v9069_v3 = vld [vmem:[#allocation2 + $0x528] ss:$16 sps:$4 sm:$0xff]   ;;  %v9074_v4 = vld [vmem:[#allocation2 + $0x564] ss:$16 sps:$4 sm:$0xff]  }
  0xbd   :  { %6354 = vmatprep.subr.bf16.mxu1 %v8993_v5  ;;  %v9077_v5 = vld [vmem:[#allocation2 + $0x54c] ss:$16 sps:$4 sm:$0xff]  }
  0xbf   :  { %5712 = vmatpush1.bf16.msra.mxu0 %v8988_v6  ;;  %v9072_v6 = vld [vmem:[#allocation2 + $0x560] ss:$16 sps:$4 sm:$0xff]  }
  0xc0   :  { %6355 = vmatpush1.bf16.msra.mxu1 %v8991_v7  ;;  %5713 = vmatprep.subr.bf16.mxu0 %v8996_v9  ;;  %v9075_v7 = vld [vmem:[#allocation2 + $0x548] ss:$16 sps:$4 sm:$0xff]   ;;  %v9080_v9 = vld [vmem:[#allocation2 + $0x584] ss:$16 sps:$4 sm:$0xff]  }
  0xc1   :  { %6356 = vmatprep.subr.bf16.mxu1 %v8999_v10  ;;  %v9083_v10 = vld [vmem:[#allocation2 + $0x56c] ss:$16 sps:$4 sm:$0xff]  }
  0xc3   :  { %5714 = vmatpush1.bf16.msra.mxu0 %v8994_v11  ;;  %v9078_v11 = vld [vmem:[#allocation2 + $0x580] ss:$16 sps:$4 sm:$0xff]  }
  0xc4   :  { %6357 = vmatpush1.bf16.msra.mxu1 %v8997_v12  ;;  %5715 = vmatprep.subr.bf16.mxu0 %v9002_v13  ;;  %v9081_v12 = vld [vmem:[#allocation2 + $0x568] ss:$16 sps:$4 sm:$0xff]   ;;  %v9086_v13 = vld [vmem:[#allocation2 + $0x5a4] ss:$16 sps:$4 sm:$0xff]  }
  0xc5   :  { %6358 = vmatprep.subr.bf16.mxu1 %v9005_v14  ;;  %v9089_v14 = vld [vmem:[#allocation2 + $0x58c] ss:$16 sps:$4 sm:$0xff]  }
  0xc7   :  { %5716 = vmatpush1.bf16.msra.mxu0 %v9000_v15  ;;  %v9084_v15 = vld [vmem:[#allocation2 + $0x5a0] ss:$16 sps:$4 sm:$0xff]  }
  0xc8   :  { %6359 = vmatpush1.bf16.msra.mxu1 %v9003_v16  ;;  %5728 = vmatprep.subr.bf16.mxu0 %v9008_v19  ;;  %v9087_v16 = vld [vmem:[#allocation2 + $0x588] ss:$16 sps:$4 sm:$0xff]   ;;  %v9090_v19 = vld [vmem:[#allocation2 + $0x5c0] ss:$16 sps:$4 sm:$0xff]  }
  0xc9   :  { %6360 = vmatprep.subr.bf16.mxu1 %v9011_v20  ;;  %v9093_v20 = vld [vmem:[#allocation2 + $0x5a8] ss:$16 sps:$4 sm:$0xff]  }
  0xca   :  { %5718 = vmatmul.mubr.bf16.vlgmr.msra.gmra.mrb[0].mxu0 %v190_v21 }
  0xcb   :  { %5729 = vmatpush1.bf16.msra.mxu0 %v9006_v22  ;;  %5760 = vmatprep.mubr.bf16.mxu0 %v193_v31  ;;  %v9101_v22 = vld [vmem:[#allocation2 + $0x5cc] ss:$16 sps:$4 sm:$0xff]  }
  0xcc   :  { %6361 = vmatpush1.bf16.msra.mxu1 %v9009_v23  ;;  %5730 = vmatprep.subr.bf16.mxu0 %v9014_v24  ;;  %v9096_v23 = vld [vmem:[#allocation2 + $0x5e0] ss:$16 sps:$4 sm:$0xff]   ;;  %v9099_v24 = vld [vmem:[#allocation2 + $0x5c8] ss:$16 sps:$4 sm:$0xff]  }
  0xcd   :  { %6373 = vmatprep.subr.bf16.mxu1 %v9017_v25  ;;  %v134_v25 = vld [vmem:[%s10644_s0 + $0x20] sm:$0xff] }
  0xcf   :  { %6363 = vmatmul.mubr.bf16.vlgmr.msra.gmra.mrb[4].mxu1 %v190_v21  ;;  %5731 = vmatpush1.bf16.msra.mxu0 %v9012_v26  ;;  %v9098_v21 = vld [vmem:[#allocation2 + $0x5e4] ss:$16 sps:$4 sm:$0xff]   ;;  %v163_v26 = vld [vmem:[%s10644_s0 + $0x108] sm:$0xff] }
  0xd0   :  { %6374 = vmatpush1.bf16.msra.mxu1 %v9015_v27  ;;  %5732 = vmatprep.subr.bf16.mxu0 %v9020_v30  ;;  %v9104_v27 = vld [vmem:[#allocation2 + $0x604] ss:$16 sps:$4 sm:$0xff]   ;;  %v192_v30 = vpack.c.bf16 %v163_v26, %v134_v25  ;;  %v9185_v26 = vld [vmem:[#allocation2 + $0x78c] ss:$16 sps:$4 sm:$0xff]  }
  0xd1   :  { %6375 = vmatprep.subr.bf16.mxu1 %v9023_v32  ;;  %6405 = vmatprep.mubr.bf16.mxu1 %v193_v31  ;;  %v166_v31 = vld [vmem:[%s10644_s0 + $0x120] sm:$0xff] }
  0xd2   :  { %v9102_v32 = vld [vmem:[#allocation2 + $0x600] ss:$16 sps:$4 sm:$0xff]   ;;  %v9182_v25 = vld [vmem:[#allocation2 + $0x7a4] ss:$16 sps:$4 sm:$0xff]  }
  0xd3   :  { %5733 = vmatpush1.bf16.msra.mxu0 %v9018_v33  ;;  %v9105_v33 = vld [vmem:[#allocation2 + $0x5e8] ss:$16 sps:$4 sm:$0xff]  }
  0xd4   :  { %6376 = vmatpush1.bf16.msra.mxu1 %v9021_v34  ;;  %5734 = vmatprep.subr.bf16.mxu0 %v9026_v35  ;;  %v9110_v34 = vld [vmem:[#allocation2 + $0x624] ss:$16 sps:$4 sm:$0xff]   ;;  %v9113_v35 = vld [vmem:[#allocation2 + $0x60c] ss:$16 sps:$4 sm:$0xff]  }
  0xd5   :  { %6377 = vmatprep.subr.bf16.mxu1 %v9029_v36  ;;  %v195_v36 = vpack.c.bf16 %v166_v31, %v137_v29  ;;  %v9188_v29 = vld [vmem:[#allocation2 + $0x7c4] ss:$16 sps:$4 sm:$0xff]   ;;  %v9186_v31 = vld [vmem:[#allocation2 + $0x7c0] ss:$16 sps:$4 sm:$0xff]  }
  0xd7   :  { %5735 = vmatpush1.bf16.msra.mxu0 %v9024_v37  ;;  %v9108_v37 = vld [vmem:[#allocation2 + $0x620] ss:$16 sps:$4 sm:$0xff]  }
  0xd8   :  { %6378 = vmatpush1.bf16.msra.mxu1 %v9027_v38  ;;  %5736 = vmatprep.subr.bf16.mxu0 %v9032_v39  ;;  %v9111_v38 = vld [vmem:[#allocation2 + $0x608] ss:$16 sps:$4 sm:$0xff]   ;;  %v9116_v39 = vld [vmem:[#allocation2 + $0x644] ss:$16 sps:$4 sm:$0xff]  }
  0xd9   :  { %6379 = vmatprep.subr.bf16.mxu1 %v9035_v40  ;;  %v9119_v40 = vld [vmem:[#allocation2 + $0x62c] ss:$16 sps:$4 sm:$0xff]  }
  0xdb   :  { %5737 = vmatpush1.bf16.msra.mxu0 %v9030_v41  ;;  %v9114_v41 = vld [vmem:[#allocation2 + $0x640] ss:$16 sps:$4 sm:$0xff]  }
  0xdc   :  { %6380 = vmatpush1.bf16.msra.mxu1 %v9033_v42  ;;  %5738 = vmatprep.subr.bf16.mxu0 %v9038_v43  ;;  %v9117_v42 = vld [vmem:[#allocation2 + $0x628] ss:$16 sps:$4 sm:$0xff]   ;;  %v9122_v43 = vld [vmem:[#allocation2 + $0x664] ss:$16 sps:$4 sm:$0xff]  }
  0xdd   :  { %6381 = vmatprep.subr.bf16.mxu1 %v9041_v44  ;;  %v9125_v44 = vld [vmem:[#allocation2 + $0x64c] ss:$16 sps:$4 sm:$0xff]  }
  0xdf   :  { %5739 = vmatpush1.bf16.msra.mxu0 %v9036_v45  ;;  %v9120_v45 = vld [vmem:[#allocation2 + $0x660] ss:$16 sps:$4 sm:$0xff]  }
  0xe0   :  { %6382 = vmatpush1.bf16.msra.mxu1 %v9039_v46  ;;  %5740 = vmatprep.subr.bf16.mxu0 %v9044_v47  ;;  %v9123_v46 = vld [vmem:[#allocation2 + $0x648] ss:$16 sps:$4 sm:$0xff]   ;;  %v9128_v47 = vld [vmem:[#allocation2 + $0x684] ss:$16 sps:$4 sm:$0xff]  }
  0xe1   :  { %6383 = vmatprep.subr.bf16.mxu1 %v9047_v48  ;;  %v9131_v48 = vld [vmem:[#allocation2 + $0x66c] ss:$16 sps:$4 sm:$0xff]  }
  0xe3   :  { %5741 = vmatpush1.bf16.msra.mxu0 %v9042_v49  ;;  %v9126_v49 = vld [vmem:[#allocation2 + $0x680] ss:$16 sps:$4 sm:$0xff]  }
  0xe4   :  { %6384 = vmatpush1.bf16.msra.mxu1 %v9045_v50  ;;  %5742 = vmatprep.subr.bf16.mxu0 %v9050_v51  ;;  %v9129_v50 = vld [vmem:[#allocation2 + $0x668] ss:$16 sps:$4 sm:$0xff]   ;;  %v9134_v51 = vld [vmem:[#allocation2 + $0x6a4] ss:$16 sps:$4 sm:$0xff]  }
  0xe5   :  { %6385 = vmatprep.subr.bf16.mxu1 %v9053_v52  ;;  %v9137_v52 = vld [vmem:[#allocation2 + $0x68c] ss:$16 sps:$4 sm:$0xff]  }
  0xe7   :  { %5743 = vmatpush1.bf16.msra.mxu0 %v9048_v53  ;;  %v9132_v53 = vld [vmem:[#allocation2 + $0x6a0] ss:$16 sps:$4 sm:$0xff]  }
  0xe8   :  { %6386 = vmatpush1.bf16.msra.mxu1 %v9051_v54  ;;  %5744 = vmatprep.subr.bf16.mxu0 %v9056_v55  ;;  %v9135_v54 = vld [vmem:[#allocation2 + $0x688] ss:$16 sps:$4 sm:$0xff]   ;;  %v9140_v55 = vld [vmem:[#allocation2 + $0x6c4] ss:$16 sps:$4 sm:$0xff]  }
  0xe9   :  { %6387 = vmatprep.subr.bf16.mxu1 %v9059_v56  ;;  %v9143_v56 = vld [vmem:[#allocation2 + $0x6ac] ss:$16 sps:$4 sm:$0xff]  }
  0xeb   :  { %5745 = vmatpush1.bf16.msra.mxu0 %v9054_v57  ;;  %v9138_v57 = vld [vmem:[#allocation2 + $0x6c0] ss:$16 sps:$4 sm:$0xff]  }
  0xec   :  { %6388 = vmatpush1.bf16.msra.mxu1 %v9057_v58  ;;  %5746 = vmatprep.subr.bf16.mxu0 %v9062_v59  ;;  %v9141_v58 = vld [vmem:[#allocation2 + $0x6a8] ss:$16 sps:$4 sm:$0xff]   ;;  %v9146_v59 = vld [vmem:[#allocation2 + $0x6e4] ss:$16 sps:$4 sm:$0xff]  }
  0xed   :  { %6389 = vmatprep.subr.bf16.mxu1 %v9065_v60  ;;  %v9149_v60 = vld [vmem:[#allocation2 + $0x6cc] ss:$16 sps:$4 sm:$0xff]  }
  0xef   :  { %5747 = vmatpush1.bf16.msra.mxu0 %v9060_v61 }
  0xf0   :  { %6390 = vmatpush1.bf16.msra.mxu1 %v9063_v62  ;;  %5748 = vmatprep.subr.bf16.mxu0 %v9068_v63  ;;  %v9144_v63 = vld [vmem:[#allocation2 + $0x6e0] ss:$16 sps:$4 sm:$0xff]  }
  0xf1   :  { %6391 = vmatprep.subr.bf16.mxu1 %v9071_v1  ;;  %v9147_v1 = vld [vmem:[#allocation2 + $0x6c8] ss:$16 sps:$4 sm:$0xff]  }
  0xf3   :  { %5749 = vmatpush1.bf16.msra.mxu0 %v9066_v2 }
  0xf4   :  { %6392 = vmatpush1.bf16.msra.mxu1 %v9069_v3  ;;  %5750 = vmatprep.subr.bf16.mxu0 %v9074_v4  ;;  %v9152_v3 = vld [vmem:[#allocation2 + $0x704] ss:$16 sps:$4 sm:$0xff]  }
  0xf5   :  { %6393 = vmatprep.subr.bf16.mxu1 %v9077_v5  ;;  %v9155_v5 = vld [vmem:[#allocation2 + $0x6ec] ss:$16 sps:$4 sm:$0xff]  }
  0xf7   :  { %5751 = vmatpush1.bf16.msra.mxu0 %v9072_v6  ;;  %v9150_v6 = vld [vmem:[#allocation2 + $0x700] ss:$16 sps:$4 sm:$0xff]  }
  0xf8   :  { %6394 = vmatpush1.bf16.msra.mxu1 %v9075_v7  ;;  %5752 = vmatprep.subr.bf16.mxu0 %v9080_v9  ;;  %v9153_v7 = vld [vmem:[#allocation2 + $0x6e8] ss:$16 sps:$4 sm:$0xff]   ;;  %v9158_v9 = vld [vmem:[#allocation2 + $0x724] ss:$16 sps:$4 sm:$0xff]  }
  0xf9   :  { %6395 = vmatprep.subr.bf16.mxu1 %v9083_v10  ;;  %v9161_v10 = vld [vmem:[#allocation2 + $0x70c] ss:$16 sps:$4 sm:$0xff]  }
  0xfb   :  { %5753 = vmatpush1.bf16.msra.mxu0 %v9078_v11  ;;  %v9156_v11 = vld [vmem:[#allocation2 + $0x720] ss:$16 sps:$4 sm:$0xff]  }
  0xfc   :  { %6396 = vmatpush1.bf16.msra.mxu1 %v9081_v12  ;;  %5754 = vmatprep.subr.bf16.mxu0 %v9086_v13  ;;  %v9159_v12 = vld [vmem:[#allocation2 + $0x708] ss:$16 sps:$4 sm:$0xff]   ;;  %v9164_v13 = vld [vmem:[#allocation2 + $0x744] ss:$16 sps:$4 sm:$0xff]  }
  0xfd   :  { %6397 = vmatprep.subr.bf16.mxu1 %v9089_v14  ;;  %v9167_v14 = vld [vmem:[#allocation2 + $0x72c] ss:$16 sps:$4 sm:$0xff]  }
  0xff   :  { %5755 = vmatpush1.bf16.msra.mxu0 %v9084_v15  ;;  %v9162_v15 = vld [vmem:[#allocation2 + $0x740] ss:$16 sps:$4 sm:$0xff]  }
 0x100   :  { %6398 = vmatpush1.bf16.msra.mxu1 %v9087_v16  ;;  %5756 = vmatprep.subr.bf16.mxu0 %v9092_v17  ;;  %v9165_v16 = vld [vmem:[#allocation2 + $0x728] ss:$16 sps:$4 sm:$0xff]   ;;  %v9170_v17 = vld [vmem:[#allocation2 + $0x764] ss:$16 sps:$4 sm:$0xff]  }
 0x101   :  { %6399 = vmatprep.subr.bf16.mxu1 %v9095_v18  ;;  %v9173_v18 = vld [vmem:[#allocation2 + $0x74c] ss:$16 sps:$4 sm:$0xff]  }
 0x103   :  { %5757 = vmatpush1.bf16.msra.mxu0 %v9090_v19  ;;  %v9168_v19 = vld [vmem:[#allocation2 + $0x760] ss:$16 sps:$4 sm:$0xff]  }
 0x104   :  { %6400 = vmatpush1.bf16.msra.mxu1 %v9093_v20  ;;  %5758 = vmatprep.subr.bf16.mxu0 %v9098_v21  ;;  %v9171_v20 = vld [vmem:[#allocation2 + $0x748] ss:$16 sps:$4 sm:$0xff]   ;;  %v9176_v21 = vld [vmem:[#allocation2 + $0x784] ss:$16 sps:$4 sm:$0xff]  }
 0x105   :  { %6401 = vmatprep.subr.bf16.mxu1 %v9101_v22  ;;  %v9179_v22 = vld [vmem:[#allocation2 + $0x76c] ss:$16 sps:$4 sm:$0xff]  }
 0x107   :  { %5759 = vmatpush1.bf16.msra.mxu0 %v9096_v23  ;;  %v9174_v23 = vld [vmem:[#allocation2 + $0x780] ss:$16 sps:$4 sm:$0xff]  }
 0x108   :  { %6402 = vmatpush1.bf16.msra.mxu1 %v9099_v24  ;;  %5771 = vmatprep.subr.bf16.mxu0 %v9104_v27  ;;  %v9177_v24 = vld [vmem:[#allocation2 + $0x768] ss:$16 sps:$4 sm:$0xff]   ;;  %v9180_v27 = vld [vmem:[#allocation2 + $0x7a0] ss:$16 sps:$4 sm:$0xff]  }
 0x109   :  { %6403 = vmatprep.subr.bf16.mxu1 %v9107_v28  ;;  %v9183_v28 = vld [vmem:[#allocation2 + $0x788] ss:$16 sps:$4 sm:$0xff]  }
 0x10a   :  { %5761 = vmatmul.mubr.bf16.vlgmr.msra.gmra.mrb[0].mxu0 %v192_v30 }
 0x10b   :  { %5772 = vmatpush1.bf16.msra.mxu0 %v9102_v32  ;;  %5803 = vmatprep.mubr.bf16.mxu0 %v195_v36  ;;  %v9189_v32 = vld [vmem:[#allocation2 + $0x7a8] ss:$16 sps:$4 sm:$0xff]  }
 0x10c   :  { %6404 = vmatpush1.bf16.msra.mxu1 %v9105_v33  ;;  %5773 = vmatprep.subr.bf16.mxu0 %v9110_v34  ;;  %v9194_v33 = vld [vmem:[#allocation2 + $0x7e4] ss:$16 sps:$4 sm:$0xff]   ;;  %v9197_v34 = vld [vmem:[#allocation2 + $0x7cc] ss:$16 sps:$4 sm:$0xff]  }
 0x10d   :  { %6416 = vmatprep.subr.bf16.mxu1 %v9113_v35  ;;  %v9192_v35 = vld [vmem:[#allocation2 + $0x7e0] ss:$16 sps:$4 sm:$0xff]  }
 0x10f   :  { %6406 = vmatmul.mubr.bf16.vlgmr.msra.gmra.mrb[4].mxu1 %v192_v30  ;;  %5774 = vmatpush1.bf16.msra.mxu0 %v9108_v37  ;;  %v9191_v30 = vld [vmem:[#allocation2 + $0x7ac] ss:$16 sps:$4 sm:$0xff]   ;;  %v136_v37 = vld [vmem:[%s10644_s0 + $0x30] sm:$0xff] }
 0x110   :  { %6417 = vmatpush1.bf16.msra.mxu1 %v9111_v38  ;;  %5775 = vmatprep.subr.bf16.mxu0 %v9116_v39  ;;  %v165_v38 = vld [vmem:[%s10644_s0 + $0x118] sm:$0xff]  ;;  %v9200_v39 = vld [vmem:[#allocation2 + $0x804] ss:$16 sps:$4 sm:$0xff]  }
 0x111   :  { %6418 = vmatprep.subr.bf16.mxu1 %v9119_v40  ;;  %6448 = vmatprep.mubr.bf16.mxu1 %v195_v36  ;;  %v9195_v36 = vld [vmem:[#allocation2 + $0x7c8] ss:$16 sps:$4 sm:$0xff]   ;;  %v9203_v40 = vld [vmem:[#allocation2 + $0x7ec] ss:$16 sps:$4 sm:$0xff]  }
 0x113   :  { %5776 = vmatpush1.bf16.msra.mxu0 %v9114_v41  ;;  %v139_v41 = vld [vmem:[%s10644_s0 + $0x48] sm:$0xff] }
 0x114   :  { %6419 = vmatpush1.bf16.msra.mxu1 %v9117_v42  ;;  %5777 = vmatprep.subr.bf16.mxu0 %v9122_v43  ;;  %v194_v42 = vpack.c.bf16 %v165_v38, %v136_v37  ;;  %v168_v43 = vld [vmem:[%s10644_s0 + $0x130] sm:$0xff]  ;;  %v9281_v38 = vld [vmem:[#allocation2 + $0x98c] ss:$16 sps:$4 sm:$0xff]  }
 0x115   :  { %6420 = vmatprep.subr.bf16.mxu1 %v9125_v44  ;;  %v9198_v44 = vld [vmem:[#allocation2 + $0x800] ss:$16 sps:$4 sm:$0xff]   ;;  %v9278_v37 = vld [vmem:[#allocation2 + $0x9a4] ss:$16 sps:$4 sm:$0xff]  }
 0x117   :  { %5778 = vmatpush1.bf16.msra.mxu0 %v9120_v45  ;;  %v9201_v45 = vld [vmem:[#allocation2 + $0x7e8] ss:$16 sps:$4 sm:$0xff]  }
 0x118   :  { %6421 = vmatpush1.bf16.msra.mxu1 %v9123_v46  ;;  %5779 = vmatprep.subr.bf16.mxu0 %v9128_v47  ;;  %v9206_v46 = vld [vmem:[#allocation2 + $0x824] ss:$16 sps:$4 sm:$0xff]   ;;  %v9209_v47 = vld [vmem:[#allocation2 + $0x80c] ss:$16 sps:$4 sm:$0xff]  }
 0x119   :  { %6422 = vmatprep.subr.bf16.mxu1 %v9131_v48  ;;  %v197_v48 = vpack.c.bf16 %v168_v43, %v139_v41  ;;  %v9284_v41 = vld [vmem:[#allocation2 + $0x9c4] ss:$16 sps:$4 sm:$0xff]   ;;  %v9282_v43 = vld [vmem:[#allocation2 + $0x9c0] ss:$16 sps:$4 sm:$0xff]  }
 0x11b   :  { %5780 = vmatpush1.bf16.msra.mxu0 %v9126_v49  ;;  %v9204_v49 = vld [vmem:[#allocation2 + $0x820] ss:$16 sps:$4 sm:$0xff]  }
 0x11c   :  { %6423 = vmatpush1.bf16.msra.mxu1 %v9129_v50  ;;  %5781 = vmatprep.subr.bf16.mxu0 %v9134_v51  ;;  %v9207_v50 = vld [vmem:[#allocation2 + $0x808] ss:$16 sps:$4 sm:$0xff]   ;;  %v9212_v51 = vld [vmem:[#allocation2 + $0x844] ss:$16 sps:$4 sm:$0xff]  }
 0x11d   :  { %6424 = vmatprep.subr.bf16.mxu1 %v9137_v52  ;;  %v9215_v52 = vld [vmem:[#allocation2 + $0x82c] ss:$16 sps:$4 sm:$0xff]  }
 0x11f   :  { %5782 = vmatpush1.bf16.msra.mxu0 %v9132_v53  ;;  %v9210_v53 = vld [vmem:[#allocation2 + $0x840] ss:$16 sps:$4 sm:$0xff]  }
 0x120   :  { %6425 = vmatpush1.bf16.msra.mxu1 %v9135_v54  ;;  %5783 = vmatprep.subr.bf16.mxu0 %v9140_v55  ;;  %v9213_v54 = vld [vmem:[#allocation2 + $0x828] ss:$16 sps:$4 sm:$0xff]   ;;  %v9218_v55 = vld [vmem:[#allocation2 + $0x864] ss:$16 sps:$4 sm:$0xff]  }
 0x121   :  { %6426 = vmatprep.subr.bf16.mxu1 %v9143_v56  ;;  %v9221_v56 = vld [vmem:[#allocation2 + $0x84c] ss:$16 sps:$4 sm:$0xff]  }
 0x122   :  { %v10467_v61 = vpop.f32.mrb[0].mxu1 }
 0x123   :  { %v10469_v62 = vpop.f32.mrb[1].mxu1  ;;  %5784 = vmatpush1.bf16.msra.mxu0 %v9138_v57  ;;  %v9216_v57 = vld [vmem:[#allocation2 + $0x860] ss:$16 sps:$4 sm:$0xff]  }
 0x124   :  { %v10471_v2 = vpop.f32.mrb[2].mxu1  ;;  %6427 = vmatpush1.bf16.msra.mxu1 %v9141_v58  ;;  %5785 = vmatprep.subr.bf16.mxu0 %v9146_v59  ;;  %v9219_v58 = vld [vmem:[#allocation2 + $0x848] ss:$16 sps:$4 sm:$0xff]   ;;  %v9224_v59 = vld [vmem:[#allocation2 + $0x884] ss:$16 sps:$4 sm:$0xff]  }
 0x125   :  { %v10473_v4 = vpop.f32.mrb[3].mxu1  ;;  %6428 = vmatprep.subr.bf16.mxu1 %v9149_v60  ;;  %v9227_v60 = vld [vmem:[#allocation2 + $0x86c] ss:$16 sps:$4 sm:$0xff]  }
 0x127   :  { %5786 = vmatpush1.bf16.msra.mxu0 %v9144_v63  ;;  %v9222_v63 = vld [vmem:[#allocation2 + $0x880] ss:$16 sps:$4 sm:$0xff]  }
 0x128   :  { %6429 = vmatpush1.bf16.msra.mxu1 %v9147_v1  ;;  %5787 = vmatprep.subr.bf16.mxu0 %v9152_v3  ;;  %v9225_v1 = vld [vmem:[#allocation2 + $0x868] ss:$16 sps:$4 sm:$0xff]   ;;  %v9230_v3 = vld [vmem:[#allocation2 + $0x8a4] ss:$16 sps:$4 sm:$0xff]  }
 0x129   :  { %6430 = vmatprep.subr.bf16.mxu1 %v9155_v5  ;;  %v9233_v5 = vld [vmem:[#allocation2 + $0x88c] ss:$16 sps:$4 sm:$0xff]  }
 0x12b   :  { %5788 = vmatpush1.bf16.msra.mxu0 %v9150_v6  ;;  %v9228_v6 = vld [vmem:[#allocation2 + $0x8a0] ss:$16 sps:$4 sm:$0xff]  }
 0x12c   :  { %6431 = vmatpush1.bf16.msra.mxu1 %v9153_v7  ;;  %5789 = vmatprep.subr.bf16.mxu0 %v9158_v9  ;;  %v9231_v7 = vld [vmem:[#allocation2 + $0x888] ss:$16 sps:$4 sm:$0xff]   ;;  %v9236_v9 = vld [vmem:[#allocation2 + $0x8c4] ss:$16 sps:$4 sm:$0xff]  }
 0x12d   :  { %6432 = vmatprep.subr.bf16.mxu1 %v9161_v10  ;;  %v9239_v10 = vld [vmem:[#allocation2 + $0x8ac] ss:$16 sps:$4 sm:$0xff]  }
 0x12f   :  { %5790 = vmatpush1.bf16.msra.mxu0 %v9156_v11  ;;  %v9234_v11 = vld [vmem:[#allocation2 + $0x8c0] ss:$16 sps:$4 sm:$0xff]  }
 0x130   :  { %6433 = vmatpush1.bf16.msra.mxu1 %v9159_v12  ;;  %5791 = vmatprep.subr.bf16.mxu0 %v9164_v13  ;;  %v9237_v12 = vld [vmem:[#allocation2 + $0x8a8] ss:$16 sps:$4 sm:$0xff]   ;;  %v9242_v13 = vld [vmem:[#allocation2 + $0x8e4] ss:$16 sps:$4 sm:$0xff]  }
 0x131   :  { %6434 = vmatprep.subr.bf16.mxu1 %v9167_v14  ;;  %v9245_v14 = vld [vmem:[#allocation2 + $0x8cc] ss:$16 sps:$4 sm:$0xff]  }
 0x133   :  { %5792 = vmatpush1.bf16.msra.mxu0 %v9162_v15  ;;  %v9240_v15 = vld [vmem:[#allocation2 + $0x8e0] ss:$16 sps:$4 sm:$0xff]  }
 0x134   :  { %6435 = vmatpush1.bf16.msra.mxu1 %v9165_v16  ;;  %5793 = vmatprep.subr.bf16.mxu0 %v9170_v17  ;;  %v9243_v16 = vld [vmem:[#allocation2 + $0x8c8] ss:$16 sps:$4 sm:$0xff]   ;;  %v9248_v17 = vld [vmem:[#allocation2 + $0x904] ss:$16 sps:$4 sm:$0xff]  }
 0x135   :  { %6436 = vmatprep.subr.bf16.mxu1 %v9173_v18  ;;  %v9251_v18 = vld [vmem:[#allocation2 + $0x8ec] ss:$16 sps:$4 sm:$0xff]  }
 0x137   :  { %5794 = vmatpush1.bf16.msra.mxu0 %v9168_v19  ;;  %v9246_v19 = vld [vmem:[#allocation2 + $0x900] ss:$16 sps:$4 sm:$0xff]  }
 0x138   :  { %6437 = vmatpush1.bf16.msra.mxu1 %v9171_v20  ;;  %5795 = vmatprep.subr.bf16.mxu0 %v9176_v21  ;;  %v9249_v20 = vld [vmem:[#allocation2 + $0x8e8] ss:$16 sps:$4 sm:$0xff]   ;;  %v9254_v21 = vld [vmem:[#allocation2 + $0x924] ss:$16 sps:$4 sm:$0xff]  }
 0x139   :  { %6438 = vmatprep.subr.bf16.mxu1 %v9179_v22  ;;  %v9257_v22 = vld [vmem:[#allocation2 + $0x90c] ss:$16 sps:$4 sm:$0xff]  }
 0x13b   :  { %5796 = vmatpush1.bf16.msra.mxu0 %v9174_v23  ;;  %v9252_v23 = vld [vmem:[#allocation2 + $0x920] ss:$16 sps:$4 sm:$0xff]  }
 0x13c   :  { %6439 = vmatpush1.bf16.msra.mxu1 %v9177_v24  ;;  %5797 = vmatprep.subr.bf16.mxu0 %v9182_v25  ;;  %v9255_v24 = vld [vmem:[#allocation2 + $0x908] ss:$16 sps:$4 sm:$0xff]   ;;  %v9260_v25 = vld [vmem:[#allocation2 + $0x944] ss:$16 sps:$4 sm:$0xff]  }
 0x13d   :  { %6440 = vmatprep.subr.bf16.mxu1 %v9185_v26  ;;  %v9263_v26 = vld [vmem:[#allocation2 + $0x92c] ss:$16 sps:$4 sm:$0xff]  }
 0x13f   :  { %5798 = vmatpush1.bf16.msra.mxu0 %v9180_v27  ;;  %v9258_v27 = vld [vmem:[#allocation2 + $0x940] ss:$16 sps:$4 sm:$0xff]  }
 0x140   :  { %6441 = vmatpush1.bf16.msra.mxu1 %v9183_v28  ;;  %5799 = vmatprep.subr.bf16.mxu0 %v9188_v29  ;;  %v9261_v28 = vld [vmem:[#allocation2 + $0x928] ss:$16 sps:$4 sm:$0xff]   ;;  %v9266_v29 = vld [vmem:[#allocation2 + $0x964] ss:$16 sps:$4 sm:$0xff]  }
 0x141   :  { %6442 = vmatprep.subr.bf16.mxu1 %v9191_v30  ;;  %v9269_v30 = vld [vmem:[#allocation2 + $0x94c] ss:$16 sps:$4 sm:$0xff]  }
 0x143   :  { %5800 = vmatpush1.bf16.msra.mxu0 %v9186_v31  ;;  %v9264_v31 = vld [vmem:[#allocation2 + $0x960] ss:$16 sps:$4 sm:$0xff]  }
 0x144   :  { %6443 = vmatpush1.bf16.msra.mxu1 %v9189_v32  ;;  %5801 = vmatprep.subr.bf16.mxu0 %v9194_v33  ;;  %v9267_v32 = vld [vmem:[#allocation2 + $0x948] ss:$16 sps:$4 sm:$0xff]   ;;  %v9272_v33 = vld [vmem:[#allocation2 + $0x984] ss:$16 sps:$4 sm:$0xff]  }
 0x145   :  { %6444 = vmatprep.subr.bf16.mxu1 %v9197_v34  ;;  %v9275_v34 = vld [vmem:[#allocation2 + $0x96c] ss:$16 sps:$4 sm:$0xff]  }
 0x147   :  { %5802 = vmatpush1.bf16.msra.mxu0 %v9192_v35  ;;  %v9270_v35 = vld [vmem:[#allocation2 + $0x980] ss:$16 sps:$4 sm:$0xff]  }
 0x148   :  { %6445 = vmatpush1.bf16.msra.mxu1 %v9195_v36  ;;  %5814 = vmatprep.subr.bf16.mxu0 %v9200_v39  ;;  %v9273_v36 = vld [vmem:[#allocation2 + $0x968] ss:$16 sps:$4 sm:$0xff]   ;;  %v9276_v39 = vld [vmem:[#allocation2 + $0x9a0] ss:$16 sps:$4 sm:$0xff]  }
 0x149   :  { %6446 = vmatprep.subr.bf16.mxu1 %v9203_v40  ;;  %v9279_v40 = vld [vmem:[#allocation2 + $0x988] ss:$16 sps:$4 sm:$0xff]  }
 0x14a   :  { %5804 = vmatmul.mubr.bf16.vlgmr.msra.gmra.mrb[0].mxu0 %v194_v42 }
 0x14b   :  { %5815 = vmatpush1.bf16.msra.mxu0 %v9198_v44  ;;  %5846 = vmatprep.mubr.bf16.mxu0 %v197_v48  ;;  %v9285_v44 = vld [vmem:[#allocation2 + $0x9a8] ss:$16 sps:$4 sm:$0xff]  }
 0x14c   :  { %6447 = vmatpush1.bf16.msra.mxu1 %v9201_v45  ;;  %5816 = vmatprep.subr.bf16.mxu0 %v9206_v46  ;;  %v9290_v45 = vld [vmem:[#allocation2 + $0x9e4] ss:$16 sps:$4 sm:$0xff]   ;;  %v9293_v46 = vld [vmem:[#allocation2 + $0x9cc] ss:$16 sps:$4 sm:$0xff]  }
 0x14d   :  { %6459 = vmatprep.subr.bf16.mxu1 %v9209_v47  ;;  %v9288_v47 = vld [vmem:[#allocation2 + $0x9e0] ss:$16 sps:$4 sm:$0xff]  }
 0x14f   :  { %6449 = vmatmul.mubr.bf16.vlgmr.msra.gmra.mrb[4].mxu1 %v194_v42  ;;  %5817 = vmatpush1.bf16.msra.mxu0 %v9204_v49  ;;  %v9287_v42 = vld [vmem:[#allocation2 + $0x9ac] ss:$16 sps:$4 sm:$0xff]   ;;  %v9296_v49 = vld [vmem:[#allocation2 + $0xa04] ss:$16 sps:$4 sm:$0xff]  }
 0x150   :  { %6460 = vmatpush1.bf16.msra.mxu1 %v9207_v50  ;;  %5818 = vmatprep.subr.bf16.mxu0 %v9212_v51  ;;  %v9299_v50 = vld [vmem:[#allocation2 + $0x9ec] ss:$16 sps:$4 sm:$0xff]   ;;  %v138_v51 = vld [vmem:[%s10644_s0 + $0x40] sm:$0xff] }
 0x151   :  { %6461 = vmatprep.subr.bf16.mxu1 %v9215_v52  ;;  %6491 = vmatprep.mubr.bf16.mxu1 %v197_v48  ;;  %v9291_v48 = vld [vmem:[#allocation2 + $0x9c8] ss:$16 sps:$4 sm:$0xff]  }
 0x152   :  { %v167_v52 = vld [vmem:[%s10644_s0 + $0x128] sm:$0xff] }
 0x153   :  { %5819 = vmatpush1.bf16.msra.mxu0 %v9210_v53  ;;  %v141_v53 = vld [vmem:[%s10644_s0 + $0x58] sm:$0xff] }
 0x154   :  { %6462 = vmatpush1.bf16.msra.mxu1 %v9213_v54  ;;  %5820 = vmatprep.subr.bf16.mxu0 %v9218_v55  ;;  %v170_v54 = vld [vmem:[%s10644_s0 + $0x140] sm:$0xff]  ;;  %v196_v55 = vpack.c.bf16 %v167_v52, %v138_v51  ;;  %v9375_v52 = vld [vmem:[#allocation2 + $0xb88] ss:$16 sps:$4 sm:$0xff]  }
 0x155   :  { %6463 = vmatprep.subr.bf16.mxu1 %v9221_v56  ;;  %v9294_v56 = vld [vmem:[#allocation2 + $0xa00] ss:$16 sps:$4 sm:$0xff]  }
 0x156   :  { %v9372_v51 = vld [vmem:[#allocation2 + $0xba0] ss:$16 sps:$4 sm:$0xff]  }
 0x157   :  { %5821 = vmatpush1.bf16.msra.mxu0 %v9216_v57  ;;  %v9297_v57 = vld [vmem:[#allocation2 + $0x9e8] ss:$16 sps:$4 sm:$0xff]  }
 0x158   :  { %6464 = vmatpush1.bf16.msra.mxu1 %v9219_v58  ;;  %5822 = vmatprep.subr.bf16.mxu0 %v9224_v59  ;;  %v9302_v58 = vld [vmem:[#allocation2 + $0xa24] ss:$16 sps:$4 sm:$0xff]   ;;  %v9305_v59 = vld [vmem:[#allocation2 + $0xa0c] ss:$16 sps:$4 sm:$0xff]  }
 0x159   :  { %6465 = vmatprep.subr.bf16.mxu1 %v9227_v60  ;;  %v199_v60 = vpack.c.bf16 %v170_v54, %v141_v53  ;;  %v9380_v53 = vld [vmem:[#allocation2 + $0xbc4] ss:$16 sps:$4 sm:$0xff]   ;;  %v9383_v54 = vld [vmem:[#allocation2 + $0xbac] ss:$16 sps:$4 sm:$0xff]  }
 0x15b   :  { %5823 = vmatpush1.bf16.msra.mxu0 %v9222_v63  ;;  %v9300_v63 = vld [vmem:[#allocation2 + $0xa20] ss:$16 sps:$4 sm:$0xff]  }
 0x15c   :  { %6466 = vmatpush1.bf16.msra.mxu1 %v9225_v1  ;;  %5824 = vmatprep.subr.bf16.mxu0 %v9230_v3  ;;  %v9303_v1 = vld [vmem:[#allocation2 + $0xa08] ss:$16 sps:$4 sm:$0xff]   ;;  %v9308_v3 = vld [vmem:[#allocation2 + $0xa44] ss:$16 sps:$4 sm:$0xff]  }
 0x15d   :  { %6467 = vmatprep.subr.bf16.mxu1 %v9233_v5  ;;  %v9311_v5 = vld [vmem:[#allocation2 + $0xa2c] ss:$16 sps:$4 sm:$0xff]  }
 0x15f   :  { %5825 = vmatpush1.bf16.msra.mxu0 %v9228_v6  ;;  %v9306_v6 = vld [vmem:[#allocation2 + $0xa40] ss:$16 sps:$4 sm:$0xff]  }
 0x160   :  { %6468 = vmatpush1.bf16.msra.mxu1 %v9231_v7  ;;  %5826 = vmatprep.subr.bf16.mxu0 %v9236_v9  ;;  %v9309_v7 = vld [vmem:[#allocation2 + $0xa28] ss:$16 sps:$4 sm:$0xff]   ;;  %v9314_v9 = vld [vmem:[#allocation2 + $0xa64] ss:$16 sps:$4 sm:$0xff]  }
 0x161   :  { %6469 = vmatprep.subr.bf16.mxu1 %v9239_v10  ;;  %v9317_v10 = vld [vmem:[#allocation2 + $0xa4c] ss:$16 sps:$4 sm:$0xff]  }
 0x163   :  { %5827 = vmatpush1.bf16.msra.mxu0 %v9234_v11  ;;  %v9312_v11 = vld [vmem:[#allocation2 + $0xa60] ss:$16 sps:$4 sm:$0xff]  }
 0x164   :  { %6470 = vmatpush1.bf16.msra.mxu1 %v9237_v12  ;;  %5828 = vmatprep.subr.bf16.mxu0 %v9242_v13  ;;  %v9315_v12 = vld [vmem:[#allocation2 + $0xa48] ss:$16 sps:$4 sm:$0xff]   ;;  %v9320_v13 = vld [vmem:[#allocation2 + $0xa84] ss:$16 sps:$4 sm:$0xff]  }
 0x165   :  { %6471 = vmatprep.subr.bf16.mxu1 %v9245_v14  ;;  %v9323_v14 = vld [vmem:[#allocation2 + $0xa6c] ss:$16 sps:$4 sm:$0xff]  }
 0x167   :  { %5829 = vmatpush1.bf16.msra.mxu0 %v9240_v15  ;;  %v9318_v15 = vld [vmem:[#allocation2 + $0xa80] ss:$16 sps:$4 sm:$0xff]  }
 0x168   :  { %6472 = vmatpush1.bf16.msra.mxu1 %v9243_v16  ;;  %5830 = vmatprep.subr.bf16.mxu0 %v9248_v17  ;;  %v9321_v16 = vld [vmem:[#allocation2 + $0xa68] ss:$16 sps:$4 sm:$0xff]   ;;  %v9326_v17 = vld [vmem:[#allocation2 + $0xaa4] ss:$16 sps:$4 sm:$0xff]  }
 0x169   :  { %6473 = vmatprep.subr.bf16.mxu1 %v9251_v18  ;;  %v9329_v18 = vld [vmem:[#allocation2 + $0xa8c] ss:$16 sps:$4 sm:$0xff]  }
 0x16b   :  { %5831 = vmatpush1.bf16.msra.mxu0 %v9246_v19  ;;  %v9324_v19 = vld [vmem:[#allocation2 + $0xaa0] ss:$16 sps:$4 sm:$0xff]  }
 0x16c   :  { %6474 = vmatpush1.bf16.msra.mxu1 %v9249_v20  ;;  %5832 = vmatprep.subr.bf16.mxu0 %v9254_v21  ;;  %v9327_v20 = vld [vmem:[#allocation2 + $0xa88] ss:$16 sps:$4 sm:$0xff]   ;;  %v9332_v21 = vld [vmem:[#allocation2 + $0xac4] ss:$16 sps:$4 sm:$0xff]  }
 0x16d   :  { %6475 = vmatprep.subr.bf16.mxu1 %v9257_v22  ;;  %v9335_v22 = vld [vmem:[#allocation2 + $0xaac] ss:$16 sps:$4 sm:$0xff]  }
 0x16f   :  { %5833 = vmatpush1.bf16.msra.mxu0 %v9252_v23  ;;  %v9330_v23 = vld [vmem:[#allocation2 + $0xac0] ss:$16 sps:$4 sm:$0xff]  }
 0x170   :  { %6476 = vmatpush1.bf16.msra.mxu1 %v9255_v24  ;;  %5834 = vmatprep.subr.bf16.mxu0 %v9260_v25  ;;  %v9333_v24 = vld [vmem:[#allocation2 + $0xaa8] ss:$16 sps:$4 sm:$0xff]   ;;  %v9338_v25 = vld [vmem:[#allocation2 + $0xae4] ss:$16 sps:$4 sm:$0xff]  }
 0x171   :  { %6477 = vmatprep.subr.bf16.mxu1 %v9263_v26  ;;  %v9341_v26 = vld [vmem:[#allocation2 + $0xacc] ss:$16 sps:$4 sm:$0xff]  }
 0x173   :  { %5835 = vmatpush1.bf16.msra.mxu0 %v9258_v27  ;;  %v9336_v27 = vld [vmem:[#allocation2 + $0xae0] ss:$16 sps:$4 sm:$0xff]  }
 0x174   :  { %6478 = vmatpush1.bf16.msra.mxu1 %v9261_v28  ;;  %5836 = vmatprep.subr.bf16.mxu0 %v9266_v29  ;;  %v9339_v28 = vld [vmem:[#allocation2 + $0xac8] ss:$16 sps:$4 sm:$0xff]   ;;  %v9344_v29 = vld [vmem:[#allocation2 + $0xb04] ss:$16 sps:$4 sm:$0xff]  }
 0x175   :  { %6479 = vmatprep.subr.bf16.mxu1 %v9269_v30  ;;  %v9347_v30 = vld [vmem:[#allocation2 + $0xaec] ss:$16 sps:$4 sm:$0xff]  }
 0x177   :  { %5837 = vmatpush1.bf16.msra.mxu0 %v9264_v31  ;;  %v9342_v31 = vld [vmem:[#allocation2 + $0xb00] ss:$16 sps:$4 sm:$0xff]  }
 0x178   :  { %6480 = vmatpush1.bf16.msra.mxu1 %v9267_v32  ;;  %5838 = vmatprep.subr.bf16.mxu0 %v9272_v33  ;;  %v9345_v32 = vld [vmem:[#allocation2 + $0xae8] ss:$16 sps:$4 sm:$0xff]   ;;  %v9350_v33 = vld [vmem:[#allocation2 + $0xb24] ss:$16 sps:$4 sm:$0xff]  }
 0x179   :  { %6481 = vmatprep.subr.bf16.mxu1 %v9275_v34  ;;  %v9353_v34 = vld [vmem:[#allocation2 + $0xb0c] ss:$16 sps:$4 sm:$0xff]  }
 0x17b   :  { %5839 = vmatpush1.bf16.msra.mxu0 %v9270_v35  ;;  %v9348_v35 = vld [vmem:[#allocation2 + $0xb20] ss:$16 sps:$4 sm:$0xff]  }
 0x17c   :  { %6482 = vmatpush1.bf16.msra.mxu1 %v9273_v36  ;;  %5840 = vmatprep.subr.bf16.mxu0 %v9278_v37  ;;  %v9351_v36 = vld [vmem:[#allocation2 + $0xb08] ss:$16 sps:$4 sm:$0xff]   ;;  %v9356_v37 = vld [vmem:[#allocation2 + $0xb44] ss:$16 sps:$4 sm:$0xff]  }
 0x17d   :  { %6483 = vmatprep.subr.bf16.mxu1 %v9281_v38  ;;  %v9359_v38 = vld [vmem:[#allocation2 + $0xb2c] ss:$16 sps:$4 sm:$0xff]  }
 0x17f   :  { %5841 = vmatpush1.bf16.msra.mxu0 %v9276_v39  ;;  %v9354_v39 = vld [vmem:[#allocation2 + $0xb40] ss:$16 sps:$4 sm:$0xff]  }
 0x180   :  { %6484 = vmatpush1.bf16.msra.mxu1 %v9279_v40  ;;  %5842 = vmatprep.subr.bf16.mxu0 %v9284_v41  ;;  %v9357_v40 = vld [vmem:[#allocation2 + $0xb28] ss:$16 sps:$4 sm:$0xff]   ;;  %v9362_v41 = vld [vmem:[#allocation2 + $0xb64] ss:$16 sps:$4 sm:$0xff]  }
 0x181   :  { %6485 = vmatprep.subr.bf16.mxu1 %v9287_v42  ;;  %v9365_v42 = vld [vmem:[#allocation2 + $0xb4c] ss:$16 sps:$4 sm:$0xff]  }
 0x183   :  { %5843 = vmatpush1.bf16.msra.mxu0 %v9282_v43  ;;  %v9360_v43 = vld [vmem:[#allocation2 + $0xb60] ss:$16 sps:$4 sm:$0xff]  }
 0x184   :  { %6486 = vmatpush1.bf16.msra.mxu1 %v9285_v44  ;;  %5844 = vmatprep.subr.bf16.mxu0 %v9290_v45  ;;  %v9363_v44 = vld [vmem:[#allocation2 + $0xb48] ss:$16 sps:$4 sm:$0xff]   ;;  %v9368_v45 = vld [vmem:[#allocation2 + $0xb84] ss:$16 sps:$4 sm:$0xff]  }
 0x185   :  { %6487 = vmatprep.subr.bf16.mxu1 %v9293_v46  ;;  %v9371_v46 = vld [vmem:[#allocation2 + $0xb6c] ss:$16 sps:$4 sm:$0xff]  }
 0x187   :  { %5845 = vmatpush1.bf16.msra.mxu0 %v9288_v47  ;;  %v9366_v47 = vld [vmem:[#allocation2 + $0xb80] ss:$16 sps:$4 sm:$0xff]  }
 0x188   :  { %6488 = vmatpush1.bf16.msra.mxu1 %v9291_v48  ;;  %5857 = vmatprep.subr.bf16.mxu0 %v9296_v49  ;;  %v9369_v48 = vld [vmem:[#allocation2 + $0xb68] ss:$16 sps:$4 sm:$0xff]   ;;  %v9374_v49 = vld [vmem:[#allocation2 + $0xba4] ss:$16 sps:$4 sm:$0xff]  }
 0x189   :  { %6489 = vmatprep.subr.bf16.mxu1 %v9299_v50  ;;  %v9377_v50 = vld [vmem:[#allocation2 + $0xb8c] ss:$16 sps:$4 sm:$0xff]  }
 0x18a   :  { %5847 = vmatmul.mubr.bf16.vlgmr.msra.gmra.mrb[0].mxu0 %v196_v55 }
 0x18b   :  { %5858 = vmatpush1.bf16.msra.mxu0 %v9294_v56  ;;  %5889 = vmatprep.mubr.bf16.mxu0 %v199_v60  ;;  %v9381_v56 = vld [vmem:[#allocation2 + $0xba8] ss:$16 sps:$4 sm:$0xff]  }
 0x18c   :  { %6490 = vmatpush1.bf16.msra.mxu1 %v9297_v57  ;;  %5859 = vmatprep.subr.bf16.mxu0 %v9302_v58  ;;  %v9386_v57 = vld [vmem:[#allocation2 + $0xbe4] ss:$16 sps:$4 sm:$0xff]   ;;  %v9389_v58 = vld [vmem:[#allocation2 + $0xbcc] ss:$16 sps:$4 sm:$0xff]  }
 0x18d   :  { %6502 = vmatprep.subr.bf16.mxu1 %v9305_v59  ;;  %v9384_v59 = vld [vmem:[#allocation2 + $0xbe0] ss:$16 sps:$4 sm:$0xff]  }
 0x18f   :  { %6492 = vmatmul.mubr.bf16.vlgmr.msra.gmra.mrb[4].mxu1 %v196_v55  ;;  %5860 = vmatpush1.bf16.msra.mxu0 %v9300_v63  ;;  %v9378_v55 = vld [vmem:[#allocation2 + $0xbc0] ss:$16 sps:$4 sm:$0xff]   ;;  %v9392_v63 = vld [vmem:[#allocation2 + $0xc04] ss:$16 sps:$4 sm:$0xff]  }
 0x190   :  { %6503 = vmatpush1.bf16.msra.mxu1 %v9303_v1  ;;  %5861 = vmatprep.subr.bf16.mxu0 %v9308_v3  ;;  %v9395_v1 = vld [vmem:[#allocation2 + $0xbec] ss:$16 sps:$4 sm:$0xff]   ;;  %v140_v3 = vld [vmem:[%s10644_s0 + $0x50] sm:$0xff] }
 0x191   :  { %6504 = vmatprep.subr.bf16.mxu1 %v9311_v5  ;;  %6534 = vmatprep.mubr.bf16.mxu1 %v199_v60  ;;  %v9387_v60 = vld [vmem:[#allocation2 + $0xbc8] ss:$16 sps:$4 sm:$0xff]  }
 0x192   :  { %v169_v5 = vld [vmem:[%s10644_s0 + $0x138] sm:$0xff] }
 0x193   :  { %5862 = vmatpush1.bf16.msra.mxu0 %v9306_v6  ;;  %v143_v6 = vld [vmem:[%s10644_s0 + $0x68] sm:$0xff] }
 0x194   :  { %6505 = vmatpush1.bf16.msra.mxu1 %v9309_v7  ;;  %5863 = vmatprep.subr.bf16.mxu0 %v9314_v9  ;;  %v172_v7 = vld [vmem:[%s10644_s0 + $0x150] sm:$0xff]  ;;  %v198_v9 = vpack.c.bf16 %v169_v5, %v140_v3  ;;  %v9471_v5 = vld [vmem:[#allocation2 + $0xd88] ss:$16 sps:$4 sm:$0xff]  }
 0x195   :  { %6506 = vmatprep.subr.bf16.mxu1 %v9317_v10  ;;  %v9390_v10 = vld [vmem:[#allocation2 + $0xc00] ss:$16 sps:$4 sm:$0xff]  }
 0x196   :  { %v9468_v3 = vld [vmem:[#allocation2 + $0xda0] ss:$16 sps:$4 sm:$0xff]  }
 0x197   :  { %5864 = vmatpush1.bf16.msra.mxu0 %v9312_v11  ;;  %v9393_v11 = vld [vmem:[#allocation2 + $0xbe8] ss:$16 sps:$4 sm:$0xff]  }
 0x198   :  { %6507 = vmatpush1.bf16.msra.mxu1 %v9315_v12  ;;  %5865 = vmatprep.subr.bf16.mxu0 %v9320_v13  ;;  %v9398_v12 = vld [vmem:[#allocation2 + $0xc24] ss:$16 sps:$4 sm:$0xff]   ;;  %v9401_v13 = vld [vmem:[#allocation2 + $0xc0c] ss:$16 sps:$4 sm:$0xff]  }
 0x199   :  { %6508 = vmatprep.subr.bf16.mxu1 %v9323_v14  ;;  %v201_v14 = vpack.c.bf16 %v172_v7, %v143_v6  ;;  %v9476_v6 = vld [vmem:[#allocation2 + $0xdc4] ss:$16 sps:$4 sm:$0xff]   ;;  %v9479_v7 = vld [vmem:[#allocation2 + $0xdac] ss:$16 sps:$4 sm:$0xff]  }
 0x19b   :  { %5866 = vmatpush1.bf16.msra.mxu0 %v9318_v15  ;;  %v9396_v15 = vld [vmem:[#allocation2 + $0xc20] ss:$16 sps:$4 sm:$0xff]  }
 0x19c   :  { %6509 = vmatpush1.bf16.msra.mxu1 %v9321_v16  ;;  %5867 = vmatprep.subr.bf16.mxu0 %v9326_v17  ;;  %v9399_v16 = vld [vmem:[#allocation2 + $0xc08] ss:$16 sps:$4 sm:$0xff]   ;;  %v9404_v17 = vld [vmem:[#allocation2 + $0xc44] ss:$16 sps:$4 sm:$0xff]  }
 0x19d   :  { %6510 = vmatprep.subr.bf16.mxu1 %v9329_v18  ;;  %v9407_v18 = vld [vmem:[#allocation2 + $0xc2c] ss:$16 sps:$4 sm:$0xff]  }
 0x19f   :  { %5868 = vmatpush1.bf16.msra.mxu0 %v9324_v19  ;;  %v9402_v19 = vld [vmem:[#allocation2 + $0xc40] ss:$16 sps:$4 sm:$0xff]  }
 0x1a0   :  { %6511 = vmatpush1.bf16.msra.mxu1 %v9327_v20  ;;  %5869 = vmatprep.subr.bf16.mxu0 %v9332_v21  ;;  %v9405_v20 = vld [vmem:[#allocation2 + $0xc28] ss:$16 sps:$4 sm:$0xff]   ;;  %v9410_v21 = vld [vmem:[#allocation2 + $0xc64] ss:$16 sps:$4 sm:$0xff]  }
 0x1a1   :  { %6512 = vmatprep.subr.bf16.mxu1 %v9335_v22  ;;  %v9413_v22 = vld [vmem:[#allocation2 + $0xc4c] ss:$16 sps:$4 sm:$0xff]  }
 0x1a3   :  { %5870 = vmatpush1.bf16.msra.mxu0 %v9330_v23  ;;  %v9408_v23 = vld [vmem:[#allocation2 + $0xc60] ss:$16 sps:$4 sm:$0xff]  }
 0x1a4   :  { %6513 = vmatpush1.bf16.msra.mxu1 %v9333_v24  ;;  %5871 = vmatprep.subr.bf16.mxu0 %v9338_v25  ;;  %v9411_v24 = vld [vmem:[#allocation2 + $0xc48] ss:$16 sps:$4 sm:$0xff]   ;;  %v9416_v25 = vld [vmem:[#allocation2 + $0xc84] ss:$16 sps:$4 sm:$0xff]  }
 0x1a5   :  { %6514 = vmatprep.subr.bf16.mxu1 %v9341_v26  ;;  %v9419_v26 = vld [vmem:[#allocation2 + $0xc6c] ss:$16 sps:$4 sm:$0xff]  }
 0x1a7   :  { %5872 = vmatpush1.bf16.msra.mxu0 %v9336_v27  ;;  %v9414_v27 = vld [vmem:[#allocation2 + $0xc80] ss:$16 sps:$4 sm:$0xff]  }
 0x1a8   :  { %6515 = vmatpush1.bf16.msra.mxu1 %v9339_v28  ;;  %5873 = vmatprep.subr.bf16.mxu0 %v9344_v29  ;;  %v9417_v28 = vld [vmem:[#allocation2 + $0xc68] ss:$16 sps:$4 sm:$0xff]   ;;  %v9422_v29 = vld [vmem:[#allocation2 + $0xca4] ss:$16 sps:$4 sm:$0xff]  }
 0x1a9   :  { %6516 = vmatprep.subr.bf16.mxu1 %v9347_v30  ;;  %v9425_v30 = vld [vmem:[#allocation2 + $0xc8c] ss:$16 sps:$4 sm:$0xff]  }
 0x1ab   :  { %5874 = vmatpush1.bf16.msra.mxu0 %v9342_v31  ;;  %v9420_v31 = vld [vmem:[#allocation2 + $0xca0] ss:$16 sps:$4 sm:$0xff]  }
 0x1ac   :  { %6517 = vmatpush1.bf16.msra.mxu1 %v9345_v32  ;;  %5875 = vmatprep.subr.bf16.mxu0 %v9350_v33  ;;  %v9423_v32 = vld [vmem:[#allocation2 + $0xc88] ss:$16 sps:$4 sm:$0xff]   ;;  %v9428_v33 = vld [vmem:[#allocation2 + $0xcc4] ss:$16 sps:$4 sm:$0xff]  }
 0x1ad   :  { %6518 = vmatprep.subr.bf16.mxu1 %v9353_v34  ;;  %v9431_v34 = vld [vmem:[#allocation2 + $0xcac] ss:$16 sps:$4 sm:$0xff]  }
 0x1af   :  { %5876 = vmatpush1.bf16.msra.mxu0 %v9348_v35  ;;  %v9426_v35 = vld [vmem:[#allocation2 + $0xcc0] ss:$16 sps:$4 sm:$0xff]  }
 0x1b0   :  { %6519 = vmatpush1.bf16.msra.mxu1 %v9351_v36  ;;  %5877 = vmatprep.subr.bf16.mxu0 %v9356_v37  ;;  %v9429_v36 = vld [vmem:[#allocation2 + $0xca8] ss:$16 sps:$4 sm:$0xff]   ;;  %v9434_v37 = vld [vmem:[#allocation2 + $0xce4] ss:$16 sps:$4 sm:$0xff]  }
 0x1b1   :  { %6520 = vmatprep.subr.bf16.mxu1 %v9359_v38  ;;  %v9437_v38 = vld [vmem:[#allocation2 + $0xccc] ss:$16 sps:$4 sm:$0xff]  }
 0x1b3   :  { %5878 = vmatpush1.bf16.msra.mxu0 %v9354_v39  ;;  %v9432_v39 = vld [vmem:[#allocation2 + $0xce0] ss:$16 sps:$4 sm:$0xff]  }
 0x1b4   :  { %6521 = vmatpush1.bf16.msra.mxu1 %v9357_v40  ;;  %5879 = vmatprep.subr.bf16.mxu0 %v9362_v41  ;;  %v9435_v40 = vld [vmem:[#allocation2 + $0xcc8] ss:$16 sps:$4 sm:$0xff]   ;;  %v9440_v41 = vld [vmem:[#allocation2 + $0xd04] ss:$16 sps:$4 sm:$0xff]  }
 0x1b5   :  { %6522 = vmatprep.subr.bf16.mxu1 %v9365_v42  ;;  %v9443_v42 = vld [vmem:[#allocation2 + $0xcec] ss:$16 sps:$4 sm:$0xff]  }
 0x1b7   :  { %5880 = vmatpush1.bf16.msra.mxu0 %v9360_v43  ;;  %v9438_v43 = vld [vmem:[#allocation2 + $0xd00] ss:$16 sps:$4 sm:$0xff]  }
 0x1b8   :  { %6523 = vmatpush1.bf16.msra.mxu1 %v9363_v44  ;;  %5881 = vmatprep.subr.bf16.mxu0 %v9368_v45  ;;  %v9441_v44 = vld [vmem:[#allocation2 + $0xce8] ss:$16 sps:$4 sm:$0xff]   ;;  %v9446_v45 = vld [vmem:[#allocation2 + $0xd24] ss:$16 sps:$4 sm:$0xff]  }
 0x1b9   :  { %6524 = vmatprep.subr.bf16.mxu1 %v9371_v46  ;;  %v9449_v46 = vld [vmem:[#allocation2 + $0xd0c] ss:$16 sps:$4 sm:$0xff]  }
 0x1bb   :  { %5882 = vmatpush1.bf16.msra.mxu0 %v9366_v47  ;;  %v9444_v47 = vld [vmem:[#allocation2 + $0xd20] ss:$16 sps:$4 sm:$0xff]  }
 0x1bc   :  { %6525 = vmatpush1.bf16.msra.mxu1 %v9369_v48  ;;  %5883 = vmatprep.subr.bf16.mxu0 %v9374_v49  ;;  %v9447_v48 = vld [vmem:[#allocation2 + $0xd08] ss:$16 sps:$4 sm:$0xff]   ;;  %v9452_v49 = vld [vmem:[#allocation2 + $0xd44] ss:$16 sps:$4 sm:$0xff]  }
 0x1bd   :  { %6526 = vmatprep.subr.bf16.mxu1 %v9377_v50  ;;  %v9455_v50 = vld [vmem:[#allocation2 + $0xd2c] ss:$16 sps:$4 sm:$0xff]  }
 0x1bf   :  { %5884 = vmatpush1.bf16.msra.mxu0 %v9372_v51  ;;  %v9450_v51 = vld [vmem:[#allocation2 + $0xd40] ss:$16 sps:$4 sm:$0xff]  }
 0x1c0   :  { %6527 = vmatpush1.bf16.msra.mxu1 %v9375_v52  ;;  %5885 = vmatprep.subr.bf16.mxu0 %v9380_v53  ;;  %v9453_v52 = vld [vmem:[#allocation2 + $0xd28] ss:$16 sps:$4 sm:$0xff]   ;;  %v9458_v53 = vld [vmem:[#allocation2 + $0xd64] ss:$16 sps:$4 sm:$0xff]  }
 0x1c1   :  { %6528 = vmatprep.subr.bf16.mxu1 %v9383_v54  ;;  %v9461_v54 = vld [vmem:[#allocation2 + $0xd4c] ss:$16 sps:$4 sm:$0xff]  }
 0x1c3   :  { %5886 = vmatpush1.bf16.msra.mxu0 %v9378_v55  ;;  %v9456_v55 = vld [vmem:[#allocation2 + $0xd60] ss:$16 sps:$4 sm:$0xff]  }
 0x1c4   :  { %6529 = vmatpush1.bf16.msra.mxu1 %v9381_v56  ;;  %5887 = vmatprep.subr.bf16.mxu0 %v9386_v57  ;;  %v9459_v56 = vld [vmem:[#allocation2 + $0xd48] ss:$16 sps:$4 sm:$0xff]   ;;  %v9464_v57 = vld [vmem:[#allocation2 + $0xd84] ss:$16 sps:$4 sm:$0xff]  }
 0x1c5   :  { %6530 = vmatprep.subr.bf16.mxu1 %v9389_v58  ;;  %v9467_v58 = vld [vmem:[#allocation2 + $0xd6c] ss:$16 sps:$4 sm:$0xff]  }
 0x1c7   :  { %5888 = vmatpush1.bf16.msra.mxu0 %v9384_v59  ;;  %v9462_v59 = vld [vmem:[#allocation2 + $0xd80] ss:$16 sps:$4 sm:$0xff]  }
 0x1c8   :  { %6531 = vmatpush1.bf16.msra.mxu1 %v9387_v60  ;;  %5900 = vmatprep.subr.bf16.mxu0 %v9392_v63  ;;  %v9465_v60 = vld [vmem:[#allocation2 + $0xd68] ss:$16 sps:$4 sm:$0xff]   ;;  %v9470_v63 = vld [vmem:[#allocation2 + $0xda4] ss:$16 sps:$4 sm:$0xff]  }
 0x1c9   :  { %6532 = vmatprep.subr.bf16.mxu1 %v9395_v1  ;;  %v9473_v1 = vld [vmem:[#allocation2 + $0xd8c] ss:$16 sps:$4 sm:$0xff]  }
 0x1ca   :  { %5890 = vmatmul.mubr.bf16.vlgmr.msra.gmra.mrb[0].mxu0 %v198_v9 }
 0x1cb   :  { %5901 = vmatpush1.bf16.msra.mxu0 %v9390_v10  ;;  %5932 = vmatprep.mubr.bf16.mxu0 %v201_v14  ;;  %v9477_v10 = vld [vmem:[#allocation2 + $0xda8] ss:$16 sps:$4 sm:$0xff]  }
 0x1cc   :  { %6533 = vmatpush1.bf16.msra.mxu1 %v9393_v11  ;;  %5902 = vmatprep.subr.bf16.mxu0 %v9398_v12  ;;  %v9482_v11 = vld [vmem:[#allocation2 + $0xde4] ss:$16 sps:$4 sm:$0xff]   ;;  %v9485_v12 = vld [vmem:[#allocation2 + $0xdcc] ss:$16 sps:$4 sm:$0xff]  }
 0x1cd   :  { %6545 = vmatprep.subr.bf16.mxu1 %v9401_v13  ;;  %v9480_v13 = vld [vmem:[#allocation2 + $0xde0] ss:$16 sps:$4 sm:$0xff]  }
 0x1cf   :  { %6535 = vmatmul.mubr.bf16.vlgmr.msra.gmra.mrb[4].mxu1 %v198_v9  ;;  %5903 = vmatpush1.bf16.msra.mxu0 %v9396_v15  ;;  %v9474_v9 = vld [vmem:[#allocation2 + $0xdc0] ss:$16 sps:$4 sm:$0xff]   ;;  %v9488_v15 = vld [vmem:[#allocation2 + $0xe04] ss:$16 sps:$4 sm:$0xff]  }
 0x1d0   :  { %6546 = vmatpush1.bf16.msra.mxu1 %v9399_v16  ;;  %5904 = vmatprep.subr.bf16.mxu0 %v9404_v17  ;;  %v9491_v16 = vld [vmem:[#allocation2 + $0xdec] ss:$16 sps:$4 sm:$0xff]   ;;  %v142_v17 = vld [vmem:[%s10644_s0 + $0x60] sm:$0xff] }
 0x1d1   :  { %6547 = vmatprep.subr.bf16.mxu1 %v9407_v18  ;;  %6577 = vmatprep.mubr.bf16.mxu1 %v201_v14  ;;  %v9483_v14 = vld [vmem:[#allocation2 + $0xdc8] ss:$16 sps:$4 sm:$0xff]  }
 0x1d2   :  { %v171_v18 = vld [vmem:[%s10644_s0 + $0x148] sm:$0xff] }
 0x1d3   :  { %5905 = vmatpush1.bf16.msra.mxu0 %v9402_v19  ;;  %v145_v19 = vld [vmem:[%s10644_s0 + $0x78] sm:$0xff] }
 0x1d4   :  { %6548 = vmatpush1.bf16.msra.mxu1 %v9405_v20  ;;  %5906 = vmatprep.subr.bf16.mxu0 %v9410_v21  ;;  %v174_v20 = vld [vmem:[%s10644_s0 + $0x160] sm:$0xff]  ;;  %v200_v21 = vpack.c.bf16 %v171_v18, %v142_v17  ;;  %v9567_v18 = vld [vmem:[#allocation2 + $0xf88] ss:$16 sps:$4 sm:$0xff]  }
 0x1d5   :  { %6549 = vmatprep.subr.bf16.mxu1 %v9413_v22  ;;  %v9486_v22 = vld [vmem:[#allocation2 + $0xe00] ss:$16 sps:$4 sm:$0xff]  }
 0x1d6   :  { %v9564_v17 = vld [vmem:[#allocation2 + $0xfa0] ss:$16 sps:$4 sm:$0xff]  }
 0x1d7   :  { %5907 = vmatpush1.bf16.msra.mxu0 %v9408_v23  ;;  %v9489_v23 = vld [vmem:[#allocation2 + $0xde8] ss:$16 sps:$4 sm:$0xff]  }
 0x1d8   :  { %6550 = vmatpush1.bf16.msra.mxu1 %v9411_v24  ;;  %5908 = vmatprep.subr.bf16.mxu0 %v9416_v25  ;;  %v9494_v24 = vld [vmem:[#allocation2 + $0xe24] ss:$16 sps:$4 sm:$0xff]   ;;  %v9497_v25 = vld [vmem:[#allocation2 + $0xe0c] ss:$16 sps:$4 sm:$0xff]  }
 0x1d9   :  { %6551 = vmatprep.subr.bf16.mxu1 %v9419_v26  ;;  %v203_v26 = vpack.c.bf16 %v174_v20, %v145_v19  ;;  %v9572_v19 = vld [vmem:[#allocation2 + $0xfc4] ss:$16 sps:$4 sm:$0xff]   ;;  %v9575_v20 = vld [vmem:[#allocation2 + $0xfac] ss:$16 sps:$4 sm:$0xff]  }
 0x1db   :  { %5909 = vmatpush1.bf16.msra.mxu0 %v9414_v27  ;;  %v9492_v27 = vld [vmem:[#allocation2 + $0xe20] ss:$16 sps:$4 sm:$0xff]  }
 0x1dc   :  { %6552 = vmatpush1.bf16.msra.mxu1 %v9417_v28  ;;  %5910 = vmatprep.subr.bf16.mxu0 %v9422_v29  ;;  %v9495_v28 = vld [vmem:[#allocation2 + $0xe08] ss:$16 sps:$4 sm:$0xff]   ;;  %v9500_v29 = vld [vmem:[#allocation2 + $0xe44] ss:$16 sps:$4 sm:$0xff]  }
 0x1dd   :  { %6553 = vmatprep.subr.bf16.mxu1 %v9425_v30  ;;  %v9503_v30 = vld [vmem:[#allocation2 + $0xe2c] ss:$16 sps:$4 sm:$0xff]  }
 0x1df   :  { %5911 = vmatpush1.bf16.msra.mxu0 %v9420_v31  ;;  %v9498_v31 = vld [vmem:[#allocation2 + $0xe40] ss:$16 sps:$4 sm:$0xff]  }
 0x1e0   :  { %6554 = vmatpush1.bf16.msra.mxu1 %v9423_v32  ;;  %5912 = vmatprep.subr.bf16.mxu0 %v9428_v33  ;;  %v9501_v32 = vld [vmem:[#allocation2 + $0xe28] ss:$16 sps:$4 sm:$0xff]   ;;  %v9506_v33 = vld [vmem:[#allocation2 + $0xe64] ss:$16 sps:$4 sm:$0xff]  }
 0x1e1   :  { %6555 = vmatprep.subr.bf16.mxu1 %v9431_v34  ;;  %v9509_v34 = vld [vmem:[#allocation2 + $0xe4c] ss:$16 sps:$4 sm:$0xff]  }
 0x1e3   :  { %5913 = vmatpush1.bf16.msra.mxu0 %v9426_v35  ;;  %v9504_v35 = vld [vmem:[#allocation2 + $0xe60] ss:$16 sps:$4 sm:$0xff]  }
 0x1e4   :  { %6556 = vmatpush1.bf16.msra.mxu1 %v9429_v36  ;;  %5914 = vmatprep.subr.bf16.mxu0 %v9434_v37  ;;  %v9507_v36 = vld [vmem:[#allocation2 + $0xe48] ss:$16 sps:$4 sm:$0xff]   ;;  %v9512_v37 = vld [vmem:[#allocation2 + $0xe84] ss:$16 sps:$4 sm:$0xff]  }
 0x1e5   :  { %6557 = vmatprep.subr.bf16.mxu1 %v9437_v38  ;;  %v9515_v38 = vld [vmem:[#allocation2 + $0xe6c] ss:$16 sps:$4 sm:$0xff]  }
 0x1e7   :  { %5915 = vmatpush1.bf16.msra.mxu0 %v9432_v39  ;;  %v9510_v39 = vld [vmem:[#allocation2 + $0xe80] ss:$16 sps:$4 sm:$0xff]  }
 0x1e8   :  { %6558 = vmatpush1.bf16.msra.mxu1 %v9435_v40  ;;  %5916 = vmatprep.subr.bf16.mxu0 %v9440_v41  ;;  %v9513_v40 = vld [vmem:[#allocation2 + $0xe68] ss:$16 sps:$4 sm:$0xff]   ;;  %v9518_v41 = vld [vmem:[#allocation2 + $0xea4] ss:$16 sps:$4 sm:$0xff]  }
 0x1e9   :  { %6559 = vmatprep.subr.bf16.mxu1 %v9443_v42  ;;  %v9521_v42 = vld [vmem:[#allocation2 + $0xe8c] ss:$16 sps:$4 sm:$0xff]  }
 0x1eb   :  { %5917 = vmatpush1.bf16.msra.mxu0 %v9438_v43  ;;  %v9516_v43 = vld [vmem:[#allocation2 + $0xea0] ss:$16 sps:$4 sm:$0xff]  }
 0x1ec   :  { %6560 = vmatpush1.bf16.msra.mxu1 %v9441_v44  ;;  %5918 = vmatprep.subr.bf16.mxu0 %v9446_v45  ;;  %v9519_v44 = vld [vmem:[#allocation2 + $0xe88] ss:$16 sps:$4 sm:$0xff]   ;;  %v9524_v45 = vld [vmem:[#allocation2 + $0xec4] ss:$16 sps:$4 sm:$0xff]  }
 0x1ed   :  { %6561 = vmatprep.subr.bf16.mxu1 %v9449_v46  ;;  %v9527_v46 = vld [vmem:[#allocation2 + $0xeac] ss:$16 sps:$4 sm:$0xff]  }
 0x1ef   :  { %5919 = vmatpush1.bf16.msra.mxu0 %v9444_v47  ;;  %v9522_v47 = vld [vmem:[#allocation2 + $0xec0] ss:$16 sps:$4 sm:$0xff]  }
 0x1f0   :  { %6562 = vmatpush1.bf16.msra.mxu1 %v9447_v48  ;;  %5920 = vmatprep.subr.bf16.mxu0 %v9452_v49  ;;  %v9525_v48 = vld [vmem:[#allocation2 + $0xea8] ss:$16 sps:$4 sm:$0xff]   ;;  %v9530_v49 = vld [vmem:[#allocation2 + $0xee4] ss:$16 sps:$4 sm:$0xff]  }
 0x1f1   :  { %6563 = vmatprep.subr.bf16.mxu1 %v9455_v50  ;;  %v9533_v50 = vld [vmem:[#allocation2 + $0xecc] ss:$16 sps:$4 sm:$0xff]  }
 0x1f3   :  { %5921 = vmatpush1.bf16.msra.mxu0 %v9450_v51  ;;  %v9528_v51 = vld [vmem:[#allocation2 + $0xee0] ss:$16 sps:$4 sm:$0xff]  }
 0x1f4   :  { %6564 = vmatpush1.bf16.msra.mxu1 %v9453_v52  ;;  %5922 = vmatprep.subr.bf16.mxu0 %v9458_v53  ;;  %v9531_v52 = vld [vmem:[#allocation2 + $0xec8] ss:$16 sps:$4 sm:$0xff]   ;;  %v9536_v53 = vld [vmem:[#allocation2 + $0xf04] ss:$16 sps:$4 sm:$0xff]  }
 0x1f5   :  { %6565 = vmatprep.subr.bf16.mxu1 %v9461_v54  ;;  %v9539_v54 = vld [vmem:[#allocation2 + $0xeec] ss:$16 sps:$4 sm:$0xff]  }
 0x1f7   :  { %5923 = vmatpush1.bf16.msra.mxu0 %v9456_v55  ;;  %v9534_v55 = vld [vmem:[#allocation2 + $0xf00] ss:$16 sps:$4 sm:$0xff]  }
 0x1f8   :  { %6566 = vmatpush1.bf16.msra.mxu1 %v9459_v56  ;;  %5924 = vmatprep.subr.bf16.mxu0 %v9464_v57  ;;  %v9537_v56 = vld [vmem:[#allocation2 + $0xee8] ss:$16 sps:$4 sm:$0xff]   ;;  %v9542_v57 = vld [vmem:[#allocation2 + $0xf24] ss:$16 sps:$4 sm:$0xff]  }
 0x1f9   :  { %6567 = vmatprep.subr.bf16.mxu1 %v9467_v58  ;;  %v9545_v58 = vld [vmem:[#allocation2 + $0xf0c] ss:$16 sps:$4 sm:$0xff]  }
 0x1fb   :  { %5925 = vmatpush1.bf16.msra.mxu0 %v9462_v59  ;;  %v9540_v59 = vld [vmem:[#allocation2 + $0xf20] ss:$16 sps:$4 sm:$0xff]  }
 0x1fc   :  { %6568 = vmatpush1.bf16.msra.mxu1 %v9465_v60  ;;  %5926 = vmatprep.subr.bf16.mxu0 %v9470_v63  ;;  %v9543_v60 = vld [vmem:[#allocation2 + $0xf08] ss:$16 sps:$4 sm:$0xff]   ;;  %v9548_v63 = vld [vmem:[#allocation2 + $0xf44] ss:$16 sps:$4 sm:$0xff]  }
 0x1fd   :  { %6569 = vmatprep.subr.bf16.mxu1 %v9473_v1  ;;  %v9551_v1 = vld [vmem:[#allocation2 + $0xf2c] ss:$16 sps:$4 sm:$0xff]  }
 0x1ff   :  { %5927 = vmatpush1.bf16.msra.mxu0 %v9468_v3  ;;  %v9546_v3 = vld [vmem:[#allocation2 + $0xf40] ss:$16 sps:$4 sm:$0xff]  }
 0x200   :  { %6570 = vmatpush1.bf16.msra.mxu1 %v9471_v5  ;;  %5928 = vmatprep.subr.bf16.mxu0 %v9476_v6  ;;  %v9549_v5 = vld [vmem:[#allocation2 + $0xf28] ss:$16 sps:$4 sm:$0xff]   ;;  %v9554_v6 = vld [vmem:[#allocation2 + $0xf64] ss:$16 sps:$4 sm:$0xff]  }
 0x201   :  { %6571 = vmatprep.subr.bf16.mxu1 %v9479_v7  ;;  %v9557_v7 = vld [vmem:[#allocation2 + $0xf4c] ss:$16 sps:$4 sm:$0xff]  }
 0x203   :  { %5929 = vmatpush1.bf16.msra.mxu0 %v9474_v9  ;;  %v9552_v9 = vld [vmem:[#allocation2 + $0xf60] ss:$16 sps:$4 sm:$0xff]  }
 0x204   :  { %6572 = vmatpush1.bf16.msra.mxu1 %v9477_v10  ;;  %5930 = vmatprep.subr.bf16.mxu0 %v9482_v11  ;;  %v9555_v10 = vld [vmem:[#allocation2 + $0xf48] ss:$16 sps:$4 sm:$0xff]   ;;  %v9560_v11 = vld [vmem:[#allocation2 + $0xf84] ss:$16 sps:$4 sm:$0xff]  }
 0x205   :  { %6573 = vmatprep.subr.bf16.mxu1 %v9485_v12  ;;  %v9563_v12 = vld [vmem:[#allocation2 + $0xf6c] ss:$16 sps:$4 sm:$0xff]  }
 0x207   :  { %5931 = vmatpush1.bf16.msra.mxu0 %v9480_v13  ;;  %v9558_v13 = vld [vmem:[#allocation2 + $0xf80] ss:$16 sps:$4 sm:$0xff]  }
 0x208   :  { %6574 = vmatpush1.bf16.msra.mxu1 %v9483_v14  ;;  %5943 = vmatprep.subr.bf16.mxu0 %v9488_v15  ;;  %v9561_v14 = vld [vmem:[#allocation2 + $0xf68] ss:$16 sps:$4 sm:$0xff]   ;;  %v9566_v15 = vld [vmem:[#allocation2 + $0xfa4] ss:$16 sps:$4 sm:$0xff]  }
 0x209   :  { %6575 = vmatprep.subr.bf16.mxu1 %v9491_v16  ;;  %v9569_v16 = vld [vmem:[#allocation2 + $0xf8c] ss:$16 sps:$4 sm:$0xff]  }
 0x20a   :  { %5933 = vmatmul.mubr.bf16.vlgmr.msra.gmra.mrb[0].mxu0 %v200_v21 }
 0x20b   :  { %5944 = vmatpush1.bf16.msra.mxu0 %v9486_v22  ;;  %5975 = vmatprep.mubr.bf16.mxu0 %v203_v26  ;;  %v9573_v22 = vld [vmem:[#allocation2 + $0xfa8] ss:$16 sps:$4 sm:$0xff]  }
 0x20c   :  { %6576 = vmatpush1.bf16.msra.mxu1 %v9489_v23  ;;  %5945 = vmatprep.subr.bf16.mxu0 %v9494_v24  ;;  %v9578_v23 = vld [vmem:[#allocation2 + $0xfe4] ss:$16 sps:$4 sm:$0xff]   ;;  %v9581_v24 = vld [vmem:[#allocation2 + $0xfcc] ss:$16 sps:$4 sm:$0xff]  }
 0x20d   :  { %6588 = vmatprep.subr.bf16.mxu1 %v9497_v25  ;;  %v9576_v25 = vld [vmem:[#allocation2 + $0xfe0] ss:$16 sps:$4 sm:$0xff]  }
 0x20f   :  { %6578 = vmatmul.mubr.bf16.vlgmr.msra.gmra.mrb[4].mxu1 %v200_v21  ;;  %5946 = vmatpush1.bf16.msra.mxu0 %v9492_v27  ;;  %v9570_v21 = vld [vmem:[#allocation2 + $0xfc0] ss:$16 sps:$4 sm:$0xff]   ;;  %v9584_v27 = vld [vmem:[#allocation2 + $0x1004] ss:$16 sps:$4 sm:$0xff]  }
 0x210   :  { %6589 = vmatpush1.bf16.msra.mxu1 %v9495_v28  ;;  %5947 = vmatprep.subr.bf16.mxu0 %v9500_v29  ;;  %v9587_v28 = vld [vmem:[#allocation2 + $0xfec] ss:$16 sps:$4 sm:$0xff]   ;;  %v144_v29 = vld [vmem:[%s10644_s0 + $0x70] sm:$0xff] }
 0x211   :  { %6590 = vmatprep.subr.bf16.mxu1 %v9503_v30  ;;  %6620 = vmatprep.mubr.bf16.mxu1 %v203_v26  ;;  %v9579_v26 = vld [vmem:[#allocation2 + $0xfc8] ss:$16 sps:$4 sm:$0xff]  }
 0x212   :  { %v173_v30 = vld [vmem:[%s10644_s0 + $0x158] sm:$0xff] }
 0x213   :  { %5948 = vmatpush1.bf16.msra.mxu0 %v9498_v31  ;;  %v147_v31 = vld [vmem:[%s10644_s0 + $0x88] sm:$0xff] }
 0x214   :  { %6591 = vmatpush1.bf16.msra.mxu1 %v9501_v32  ;;  %5949 = vmatprep.subr.bf16.mxu0 %v9506_v33  ;;  %v176_v32 = vld [vmem:[%s10644_s0 + $0x170] sm:$0xff]  ;;  %v202_v33 = vpack.c.bf16 %v173_v30, %v144_v29  ;;  %v9663_v30 = vld [vmem:[#allocation2 + $0x1188] ss:$16 sps:$4 sm:$0xff]  }
 0x215   :  { %6592 = vmatprep.subr.bf16.mxu1 %v9509_v34  ;;  %v9582_v34 = vld [vmem:[#allocation2 + $0x1000] ss:$16 sps:$4 sm:$0xff]  }
 0x216   :  { %v9660_v29 = vld [vmem:[#allocation2 + $0x11a0] ss:$16 sps:$4 sm:$0xff]  }
 0x217   :  { %5950 = vmatpush1.bf16.msra.mxu0 %v9504_v35  ;;  %v9585_v35 = vld [vmem:[#allocation2 + $0xfe8] ss:$16 sps:$4 sm:$0xff]  }
 0x218   :  { %6593 = vmatpush1.bf16.msra.mxu1 %v9507_v36  ;;  %5951 = vmatprep.subr.bf16.mxu0 %v9512_v37  ;;  %v9590_v36 = vld [vmem:[#allocation2 + $0x1024] ss:$16 sps:$4 sm:$0xff]   ;;  %v9593_v37 = vld [vmem:[#allocation2 + $0x100c] ss:$16 sps:$4 sm:$0xff]  }
 0x219   :  { %6594 = vmatprep.subr.bf16.mxu1 %v9515_v38  ;;  %v205_v38 = vpack.c.bf16 %v176_v32, %v147_v31  ;;  %v9668_v31 = vld [vmem:[#allocation2 + $0x11c4] ss:$16 sps:$4 sm:$0xff]   ;;  %v9671_v32 = vld [vmem:[#allocation2 + $0x11ac] ss:$16 sps:$4 sm:$0xff]  }
 0x21b   :  { %5952 = vmatpush1.bf16.msra.mxu0 %v9510_v39  ;;  %v9588_v39 = vld [vmem:[#allocation2 + $0x1020] ss:$16 sps:$4 sm:$0xff]  }
 0x21c   :  { %6595 = vmatpush1.bf16.msra.mxu1 %v9513_v40  ;;  %5953 = vmatprep.subr.bf16.mxu0 %v9518_v41  ;;  %v9591_v40 = vld [vmem:[#allocation2 + $0x1008] ss:$16 sps:$4 sm:$0xff]   ;;  %v9596_v41 = vld [vmem:[#allocation2 + $0x1044] ss:$16 sps:$4 sm:$0xff]  }
 0x21d   :  { %6596 = vmatprep.subr.bf16.mxu1 %v9521_v42  ;;  %v9599_v42 = vld [vmem:[#allocation2 + $0x102c] ss:$16 sps:$4 sm:$0xff]  }
 0x21f   :  { %5954 = vmatpush1.bf16.msra.mxu0 %v9516_v43  ;;  %v9594_v43 = vld [vmem:[#allocation2 + $0x1040] ss:$16 sps:$4 sm:$0xff]  }
 0x220   :  { %6597 = vmatpush1.bf16.msra.mxu1 %v9519_v44  ;;  %5955 = vmatprep.subr.bf16.mxu0 %v9524_v45  ;;  %v9597_v44 = vld [vmem:[#allocation2 + $0x1028] ss:$16 sps:$4 sm:$0xff]   ;;  %v9602_v45 = vld [vmem:[#allocation2 + $0x1064] ss:$16 sps:$4 sm:$0xff]  }
 0x221   :  { %6598 = vmatprep.subr.bf16.mxu1 %v9527_v46  ;;  %v9605_v46 = vld [vmem:[#allocation2 + $0x104c] ss:$16 sps:$4 sm:$0xff]  }
 0x223   :  { %5956 = vmatpush1.bf16.msra.mxu0 %v9522_v47  ;;  %v9600_v47 = vld [vmem:[#allocation2 + $0x1060] ss:$16 sps:$4 sm:$0xff]  }
 0x224   :  { %6599 = vmatpush1.bf16.msra.mxu1 %v9525_v48  ;;  %5957 = vmatprep.subr.bf16.mxu0 %v9530_v49  ;;  %v9603_v48 = vld [vmem:[#allocation2 + $0x1048] ss:$16 sps:$4 sm:$0xff]   ;;  %v9608_v49 = vld [vmem:[#allocation2 + $0x1084] ss:$16 sps:$4 sm:$0xff]  }
 0x225   :  { %6600 = vmatprep.subr.bf16.mxu1 %v9533_v50  ;;  %v9611_v50 = vld [vmem:[#allocation2 + $0x106c] ss:$16 sps:$4 sm:$0xff]  }
 0x227   :  { %5958 = vmatpush1.bf16.msra.mxu0 %v9528_v51  ;;  %v9606_v51 = vld [vmem:[#allocation2 + $0x1080] ss:$16 sps:$4 sm:$0xff]  }
 0x228   :  { %6601 = vmatpush1.bf16.msra.mxu1 %v9531_v52  ;;  %5959 = vmatprep.subr.bf16.mxu0 %v9536_v53  ;;  %v9609_v52 = vld [vmem:[#allocation2 + $0x1068] ss:$16 sps:$4 sm:$0xff]   ;;  %v9614_v53 = vld [vmem:[#allocation2 + $0x10a4] ss:$16 sps:$4 sm:$0xff]  }
 0x229   :  { %6602 = vmatprep.subr.bf16.mxu1 %v9539_v54  ;;  %v9617_v54 = vld [vmem:[#allocation2 + $0x108c] ss:$16 sps:$4 sm:$0xff]  }
 0x22b   :  { %5960 = vmatpush1.bf16.msra.mxu0 %v9534_v55  ;;  %v9612_v55 = vld [vmem:[#allocation2 + $0x10a0] ss:$16 sps:$4 sm:$0xff]  }
 0x22c   :  { %6603 = vmatpush1.bf16.msra.mxu1 %v9537_v56  ;;  %5961 = vmatprep.subr.bf16.mxu0 %v9542_v57  ;;  %v9615_v56 = vld [vmem:[#allocation2 + $0x1088] ss:$16 sps:$4 sm:$0xff]   ;;  %v9620_v57 = vld [vmem:[#allocation2 + $0x10c4] ss:$16 sps:$4 sm:$0xff]  }
 0x22d   :  { %6604 = vmatprep.subr.bf16.mxu1 %v9545_v58  ;;  %v9623_v58 = vld [vmem:[#allocation2 + $0x10ac] ss:$16 sps:$4 sm:$0xff]  }
 0x22f   :  { %5962 = vmatpush1.bf16.msra.mxu0 %v9540_v59  ;;  %v9618_v59 = vld [vmem:[#allocation2 + $0x10c0] ss:$16 sps:$4 sm:$0xff]  }
 0x230   :  { %6605 = vmatpush1.bf16.msra.mxu1 %v9543_v60  ;;  %5963 = vmatprep.subr.bf16.mxu0 %v9548_v63  ;;  %v9621_v60 = vld [vmem:[#allocation2 + $0x10a8] ss:$16 sps:$4 sm:$0xff]   ;;  %v9626_v63 = vld [vmem:[#allocation2 + $0x10e4] ss:$16 sps:$4 sm:$0xff]  }
 0x231   :  { %6606 = vmatprep.subr.bf16.mxu1 %v9551_v1  ;;  %v9629_v1 = vld [vmem:[#allocation2 + $0x10cc] ss:$16 sps:$4 sm:$0xff]  }
 0x233   :  { %5964 = vmatpush1.bf16.msra.mxu0 %v9546_v3  ;;  %v9624_v3 = vld [vmem:[#allocation2 + $0x10e0] ss:$16 sps:$4 sm:$0xff]  }
 0x234   :  { %6607 = vmatpush1.bf16.msra.mxu1 %v9549_v5  ;;  %5965 = vmatprep.subr.bf16.mxu0 %v9554_v6  ;;  %v9627_v5 = vld [vmem:[#allocation2 + $0x10c8] ss:$16 sps:$4 sm:$0xff]   ;;  %v9632_v6 = vld [vmem:[#allocation2 + $0x1104] ss:$16 sps:$4 sm:$0xff]  }
 0x235   :  { %6608 = vmatprep.subr.bf16.mxu1 %v9557_v7  ;;  %v9635_v7 = vld [vmem:[#allocation2 + $0x10ec] ss:$16 sps:$4 sm:$0xff]  }
 0x237   :  { %5966 = vmatpush1.bf16.msra.mxu0 %v9552_v9  ;;  %v9630_v9 = vld [vmem:[#allocation2 + $0x1100] ss:$16 sps:$4 sm:$0xff]  }
 0x238   :  { %6609 = vmatpush1.bf16.msra.mxu1 %v9555_v10  ;;  %5967 = vmatprep.subr.bf16.mxu0 %v9560_v11  ;;  %v9633_v10 = vld [vmem:[#allocation2 + $0x10e8] ss:$16 sps:$4 sm:$0xff]   ;;  %v9638_v11 = vld [vmem:[#allocation2 + $0x1124] ss:$16 sps:$4 sm:$0xff]  }
 0x239   :  { %6610 = vmatprep.subr.bf16.mxu1 %v9563_v12  ;;  %v9641_v12 = vld [vmem:[#allocation2 + $0x110c] ss:$16 sps:$4 sm:$0xff]  }
 0x23b   :  { %5968 = vmatpush1.bf16.msra.mxu0 %v9558_v13  ;;  %v9636_v13 = vld [vmem:[#allocation2 + $0x1120] ss:$16 sps:$4 sm:$0xff]  }
 0x23c   :  { %6611 = vmatpush1.bf16.msra.mxu1 %v9561_v14  ;;  %5969 = vmatprep.subr.bf16.mxu0 %v9566_v15  ;;  %v9639_v14 = vld [vmem:[#allocation2 + $0x1108] ss:$16 sps:$4 sm:$0xff]   ;;  %v9644_v15 = vld [vmem:[#allocation2 + $0x1144] ss:$16 sps:$4 sm:$0xff]  }
 0x23d   :  { %6612 = vmatprep.subr.bf16.mxu1 %v9569_v16  ;;  %v9647_v16 = vld [vmem:[#allocation2 + $0x112c] ss:$16 sps:$4 sm:$0xff]  }
 0x23f   :  { %5970 = vmatpush1.bf16.msra.mxu0 %v9564_v17  ;;  %v9642_v17 = vld [vmem:[#allocation2 + $0x1140] ss:$16 sps:$4 sm:$0xff]  }
 0x240   :  { %6613 = vmatpush1.bf16.msra.mxu1 %v9567_v18  ;;  %5971 = vmatprep.subr.bf16.mxu0 %v9572_v19  ;;  %v9645_v18 = vld [vmem:[#allocation2 + $0x1128] ss:$16 sps:$4 sm:$0xff]   ;;  %v9650_v19 = vld [vmem:[#allocation2 + $0x1164] ss:$16 sps:$4 sm:$0xff]  }
 0x241   :  { %6614 = vmatprep.subr.bf16.mxu1 %v9575_v20  ;;  %v9653_v20 = vld [vmem:[#allocation2 + $0x114c] ss:$16 sps:$4 sm:$0xff]  }
 0x243   :  { %5972 = vmatpush1.bf16.msra.mxu0 %v9570_v21  ;;  %v9648_v21 = vld [vmem:[#allocation2 + $0x1160] ss:$16 sps:$4 sm:$0xff]  }
 0x244   :  { %6615 = vmatpush1.bf16.msra.mxu1 %v9573_v22  ;;  %5973 = vmatprep.subr.bf16.mxu0 %v9578_v23  ;;  %v9651_v22 = vld [vmem:[#allocation2 + $0x1148] ss:$16 sps:$4 sm:$0xff]   ;;  %v9656_v23 = vld [vmem:[#allocation2 + $0x1184] ss:$16 sps:$4 sm:$0xff]  }
 0x245   :  { %6616 = vmatprep.subr.bf16.mxu1 %v9581_v24  ;;  %v9659_v24 = vld [vmem:[#allocation2 + $0x116c] ss:$16 sps:$4 sm:$0xff]  }
 0x247   :  { %5974 = vmatpush1.bf16.msra.mxu0 %v9576_v25  ;;  %v9654_v25 = vld [vmem:[#allocation2 + $0x1180] ss:$16 sps:$4 sm:$0xff]  }
 0x248   :  { %6617 = vmatpush1.bf16.msra.mxu1 %v9579_v26  ;;  %5986 = vmatprep.subr.bf16.mxu0 %v9584_v27  ;;  %v9657_v26 = vld [vmem:[#allocation2 + $0x1168] ss:$16 sps:$4 sm:$0xff]   ;;  %v9662_v27 = vld [vmem:[#allocation2 + $0x11a4] ss:$16 sps:$4 sm:$0xff]  }
 0x249   :  { %6618 = vmatprep.subr.bf16.mxu1 %v9587_v28  ;;  %v9665_v28 = vld [vmem:[#allocation2 + $0x118c] ss:$16 sps:$4 sm:$0xff]  }
 0x24a   :  { %5976 = vmatmul.mubr.bf16.vlgmr.msra.gmra.mrb[0].mxu0 %v202_v33 }
 0x24b   :  { %5987 = vmatpush1.bf16.msra.mxu0 %v9582_v34  ;;  %6018 = vmatprep.mubr.bf16.mxu0 %v205_v38  ;;  %v9669_v34 = vld [vmem:[#allocation2 + $0x11a8] ss:$16 sps:$4 sm:$0xff]  }
 0x24c   :  { %6619 = vmatpush1.bf16.msra.mxu1 %v9585_v35  ;;  %5988 = vmatprep.subr.bf16.mxu0 %v9590_v36  ;;  %v9674_v35 = vld [vmem:[#allocation2 + $0x11e4] ss:$16 sps:$4 sm:$0xff]   ;;  %v9677_v36 = vld [vmem:[#allocation2 + $0x11cc] ss:$16 sps:$4 sm:$0xff]  }
 0x24d   :  { %6631 = vmatprep.subr.bf16.mxu1 %v9593_v37  ;;  %v9672_v37 = vld [vmem:[#allocation2 + $0x11e0] ss:$16 sps:$4 sm:$0xff]  }
 0x24f   :  { %6621 = vmatmul.mubr.bf16.vlgmr.msra.gmra.mrb[4].mxu1 %v202_v33  ;;  %5989 = vmatpush1.bf16.msra.mxu0 %v9588_v39  ;;  %v9666_v33 = vld [vmem:[#allocation2 + $0x11c0] ss:$16 sps:$4 sm:$0xff]   ;;  %v9680_v39 = vld [vmem:[#allocation2 + $0x1204] ss:$16 sps:$4 sm:$0xff]  }
 0x250   :  { %6632 = vmatpush1.bf16.msra.mxu1 %v9591_v40  ;;  %5990 = vmatprep.subr.bf16.mxu0 %v9596_v41  ;;  %v9683_v40 = vld [vmem:[#allocation2 + $0x11ec] ss:$16 sps:$4 sm:$0xff]   ;;  %v146_v41 = vld [vmem:[%s10644_s0 + $0x80] sm:$0xff] }
 0x251   :  { %6633 = vmatprep.subr.bf16.mxu1 %v9599_v42  ;;  %6663 = vmatprep.mubr.bf16.mxu1 %v205_v38  ;;  %v9675_v38 = vld [vmem:[#allocation2 + $0x11c8] ss:$16 sps:$4 sm:$0xff]  }
 0x252   :  { %v175_v42 = vld [vmem:[%s10644_s0 + $0x168] sm:$0xff] }
 0x253   :  { %5991 = vmatpush1.bf16.msra.mxu0 %v9594_v43  ;;  %v149_v43 = vld [vmem:[%s10644_s0 + $0x98] sm:$0xff] }
 0x254   :  { %6634 = vmatpush1.bf16.msra.mxu1 %v9597_v44  ;;  %5992 = vmatprep.subr.bf16.mxu0 %v9602_v45  ;;  %v178_v44 = vld [vmem:[%s10644_s0 + $0x180] sm:$0xff]  ;;  %v204_v45 = vpack.c.bf16 %v175_v42, %v146_v41  ;;  %v9759_v42 = vld [vmem:[#allocation2 + $0x1388] ss:$16 sps:$4 sm:$0xff]  }
 0x255   :  { %6635 = vmatprep.subr.bf16.mxu1 %v9605_v46  ;;  %v9678_v46 = vld [vmem:[#allocation2 + $0x1200] ss:$16 sps:$4 sm:$0xff]  }
 0x256   :  { %v9756_v41 = vld [vmem:[#allocation2 + $0x13a0] ss:$16 sps:$4 sm:$0xff]  }
 0x257   :  { %5993 = vmatpush1.bf16.msra.mxu0 %v9600_v47  ;;  %v9681_v47 = vld [vmem:[#allocation2 + $0x11e8] ss:$16 sps:$4 sm:$0xff]  }
 0x258   :  { %6636 = vmatpush1.bf16.msra.mxu1 %v9603_v48  ;;  %5994 = vmatprep.subr.bf16.mxu0 %v9608_v49  ;;  %v9686_v48 = vld [vmem:[#allocation2 + $0x1224] ss:$16 sps:$4 sm:$0xff]   ;;  %v9689_v49 = vld [vmem:[#allocation2 + $0x120c] ss:$16 sps:$4 sm:$0xff]  }
 0x259   :  { %6637 = vmatprep.subr.bf16.mxu1 %v9611_v50  ;;  %v207_v50 = vpack.c.bf16 %v178_v44, %v149_v43  ;;  %v9764_v43 = vld [vmem:[#allocation2 + $0x13c4] ss:$16 sps:$4 sm:$0xff]   ;;  %v9767_v44 = vld [vmem:[#allocation2 + $0x13ac] ss:$16 sps:$4 sm:$0xff]  }
 0x25b   :  { %5995 = vmatpush1.bf16.msra.mxu0 %v9606_v51  ;;  %v9684_v51 = vld [vmem:[#allocation2 + $0x1220] ss:$16 sps:$4 sm:$0xff]  }
 0x25c   :  { %6638 = vmatpush1.bf16.msra.mxu1 %v9609_v52  ;;  %5996 = vmatprep.subr.bf16.mxu0 %v9614_v53  ;;  %v9687_v52 = vld [vmem:[#allocation2 + $0x1208] ss:$16 sps:$4 sm:$0xff]   ;;  %v9692_v53 = vld [vmem:[#allocation2 + $0x1244] ss:$16 sps:$4 sm:$0xff]  }
 0x25d   :  { %6639 = vmatprep.subr.bf16.mxu1 %v9617_v54  ;;  %v9695_v54 = vld [vmem:[#allocation2 + $0x122c] ss:$16 sps:$4 sm:$0xff]  }
 0x25f   :  { %5997 = vmatpush1.bf16.msra.mxu0 %v9612_v55  ;;  %v9690_v55 = vld [vmem:[#allocation2 + $0x1240] ss:$16 sps:$4 sm:$0xff]  }
 0x260   :  { %6640 = vmatpush1.bf16.msra.mxu1 %v9615_v56  ;;  %5998 = vmatprep.subr.bf16.mxu0 %v9620_v57  ;;  %v9693_v56 = vld [vmem:[#allocation2 + $0x1228] ss:$16 sps:$4 sm:$0xff]   ;;  %v9698_v57 = vld [vmem:[#allocation2 + $0x1264] ss:$16 sps:$4 sm:$0xff]  }
 0x261   :  { %6641 = vmatprep.subr.bf16.mxu1 %v9623_v58  ;;  %v9701_v58 = vld [vmem:[#allocation2 + $0x124c] ss:$16 sps:$4 sm:$0xff]  }
 0x263   :  { %5999 = vmatpush1.bf16.msra.mxu0 %v9618_v59  ;;  %v9696_v59 = vld [vmem:[#allocation2 + $0x1260] ss:$16 sps:$4 sm:$0xff]  }
 0x264   :  { %6642 = vmatpush1.bf16.msra.mxu1 %v9621_v60  ;;  %6000 = vmatprep.subr.bf16.mxu0 %v9626_v63  ;;  %v9699_v60 = vld [vmem:[#allocation2 + $0x1248] ss:$16 sps:$4 sm:$0xff]   ;;  %v9704_v63 = vld [vmem:[#allocation2 + $0x1284] ss:$16 sps:$4 sm:$0xff]  }
 0x265   :  { %6643 = vmatprep.subr.bf16.mxu1 %v9629_v1  ;;  %v9707_v1 = vld [vmem:[#allocation2 + $0x126c] ss:$16 sps:$4 sm:$0xff]  }
 0x267   :  { %6001 = vmatpush1.bf16.msra.mxu0 %v9624_v3  ;;  %v9702_v3 = vld [vmem:[#allocation2 + $0x1280] ss:$16 sps:$4 sm:$0xff]  }
 0x268   :  { %6644 = vmatpush1.bf16.msra.mxu1 %v9627_v5  ;;  %6002 = vmatprep.subr.bf16.mxu0 %v9632_v6  ;;  %v9705_v5 = vld [vmem:[#allocation2 + $0x1268] ss:$16 sps:$4 sm:$0xff]   ;;  %v9710_v6 = vld [vmem:[#allocation2 + $0x12a4] ss:$16 sps:$4 sm:$0xff]  }
 0x269   :  { %6645 = vmatprep.subr.bf16.mxu1 %v9635_v7  ;;  %v9713_v7 = vld [vmem:[#allocation2 + $0x128c] ss:$16 sps:$4 sm:$0xff]  }
 0x26b   :  { %6003 = vmatpush1.bf16.msra.mxu0 %v9630_v9  ;;  %v9708_v9 = vld [vmem:[#allocation2 + $0x12a0] ss:$16 sps:$4 sm:$0xff]  }
 0x26c   :  { %6646 = vmatpush1.bf16.msra.mxu1 %v9633_v10  ;;  %6004 = vmatprep.subr.bf16.mxu0 %v9638_v11  ;;  %v9711_v10 = vld [vmem:[#allocation2 + $0x1288] ss:$16 sps:$4 sm:$0xff]   ;;  %v9716_v11 = vld [vmem:[#allocation2 + $0x12c4] ss:$16 sps:$4 sm:$0xff]  }
 0x26d   :  { %6647 = vmatprep.subr.bf16.mxu1 %v9641_v12  ;;  %v9719_v12 = vld [vmem:[#allocation2 + $0x12ac] ss:$16 sps:$4 sm:$0xff]  }
 0x26f   :  { %6005 = vmatpush1.bf16.msra.mxu0 %v9636_v13  ;;  %v9714_v13 = vld [vmem:[#allocation2 + $0x12c0] ss:$16 sps:$4 sm:$0xff]  }
 0x270   :  { %6648 = vmatpush1.bf16.msra.mxu1 %v9639_v14  ;;  %6006 = vmatprep.subr.bf16.mxu0 %v9644_v15  ;;  %v9717_v14 = vld [vmem:[#allocation2 + $0x12a8] ss:$16 sps:$4 sm:$0xff]   ;;  %v9722_v15 = vld [vmem:[#allocation2 + $0x12e4] ss:$16 sps:$4 sm:$0xff]  }
 0x271   :  { %6649 = vmatprep.subr.bf16.mxu1 %v9647_v16  ;;  %v9725_v16 = vld [vmem:[#allocation2 + $0x12cc] ss:$16 sps:$4 sm:$0xff]  }
 0x273   :  { %6007 = vmatpush1.bf16.msra.mxu0 %v9642_v17  ;;  %v9720_v17 = vld [vmem:[#allocation2 + $0x12e0] ss:$16 sps:$4 sm:$0xff]  }
 0x274   :  { %6650 = vmatpush1.bf16.msra.mxu1 %v9645_v18  ;;  %6008 = vmatprep.subr.bf16.mxu0 %v9650_v19  ;;  %v9723_v18 = vld [vmem:[#allocation2 + $0x12c8] ss:$16 sps:$4 sm:$0xff]   ;;  %v9728_v19 = vld [vmem:[#allocation2 + $0x1304] ss:$16 sps:$4 sm:$0xff]  }
 0x275   :  { %6651 = vmatprep.subr.bf16.mxu1 %v9653_v20  ;;  %v9731_v20 = vld [vmem:[#allocation2 + $0x12ec] ss:$16 sps:$4 sm:$0xff]  }
 0x277   :  { %6009 = vmatpush1.bf16.msra.mxu0 %v9648_v21  ;;  %v9726_v21 = vld [vmem:[#allocation2 + $0x1300] ss:$16 sps:$4 sm:$0xff]  }
 0x278   :  { %6652 = vmatpush1.bf16.msra.mxu1 %v9651_v22  ;;  %6010 = vmatprep.subr.bf16.mxu0 %v9656_v23  ;;  %v9729_v22 = vld [vmem:[#allocation2 + $0x12e8] ss:$16 sps:$4 sm:$0xff]   ;;  %v9734_v23 = vld [vmem:[#allocation2 + $0x1324] ss:$16 sps:$4 sm:$0xff]  }
 0x279   :  { %6653 = vmatprep.subr.bf16.mxu1 %v9659_v24  ;;  %v9737_v24 = vld [vmem:[#allocation2 + $0x130c] ss:$16 sps:$4 sm:$0xff]  }
 0x27b   :  { %6011 = vmatpush1.bf16.msra.mxu0 %v9654_v25  ;;  %v9732_v25 = vld [vmem:[#allocation2 + $0x1320] ss:$16 sps:$4 sm:$0xff]  }
 0x27c   :  { %6654 = vmatpush1.bf16.msra.mxu1 %v9657_v26  ;;  %6012 = vmatprep.subr.bf16.mxu0 %v9662_v27  ;;  %v9735_v26 = vld [vmem:[#allocation2 + $0x1308] ss:$16 sps:$4 sm:$0xff]   ;;  %v9740_v27 = vld [vmem:[#allocation2 + $0x1344] ss:$16 sps:$4 sm:$0xff]  }
 0x27d   :  { %6655 = vmatprep.subr.bf16.mxu1 %v9665_v28  ;;  %v9743_v28 = vld [vmem:[#allocation2 + $0x132c] ss:$16 sps:$4 sm:$0xff]  }
 0x27f   :  { %6013 = vmatpush1.bf16.msra.mxu0 %v9660_v29  ;;  %v9738_v29 = vld [vmem:[#allocation2 + $0x1340] ss:$16 sps:$4 sm:$0xff]  }
 0x280   :  { %6656 = vmatpush1.bf16.msra.mxu1 %v9663_v30  ;;  %6014 = vmatprep.subr.bf16.mxu0 %v9668_v31  ;;  %v9741_v30 = vld [vmem:[#allocation2 + $0x1328] ss:$16 sps:$4 sm:$0xff]   ;;  %v9746_v31 = vld [vmem:[#allocation2 + $0x1364] ss:$16 sps:$4 sm:$0xff]  }
 0x281   :  { %6657 = vmatprep.subr.bf16.mxu1 %v9671_v32  ;;  %v9749_v32 = vld [vmem:[#allocation2 + $0x134c] ss:$16 sps:$4 sm:$0xff]  }
 0x283   :  { %6015 = vmatpush1.bf16.msra.mxu0 %v9666_v33  ;;  %v9744_v33 = vld [vmem:[#allocation2 + $0x1360] ss:$16 sps:$4 sm:$0xff]  }
 0x284   :  { %6658 = vmatpush1.bf16.msra.mxu1 %v9669_v34  ;;  %6016 = vmatprep.subr.bf16.mxu0 %v9674_v35  ;;  %v9747_v34 = vld [vmem:[#allocation2 + $0x1348] ss:$16 sps:$4 sm:$0xff]   ;;  %v9752_v35 = vld [vmem:[#allocation2 + $0x1384] ss:$16 sps:$4 sm:$0xff]  }
 0x285   :  { %6659 = vmatprep.subr.bf16.mxu1 %v9677_v36  ;;  %v9755_v36 = vld [vmem:[#allocation2 + $0x136c] ss:$16 sps:$4 sm:$0xff]  }
 0x287   :  { %6017 = vmatpush1.bf16.msra.mxu0 %v9672_v37  ;;  %v9750_v37 = vld [vmem:[#allocation2 + $0x1380] ss:$16 sps:$4 sm:$0xff]  }
 0x288   :  { %6660 = vmatpush1.bf16.msra.mxu1 %v9675_v38  ;;  %6029 = vmatprep.subr.bf16.mxu0 %v9680_v39  ;;  %v9753_v38 = vld [vmem:[#allocation2 + $0x1368] ss:$16 sps:$4 sm:$0xff]   ;;  %v9758_v39 = vld [vmem:[#allocation2 + $0x13a4] ss:$16 sps:$4 sm:$0xff]  }
 0x289   :  { %6661 = vmatprep.subr.bf16.mxu1 %v9683_v40  ;;  %v9761_v40 = vld [vmem:[#allocation2 + $0x138c] ss:$16 sps:$4 sm:$0xff]  }
 0x28a   :  { %6019 = vmatmul.mubr.bf16.vlgmr.msra.gmra.mrb[0].mxu0 %v204_v45 }
 0x28b   :  { %6030 = vmatpush1.bf16.msra.mxu0 %v9678_v46  ;;  %6061 = vmatprep.mubr.bf16.mxu0 %v207_v50  ;;  %v9765_v46 = vld [vmem:[#allocation2 + $0x13a8] ss:$16 sps:$4 sm:$0xff]  }
 0x28c   :  { %6662 = vmatpush1.bf16.msra.mxu1 %v9681_v47  ;;  %6031 = vmatprep.subr.bf16.mxu0 %v9686_v48  ;;  %v9770_v47 = vld [vmem:[#allocation2 + $0x13e4] ss:$16 sps:$4 sm:$0xff]   ;;  %v9773_v48 = vld [vmem:[#allocation2 + $0x13cc] ss:$16 sps:$4 sm:$0xff]  }
 0x28d   :  { %6674 = vmatprep.subr.bf16.mxu1 %v9689_v49  ;;  %v9768_v49 = vld [vmem:[#allocation2 + $0x13e0] ss:$16 sps:$4 sm:$0xff]  }
 0x28f   :  { %6664 = vmatmul.mubr.bf16.vlgmr.msra.gmra.mrb[4].mxu1 %v204_v45  ;;  %6032 = vmatpush1.bf16.msra.mxu0 %v9684_v51  ;;  %v9762_v45 = vld [vmem:[#allocation2 + $0x13c0] ss:$16 sps:$4 sm:$0xff]  }
 0x290   :  { %6675 = vmatpush1.bf16.msra.mxu1 %v9687_v52  ;;  %6033 = vmatprep.subr.bf16.mxu0 %v9692_v53  ;;  %v148_v51 = vld [vmem:[%s10644_s0 + $0x90] sm:$0xff]  ;;  %v177_v52 = vld [vmem:[%s10644_s0 + $0x178] sm:$0xff] }
 0x291   :  { %6676 = vmatprep.subr.bf16.mxu1 %v9695_v54  ;;  %6706 = vmatprep.mubr.bf16.mxu1 %v207_v50  ;;  %v9771_v50 = vld [vmem:[#allocation2 + $0x13c8] ss:$16 sps:$4 sm:$0xff]   ;;  %v9776_v53 = vld [vmem:[#allocation2 + $0x1404] ss:$16 sps:$4 sm:$0xff]   ;;  %v9779_v54 = vld [vmem:[#allocation2 + $0x13ec] ss:$16 sps:$4 sm:$0xff]  }
 0x293   :  { %6034 = vmatpush1.bf16.msra.mxu0 %v9690_v55  ;;  %v206_v55 = vpack.c.bf16 %v177_v52, %v148_v51  ;;  %v9854_v51 = vld [vmem:[#allocation2 + $0x15a4] ss:$16 sps:$4 sm:$0xff]   ;;  %v9857_v52 = vld [vmem:[#allocation2 + $0x158c] ss:$16 sps:$4 sm:$0xff]  }
 0x294   :  { %6677 = vmatpush1.bf16.msra.mxu1 %v9693_v56  ;;  %6035 = vmatprep.subr.bf16.mxu0 %v9698_v57  ;;  %v151_v56 = vld [vmem:[%s10644_s0 + $0xa8] sm:$0xff]  ;;  %v180_v57 = vld [vmem:[%s10644_s0 + $0x190] sm:$0xff] }
 0x295   :  { %6678 = vmatprep.subr.bf16.mxu1 %v9701_v58  ;;  %v9774_v58 = vld [vmem:[#allocation2 + $0x1400] ss:$16 sps:$4 sm:$0xff]  }
 0x297   :  { %6036 = vmatpush1.bf16.msra.mxu0 %v9696_v59  ;;  %v9777_v59 = vld [vmem:[#allocation2 + $0x13e8] ss:$16 sps:$4 sm:$0xff]  }
 0x298   :  { %6679 = vmatpush1.bf16.msra.mxu1 %v9699_v60  ;;  %6037 = vmatprep.subr.bf16.mxu0 %v9704_v63  ;;  %v9782_v60 = vld [vmem:[#allocation2 + $0x1424] ss:$16 sps:$4 sm:$0xff]   ;;  %v9785_v63 = vld [vmem:[#allocation2 + $0x140c] ss:$16 sps:$4 sm:$0xff]  }
 0x299   :  { %6680 = vmatprep.subr.bf16.mxu1 %v9707_v1  ;;  %v209_v1 = vpack.c.bf16 %v180_v57, %v151_v56  ;;  %v9863_v56 = vld [vmem:[#allocation2 + $0x15ac] ss:$16 sps:$4 sm:$0xff]   ;;  %v9858_v57 = vld [vmem:[#allocation2 + $0x15c0] ss:$16 sps:$4 sm:$0xff]  }
 0x29b   :  { %6038 = vmatpush1.bf16.msra.mxu0 %v9702_v3  ;;  %v9780_v3 = vld [vmem:[#allocation2 + $0x1420] ss:$16 sps:$4 sm:$0xff]  }
 0x29c   :  { %6681 = vmatpush1.bf16.msra.mxu1 %v9705_v5  ;;  %6039 = vmatprep.subr.bf16.mxu0 %v9710_v6  ;;  %v9783_v5 = vld [vmem:[#allocation2 + $0x1408] ss:$16 sps:$4 sm:$0xff]   ;;  %v9788_v6 = vld [vmem:[#allocation2 + $0x1444] ss:$16 sps:$4 sm:$0xff]  }
 0x29d   :  { %6682 = vmatprep.subr.bf16.mxu1 %v9713_v7  ;;  %v9791_v7 = vld [vmem:[#allocation2 + $0x142c] ss:$16 sps:$4 sm:$0xff]  }
 0x29f   :  { %6040 = vmatpush1.bf16.msra.mxu0 %v9708_v9  ;;  %v9786_v9 = vld [vmem:[#allocation2 + $0x1440] ss:$16 sps:$4 sm:$0xff]  }
 0x2a0   :  { %6683 = vmatpush1.bf16.msra.mxu1 %v9711_v10  ;;  %6041 = vmatprep.subr.bf16.mxu0 %v9716_v11  ;;  %v9789_v10 = vld [vmem:[#allocation2 + $0x1428] ss:$16 sps:$4 sm:$0xff]   ;;  %v9794_v11 = vld [vmem:[#allocation2 + $0x1464] ss:$16 sps:$4 sm:$0xff]  }
 0x2a1   :  { %6684 = vmatprep.subr.bf16.mxu1 %v9719_v12  ;;  %v9797_v12 = vld [vmem:[#allocation2 + $0x144c] ss:$16 sps:$4 sm:$0xff]  }
 0x2a3   :  { %6042 = vmatpush1.bf16.msra.mxu0 %v9714_v13  ;;  %v9792_v13 = vld [vmem:[#allocation2 + $0x1460] ss:$16 sps:$4 sm:$0xff]  }
 0x2a4   :  { %6685 = vmatpush1.bf16.msra.mxu1 %v9717_v14  ;;  %6043 = vmatprep.subr.bf16.mxu0 %v9722_v15  ;;  %v9795_v14 = vld [vmem:[#allocation2 + $0x1448] ss:$16 sps:$4 sm:$0xff]   ;;  %v9800_v15 = vld [vmem:[#allocation2 + $0x1484] ss:$16 sps:$4 sm:$0xff]  }
 0x2a5   :  { %6686 = vmatprep.subr.bf16.mxu1 %v9725_v16  ;;  %v9803_v16 = vld [vmem:[#allocation2 + $0x146c] ss:$16 sps:$4 sm:$0xff]  }
 0x2a7   :  { %6044 = vmatpush1.bf16.msra.mxu0 %v9720_v17  ;;  %v9798_v17 = vld [vmem:[#allocation2 + $0x1480] ss:$16 sps:$4 sm:$0xff]  }
 0x2a8   :  { %6687 = vmatpush1.bf16.msra.mxu1 %v9723_v18  ;;  %6045 = vmatprep.subr.bf16.mxu0 %v9728_v19  ;;  %v9801_v18 = vld [vmem:[#allocation2 + $0x1468] ss:$16 sps:$4 sm:$0xff]   ;;  %v9806_v19 = vld [vmem:[#allocation2 + $0x14a4] ss:$16 sps:$4 sm:$0xff]  }
 0x2a9   :  { %6688 = vmatprep.subr.bf16.mxu1 %v9731_v20  ;;  %v9809_v20 = vld [vmem:[#allocation2 + $0x148c] ss:$16 sps:$4 sm:$0xff]  }
 0x2ab   :  { %6046 = vmatpush1.bf16.msra.mxu0 %v9726_v21  ;;  %v9804_v21 = vld [vmem:[#allocation2 + $0x14a0] ss:$16 sps:$4 sm:$0xff]  }
 0x2ac   :  { %6689 = vmatpush1.bf16.msra.mxu1 %v9729_v22  ;;  %6047 = vmatprep.subr.bf16.mxu0 %v9734_v23  ;;  %v9807_v22 = vld [vmem:[#allocation2 + $0x1488] ss:$16 sps:$4 sm:$0xff]   ;;  %v9812_v23 = vld [vmem:[#allocation2 + $0x14c4] ss:$16 sps:$4 sm:$0xff]  }
 0x2ad   :  { %6690 = vmatprep.subr.bf16.mxu1 %v9737_v24  ;;  %v9815_v24 = vld [vmem:[#allocation2 + $0x14ac] ss:$16 sps:$4 sm:$0xff]  }
 0x2af   :  { %6048 = vmatpush1.bf16.msra.mxu0 %v9732_v25  ;;  %v9810_v25 = vld [vmem:[#allocation2 + $0x14c0] ss:$16 sps:$4 sm:$0xff]  }
 0x2b0   :  { %6691 = vmatpush1.bf16.msra.mxu1 %v9735_v26  ;;  %6049 = vmatprep.subr.bf16.mxu0 %v9740_v27  ;;  %v9813_v26 = vld [vmem:[#allocation2 + $0x14a8] ss:$16 sps:$4 sm:$0xff]   ;;  %v9818_v27 = vld [vmem:[#allocation2 + $0x14e4] ss:$16 sps:$4 sm:$0xff]  }
 0x2b1   :  { %6692 = vmatprep.subr.bf16.mxu1 %v9743_v28  ;;  %v9821_v28 = vld [vmem:[#allocation2 + $0x14cc] ss:$16 sps:$4 sm:$0xff]  }
 0x2b3   :  { %6050 = vmatpush1.bf16.msra.mxu0 %v9738_v29  ;;  %v9816_v29 = vld [vmem:[#allocation2 + $0x14e0] ss:$16 sps:$4 sm:$0xff]  }
 0x2b4   :  { %6693 = vmatpush1.bf16.msra.mxu1 %v9741_v30  ;;  %6051 = vmatprep.subr.bf16.mxu0 %v9746_v31  ;;  %v9819_v30 = vld [vmem:[#allocation2 + $0x14c8] ss:$16 sps:$4 sm:$0xff]   ;;  %v9824_v31 = vld [vmem:[#allocation2 + $0x1504] ss:$16 sps:$4 sm:$0xff]  }
 0x2b5   :  { %6694 = vmatprep.subr.bf16.mxu1 %v9749_v32  ;;  %v9827_v32 = vld [vmem:[#allocation2 + $0x14ec] ss:$16 sps:$4 sm:$0xff]  }
 0x2b7   :  { %6052 = vmatpush1.bf16.msra.mxu0 %v9744_v33  ;;  %v9822_v33 = vld [vmem:[#allocation2 + $0x1500] ss:$16 sps:$4 sm:$0xff]  }
 0x2b8   :  { %6695 = vmatpush1.bf16.msra.mxu1 %v9747_v34  ;;  %6053 = vmatprep.subr.bf16.mxu0 %v9752_v35  ;;  %v9825_v34 = vld [vmem:[#allocation2 + $0x14e8] ss:$16 sps:$4 sm:$0xff]   ;;  %v9830_v35 = vld [vmem:[#allocation2 + $0x1524] ss:$16 sps:$4 sm:$0xff]  }
 0x2b9   :  { %6696 = vmatprep.subr.bf16.mxu1 %v9755_v36  ;;  %v9833_v36 = vld [vmem:[#allocation2 + $0x150c] ss:$16 sps:$4 sm:$0xff]  }
 0x2bb   :  { %6054 = vmatpush1.bf16.msra.mxu0 %v9750_v37  ;;  %v9828_v37 = vld [vmem:[#allocation2 + $0x1520] ss:$16 sps:$4 sm:$0xff]  }
 0x2bc   :  { %6697 = vmatpush1.bf16.msra.mxu1 %v9753_v38  ;;  %6055 = vmatprep.subr.bf16.mxu0 %v9758_v39  ;;  %v9831_v38 = vld [vmem:[#allocation2 + $0x1508] ss:$16 sps:$4 sm:$0xff]   ;;  %v9836_v39 = vld [vmem:[#allocation2 + $0x1544] ss:$16 sps:$4 sm:$0xff]  }
 0x2bd   :  { %6698 = vmatprep.subr.bf16.mxu1 %v9761_v40  ;;  %v9839_v40 = vld [vmem:[#allocation2 + $0x152c] ss:$16 sps:$4 sm:$0xff]  }
 0x2bf   :  { %6056 = vmatpush1.bf16.msra.mxu0 %v9756_v41  ;;  %v9834_v41 = vld [vmem:[#allocation2 + $0x1540] ss:$16 sps:$4 sm:$0xff]  }
 0x2c0   :  { %6699 = vmatpush1.bf16.msra.mxu1 %v9759_v42  ;;  %6057 = vmatprep.subr.bf16.mxu0 %v9764_v43  ;;  %v9837_v42 = vld [vmem:[#allocation2 + $0x1528] ss:$16 sps:$4 sm:$0xff]   ;;  %v9842_v43 = vld [vmem:[#allocation2 + $0x1564] ss:$16 sps:$4 sm:$0xff]  }
 0x2c1   :  { %6700 = vmatprep.subr.bf16.mxu1 %v9767_v44  ;;  %v9845_v44 = vld [vmem:[#allocation2 + $0x154c] ss:$16 sps:$4 sm:$0xff]  }
 0x2c3   :  { %6058 = vmatpush1.bf16.msra.mxu0 %v9762_v45  ;;  %v9840_v45 = vld [vmem:[#allocation2 + $0x1560] ss:$16 sps:$4 sm:$0xff]  }
 0x2c4   :  { %6701 = vmatpush1.bf16.msra.mxu1 %v9765_v46  ;;  %6059 = vmatprep.subr.bf16.mxu0 %v9770_v47  ;;  %v9843_v46 = vld [vmem:[#allocation2 + $0x1548] ss:$16 sps:$4 sm:$0xff]   ;;  %v9848_v47 = vld [vmem:[#allocation2 + $0x1584] ss:$16 sps:$4 sm:$0xff]  }
 0x2c5   :  { %6702 = vmatprep.subr.bf16.mxu1 %v9773_v48  ;;  %v9851_v48 = vld [vmem:[#allocation2 + $0x156c] ss:$16 sps:$4 sm:$0xff]  }
 0x2c7   :  { %6060 = vmatpush1.bf16.msra.mxu0 %v9768_v49  ;;  %v9846_v49 = vld [vmem:[#allocation2 + $0x1580] ss:$16 sps:$4 sm:$0xff]  }
 0x2c8   :  { %6703 = vmatpush1.bf16.msra.mxu1 %v9771_v50  ;;  %6072 = vmatprep.subr.bf16.mxu0 %v9776_v53  ;;  %v9849_v50 = vld [vmem:[#allocation2 + $0x1568] ss:$16 sps:$4 sm:$0xff]   ;;  %v9852_v53 = vld [vmem:[#allocation2 + $0x15a0] ss:$16 sps:$4 sm:$0xff]  }
 0x2c9   :  { %6704 = vmatprep.subr.bf16.mxu1 %v9779_v54  ;;  %v9855_v54 = vld [vmem:[#allocation2 + $0x1588] ss:$16 sps:$4 sm:$0xff]  }
 0x2ca   :  { %6062 = vmatmul.mubr.bf16.vlgmr.msra.gmra.mrb[0].mxu0 %v206_v55 }
 0x2cb   :  { %6073 = vmatpush1.bf16.msra.mxu0 %v9774_v58  ;;  %6104 = vmatprep.mubr.bf16.mxu0 %v209_v1  ;;  %v9861_v58 = vld [vmem:[#allocation2 + $0x15a8] ss:$16 sps:$4 sm:$0xff]  }
 0x2cc   :  { %6705 = vmatpush1.bf16.msra.mxu1 %v9777_v59  ;;  %6074 = vmatprep.subr.bf16.mxu0 %v9782_v60  ;;  %v9866_v59 = vld [vmem:[#allocation2 + $0x15e4] ss:$16 sps:$4 sm:$0xff]   ;;  %v9869_v60 = vld [vmem:[#allocation2 + $0x15cc] ss:$16 sps:$4 sm:$0xff]  }
 0x2cd   :  { %6717 = vmatprep.subr.bf16.mxu1 %v9785_v63  ;;  %v9864_v63 = vld [vmem:[#allocation2 + $0x15e0] ss:$16 sps:$4 sm:$0xff]  }
 0x2cf   :  { %6707 = vmatmul.mubr.bf16.vlgmr.msra.gmra.mrb[4].mxu1 %v206_v55  ;;  %6075 = vmatpush1.bf16.msra.mxu0 %v9780_v3  ;;  %v9860_v55 = vld [vmem:[#allocation2 + $0x15c4] ss:$16 sps:$4 sm:$0xff]  }
 0x2d0   :  { %6718 = vmatpush1.bf16.msra.mxu1 %v9783_v5  ;;  %6076 = vmatprep.subr.bf16.mxu0 %v9788_v6  ;;  %v150_v3 = vld [vmem:[%s10644_s0 + $0xa0] sm:$0xff]  ;;  %v179_v5 = vld [vmem:[%s10644_s0 + $0x188] sm:$0xff] }
 0x2d1   :  { %6719 = vmatprep.subr.bf16.mxu1 %v9791_v7  ;;  %6749 = vmatprep.mubr.bf16.mxu1 %v209_v1  ;;  %v9867_v1 = vld [vmem:[#allocation2 + $0x15c8] ss:$16 sps:$4 sm:$0xff]   ;;  %v9872_v6 = vld [vmem:[#allocation2 + $0x1604] ss:$16 sps:$4 sm:$0xff]   ;;  %v9875_v7 = vld [vmem:[#allocation2 + $0x15ec] ss:$16 sps:$4 sm:$0xff]  }
 0x2d3   :  { %6077 = vmatpush1.bf16.msra.mxu0 %v9786_v9  ;;  %v208_v9 = vpack.c.bf16 %v179_v5, %v150_v3  ;;  %v9950_v3 = vld [vmem:[#allocation2 + $0x17a4] ss:$16 sps:$4 sm:$0xff]   ;;  %v9953_v5 = vld [vmem:[#allocation2 + $0x178c] ss:$16 sps:$4 sm:$0xff]  }
 0x2d4   :  { %6720 = vmatpush1.bf16.msra.mxu1 %v9789_v10  ;;  %6078 = vmatprep.subr.bf16.mxu0 %v9794_v11  ;;  %v153_v10 = vld [vmem:[%s10644_s0 + $0xb8] sm:$0xff]  ;;  %v182_v11 = vld [vmem:[%s10644_s0 + $0x1a0] sm:$0xff] }
 0x2d5   :  { %6721 = vmatprep.subr.bf16.mxu1 %v9797_v12  ;;  %v9870_v12 = vld [vmem:[#allocation2 + $0x1600] ss:$16 sps:$4 sm:$0xff]  }
 0x2d7   :  { %6079 = vmatpush1.bf16.msra.mxu0 %v9792_v13  ;;  %v9873_v13 = vld [vmem:[#allocation2 + $0x15e8] ss:$16 sps:$4 sm:$0xff]  }
 0x2d8   :  { %6722 = vmatpush1.bf16.msra.mxu1 %v9795_v14  ;;  %6080 = vmatprep.subr.bf16.mxu0 %v9800_v15  ;;  %v9878_v14 = vld [vmem:[#allocation2 + $0x1624] ss:$16 sps:$4 sm:$0xff]   ;;  %v9881_v15 = vld [vmem:[#allocation2 + $0x160c] ss:$16 sps:$4 sm:$0xff]  }
 0x2d9   :  { %6723 = vmatprep.subr.bf16.mxu1 %v9803_v16  ;;  %v211_v16 = vpack.c.bf16 %v182_v11, %v153_v10  ;;  %v9959_v10 = vld [vmem:[#allocation2 + $0x17ac] ss:$16 sps:$4 sm:$0xff]   ;;  %v9954_v11 = vld [vmem:[#allocation2 + $0x17c0] ss:$16 sps:$4 sm:$0xff]  }
 0x2db   :  { %6081 = vmatpush1.bf16.msra.mxu0 %v9798_v17  ;;  %v9876_v17 = vld [vmem:[#allocation2 + $0x1620] ss:$16 sps:$4 sm:$0xff]  }
 0x2dc   :  { %6724 = vmatpush1.bf16.msra.mxu1 %v9801_v18  ;;  %6082 = vmatprep.subr.bf16.mxu0 %v9806_v19  ;;  %v9879_v18 = vld [vmem:[#allocation2 + $0x1608] ss:$16 sps:$4 sm:$0xff]   ;;  %v9884_v19 = vld [vmem:[#allocation2 + $0x1644] ss:$16 sps:$4 sm:$0xff]  }
 0x2dd   :  { %6725 = vmatprep.subr.bf16.mxu1 %v9809_v20  ;;  %v9887_v20 = vld [vmem:[#allocation2 + $0x162c] ss:$16 sps:$4 sm:$0xff]  }
 0x2df   :  { %6083 = vmatpush1.bf16.msra.mxu0 %v9804_v21  ;;  %v9882_v21 = vld [vmem:[#allocation2 + $0x1640] ss:$16 sps:$4 sm:$0xff]  }
 0x2e0   :  { %6726 = vmatpush1.bf16.msra.mxu1 %v9807_v22  ;;  %6084 = vmatprep.subr.bf16.mxu0 %v9812_v23  ;;  %v9885_v22 = vld [vmem:[#allocation2 + $0x1628] ss:$16 sps:$4 sm:$0xff]   ;;  %v9890_v23 = vld [vmem:[#allocation2 + $0x1664] ss:$16 sps:$4 sm:$0xff]  }
 0x2e1   :  { %6727 = vmatprep.subr.bf16.mxu1 %v9815_v24  ;;  %v9893_v24 = vld [vmem:[#allocation2 + $0x164c] ss:$16 sps:$4 sm:$0xff]  }
 0x2e3   :  { %6085 = vmatpush1.bf16.msra.mxu0 %v9810_v25  ;;  %v9888_v25 = vld [vmem:[#allocation2 + $0x1660] ss:$16 sps:$4 sm:$0xff]  }
 0x2e4   :  { %6728 = vmatpush1.bf16.msra.mxu1 %v9813_v26  ;;  %6086 = vmatprep.subr.bf16.mxu0 %v9818_v27  ;;  %v9891_v26 = vld [vmem:[#allocation2 + $0x1648] ss:$16 sps:$4 sm:$0xff]   ;;  %v9896_v27 = vld [vmem:[#allocation2 + $0x1684] ss:$16 sps:$4 sm:$0xff]  }
 0x2e5   :  { %6729 = vmatprep.subr.bf16.mxu1 %v9821_v28  ;;  %v9899_v28 = vld [vmem:[#allocation2 + $0x166c] ss:$16 sps:$4 sm:$0xff]  }
 0x2e7   :  { %6087 = vmatpush1.bf16.msra.mxu0 %v9816_v29  ;;  %v9894_v29 = vld [vmem:[#allocation2 + $0x1680] ss:$16 sps:$4 sm:$0xff]  }
 0x2e8   :  { %6730 = vmatpush1.bf16.msra.mxu1 %v9819_v30  ;;  %6088 = vmatprep.subr.bf16.mxu0 %v9824_v31  ;;  %v9897_v30 = vld [vmem:[#allocation2 + $0x1668] ss:$16 sps:$4 sm:$0xff]   ;;  %v9902_v31 = vld [vmem:[#allocation2 + $0x16a4] ss:$16 sps:$4 sm:$0xff]  }
 0x2e9   :  { %6731 = vmatprep.subr.bf16.mxu1 %v9827_v32  ;;  %v9905_v32 = vld [vmem:[#allocation2 + $0x168c] ss:$16 sps:$4 sm:$0xff]  }
 0x2eb   :  { %6089 = vmatpush1.bf16.msra.mxu0 %v9822_v33  ;;  %v9900_v33 = vld [vmem:[#allocation2 + $0x16a0] ss:$16 sps:$4 sm:$0xff]  }
 0x2ec   :  { %6732 = vmatpush1.bf16.msra.mxu1 %v9825_v34  ;;  %6090 = vmatprep.subr.bf16.mxu0 %v9830_v35  ;;  %v9903_v34 = vld [vmem:[#allocation2 + $0x1688] ss:$16 sps:$4 sm:$0xff]   ;;  %v9908_v35 = vld [vmem:[#allocation2 + $0x16c4] ss:$16 sps:$4 sm:$0xff]  }
 0x2ed   :  { %6733 = vmatprep.subr.bf16.mxu1 %v9833_v36  ;;  %v9911_v36 = vld [vmem:[#allocation2 + $0x16ac] ss:$16 sps:$4 sm:$0xff]  }
 0x2ef   :  { %6091 = vmatpush1.bf16.msra.mxu0 %v9828_v37  ;;  %v9906_v37 = vld [vmem:[#allocation2 + $0x16c0] ss:$16 sps:$4 sm:$0xff]  }
 0x2f0   :  { %6734 = vmatpush1.bf16.msra.mxu1 %v9831_v38  ;;  %6092 = vmatprep.subr.bf16.mxu0 %v9836_v39  ;;  %v9909_v38 = vld [vmem:[#allocation2 + $0x16a8] ss:$16 sps:$4 sm:$0xff]   ;;  %v9914_v39 = vld [vmem:[#allocation2 + $0x16e4] ss:$16 sps:$4 sm:$0xff]  }
 0x2f1   :  { %6735 = vmatprep.subr.bf16.mxu1 %v9839_v40  ;;  %v9917_v40 = vld [vmem:[#allocation2 + $0x16cc] ss:$16 sps:$4 sm:$0xff]  }
 0x2f3   :  { %6093 = vmatpush1.bf16.msra.mxu0 %v9834_v41  ;;  %v9912_v41 = vld [vmem:[#allocation2 + $0x16e0] ss:$16 sps:$4 sm:$0xff]  }
 0x2f4   :  { %6736 = vmatpush1.bf16.msra.mxu1 %v9837_v42  ;;  %6094 = vmatprep.subr.bf16.mxu0 %v9842_v43  ;;  %v9915_v42 = vld [vmem:[#allocation2 + $0x16c8] ss:$16 sps:$4 sm:$0xff]   ;;  %v9920_v43 = vld [vmem:[#allocation2 + $0x1704] ss:$16 sps:$4 sm:$0xff]  }
 0x2f5   :  { %6737 = vmatprep.subr.bf16.mxu1 %v9845_v44  ;;  %v9923_v44 = vld [vmem:[#allocation2 + $0x16ec] ss:$16 sps:$4 sm:$0xff]  }
 0x2f7   :  { %6095 = vmatpush1.bf16.msra.mxu0 %v9840_v45  ;;  %v9918_v45 = vld [vmem:[#allocation2 + $0x1700] ss:$16 sps:$4 sm:$0xff]  }
 0x2f8   :  { %6738 = vmatpush1.bf16.msra.mxu1 %v9843_v46  ;;  %6096 = vmatprep.subr.bf16.mxu0 %v9848_v47  ;;  %v9921_v46 = vld [vmem:[#allocation2 + $0x16e8] ss:$16 sps:$4 sm:$0xff]   ;;  %v9926_v47 = vld [vmem:[#allocation2 + $0x1724] ss:$16 sps:$4 sm:$0xff]  }
 0x2f9   :  { %6739 = vmatprep.subr.bf16.mxu1 %v9851_v48  ;;  %v9929_v48 = vld [vmem:[#allocation2 + $0x170c] ss:$16 sps:$4 sm:$0xff]  }
 0x2fb   :  { %6097 = vmatpush1.bf16.msra.mxu0 %v9846_v49  ;;  %v9924_v49 = vld [vmem:[#allocation2 + $0x1720] ss:$16 sps:$4 sm:$0xff]  }
 0x2fc   :  { %6740 = vmatpush1.bf16.msra.mxu1 %v9849_v50  ;;  %6098 = vmatprep.subr.bf16.mxu0 %v9854_v51  ;;  %v9927_v50 = vld [vmem:[#allocation2 + $0x1708] ss:$16 sps:$4 sm:$0xff]   ;;  %v9932_v51 = vld [vmem:[#allocation2 + $0x1744] ss:$16 sps:$4 sm:$0xff]  }
 0x2fd   :  { %6741 = vmatprep.subr.bf16.mxu1 %v9857_v52  ;;  %v9935_v52 = vld [vmem:[#allocation2 + $0x172c] ss:$16 sps:$4 sm:$0xff]  }
 0x2ff   :  { %6099 = vmatpush1.bf16.msra.mxu0 %v9852_v53  ;;  %v9930_v53 = vld [vmem:[#allocation2 + $0x1740] ss:$16 sps:$4 sm:$0xff]  }
 0x300   :  { %6742 = vmatpush1.bf16.msra.mxu1 %v9855_v54  ;;  %6100 = vmatprep.subr.bf16.mxu0 %v9860_v55  ;;  %v9933_v54 = vld [vmem:[#allocation2 + $0x1728] ss:$16 sps:$4 sm:$0xff]   ;;  %v9938_v55 = vld [vmem:[#allocation2 + $0x1764] ss:$16 sps:$4 sm:$0xff]  }
 0x301   :  { %6743 = vmatprep.subr.bf16.mxu1 %v9863_v56  ;;  %v9941_v56 = vld [vmem:[#allocation2 + $0x174c] ss:$16 sps:$4 sm:$0xff]  }
 0x303   :  { %6101 = vmatpush1.bf16.msra.mxu0 %v9858_v57  ;;  %v9936_v57 = vld [vmem:[#allocation2 + $0x1760] ss:$16 sps:$4 sm:$0xff]  }
 0x304   :  { %6744 = vmatpush1.bf16.msra.mxu1 %v9861_v58  ;;  %6102 = vmatprep.subr.bf16.mxu0 %v9866_v59  ;;  %v9939_v58 = vld [vmem:[#allocation2 + $0x1748] ss:$16 sps:$4 sm:$0xff]   ;;  %v9944_v59 = vld [vmem:[#allocation2 + $0x1784] ss:$16 sps:$4 sm:$0xff]  }
 0x305   :  { %6745 = vmatprep.subr.bf16.mxu1 %v9869_v60  ;;  %v9947_v60 = vld [vmem:[#allocation2 + $0x176c] ss:$16 sps:$4 sm:$0xff]  }
 0x307   :  { %6103 = vmatpush1.bf16.msra.mxu0 %v9864_v63  ;;  %v9942_v63 = vld [vmem:[#allocation2 + $0x1780] ss:$16 sps:$4 sm:$0xff]  }
 0x308   :  { %6746 = vmatpush1.bf16.msra.mxu1 %v9867_v1  ;;  %6115 = vmatprep.subr.bf16.mxu0 %v9872_v6  ;;  %v9945_v1 = vld [vmem:[#allocation2 + $0x1768] ss:$16 sps:$4 sm:$0xff]   ;;  %v9948_v6 = vld [vmem:[#allocation2 + $0x17a0] ss:$16 sps:$4 sm:$0xff]  }
 0x309   :  { %6747 = vmatprep.subr.bf16.mxu1 %v9875_v7  ;;  %v9951_v7 = vld [vmem:[#allocation2 + $0x1788] ss:$16 sps:$4 sm:$0xff]  }
 0x30a   :  { %6105 = vmatmul.mubr.bf16.vlgmr.msra.gmra.mrb[0].mxu0 %v208_v9 }
 0x30b   :  { %6116 = vmatpush1.bf16.msra.mxu0 %v9870_v12  ;;  %6147 = vmatprep.mubr.bf16.mxu0 %v211_v16  ;;  %v9957_v12 = vld [vmem:[#allocation2 + $0x17a8] ss:$16 sps:$4 sm:$0xff]  }
 0x30c   :  { %6748 = vmatpush1.bf16.msra.mxu1 %v9873_v13  ;;  %6117 = vmatprep.subr.bf16.mxu0 %v9878_v14  ;;  %v9962_v13 = vld [vmem:[#allocation2 + $0x17e4] ss:$16 sps:$4 sm:$0xff]   ;;  %v9965_v14 = vld [vmem:[#allocation2 + $0x17cc] ss:$16 sps:$4 sm:$0xff]  }
 0x30d   :  { %6760 = vmatprep.subr.bf16.mxu1 %v9881_v15  ;;  %v9960_v15 = vld [vmem:[#allocation2 + $0x17e0] ss:$16 sps:$4 sm:$0xff]  }
 0x30f   :  { %6750 = vmatmul.mubr.bf16.vlgmr.msra.gmra.mrb[4].mxu1 %v208_v9  ;;  %6118 = vmatpush1.bf16.msra.mxu0 %v9876_v17  ;;  %v9956_v9 = vld [vmem:[#allocation2 + $0x17c4] ss:$16 sps:$4 sm:$0xff]  }
 0x310   :  { %6761 = vmatpush1.bf16.msra.mxu1 %v9879_v18  ;;  %6119 = vmatprep.subr.bf16.mxu0 %v9884_v19  ;;  %v152_v17 = vld [vmem:[%s10644_s0 + $0xb0] sm:$0xff]  ;;  %v181_v18 = vld [vmem:[%s10644_s0 + $0x198] sm:$0xff] }
 0x311   :  { %6762 = vmatprep.subr.bf16.mxu1 %v9887_v20  ;;  %6792 = vmatprep.mubr.bf16.mxu1 %v211_v16  ;;  %v9963_v16 = vld [vmem:[#allocation2 + $0x17c8] ss:$16 sps:$4 sm:$0xff]   ;;  %v9968_v19 = vld [vmem:[#allocation2 + $0x1804] ss:$16 sps:$4 sm:$0xff]   ;;  %v9971_v20 = vld [vmem:[#allocation2 + $0x17ec] ss:$16 sps:$4 sm:$0xff]  }
 0x313   :  { %6120 = vmatpush1.bf16.msra.mxu0 %v9882_v21  ;;  %v210_v21 = vpack.c.bf16 %v181_v18, %v152_v17  ;;  %v10046_v17 = vld [vmem:[#allocation2 + $0x19a4] ss:$16 sps:$4 sm:$0xff]   ;;  %v10049_v18 = vld [vmem:[#allocation2 + $0x198c] ss:$16 sps:$4 sm:$0xff]  }
 0x314   :  { %6763 = vmatpush1.bf16.msra.mxu1 %v9885_v22  ;;  %6121 = vmatprep.subr.bf16.mxu0 %v9890_v23  ;;  %v155_v22 = vld [vmem:[%s10644_s0 + $0xc8] sm:$0xff]  ;;  %v184_v23 = vld [vmem:[%s10644_s0 + $0x1b0] sm:$0xff] }
 0x315   :  { %6764 = vmatprep.subr.bf16.mxu1 %v9893_v24  ;;  %v9966_v24 = vld [vmem:[#allocation2 + $0x1800] ss:$16 sps:$4 sm:$0xff]  }
 0x317   :  { %6122 = vmatpush1.bf16.msra.mxu0 %v9888_v25  ;;  %v9969_v25 = vld [vmem:[#allocation2 + $0x17e8] ss:$16 sps:$4 sm:$0xff]  }
 0x318   :  { %6765 = vmatpush1.bf16.msra.mxu1 %v9891_v26  ;;  %6123 = vmatprep.subr.bf16.mxu0 %v9896_v27  ;;  %v9974_v26 = vld [vmem:[#allocation2 + $0x1824] ss:$16 sps:$4 sm:$0xff]   ;;  %v9977_v27 = vld [vmem:[#allocation2 + $0x180c] ss:$16 sps:$4 sm:$0xff]  }
 0x319   :  { %6766 = vmatprep.subr.bf16.mxu1 %v9899_v28  ;;  %v213_v28 = vpack.c.bf16 %v184_v23, %v155_v22  ;;  %v10055_v22 = vld [vmem:[#allocation2 + $0x19ac] ss:$16 sps:$4 sm:$0xff]   ;;  %v10050_v23 = vld [vmem:[#allocation2 + $0x19c0] ss:$16 sps:$4 sm:$0xff]  }
 0x31b   :  { %6124 = vmatpush1.bf16.msra.mxu0 %v9894_v29  ;;  %v9972_v29 = vld [vmem:[#allocation2 + $0x1820] ss:$16 sps:$4 sm:$0xff]  }
 0x31c   :  { %6767 = vmatpush1.bf16.msra.mxu1 %v9897_v30  ;;  %6125 = vmatprep.subr.bf16.mxu0 %v9902_v31  ;;  %v9975_v30 = vld [vmem:[#allocation2 + $0x1808] ss:$16 sps:$4 sm:$0xff]   ;;  %v9980_v31 = vld [vmem:[#allocation2 + $0x1844] ss:$16 sps:$4 sm:$0xff]  }
 0x31d   :  { %6768 = vmatprep.subr.bf16.mxu1 %v9905_v32  ;;  %v9983_v32 = vld [vmem:[#allocation2 + $0x182c] ss:$16 sps:$4 sm:$0xff]  }
 0x31f   :  { %6126 = vmatpush1.bf16.msra.mxu0 %v9900_v33  ;;  %v9978_v33 = vld [vmem:[#allocation2 + $0x1840] ss:$16 sps:$4 sm:$0xff]  }
 0x320   :  { %6769 = vmatpush1.bf16.msra.mxu1 %v9903_v34  ;;  %6127 = vmatprep.subr.bf16.mxu0 %v9908_v35  ;;  %v9981_v34 = vld [vmem:[#allocation2 + $0x1828] ss:$16 sps:$4 sm:$0xff]   ;;  %v9986_v35 = vld [vmem:[#allocation2 + $0x1864] ss:$16 sps:$4 sm:$0xff]  }
 0x321   :  { %6770 = vmatprep.subr.bf16.mxu1 %v9911_v36  ;;  %v9989_v36 = vld [vmem:[#allocation2 + $0x184c] ss:$16 sps:$4 sm:$0xff]  }
 0x323   :  { %6128 = vmatpush1.bf16.msra.mxu0 %v9906_v37  ;;  %v9984_v37 = vld [vmem:[#allocation2 + $0x1860] ss:$16 sps:$4 sm:$0xff]  }
 0x324   :  { %6771 = vmatpush1.bf16.msra.mxu1 %v9909_v38  ;;  %6129 = vmatprep.subr.bf16.mxu0 %v9914_v39  ;;  %v9987_v38 = vld [vmem:[#allocation2 + $0x1848] ss:$16 sps:$4 sm:$0xff]   ;;  %v9992_v39 = vld [vmem:[#allocation2 + $0x1884] ss:$16 sps:$4 sm:$0xff]  }
 0x325   :  { %6772 = vmatprep.subr.bf16.mxu1 %v9917_v40  ;;  %v9995_v40 = vld [vmem:[#allocation2 + $0x186c] ss:$16 sps:$4 sm:$0xff]  }
 0x327   :  { %6130 = vmatpush1.bf16.msra.mxu0 %v9912_v41  ;;  %v9990_v41 = vld [vmem:[#allocation2 + $0x1880] ss:$16 sps:$4 sm:$0xff]  }
 0x328   :  { %6773 = vmatpush1.bf16.msra.mxu1 %v9915_v42  ;;  %6131 = vmatprep.subr.bf16.mxu0 %v9920_v43  ;;  %v9993_v42 = vld [vmem:[#allocation2 + $0x1868] ss:$16 sps:$4 sm:$0xff]   ;;  %v9998_v43 = vld [vmem:[#allocation2 + $0x18a4] ss:$16 sps:$4 sm:$0xff]  }
 0x329   :  { %6774 = vmatprep.subr.bf16.mxu1 %v9923_v44  ;;  %v10001_v44 = vld [vmem:[#allocation2 + $0x188c] ss:$16 sps:$4 sm:$0xff]  }
 0x32b   :  { %6132 = vmatpush1.bf16.msra.mxu0 %v9918_v45  ;;  %v9996_v45 = vld [vmem:[#allocation2 + $0x18a0] ss:$16 sps:$4 sm:$0xff]  }
 0x32c   :  { %6775 = vmatpush1.bf16.msra.mxu1 %v9921_v46  ;;  %6133 = vmatprep.subr.bf16.mxu0 %v9926_v47  ;;  %v9999_v46 = vld [vmem:[#allocation2 + $0x1888] ss:$16 sps:$4 sm:$0xff]   ;;  %v10004_v47 = vld [vmem:[#allocation2 + $0x18c4] ss:$16 sps:$4 sm:$0xff]  }
 0x32d   :  { %6776 = vmatprep.subr.bf16.mxu1 %v9929_v48  ;;  %v10007_v48 = vld [vmem:[#allocation2 + $0x18ac] ss:$16 sps:$4 sm:$0xff]  }
 0x32f   :  { %6134 = vmatpush1.bf16.msra.mxu0 %v9924_v49  ;;  %v10002_v49 = vld [vmem:[#allocation2 + $0x18c0] ss:$16 sps:$4 sm:$0xff]  }
 0x330   :  { %6777 = vmatpush1.bf16.msra.mxu1 %v9927_v50  ;;  %6135 = vmatprep.subr.bf16.mxu0 %v9932_v51  ;;  %v10005_v50 = vld [vmem:[#allocation2 + $0x18a8] ss:$16 sps:$4 sm:$0xff]   ;;  %v10010_v51 = vld [vmem:[#allocation2 + $0x18e4] ss:$16 sps:$4 sm:$0xff]  }
 0x331   :  { %6778 = vmatprep.subr.bf16.mxu1 %v9935_v52  ;;  %v10013_v52 = vld [vmem:[#allocation2 + $0x18cc] ss:$16 sps:$4 sm:$0xff]  }
 0x333   :  { %6136 = vmatpush1.bf16.msra.mxu0 %v9930_v53  ;;  %v10008_v53 = vld [vmem:[#allocation2 + $0x18e0] ss:$16 sps:$4 sm:$0xff]  }
 0x334   :  { %6779 = vmatpush1.bf16.msra.mxu1 %v9933_v54  ;;  %6137 = vmatprep.subr.bf16.mxu0 %v9938_v55  ;;  %v10011_v54 = vld [vmem:[#allocation2 + $0x18c8] ss:$16 sps:$4 sm:$0xff]   ;;  %v10016_v55 = vld [vmem:[#allocation2 + $0x1904] ss:$16 sps:$4 sm:$0xff]  }
 0x335   :  { %6780 = vmatprep.subr.bf16.mxu1 %v9941_v56  ;;  %v10019_v56 = vld [vmem:[#allocation2 + $0x18ec] ss:$16 sps:$4 sm:$0xff]  }
 0x337   :  { %6138 = vmatpush1.bf16.msra.mxu0 %v9936_v57  ;;  %v10014_v57 = vld [vmem:[#allocation2 + $0x1900] ss:$16 sps:$4 sm:$0xff]  }
 0x338   :  { %6781 = vmatpush1.bf16.msra.mxu1 %v9939_v58  ;;  %6139 = vmatprep.subr.bf16.mxu0 %v9944_v59  ;;  %v10017_v58 = vld [vmem:[#allocation2 + $0x18e8] ss:$16 sps:$4 sm:$0xff]   ;;  %v10022_v59 = vld [vmem:[#allocation2 + $0x1924] ss:$16 sps:$4 sm:$0xff]  }
 0x339   :  { %6782 = vmatprep.subr.bf16.mxu1 %v9947_v60  ;;  %v10025_v60 = vld [vmem:[#allocation2 + $0x190c] ss:$16 sps:$4 sm:$0xff]  }
 0x33b   :  { %6140 = vmatpush1.bf16.msra.mxu0 %v9942_v63  ;;  %v10020_v63 = vld [vmem:[#allocation2 + $0x1920] ss:$16 sps:$4 sm:$0xff]  }
 0x33c   :  { %6783 = vmatpush1.bf16.msra.mxu1 %v9945_v1  ;;  %6141 = vmatprep.subr.bf16.mxu0 %v9950_v3  ;;  %v10023_v1 = vld [vmem:[#allocation2 + $0x1908] ss:$16 sps:$4 sm:$0xff]   ;;  %v10028_v3 = vld [vmem:[#allocation2 + $0x1944] ss:$16 sps:$4 sm:$0xff]  }
 0x33d   :  { %6784 = vmatprep.subr.bf16.mxu1 %v9953_v5  ;;  %v10031_v5 = vld [vmem:[#allocation2 + $0x192c] ss:$16 sps:$4 sm:$0xff]  }
 0x33f   :  { %6142 = vmatpush1.bf16.msra.mxu0 %v9948_v6  ;;  %v10026_v6 = vld [vmem:[#allocation2 + $0x1940] ss:$16 sps:$4 sm:$0xff]  }
 0x340   :  { %6785 = vmatpush1.bf16.msra.mxu1 %v9951_v7  ;;  %6143 = vmatprep.subr.bf16.mxu0 %v9956_v9  ;;  %v10029_v7 = vld [vmem:[#allocation2 + $0x1928] ss:$16 sps:$4 sm:$0xff]   ;;  %v10034_v9 = vld [vmem:[#allocation2 + $0x1964] ss:$16 sps:$4 sm:$0xff]  }
 0x341   :  { %6786 = vmatprep.subr.bf16.mxu1 %v9959_v10  ;;  %v10037_v10 = vld [vmem:[#allocation2 + $0x194c] ss:$16 sps:$4 sm:$0xff]  }
 0x343   :  { %6144 = vmatpush1.bf16.msra.mxu0 %v9954_v11  ;;  %v10032_v11 = vld [vmem:[#allocation2 + $0x1960] ss:$16 sps:$4 sm:$0xff]  }
 0x344   :  { %6787 = vmatpush1.bf16.msra.mxu1 %v9957_v12  ;;  %6145 = vmatprep.subr.bf16.mxu0 %v9962_v13  ;;  %v10035_v12 = vld [vmem:[#allocation2 + $0x1948] ss:$16 sps:$4 sm:$0xff]   ;;  %v10040_v13 = vld [vmem:[#allocation2 + $0x1984] ss:$16 sps:$4 sm:$0xff]  }
 0x345   :  { %6788 = vmatprep.subr.bf16.mxu1 %v9965_v14  ;;  %v10043_v14 = vld [vmem:[#allocation2 + $0x196c] ss:$16 sps:$4 sm:$0xff]  }
 0x347   :  { %6146 = vmatpush1.bf16.msra.mxu0 %v9960_v15  ;;  %v10038_v15 = vld [vmem:[#allocation2 + $0x1980] ss:$16 sps:$4 sm:$0xff]  }
 0x348   :  { %6789 = vmatpush1.bf16.msra.mxu1 %v9963_v16  ;;  %6158 = vmatprep.subr.bf16.mxu0 %v9968_v19  ;;  %v10041_v16 = vld [vmem:[#allocation2 + $0x1968] ss:$16 sps:$4 sm:$0xff]   ;;  %v10044_v19 = vld [vmem:[#allocation2 + $0x19a0] ss:$16 sps:$4 sm:$0xff]  }
 0x349   :  { %6790 = vmatprep.subr.bf16.mxu1 %v9971_v20  ;;  %v10047_v20 = vld [vmem:[#allocation2 + $0x1988] ss:$16 sps:$4 sm:$0xff]  }
 0x34a   :  { %6148 = vmatmul.mubr.bf16.vlgmr.msra.gmra.mrb[0].mxu0 %v210_v21 }
 0x34b   :  { %6159 = vmatpush1.bf16.msra.mxu0 %v9966_v24  ;;  %6190 = vmatprep.mubr.bf16.mxu0 %v213_v28  ;;  %v10053_v24 = vld [vmem:[#allocation2 + $0x19a8] ss:$16 sps:$4 sm:$0xff]  }
 0x34c   :  { %6791 = vmatpush1.bf16.msra.mxu1 %v9969_v25  ;;  %6160 = vmatprep.subr.bf16.mxu0 %v9974_v26  ;;  %v10058_v25 = vld [vmem:[#allocation2 + $0x19e4] ss:$16 sps:$4 sm:$0xff]   ;;  %v10061_v26 = vld [vmem:[#allocation2 + $0x19cc] ss:$16 sps:$4 sm:$0xff]  }
 0x34d   :  { %6803 = vmatprep.subr.bf16.mxu1 %v9977_v27  ;;  %v10056_v27 = vld [vmem:[#allocation2 + $0x19e0] ss:$16 sps:$4 sm:$0xff]  }
 0x34f   :  { %6793 = vmatmul.mubr.bf16.vlgmr.msra.gmra.mrb[4].mxu1 %v210_v21  ;;  %6161 = vmatpush1.bf16.msra.mxu0 %v9972_v29  ;;  %v10052_v21 = vld [vmem:[#allocation2 + $0x19c4] ss:$16 sps:$4 sm:$0xff]  }
 0x350   :  { %6804 = vmatpush1.bf16.msra.mxu1 %v9975_v30  ;;  %6162 = vmatprep.subr.bf16.mxu0 %v9980_v31  ;;  %v154_v29 = vld [vmem:[%s10644_s0 + $0xc0] sm:$0xff]  ;;  %v183_v30 = vld [vmem:[%s10644_s0 + $0x1a8] sm:$0xff] }
 0x351   :  { %6805 = vmatprep.subr.bf16.mxu1 %v9983_v32  ;;  %6835 = vmatprep.mubr.bf16.mxu1 %v213_v28  ;;  %v10059_v28 = vld [vmem:[#allocation2 + $0x19c8] ss:$16 sps:$4 sm:$0xff]   ;;  %v10064_v31 = vld [vmem:[#allocation2 + $0x1a04] ss:$16 sps:$4 sm:$0xff]   ;;  %v10067_v32 = vld [vmem:[#allocation2 + $0x19ec] ss:$16 sps:$4 sm:$0xff]  }
 0x353   :  { %6163 = vmatpush1.bf16.msra.mxu0 %v9978_v33  ;;  %v212_v33 = vpack.c.bf16 %v183_v30, %v154_v29  ;;  %v10142_v29 = vld [vmem:[#allocation2 + $0x1ba4] ss:$16 sps:$4 sm:$0xff]   ;;  %v10145_v30 = vld [vmem:[#allocation2 + $0x1b8c] ss:$16 sps:$4 sm:$0xff]  }
 0x354   :  { %6806 = vmatpush1.bf16.msra.mxu1 %v9981_v34  ;;  %6164 = vmatprep.subr.bf16.mxu0 %v9986_v35  ;;  %v157_v34 = vld [vmem:[%s10644_s0 + $0xd8] sm:$0xff]  ;;  %v186_v35 = vld [vmem:[%s10644_s0 + $0x1c0] sm:$0xff] }
 0x355   :  { %6807 = vmatprep.subr.bf16.mxu1 %v9989_v36  ;;  %v10062_v36 = vld [vmem:[#allocation2 + $0x1a00] ss:$16 sps:$4 sm:$0xff]  }
 0x357   :  { %6165 = vmatpush1.bf16.msra.mxu0 %v9984_v37  ;;  %v10065_v37 = vld [vmem:[#allocation2 + $0x19e8] ss:$16 sps:$4 sm:$0xff]  }
 0x358   :  { %6808 = vmatpush1.bf16.msra.mxu1 %v9987_v38  ;;  %6166 = vmatprep.subr.bf16.mxu0 %v9992_v39  ;;  %v10070_v38 = vld [vmem:[#allocation2 + $0x1a24] ss:$16 sps:$4 sm:$0xff]   ;;  %v10073_v39 = vld [vmem:[#allocation2 + $0x1a0c] ss:$16 sps:$4 sm:$0xff]  }
 0x359   :  { %6809 = vmatprep.subr.bf16.mxu1 %v9995_v40  ;;  %v215_v40 = vpack.c.bf16 %v186_v35, %v157_v34  ;;  %v10151_v34 = vld [vmem:[#allocation2 + $0x1bac] ss:$16 sps:$4 sm:$0xff]   ;;  %v10146_v35 = vld [vmem:[#allocation2 + $0x1bc0] ss:$16 sps:$4 sm:$0xff]  }
 0x35b   :  { %6167 = vmatpush1.bf16.msra.mxu0 %v9990_v41  ;;  %v10068_v41 = vld [vmem:[#allocation2 + $0x1a20] ss:$16 sps:$4 sm:$0xff]  }
 0x35c   :  { %6810 = vmatpush1.bf16.msra.mxu1 %v9993_v42  ;;  %6168 = vmatprep.subr.bf16.mxu0 %v9998_v43  ;;  %v10071_v42 = vld [vmem:[#allocation2 + $0x1a08] ss:$16 sps:$4 sm:$0xff]   ;;  %v10076_v43 = vld [vmem:[#allocation2 + $0x1a44] ss:$16 sps:$4 sm:$0xff]  }
 0x35d   :  { %6811 = vmatprep.subr.bf16.mxu1 %v10001_v44  ;;  %v10079_v44 = vld [vmem:[#allocation2 + $0x1a2c] ss:$16 sps:$4 sm:$0xff]  }
 0x35f   :  { %6169 = vmatpush1.bf16.msra.mxu0 %v9996_v45  ;;  %v10074_v45 = vld [vmem:[#allocation2 + $0x1a40] ss:$16 sps:$4 sm:$0xff]  }
 0x360   :  { %6812 = vmatpush1.bf16.msra.mxu1 %v9999_v46  ;;  %6170 = vmatprep.subr.bf16.mxu0 %v10004_v47  ;;  %v10077_v46 = vld [vmem:[#allocation2 + $0x1a28] ss:$16 sps:$4 sm:$0xff]   ;;  %v10082_v47 = vld [vmem:[#allocation2 + $0x1a64] ss:$16 sps:$4 sm:$0xff]  }
 0x361   :  { %6813 = vmatprep.subr.bf16.mxu1 %v10007_v48  ;;  %v10085_v48 = vld [vmem:[#allocation2 + $0x1a4c] ss:$16 sps:$4 sm:$0xff]  }
 0x363   :  { %6171 = vmatpush1.bf16.msra.mxu0 %v10002_v49  ;;  %v10080_v49 = vld [vmem:[#allocation2 + $0x1a60] ss:$16 sps:$4 sm:$0xff]  }
 0x364   :  { %6814 = vmatpush1.bf16.msra.mxu1 %v10005_v50  ;;  %6172 = vmatprep.subr.bf16.mxu0 %v10010_v51  ;;  %v10083_v50 = vld [vmem:[#allocation2 + $0x1a48] ss:$16 sps:$4 sm:$0xff]   ;;  %v10088_v51 = vld [vmem:[#allocation2 + $0x1a84] ss:$16 sps:$4 sm:$0xff]  }
 0x365   :  { %6815 = vmatprep.subr.bf16.mxu1 %v10013_v52  ;;  %v10091_v52 = vld [vmem:[#allocation2 + $0x1a6c] ss:$16 sps:$4 sm:$0xff]  }
 0x367   :  { %6173 = vmatpush1.bf16.msra.mxu0 %v10008_v53  ;;  %v10086_v53 = vld [vmem:[#allocation2 + $0x1a80] ss:$16 sps:$4 sm:$0xff]  }
 0x368   :  { %6816 = vmatpush1.bf16.msra.mxu1 %v10011_v54  ;;  %6174 = vmatprep.subr.bf16.mxu0 %v10016_v55  ;;  %v10089_v54 = vld [vmem:[#allocation2 + $0x1a68] ss:$16 sps:$4 sm:$0xff]   ;;  %v10094_v55 = vld [vmem:[#allocation2 + $0x1aa4] ss:$16 sps:$4 sm:$0xff]  }
 0x369   :  { %6817 = vmatprep.subr.bf16.mxu1 %v10019_v56  ;;  %v10097_v56 = vld [vmem:[#allocation2 + $0x1a8c] ss:$16 sps:$4 sm:$0xff]  }
 0x36b   :  { %6175 = vmatpush1.bf16.msra.mxu0 %v10014_v57  ;;  %v10092_v57 = vld [vmem:[#allocation2 + $0x1aa0] ss:$16 sps:$4 sm:$0xff]  }
 0x36c   :  { %6818 = vmatpush1.bf16.msra.mxu1 %v10017_v58  ;;  %6176 = vmatprep.subr.bf16.mxu0 %v10022_v59  ;;  %v10095_v58 = vld [vmem:[#allocation2 + $0x1a88] ss:$16 sps:$4 sm:$0xff]   ;;  %v10100_v59 = vld [vmem:[#allocation2 + $0x1ac4] ss:$16 sps:$4 sm:$0xff]  }
 0x36d   :  { %6819 = vmatprep.subr.bf16.mxu1 %v10025_v60  ;;  %v10103_v60 = vld [vmem:[#allocation2 + $0x1aac] ss:$16 sps:$4 sm:$0xff]  }
 0x36f   :  { %6177 = vmatpush1.bf16.msra.mxu0 %v10020_v63  ;;  %v10098_v63 = vld [vmem:[#allocation2 + $0x1ac0] ss:$16 sps:$4 sm:$0xff]  }
 0x370   :  { %6820 = vmatpush1.bf16.msra.mxu1 %v10023_v1  ;;  %6178 = vmatprep.subr.bf16.mxu0 %v10028_v3  ;;  %v10101_v1 = vld [vmem:[#allocation2 + $0x1aa8] ss:$16 sps:$4 sm:$0xff]   ;;  %v10106_v3 = vld [vmem:[#allocation2 + $0x1ae4] ss:$16 sps:$4 sm:$0xff]  }
 0x371   :  { %6821 = vmatprep.subr.bf16.mxu1 %v10031_v5  ;;  %v10109_v5 = vld [vmem:[#allocation2 + $0x1acc] ss:$16 sps:$4 sm:$0xff]  }
 0x373   :  { %6179 = vmatpush1.bf16.msra.mxu0 %v10026_v6  ;;  %v10104_v6 = vld [vmem:[#allocation2 + $0x1ae0] ss:$16 sps:$4 sm:$0xff]  }
 0x374   :  { %6822 = vmatpush1.bf16.msra.mxu1 %v10029_v7  ;;  %6180 = vmatprep.subr.bf16.mxu0 %v10034_v9  ;;  %v10107_v7 = vld [vmem:[#allocation2 + $0x1ac8] ss:$16 sps:$4 sm:$0xff]   ;;  %v10112_v9 = vld [vmem:[#allocation2 + $0x1b04] ss:$16 sps:$4 sm:$0xff]  }
 0x375   :  { %6823 = vmatprep.subr.bf16.mxu1 %v10037_v10  ;;  %v10115_v10 = vld [vmem:[#allocation2 + $0x1aec] ss:$16 sps:$4 sm:$0xff]  }
 0x377   :  { %6181 = vmatpush1.bf16.msra.mxu0 %v10032_v11  ;;  %v10110_v11 = vld [vmem:[#allocation2 + $0x1b00] ss:$16 sps:$4 sm:$0xff]  }
 0x378   :  { %6824 = vmatpush1.bf16.msra.mxu1 %v10035_v12  ;;  %6182 = vmatprep.subr.bf16.mxu0 %v10040_v13  ;;  %v10113_v12 = vld [vmem:[#allocation2 + $0x1ae8] ss:$16 sps:$4 sm:$0xff]   ;;  %v10118_v13 = vld [vmem:[#allocation2 + $0x1b24] ss:$16 sps:$4 sm:$0xff]  }
 0x379   :  { %6825 = vmatprep.subr.bf16.mxu1 %v10043_v14  ;;  %v10121_v14 = vld [vmem:[#allocation2 + $0x1b0c] ss:$16 sps:$4 sm:$0xff]  }
 0x37b   :  { %6183 = vmatpush1.bf16.msra.mxu0 %v10038_v15  ;;  %v10116_v15 = vld [vmem:[#allocation2 + $0x1b20] ss:$16 sps:$4 sm:$0xff]  }
 0x37c   :  { %6826 = vmatpush1.bf16.msra.mxu1 %v10041_v16  ;;  %6184 = vmatprep.subr.bf16.mxu0 %v10046_v17  ;;  %v10119_v16 = vld [vmem:[#allocation2 + $0x1b08] ss:$16 sps:$4 sm:$0xff]   ;;  %v10124_v17 = vld [vmem:[#allocation2 + $0x1b44] ss:$16 sps:$4 sm:$0xff]  }
 0x37d   :  { %6827 = vmatprep.subr.bf16.mxu1 %v10049_v18  ;;  %v10127_v18 = vld [vmem:[#allocation2 + $0x1b2c] ss:$16 sps:$4 sm:$0xff]  }
 0x37f   :  { %6185 = vmatpush1.bf16.msra.mxu0 %v10044_v19  ;;  %v10122_v19 = vld [vmem:[#allocation2 + $0x1b40] ss:$16 sps:$4 sm:$0xff]  }
 0x380   :  { %6828 = vmatpush1.bf16.msra.mxu1 %v10047_v20  ;;  %6186 = vmatprep.subr.bf16.mxu0 %v10052_v21  ;;  %v10125_v20 = vld [vmem:[#allocation2 + $0x1b28] ss:$16 sps:$4 sm:$0xff]   ;;  %v10130_v21 = vld [vmem:[#allocation2 + $0x1b64] ss:$16 sps:$4 sm:$0xff]  }
 0x381   :  { %6829 = vmatprep.subr.bf16.mxu1 %v10055_v22  ;;  %v10133_v22 = vld [vmem:[#allocation2 + $0x1b4c] ss:$16 sps:$4 sm:$0xff]  }
 0x383   :  { %6187 = vmatpush1.bf16.msra.mxu0 %v10050_v23  ;;  %v10128_v23 = vld [vmem:[#allocation2 + $0x1b60] ss:$16 sps:$4 sm:$0xff]  }
 0x384   :  { %6830 = vmatpush1.bf16.msra.mxu1 %v10053_v24  ;;  %6188 = vmatprep.subr.bf16.mxu0 %v10058_v25  ;;  %v10131_v24 = vld [vmem:[#allocation2 + $0x1b48] ss:$16 sps:$4 sm:$0xff]   ;;  %v10136_v25 = vld [vmem:[#allocation2 + $0x1b84] ss:$16 sps:$4 sm:$0xff]  }
 0x385   :  { %6831 = vmatprep.subr.bf16.mxu1 %v10061_v26  ;;  %v10139_v26 = vld [vmem:[#allocation2 + $0x1b6c] ss:$16 sps:$4 sm:$0xff]  }
 0x387   :  { %6189 = vmatpush1.bf16.msra.mxu0 %v10056_v27  ;;  %v10134_v27 = vld [vmem:[#allocation2 + $0x1b80] ss:$16 sps:$4 sm:$0xff]  }
 0x388   :  { %6832 = vmatpush1.bf16.msra.mxu1 %v10059_v28  ;;  %6201 = vmatprep.subr.bf16.mxu0 %v10064_v31  ;;  %v10137_v28 = vld [vmem:[#allocation2 + $0x1b68] ss:$16 sps:$4 sm:$0xff]   ;;  %v10140_v31 = vld [vmem:[#allocation2 + $0x1ba0] ss:$16 sps:$4 sm:$0xff]  }
 0x389   :  { %6833 = vmatprep.subr.bf16.mxu1 %v10067_v32  ;;  %v10143_v32 = vld [vmem:[#allocation2 + $0x1b88] ss:$16 sps:$4 sm:$0xff]  }
 0x38a   :  { %6191 = vmatmul.mubr.bf16.vlgmr.msra.gmra.mrb[0].mxu0 %v212_v33 }
 0x38b   :  { %6202 = vmatpush1.bf16.msra.mxu0 %v10062_v36  ;;  %6233 = vmatprep.mubr.bf16.mxu0 %v215_v40  ;;  %v10149_v36 = vld [vmem:[#allocation2 + $0x1ba8] ss:$16 sps:$4 sm:$0xff]  }
 0x38c   :  { %6834 = vmatpush1.bf16.msra.mxu1 %v10065_v37  ;;  %6203 = vmatprep.subr.bf16.mxu0 %v10070_v38  ;;  %v10154_v37 = vld [vmem:[#allocation2 + $0x1be4] ss:$16 sps:$4 sm:$0xff]   ;;  %v10157_v38 = vld [vmem:[#allocation2 + $0x1bcc] ss:$16 sps:$4 sm:$0xff]  }
 0x38d   :  { %6846 = vmatprep.subr.bf16.mxu1 %v10073_v39  ;;  %v10152_v39 = vld [vmem:[#allocation2 + $0x1be0] ss:$16 sps:$4 sm:$0xff]  }
 0x38f   :  { %6836 = vmatmul.mubr.bf16.vlgmr.msra.gmra.mrb[4].mxu1 %v212_v33  ;;  %6204 = vmatpush1.bf16.msra.mxu0 %v10068_v41  ;;  %v10148_v33 = vld [vmem:[#allocation2 + $0x1bc4] ss:$16 sps:$4 sm:$0xff]  }
 0x390   :  { %6847 = vmatpush1.bf16.msra.mxu1 %v10071_v42  ;;  %6205 = vmatprep.subr.bf16.mxu0 %v10076_v43  ;;  %v156_v41 = vld [vmem:[%s10644_s0 + $0xd0] sm:$0xff]  ;;  %v185_v42 = vld [vmem:[%s10644_s0 + $0x1b8] sm:$0xff] }
 0x391   :  { %6848 = vmatprep.subr.bf16.mxu1 %v10079_v44  ;;  %6878 = vmatprep.mubr.bf16.mxu1 %v215_v40  ;;  %v10155_v40 = vld [vmem:[#allocation2 + $0x1bc8] ss:$16 sps:$4 sm:$0xff]   ;;  %v10160_v43 = vld [vmem:[#allocation2 + $0x1bec] ss:$16 sps:$4 sm:$0xff]   ;;  %v10164_v44 = vld [vmem:[#allocation4 + $0x40] sm:$0xff]  }
 0x393   :  { %6206 = vmatpush1.bf16.msra.mxu0 %v10074_v45  ;;  %v214_v45 = vpack.c.bf16 %v185_v42, %v156_v41 }
 0x394   :  { %6849 = vmatpush1.bf16.msra.mxu1 %v10077_v46  ;;  %6207 = vmatprep.subr.bf16.mxu0 %v10082_v47  ;;  %v10158_v46 = vld [vmem:[#allocation2 + $0x1be8] ss:$16 sps:$4 sm:$0xff]   ;;  %v10165_v47 = vld [vmem:[#allocation4] sm:$0xff]  }
 0x395   :  { %6850 = vmatprep.subr.bf16.mxu1 %v10085_v48  ;;  %v10163_v48 = vld [vmem:[#allocation2 + $0x1c0c] ss:$16 sps:$4 sm:$0xff]  }
 0x397   :  { %6208 = vmatpush1.bf16.msra.mxu0 %v10080_v49  ;;  %v10166_v49 = vld [vmem:[#allocation4 + $0x48] sm:$0xff]  }
 0x398   :  { %6851 = vmatpush1.bf16.msra.mxu1 %v10083_v50  ;;  %6209 = vmatprep.subr.bf16.mxu0 %v10088_v51  ;;  %v10161_v50 = vld [vmem:[#allocation2 + $0x1c08] ss:$16 sps:$4 sm:$0xff]  }
 0x399   :  { %6852 = vmatprep.subr.bf16.mxu1 %v10091_v52  ;;  %v10167_v51 = vld [vmem:[#allocation4 + $0x8] sm:$0xff]   ;;  %v10172_v52 = vld [vmem:[#allocation4 + $0xc0] sm:$0xff]  }
 0x39b   :  { %6210 = vmatpush1.bf16.msra.mxu0 %v10086_v53  ;;  %v10168_v53 = vld [vmem:[#allocation4 + $0x50] sm:$0xff]  }
 0x39c   :  { %6853 = vmatpush1.bf16.msra.mxu1 %v10089_v54  ;;  %6211 = vmatprep.subr.bf16.mxu0 %v10094_v55  ;;  %v10169_v54 = vld [vmem:[#allocation4 + $0x10] sm:$0xff]   ;;  %v10170_v55 = vld [vmem:[#allocation4 + $0x58] sm:$0xff]  }
 0x39d   :  { %6854 = vmatprep.subr.bf16.mxu1 %v10097_v56  ;;  %v10171_v56 = vld [vmem:[#allocation4 + $0x18] sm:$0xff]  }
 0x39f   :  { %6212 = vmatpush1.bf16.msra.mxu0 %v10092_v57  ;;  %v10174_v57 = vld [vmem:[#allocation4 + $0x60] sm:$0xff]  }
 0x3a0   :  { %6855 = vmatpush1.bf16.msra.mxu1 %v10095_v58  ;;  %6213 = vmatprep.subr.bf16.mxu0 %v10100_v59  ;;  %v10173_v58 = vld [vmem:[#allocation4 + $0x80] sm:$0xff]  }
 0x3a1   :  { %6856 = vmatprep.subr.bf16.mxu1 %v10103_v60  ;;  %v10175_v59 = vld [vmem:[#allocation4 + $0x20] sm:$0xff]   ;;  %v10176_v60 = vld [vmem:[#allocation4 + $0xc8] sm:$0xff]  }
 0x3a3   :  { %6214 = vmatpush1.bf16.msra.mxu0 %v10098_v63  ;;  %v10178_v63 = vld [vmem:[#allocation4 + $0x68] sm:$0xff]  }
 0x3a4   :  { %6857 = vmatpush1.bf16.msra.mxu1 %v10101_v1  ;;  %6215 = vmatprep.subr.bf16.mxu0 %v10106_v3  ;;  %v10179_v1 = vld [vmem:[#allocation4 + $0x28] sm:$0xff]   ;;  %v10180_v3 = vld [vmem:[#allocation4 + $0xd0] sm:$0xff]  }
 0x3a5   :  { %6858 = vmatprep.subr.bf16.mxu1 %v10109_v5  ;;  %v10181_v5 = vld [vmem:[#allocation4 + $0x90] sm:$0xff]  }
 0x3a7   :  { %6216 = vmatpush1.bf16.msra.mxu0 %v10104_v6  ;;  %v10182_v6 = vld [vmem:[#allocation4 + $0x70] sm:$0xff]  }
 0x3a8   :  { %6859 = vmatpush1.bf16.msra.mxu1 %v10107_v7  ;;  %6217 = vmatprep.subr.bf16.mxu0 %v10112_v9  ;;  %v10183_v7 = vld [vmem:[#allocation4 + $0x30] sm:$0xff]   ;;  %v10184_v9 = vld [vmem:[#allocation4 + $0xd8] sm:$0xff]  }
 0x3a9   :  { %6860 = vmatprep.subr.bf16.mxu1 %v10115_v10  ;;  %v10185_v10 = vld [vmem:[#allocation4 + $0x98] sm:$0xff]  }
 0x3ab   :  { %6218 = vmatpush1.bf16.msra.mxu0 %v10110_v11  ;;  %v10187_v11 = vld [vmem:[#allocation4 + $0x38] sm:$0xff]  }
 0x3ac   :  { %6861 = vmatpush1.bf16.msra.mxu1 %v10113_v12  ;;  %6219 = vmatprep.subr.bf16.mxu0 %v10118_v13  ;;  %v10188_v12 = vld [vmem:[#allocation4 + $0xe0] sm:$0xff]  }
 0x3ad   :  { %6862 = vmatprep.subr.bf16.mxu1 %v10121_v14  ;;  %v10189_v13 = vld [vmem:[#allocation4 + $0xa0] sm:$0xff]   ;;  %v10190_v14 = vld [vmem:[#allocation4 + $0xe8] sm:$0xff]  }
 0x3af   :  { %6220 = vmatpush1.bf16.msra.mxu0 %v10116_v15  ;;  %v10191_v15 = vld [vmem:[#allocation4 + $0xa8] sm:$0xff]  }
 0x3b0   :  { %6863 = vmatpush1.bf16.msra.mxu1 %v10119_v16  ;;  %6221 = vmatprep.subr.bf16.mxu0 %v10124_v17  ;;  %v10192_v16 = vld [vmem:[#allocation4 + $0xf0] sm:$0xff]  }
 0x3b1   :  { %6864 = vmatprep.subr.bf16.mxu1 %v10127_v18  ;;  %v10193_v17 = vld [vmem:[#allocation4 + $0xb0] sm:$0xff]   ;;  %v10194_v18 = vld [vmem:[#allocation4 + $0xf8] sm:$0xff]  }
 0x3b3   :  { %6222 = vmatpush1.bf16.msra.mxu0 %v10122_v19  ;;  %v10195_v19 = vld [vmem:[#allocation4 + $0xb8] sm:$0xff]  }
 0x3b4   :  { %6865 = vmatpush1.bf16.msra.mxu1 %v10125_v20  ;;  %6223 = vmatprep.subr.bf16.mxu0 %v10130_v21  ;;  %v10323_v20 = vmov 0.0   ;;  %v1118_v21 = vlaneseq }
 0x3b5   :  { %6866 = vmatprep.subr.bf16.mxu1 %v10133_v22 }
 0x3b6   :  { %v1119_v22 = vshrl.u32 %v1118_v21, 7  ;;  %v126_v21 = vld [vmem:[#allocation7 + $0x1] ss:$0 sm:$0xff] }
 0x3b7   :  { %6224 = vmatpush1.bf16.msra.mxu0 %v10128_v23 }
 0x3b8   :  { %6867 = vmatpush1.bf16.msra.mxu1 %v10131_v24  ;;  %6225 = vmatprep.subr.bf16.mxu0 %v10136_v25  ;;  %v1120_v23 = vsub.s32 0, %v1119_v22  ;;  %v125_v24 = vld [vmem:[#allocation7] ss:$8 sm:$0xf]  ;;  %v1124_v25 = vsub.s32 1, %v1119_v22 }
 0x3b9   :  { %6868 = vmatprep.subr.bf16.mxu1 %v10139_v26 }
 0x3ba   :  { %v1121_v26 = vrot.slane %v125_v24, %v1120_v23 }
 0x3bb   :  { %6226 = vmatpush1.bf16.msra.mxu0 %v10134_v27  ;;  %v1125_v27 = vrot.slane %v125_v24, %v1124_v25 }
 0x3bc   :  { %6869 = vmatpush1.bf16.msra.mxu1 %v10137_v28  ;;  %6227 = vmatprep.subr.bf16.mxu0 %v10142_v29 }
 0x3bd   :  { %6870 = vmatprep.subr.bf16.mxu1 %v10145_v30 }
 0x3bf   :  { %6228 = vmatpush1.bf16.msra.mxu0 %v10140_v31 }
 0x3c0   :  { %6871 = vmatpush1.bf16.msra.mxu1 %v10143_v32  ;;  %6229 = vmatprep.subr.bf16.mxu0 %v10148_v33 }
 0x3c1   :  { %6872 = vmatprep.subr.bf16.mxu1 %v10151_v34 }
 0x3c3   :  { %6230 = vmatpush1.bf16.msra.mxu0 %v10146_v35 }
 0x3c4   :  { %6873 = vmatpush1.bf16.msra.mxu1 %v10149_v36  ;;  %6231 = vmatprep.subr.bf16.mxu0 %v10154_v37 }
 0x3c5   :  { %6874 = vmatprep.subr.bf16.mxu1 %v10157_v38 }
 0x3c7   :  { %6232 = vmatpush1.bf16.msra.mxu0 %v10152_v39 }
 0x3c8   :  { %6875 = vmatpush1.bf16.msra.mxu1 %v10155_v40  ;;  %8552 = vmatprep.subr.bf16.mxu0 %v10164_v44 }
 0x3c9   :  { %6876 = vmatprep.subr.bf16.mxu1 %v10160_v43 }
 0x3ca   :  { %6234 = vmatmul.mubr.bf16.vlgmr.msra.gmra.mrb[0].mxu0 %v214_v45 }
 0x3cb   :  { %8553 = vmatpush3.bf16.msra.mxu0 %v10165_v47  ;;  %v1132_v47 = vsub.s32 3, %v1119_v22 }
 0x3cc   :  { %6877 = vmatpush1.bf16.msra.mxu1 %v10158_v46  ;;  %8554 = vmatprep.subr.bf16.mxu0 %v10166_v49 }
 0x3cd   :  { %6889 = vmatprep.subr.bf16.mxu1 %v10163_v48  ;;  %v10196_v48 = vld [vmem:[#allocation6] sm:$0xff]   ;;  %v1133_v49 = vrot.slane %v125_v24, %v1132_v47 }
 0x3cf   :  { %6879 = vmatmul.mubr.bf16.vlgmr.msra.gmra.mrb[4].mxu1 %v214_v45  ;;  %8555 = vmatpush3.bf16.msra.mxu0 %v10167_v51  ;;  %v1128_v45 = vsub.s32 2, %v1119_v22 }
 0x3d0   :  { %6890 = vmatpush1.bf16.msra.mxu1 %v10161_v50  ;;  %6921 = vmatprep.mubr.bf16.mxu1 %v10322_v0  ;;  %v10177_v0 = vld [vmem:[#allocation4 + $0x88] sm:$0xff]  }
 0x3d1   :  { %8574 = vmatprep.subr.bf16.mxu1 %v10172_v52  ;;  %8556 = vmatprep.subr.bf16.mxu0 %v10168_v53 }
 0x3d3   :  { %8557 = vmatpush3.bf16.msra.mxu0 %v10169_v54 }
 0x3d4   :  { %8558 = vmatprep.subr.bf16.mxu0 %v10170_v55 }
 0x3d7   :  { %8559 = vmatpush3.bf16.msra.mxu0 %v10171_v56 }
 0x3d8   :  { %8560 = vmatprep.subr.bf16.mxu0 %v10174_v57 }
 0x3db   :  { %8482 = vmatmul.mubr.msk.bf16.vlgmr.msra.gmra.mrb[4].mxu1 %vm5638_vm0, %v10421_v8  ;;  %8561 = vmatpush3.bf16.msra.mxu0 %v10175_v59  ;;  %v10186_v8 = vld [vmem:[#allocation4 + $0x78] sm:$0xff]  }
 0x3dc   :  { %8575 = vmatpush3.bf16.msra.mxu1 %v10173_v58  ;;  %8562 = vmatprep.subr.bf16.mxu0 %v10178_v63  ;;  %v10198_v63 = vld [vmem:[#allocation6 + $0x10] sm:$0xff]  }
 0x3dd   :  { %8576 = vmatprep.subr.bf16.mxu1 %v10176_v60 }
 0x3df   :  { %8563 = vmatpush3.bf16.msra.mxu0 %v10179_v1  ;;  %v10199_v1 = vld [vmem:[#allocation6 + $0x18] sm:$0xff]  }
 0x3e0   :  { %8577 = vmatpush3.bf16.msra.mxu1 %v10177_v0  ;;  %8564 = vmatprep.subr.bf16.mxu0 %v10182_v6  ;;  %v10202_v6 = vld [vmem:[#allocation6 + $0x30] sm:$0xff]  }
 0x3e1   :  { %8578 = vmatprep.subr.bf16.mxu1 %v10180_v3  ;;  %v10200_v3 = vld [vmem:[#allocation6 + $0x20] sm:$0xff]  }
 0x3e3   :  { %8565 = vmatpush3.bf16.msra.mxu0 %v10183_v7  ;;  %v10203_v7 = vld [vmem:[#allocation6 + $0x38] sm:$0xff]  }
 0x3e4   :  { %8579 = vmatpush3.bf16.msra.mxu1 %v10181_v5  ;;  %8566 = vmatprep.subr.bf16.mxu0 %v10186_v8  ;;  %v10201_v5 = vld [vmem:[#allocation6 + $0x28] sm:$0xff]   ;;  %v10206_v8 = vld [vmem:[#allocation6 + $0x50] sm:$0xff]  }
 0x3e5   :  { %8580 = vmatprep.subr.bf16.mxu1 %v10184_v9  ;;  %v10204_v9 = vld [vmem:[#allocation6 + $0x40] sm:$0xff]  }
 0x3e7   :  { %8567 = vmatpush3.bf16.msra.mxu0 %v10187_v11  ;;  %v10207_v11 = vld [vmem:[#allocation6 + $0x58] sm:$0xff]  }
 0x3e8   :  { %8581 = vmatpush3.bf16.msra.mxu1 %v10185_v10  ;;  %8623 = vmatprep.subr.bf16.mxu0 %v10323_v20  ;;  %v10205_v10 = vld [vmem:[#allocation6 + $0x48] sm:$0xff]  }
 0x3e9   :  { %8582 = vmatprep.subr.bf16.mxu1 %v10188_v12  ;;  %v10208_v12 = vld [vmem:[#allocation6 + $0x60] sm:$0xff]  }
 0x3ec   :  { %8583 = vmatpush3.bf16.msra.mxu1 %v10189_v13  ;;  %v10209_v13 = vld [vmem:[#allocation6 + $0x68] sm:$0xff]  }
 0x3ed   :  { %8584 = vmatprep.subr.bf16.mxu1 %v10190_v14 }
 0x3f0   :  { %8585 = vmatpush3.bf16.msra.mxu1 %v10191_v15 }
 0x3f1   :  { %8586 = vmatprep.subr.bf16.mxu1 %v10192_v16 }
 0x3f4   :  { %8587 = vmatpush3.bf16.msra.mxu1 %v10193_v17 }
 0x3f5   :  { %8588 = vmatprep.subr.bf16.mxu1 %v10194_v18 }
 0x3f8   :  { %8589 = vmatpush3.bf16.msra.mxu1 %v10195_v19 }
 0x3f9   :  { %8643 = vmatprep.subr.bf16.mxu1 %v10323_v20 }
 0x49d   :  { %v6235_v28 = vpop.f32.mrb[0].mxu0 }
 0x49e   :  { %v8683_v29 = vadd.f32 %v6235_v28, %v1121_v26  ;;  %v6237_v30 = vpop.f32.mrb[1].mxu0 }
 0x49f   :  { %v8685_v31 = vadd.f32 %v6237_v30, %v1125_v27  ;;  %v6239_v32 = vpop.f32.mrb[2].mxu0 }
 0x4a0   :  { %v8684_v33 = vadd.f32 %v8683_v29, %v10467_v61  ;;  %v8687_v34 = vadd.f32 %v6239_v32, %v1121_v26  ;;  %v6241_v35 = vpop.f32.mrb[3].mxu0  ;;  %v1129_v61 = vrot.slane %v125_v24, %v1128_v45 }
 0x4a1   :  { %v8686_v36 = vadd.f32 %v8685_v31, %v10469_v62  ;;  %v8689_v37 = vadd.f32 %v6241_v35, %v1125_v27  ;;  %v10197_v62 = vld [vmem:[#allocation6 + $0x8] sm:$0xff]   ;;  %v10210_v35 = vld [vmem:[#allocation6 + $0x70] sm:$0xff]  }
 0x4a2   :  { %v8688_v38 = vadd.f32 %v8687_v34, %v10471_v2  ;;  %v6932_v40 = vmax.f32 %v8684_v33, 0.0 }
 0x4a3   :  { %v8690_v39 = vadd.f32 %v8689_v37, %v10473_v4  ;;  %v6933_v42 = vmax.f32 %v8686_v36, 0.0  ;;  %v10211_v36 = vld [vmem:[#allocation6 + $0x78] sm:$0xff]   ;;  %v10212_v37 = vld [vmem:[#allocation6 + $0x80] sm:$0xff]  }
 0x4a4   :  { %v6936_v41 = vmax.f32 %v8688_v38, 0.0  ;;  %v10213_v38 = vld [vmem:[#allocation6 + $0x88] sm:$0xff]  }
 0x4a5   :  { %v6937_v43 = vmax.f32 %v8690_v39, 0.0  ;;  %v10214_v39 = vld [vmem:[#allocation6 + $0x90] sm:$0xff]  }
 0x4a6   :  { %v6940_v44 = vpack.c.bf16 %v6936_v41, %v6932_v40  ;;  %v10215_v40 = vld [vmem:[#allocation6 + $0x98] sm:$0xff]   ;;  %v10216_v41 = vld [vmem:[#allocation6 + $0xa0] sm:$0xff]  }
 0x4a7   :  { %v6941_v46 = vpack.c.bf16 %v6937_v43, %v6933_v42  ;;  %v127_v42 = vld [vmem:[#allocation7 + $0x9] ss:$0 sm:$0xff] }
 0x4a9   :  { %7232 = vmatprep.mubr.bf16.mxu0 %v6941_v46 }
 0x4aa   :  { %7233 = vmatmul.mubr.bf16.vlgmr.msra.gmra.mrb[4].mxu0 %v6940_v44 }
 0x4ab   :  { %8624 = vmatpush3.bf16.msra.mxu0 %v10196_v48  ;;  %8639 = vmatprep.mubr.msk.bf16.mxu0 %vm10324_vm1, %v10323_v20 }
 0x4ac   :  { %8625 = vmatprep.subr.bf16.mxu0 %v10323_v20 }
 0x4ae   :  { %v6923_v2 = vpop.f32.mrb[4].mxu1 }
 0x4af   :  { %v8691_v50 = vadd.f32 %v6923_v2, %v1129_v61  ;;  %v6925_v4 = vpop.f32.mrb[5].mxu1  ;;  %8626 = vmatpush3.bf16.msra.mxu0 %v10197_v62  ;;  %v10217_v2 = vld [vmem:[#allocation6 + $0xa8] sm:$0xff]  }
 0x4b0   :  { %v8692_v51 = vadd.f32 %v6925_v4, %v1133_v49  ;;  %v6927_v52 = vpop.f32.mrb[6].mxu1  ;;  %8627 = vmatprep.subr.bf16.mxu0 %v10323_v20  ;;  %v10219_v4 = vld [vmem:[#allocation6 + $0xb8] sm:$0xff]  }
 0x4b1   :  { %v8693_v53 = vadd.f32 %v6927_v52, %v1129_v61  ;;  %v6929_v54 = vpop.f32.mrb[7].mxu1  ;;  %v6934_v56 = vmax.f32 %v8691_v50, 0.0  ;;  %v10218_v50 = vld [vmem:[#allocation6 + $0xb0] sm:$0xff]  }
 0x4b2   :  { %v8694_v55 = vadd.f32 %v6929_v54, %v1133_v49  ;;  %v6935_v58 = vmax.f32 %v8692_v51, 0.0  ;;  %v128_v51 = vld [vmem:[#allocation7 + $0x11] ss:$0 sm:$0xff] }
 0x4b3   :  { %v6938_v57 = vmax.f32 %v8693_v53, 0.0  ;;  %8628 = vmatpush3.bf16.msra.mxu0 %v10198_v63  ;;  %v8544_v53 = vld [vmem:[%s10645_s1] sm:$0xff]  }
 0x4b4   :  { %v6939_v59 = vmax.f32 %v8694_v55, 0.0  ;;  %8629 = vmatprep.subr.bf16.mxu0 %v10323_v20 }
 0x4b5   :  { %v6942_v60 = vpack.c.bf16 %v6938_v57, %v6934_v56 }
 0x4b6   :  { %v6943_v0 = vpack.c.bf16 %v6939_v59, %v6935_v58  ;;  %v8545_v58 = vunpack.c.l.bf16 %v8544_v53 }
 0x4b7   :  { %8630 = vmatpush3.bf16.msra.mxu0 %v10199_v1 }
 0x4b8   :  { %7273 = vmatprep.mubr.bf16.mxu1 %v6943_v0  ;;  %8631 = vmatprep.subr.bf16.mxu0 %v10323_v20 }
 0x4b9   :  { %7274 = vmatmul.mubr.bf16.vlgmr.msra.gmra.mrb[8].mxu1 %v6942_v60  ;;  %v8546_v60 = vunpack.c.h.bf16 %v8544_v53 }
 0x4ba   :  { %8659 = vmatprep.mubr.msk.bf16.mxu1 %vm10324_vm1, %v10323_v20  ;;  %8644 = vmatpush3.bf16.msra.mxu1 %v10204_v9 }
 0x4bb   :  { %8632 = vmatpush3.bf16.msra.mxu0 %v10200_v3  ;;  %8645 = vmatprep.subr.bf16.mxu1 %v10323_v20 }
 0x4bc   :  { %8633 = vmatprep.subr.bf16.mxu0 %v10323_v20 }
 0x4be   :  { %8646 = vmatpush3.bf16.msra.mxu1 %v10205_v10 }
 0x4bf   :  { %8634 = vmatpush3.bf16.msra.mxu0 %v10201_v5  ;;  %8647 = vmatprep.subr.bf16.mxu1 %v10323_v20  ;;  %v129_v5 = vld [vmem:[#allocation7 + $0x19] ss:$0 sm:$0xff] }
 0x4c0   :  { %8635 = vmatprep.subr.bf16.mxu0 %v10323_v20 }
 0x4c2   :  { %8648 = vmatpush3.bf16.msra.mxu1 %v10206_v8 }
 0x4c3   :  { %8636 = vmatpush3.bf16.msra.mxu0 %v10202_v6  ;;  %8649 = vmatprep.subr.bf16.mxu1 %v10323_v20 }
 0x4c4   :  { %8637 = vmatprep.subr.bf16.mxu0 %v10323_v20 }
 0x4c6   :  { %8650 = vmatpush3.bf16.msra.mxu1 %v10207_v11 }
 0x4c7   :  { %8638 = vmatpush3.bf16.msra.mxu0 %v10203_v7  ;;  %8651 = vmatprep.subr.bf16.mxu1 %v10323_v20 }
 0x4c8   :  { %8663 = vmatprep.subr.bf16.mxu0 %v10323_v20 }
 0x4ca   :  { %8652 = vmatpush3.bf16.msra.mxu1 %v10208_v12 }
 0x4cb   :  { %8653 = vmatprep.subr.bf16.mxu1 %v10323_v20 }
 0x4ce   :  { %8654 = vmatpush3.bf16.msra.mxu1 %v10209_v13 }
 0x4cf   :  { %8655 = vmatprep.subr.bf16.mxu1 %v10323_v20 }
 0x4d2   :  { %8656 = vmatpush3.bf16.msra.mxu1 %v10210_v35 }
 0x4d3   :  { %8657 = vmatprep.subr.bf16.mxu1 %v10323_v20 }
 0x4d6   :  { %8658 = vmatpush3.bf16.msra.mxu1 %v10211_v36 }
 0x57d   :  { %v8568_v14 = vpop.f32.mrb[4].mxu0 }
 0x57e   :  { %v8569_v15 = vpop.f32.mrb[5].mxu0 }
 0x57f   :  { %v8570_v16 = vadd.f32 %v8569_v15, %v8568_v14  ;;  %v8571_v17 = vpop.f32.mrb[6].mxu0 }
 0x580   :  { %v8572_v18 = vpop.f32.mrb[7].mxu0 }
 0x581   :  { %v8573_v19 = vadd.f32 %v8572_v18, %v8571_v17  ;;  %v7235_v24 = vadd.f32 %v8570_v16, %v126_v21 }
 0x583   :  { %v7238_v28 = vadd.f32 %v8573_v19, %v126_v21 }
 0x58c   :  { %v8590_v22 = vpop.f32.mrb[8].mxu1 }
 0x58d   :  { %v8591_v23 = vpop.f32.mrb[9].mxu1 }
 0x58e   :  { %v8592_v25 = vadd.f32 %v8591_v23, %v8590_v22  ;;  %v8593_v26 = vpop.f32.mrb[10].mxu1 }
 0x58f   :  { %v8594_v27 = vpop.f32.mrb[11].mxu1 }
 0x590   :  { %v7276_v29 = vadd.f32 %v8592_v25, %v7235_v24  ;;  %v8595_v30 = vadd.f32 %v8594_v27, %v8593_v26 }
 0x592   :  { %v7279_v31 = vadd.f32 %v8595_v30, %v7238_v28  ;;  %v7282_v32 = vmax.f32 %v7276_v29, 0.0 }
 0x594   :  { %v7283_v33 = vmax.f32 %v7279_v31, 0.0 }
 0x596   :  { %v7284_v34 = vpack.c.bf16 %v7283_v33, %v7282_v32 }
 0x598   :  { %8640 = vmatmul.mubr.bf16.vlgmr.msra.gmra.mrb[8].mxu0 %v7284_v34 }
 0x599   :  { %8679 = vmatprep.mubr.msk.bf16.mxu0 %vm10324_vm1, %v10323_v20  ;;  %8664 = vmatpush3.bf16.msra.mxu0 %v10212_v37 }
 0x59a   :  { %8665 = vmatprep.subr.bf16.mxu0 %v10323_v20 }
 0x59d   :  { %8666 = vmatpush3.bf16.msra.mxu0 %v10213_v38 }
 0x59e   :  { %8667 = vmatprep.subr.bf16.mxu0 %v10323_v20 }
 0x5a1   :  { %8668 = vmatpush3.bf16.msra.mxu0 %v10214_v39 }
 0x5a2   :  { %8669 = vmatprep.subr.bf16.mxu0 %v10323_v20 }
 0x5a5   :  { %8670 = vmatpush3.bf16.msra.mxu0 %v10215_v40 }
 0x5a6   :  { %8671 = vmatprep.subr.bf16.mxu0 %v10323_v20 }
 0x5a9   :  { %8672 = vmatpush3.bf16.msra.mxu0 %v10216_v41 }
 0x5aa   :  { %8673 = vmatprep.subr.bf16.mxu0 %v10323_v20 }
 0x5ad   :  { %8674 = vmatpush3.bf16.msra.mxu0 %v10217_v2 }
 0x5ae   :  { %8675 = vmatprep.subr.bf16.mxu0 %v10323_v20 }
 0x5b1   :  { %8676 = vmatpush3.bf16.msra.mxu0 %v10218_v50 }
 0x5b2   :  { %8677 = vmatprep.subr.bf16.mxu0 %v10323_v20 }
 0x5b5   :  { %8678 = vmatpush3.bf16.msra.mxu0 %v10219_v4 }
 0x66b   :  { %v7367_v43 = vpop.f32.mrb[8].mxu0 }
 0x66c   :  { %v7368_v44 = vadd.f32 %v7367_v43, %v127_v42  ;;  %v8641_v45 = vpop.f32.mrb[9].mxu0 }
 0x66d   :  { %v7370_v46 = vpop.f32.mrb[10].mxu0 }
 0x66e   :  { %v7371_v47 = vadd.f32 %v7370_v46, %v127_v42  ;;  %v8642_v48 = vpop.f32.mrb[11].mxu0  ;;  %v7374_v61 = vmax.f32 %v7368_v44, 0.0 }
 0x670   :  { %v7375_v49 = vmax.f32 %v7371_v47, 0.0 }
 0x672   :  { %v7376_v62 = vpack.c.bf16 %v7375_v49, %v7374_v61 }
 0x674   :  { %8660 = vmatmul.mubr.bf16.vlgmr.msra.gmra.mrb[12].mxu1 %v7376_v62 }
 0x747   :  { %v7459_v52 = vpop.f32.mrb[12].mxu1 }
 0x748   :  { %v7460_v54 = vadd.f32 %v7459_v52, %v128_v51  ;;  %v8661_v55 = vpop.f32.mrb[13].mxu1 }
 0x749   :  { %v7462_v56 = vpop.f32.mrb[14].mxu1 }
 0x74a   :  { %v7466_v57 = vmax.f32 %v7460_v54, 0.0  ;;  %v7463_v59 = vadd.f32 %v7462_v56, %v128_v51  ;;  %v8662_v0 = vpop.f32.mrb[15].mxu1 }
 0x74c   :  { %v7467_v63 = vmax.f32 %v7463_v59, 0.0  ;;  %v7472_v1 = vadd.f32 %v8545_v58, %v7466_v57 }
 0x74e   :  { %v7473_v3 = vadd.f32 %v8546_v60, %v7467_v63 }
 0x750   :  { %v7474_v20 = vpack.c.bf16 %v7473_v3, %v7472_v1 }
 0x752   :  { %8680 = vmatmul.mubr.bf16.vlgmr.msra.gmra.mrb[12].mxu0 %v7474_v20 }
 0x825   :  { %v7557_v6 = vpop.f32.mrb[12].mxu0 }
 0x826   :  { %v8681_v7 = vpop.f32.mrb[13].mxu0  ;;  %v7558_v10 = vadd.f32 %v7557_v6, %v129_v5 }
 0x827   :  { %v7560_v9 = vpop.f32.mrb[14].mxu0 }
 0x828   :  { %v7561_v8 = vadd.f32 %v7560_v9, %v129_v5  ;;  %v8682_v11 = vpop.f32.mrb[15].mxu0 }
 0x82a   :  { %v8550_v12 = vpack.c.bf16 %v7561_v8, %v7558_v10 }
 0x82c   :  { %8551 = vst [vmem:[%s10650_s6] sm:$0xff] %v8550_v12  }
 0x82d   :  { %7578 = vsyncpa [#allocation3], 1 }
 0x82e   :  { %7579 = vsyncpa [#allocation5], 1 }
 0x82f   :  { %7580 = vsyncpa [#allocation8], 1 }

// kernel: fwd.1
= control target key start
LH: loop header
LB: loop body
LE: loop exit
PB: predicated region body
PF: predicated region fallthrough
CT: control target
= control target key end

     0   :  { %11 = vsyncpa [#allocation3], 0  ;;  %s10644_s0 = inlined_call_operand.vmem [shape: f32[16,3600], index: 0, kind: input, shape index: {}]   ;;  %s10645_s1 = inlined_call_operand.vmem [shape: bf16[16,128], index: 1, kind: input, shape index: {}]   ;;  %s10646_s2 = inlined_call_operand.hbm [shape: bf16[3600,512], index: 2, kind: input, shape index: {}]   ;;  %s10647_s3 = inlined_call_operand.hbm [shape: bf16[512,128], index: 3, kind: input, shape index: {}]   ;;  %s10648_s4 = inlined_call_operand.hbm [shape: bf16[384,128], index: 4, kind: input, shape index: {}]   ;;  %s10649_s5 = inlined_call_operand.hbm [shape: f32[8,512], index: 5, kind: input, shape index: {}]   ;;  %s10650_s6 = inlined_call_operand.vmem [shape: bf16[16,128], index: 6, kind: output, shape index: {}]  }
   0x1   :  { %12 = vsyncpa [#allocation5], 0 }
   0x2   :  { %13 = vsyncpa [#allocation8], 0  ;;  %s10314_s21 = smov [#allocation4]   ;;  %s10220_s25 = scalar_lea.hbm %s10647_s3, 4096 }
   0x3   :  { %s35_s22 = sshll.u32 %s10314_s21, 4  ;;  %p10221_p0 = scmp.ne.s32.totalorder %s10647_s3, %s10220_s25  ;;  %s36_s22 = int_to_ptr.vmem [resolvable:$true] %s35_s22 }
   0x4   :  { %p10224_p1 = scmp.lt.u32.totalorder %s10220_s25, %s10647_s3 }
   0x6   :  { %p10226_p2 = pnand %p10224_p1, %p10221_p0 }
   0x8   :  { %10229 = shalt.err (!%p10226_p2)
}
   0x9   :  { %s10230_s30 = scalar_lea.vmem %s36_s22, 4096  ;;  %p10235_p4 = scmp.lt.s32.totalorder %s36_s22, %s36_s22 }
   0xa   :  { %p10231_p3 = scmp.ne.s32.totalorder %s36_s22, %s10230_s30  ;;  %p10236_p5 = scmp.lt.s32.totalorder %s10230_s30, %s10230_s30 }
   0xc   :  { %p10237_p6 = por %p10236_p5, %p10235_p4 }
   0xe   :  { %p10238_p7 = pnand %p10237_p6, %p10231_p3 }
  0x10   :  { %10241 = shalt.err (!%p10238_p7)
}
  0x11   :  { %s10315_s7 = smov 64   ;;  %s10316_s8 = smov 4  }
  0x12   :  { %41 = dma.hbm_to_vmem [thread:$0]  %s10647_s3, 4096, %s36_s22, [#allocation5], %s10315_s7, %s10315_s7, %s10316_s8  }
  0x13   :  { %s10317_s11 = smov [#allocation2]   ;;  %s10242_s15 = scalar_lea.hbm %s10646_s2, 115200 }
  0x14   :  { %s23_s12 = sshll.u32 %s10317_s11, 4  ;;  %p10243_p8 = scmp.ne.s32.totalorder %s10646_s2, %s10242_s15  ;;  %s24_s12 = int_to_ptr.vmem [resolvable:$true] %s23_s12 }
  0x15   :  { %p10246_p9 = scmp.lt.u32.totalorder %s10242_s15, %s10646_s2 }
  0x17   :  { %p10248_p10 = pnand %p10246_p9, %p10243_p8 }
  0x19   :  { %10251 = shalt.err (!%p10248_p10)
}
  0x1a   :  { %s10252_s20 = scalar_lea.vmem %s24_s12, 115200  ;;  %p10257_p12 = scmp.lt.s32.totalorder %s24_s12, %s24_s12 }
  0x1b   :  { %p10253_p11 = scmp.ne.s32.totalorder %s24_s12, %s10252_s20  ;;  %p10258_p13 = scmp.lt.s32.totalorder %s10252_s20, %s10252_s20 }
  0x1d   :  { %p10259_p0 = por %p10258_p13, %p10257_p12 }
  0x1f   :  { %p10260_p1 = pnand %p10259_p0, %p10253_p11 }
  0x21   :  { %10263 = shalt.err (!%p10260_p1)
}
  0x22   :  { %s10318_s3 = smov 256   ;;  %s10319_s21 = smov 16  }
  0x23   :  { %29 = dma.hbm_to_vmem [thread:$0]  %s10646_s2, 115200, %s24_s12, [#allocation3], %s10318_s3, %s10318_s3, %s10319_s21  }
  0x24   :  { %s10320_s24 = smov [#allocation6]   ;;  %s10321_s26 = smov [#allocation7]  }
  0x25   :  { %s47_s25 = sshll.u32 %s10320_s24, 4  ;;  %s60_s27 = sshll.u32 %s10321_s26, 4  ;;  %s48_s25 = int_to_ptr.vmem [resolvable:$true] %s47_s25  ;;  %s61_s27 = int_to_ptr.vmem [resolvable:$true] %s60_s27 }
  0x26   :  { %s10264_s30 = scalar_lea.hbm %s10648_s4, 3072 }
  0x27   :  { %p10265_p2 = scmp.ne.s32.totalorder %s10648_s4, %s10264_s30  ;;  %p10268_p3 = scmp.lt.u32.totalorder %s10264_s30, %s10648_s4 }
  0x29   :  { %p10270_p4 = pnand %p10268_p3, %p10265_p2 }
  0x2b   :  { %10273 = shalt.err (!%p10270_p4)
}
  0x2c   :  { %s10274_s2 = scalar_lea.vmem %s48_s25, 3072  ;;  %p10279_p6 = scmp.lt.s32.totalorder %s48_s25, %s48_s25 }
  0x2d   :  { %p10275_p5 = scmp.ne.s32.totalorder %s48_s25, %s10274_s2  ;;  %p10280_p7 = scmp.lt.s32.totalorder %s10274_s2, %s10274_s2 }
  0x2f   :  { %p10281_p8 = por %p10280_p7, %p10279_p6 }
  0x31   :  { %p10282_p9 = pnand %p10281_p8, %p10275_p5 }
  0x33   :  { %10285 = shalt.err (!%p10282_p9)
}
  0x34   :  { %53 = dma.hbm_to_vmem [thread:$0]  %s10648_s4, 3072, %s48_s25, [#allocation5], %s10315_s7, %s10315_s7, %s10316_s8  }
  0x35   :  { %s10286_s17 = scalar_lea.hbm %s10649_s5, 512 }
  0x36   :  { %p10287_p10 = scmp.ne.s32.totalorder %s10649_s5, %s10286_s17  ;;  %p10290_p11 = scmp.lt.u32.totalorder %s10286_s17, %s10649_s5 }
  0x38   :  { %p10292_p12 = pnand %p10290_p11, %p10287_p10 }
  0x3a   :  { %10295 = shalt.err (!%p10292_p12)
}
  0x3b   :  { %s10296_s21 = scalar_lea.vmem %s61_s27, 512  ;;  %p10301_p0 = scmp.lt.s32.totalorder %s61_s27, %s61_s27 }
  0x3c   :  { %p10297_p13 = scmp.ne.s32.totalorder %s61_s27, %s10296_s21  ;;  %p10302_p1 = scmp.lt.s32.totalorder %s10296_s21, %s10296_s21 }
  0x3e   :  { %p10303_p2 = por %p10302_p1, %p10301_p0 }
  0x40   :  { %p10304_p3 = pnand %p10303_p2, %p10297_p13 }
  0x42   :  { %10307 = shalt.err (!%p10304_p3)
}
  0x43   :  { %63 = dma.hbm_to_vmem [thread:$0]  %s10649_s5, 512, %s61_s27, [#allocation8]  }
  0x44   :  { %10308 = dma.done.wait [#allocation3], 115200  }
  0x45   :  { %10309 = vsyncadd [#allocation3], 4294852096 }
  0x46   :  { %10310 = dma.done.wait [#allocation5], 7168  }
  0x47   :  { %10311 = vsyncadd [#allocation5], 4294960128 }
  0x48   :  { %10312 = dma.done.wait [#allocation8], 512  }
  0x49   :  { %10313 = vsyncadd [#allocation8], 4294966784  ;;  %v10322_v0 = vmov 0   ;;  %v8814_v1 = vld [vmem:[#allocation2 + $0x4] ss:$16 sps:$4 sm:$0xff]   ;;  %v187_v7 = vld [vmem:[%s10644_s0 + $0x1c8] sm:$0xff] }
  0x4a   :  { %6276 = vmatprep.mubr.bf16.mxu1 %v10322_v0  ;;  %v8816_v2 = vld [vmem:[#allocation2 + $0x1c04] ss:$16 sps:$4 sm:$0xff]   ;;  %5642 = vmatprep.subr.bf16.mxu0 %v8814_v1  ;;  %v8818_v3 = vld [vmem:[#allocation2] ss:$16 sps:$4 sm:$0xff]   ;;  %vm5638_vm0 = vcmask 130048   ;;  %v131_v52 = vld [vmem:[%s10644_s0 + $0x8] sm:$0xff] }
  0x4b   :  { %v8819_v4 = vld [vmem:[#allocation2 + $0x1c00] ss:$16 sps:$4 sm:$0xff]   ;;  %6244 = vmatprep.subr.bf16.mxu1 %v8816_v2  ;;  %v8820_v5 = vld [vmem:[#allocation2 + $0x24] ss:$16 sps:$4 sm:$0xff]   ;;  %5643 = vmatpush1.bf16.msra.mxu0 %v8818_v3  ;;  %v8822_v9 = vld [vmem:[#allocation2 + $0x8] ss:$16 sps:$4 sm:$0xff]  }
  0x4c   :  { %v158_v6 = vld [vmem:[%s10644_s0 + $0xe0] sm:$0xff]  ;;  %6245 = vmatpush1.bf16.msra.mxu1 %v8819_v4  ;;  %5644 = vmatprep.subr.bf16.mxu0 %v8820_v5  ;;  %v8824_v10 = vld [vmem:[#allocation2 + $0xc] ss:$16 sps:$4 sm:$0xff]   ;;  %v8828_v13 = vld [vmem:[#allocation2 + $0x28] ss:$16 sps:$4 sm:$0xff]   ;;  %vm10324_vm1 = vmmov 0  }
  0x4d   :  { %v10421_v8 = vpack.c.bf16 %v187_v7, %v158_v6  ;;  %v8825_v11 = vld [vmem:[#allocation2 + $0x20] ss:$16 sps:$4 sm:$0xff]   ;;  %v8826_v12 = vld [vmem:[#allocation2 + $0x44] ss:$16 sps:$4 sm:$0xff]   ;;  %6287 = vmatprep.subr.bf16.mxu1 %v8824_v10  ;;  %v8830_v14 = vld [vmem:[#allocation2 + $0x2c] ss:$16 sps:$4 sm:$0xff]  }
  0x4e   :  { %v8831_v15 = vld [vmem:[#allocation2 + $0x40] ss:$16 sps:$4 sm:$0xff]   ;;  %v8832_v16 = vld [vmem:[#allocation2 + $0x64] ss:$16 sps:$4 sm:$0xff]   ;;  %v8836_v17 = vld [vmem:[#allocation2 + $0x4c] ss:$16 sps:$4 sm:$0xff]  }
  0x4f   :  { %8481 = vmatmul.mubr.msk.bf16.vlgmr.msra.gmra.mrb[0].mxu1 %vm5638_vm0, %v10421_v8  ;;  %5645 = vmatpush1.bf16.msra.mxu0 %v8825_v11  ;;  %v8834_v18 = vld [vmem:[#allocation2 + $0x48] ss:$16 sps:$4 sm:$0xff]   ;;  %v8837_v19 = vld [vmem:[#allocation2 + $0x60] ss:$16 sps:$4 sm:$0xff]   ;;  %v8838_v20 = vld [vmem:[#allocation2 + $0x84] ss:$16 sps:$4 sm:$0xff]  }
  0x50   :  { %6288 = vmatpush1.bf16.msra.mxu1 %v8822_v9  ;;  %5646 = vmatprep.subr.bf16.mxu0 %v8826_v12  ;;  %v8842_v21 = vld [vmem:[#allocation2 + $0x6c] ss:$16 sps:$4 sm:$0xff]   ;;  %v8840_v22 = vld [vmem:[#allocation2 + $0x68] ss:$16 sps:$4 sm:$0xff]   ;;  %v8843_v23 = vld [vmem:[#allocation2 + $0x80] ss:$16 sps:$4 sm:$0xff]  }
  0x51   :  { %6289 = vmatprep.subr.bf16.mxu1 %v8830_v14  ;;  %v8844_v24 = vld [vmem:[#allocation2 + $0xa4] ss:$16 sps:$4 sm:$0xff]   ;;  %v8848_v25 = vld [vmem:[#allocation2 + $0x8c] ss:$16 sps:$4 sm:$0xff]   ;;  %v8846_v26 = vld [vmem:[#allocation2 + $0x88] ss:$16 sps:$4 sm:$0xff]  }
  0x52   :  { %v8849_v27 = vld [vmem:[#allocation2 + $0xa0] ss:$16 sps:$4 sm:$0xff]   ;;  %v8850_v28 = vld [vmem:[#allocation2 + $0xc4] ss:$16 sps:$4 sm:$0xff]   ;;  %v8854_v29 = vld [vmem:[#allocation2 + $0xac] ss:$16 sps:$4 sm:$0xff]  }
  0x53   :  { %5647 = vmatpush1.bf16.msra.mxu0 %v8831_v15  ;;  %v8852_v30 = vld [vmem:[#allocation2 + $0xa8] ss:$16 sps:$4 sm:$0xff]   ;;  %v8855_v31 = vld [vmem:[#allocation2 + $0xc0] ss:$16 sps:$4 sm:$0xff]   ;;  %v8856_v32 = vld [vmem:[#allocation2 + $0xe4] ss:$16 sps:$4 sm:$0xff]  }
  0x54   :  { %6290 = vmatpush1.bf16.msra.mxu1 %v8828_v13  ;;  %5648 = vmatprep.subr.bf16.mxu0 %v8832_v16  ;;  %v8860_v33 = vld [vmem:[#allocation2 + $0xcc] ss:$16 sps:$4 sm:$0xff]   ;;  %v8858_v34 = vld [vmem:[#allocation2 + $0xc8] ss:$16 sps:$4 sm:$0xff]   ;;  %v8861_v35 = vld [vmem:[#allocation2 + $0xe0] ss:$16 sps:$4 sm:$0xff]  }
  0x55   :  { %6291 = vmatprep.subr.bf16.mxu1 %v8836_v17  ;;  %v8862_v36 = vld [vmem:[#allocation2 + $0x104] ss:$16 sps:$4 sm:$0xff]   ;;  %v8866_v37 = vld [vmem:[#allocation2 + $0xec] ss:$16 sps:$4 sm:$0xff]   ;;  %v8864_v38 = vld [vmem:[#allocation2 + $0xe8] ss:$16 sps:$4 sm:$0xff]  }
  0x56   :  { %v8867_v39 = vld [vmem:[#allocation2 + $0x100] ss:$16 sps:$4 sm:$0xff]   ;;  %v8868_v40 = vld [vmem:[#allocation2 + $0x124] ss:$16 sps:$4 sm:$0xff]   ;;  %v8872_v41 = vld [vmem:[#allocation2 + $0x10c] ss:$16 sps:$4 sm:$0xff]  }
  0x57   :  { %5649 = vmatpush1.bf16.msra.mxu0 %v8837_v19  ;;  %v8870_v42 = vld [vmem:[#allocation2 + $0x108] ss:$16 sps:$4 sm:$0xff]   ;;  %v8873_v43 = vld [vmem:[#allocation2 + $0x120] ss:$16 sps:$4 sm:$0xff]   ;;  %v8874_v44 = vld [vmem:[#allocation2 + $0x144] ss:$16 sps:$4 sm:$0xff]  }
  0x58   :  { %6292 = vmatpush1.bf16.msra.mxu1 %v8834_v18  ;;  %5650 = vmatprep.subr.bf16.mxu0 %v8838_v20  ;;  %v8878_v45 = vld [vmem:[#allocation2 + $0x12c] ss:$16 sps:$4 sm:$0xff]   ;;  %v8876_v46 = vld [vmem:[#allocation2 + $0x128] ss:$16 sps:$4 sm:$0xff]   ;;  %v8879_v47 = vld [vmem:[#allocation2 + $0x140] ss:$16 sps:$4 sm:$0xff]  }
  0x59   :  { %6293 = vmatprep.subr.bf16.mxu1 %v8842_v21  ;;  %v8880_v48 = vld [vmem:[#allocation2 + $0x164] ss:$16 sps:$4 sm:$0xff]   ;;  %v8884_v49 = vld [vmem:[#allocation2 + $0x14c] ss:$16 sps:$4 sm:$0xff]   ;;  %v8882_v50 = vld [vmem:[#allocation2 + $0x148] ss:$16 sps:$4 sm:$0xff]  }
  0x5a   :  { %v8885_v51 = vld [vmem:[#allocation2 + $0x160] ss:$16 sps:$4 sm:$0xff]   ;;  %v8886_v54 = vld [vmem:[#allocation2 + $0x184] ss:$16 sps:$4 sm:$0xff]   ;;  %v8890_v56 = vld [vmem:[#allocation2 + $0x16c] ss:$16 sps:$4 sm:$0xff]  }
  0x5b   :  { %5651 = vmatpush1.bf16.msra.mxu0 %v8843_v23  ;;  %v160_v53 = vld [vmem:[%s10644_s0 + $0xf0] sm:$0xff]  ;;  %v8888_v57 = vld [vmem:[#allocation2 + $0x168] ss:$16 sps:$4 sm:$0xff]   ;;  %v8896_v60 = vld [vmem:[#allocation2 + $0x18c] ss:$16 sps:$4 sm:$0xff]  }
  0x5c   :  { %6294 = vmatpush1.bf16.msra.mxu1 %v8840_v22  ;;  %5652 = vmatprep.subr.bf16.mxu0 %v8844_v24  ;;  %v189_v55 = vpack.c.bf16 %v160_v53, %v131_v52  ;;  %v8891_v58 = vld [vmem:[#allocation2 + $0x180] ss:$16 sps:$4 sm:$0xff]   ;;  %v8892_v59 = vld [vmem:[#allocation2 + $0x1a4] ss:$16 sps:$4 sm:$0xff]   ;;  %v8894_v61 = vld [vmem:[#allocation2 + $0x188] ss:$16 sps:$4 sm:$0xff]  }
  0x5d   :  { %6295 = vmatprep.subr.bf16.mxu1 %v8848_v25  ;;  %v8897_v62 = vld [vmem:[#allocation2 + $0x1a0] ss:$16 sps:$4 sm:$0xff]   ;;  %v8898_v63 = vld [vmem:[#allocation2 + $0x1c4] ss:$16 sps:$4 sm:$0xff]   ;;  %v8902_v1 = vld [vmem:[#allocation2 + $0x1ac] ss:$16 sps:$4 sm:$0xff]  }
  0x5e   :  { %5674 = vmatprep.mubr.bf16.mxu0 %v189_v55  ;;  %6319 = vmatprep.mubr.bf16.mxu1 %v189_v55  ;;  %v8900_v2 = vld [vmem:[#allocation2 + $0x1a8] ss:$16 sps:$4 sm:$0xff]   ;;  %v8903_v3 = vld [vmem:[#allocation2 + $0x1c0] ss:$16 sps:$4 sm:$0xff]   ;;  %v8904_v4 = vld [vmem:[#allocation2 + $0x1e4] ss:$16 sps:$4 sm:$0xff]  }
  0x5f   :  { %5653 = vmatpush1.bf16.msra.mxu0 %v8849_v27  ;;  %v8908_v5 = vld [vmem:[#allocation2 + $0x1cc] ss:$16 sps:$4 sm:$0xff]   ;;  %v8906_v6 = vld [vmem:[#allocation2 + $0x1c8] ss:$16 sps:$4 sm:$0xff]   ;;  %v8909_v7 = vld [vmem:[#allocation2 + $0x1e0] ss:$16 sps:$4 sm:$0xff]  }
  0x60   :  { %6296 = vmatpush1.bf16.msra.mxu1 %v8846_v26  ;;  %5654 = vmatprep.subr.bf16.mxu0 %v8850_v28  ;;  %v130_v9 = vld [vmem:[%s10644_s0] sm:$0xff]  ;;  %v159_v10 = vld [vmem:[%s10644_s0 + $0xe8] sm:$0xff] }
  0x61   :  { %6297 = vmatprep.subr.bf16.mxu1 %v8854_v29  ;;  %v8912_v11 = vld [vmem:[#allocation2 + $0x204] ss:$16 sps:$4 sm:$0xff]   ;;  %v8915_v12 = vld [vmem:[#allocation2 + $0x1ec] ss:$16 sps:$4 sm:$0xff]   ;;  %v188_v13 = vpack.c.bf16 %v159_v10, %v130_v9  ;;  %v8910_v14 = vld [vmem:[#allocation2 + $0x200] ss:$16 sps:$4 sm:$0xff]  }
  0x62   :  { %v8913_v15 = vld [vmem:[#allocation2 + $0x1e8] ss:$16 sps:$4 sm:$0xff]   ;;  %v8918_v16 = vld [vmem:[#allocation2 + $0x224] ss:$16 sps:$4 sm:$0xff]   ;;  %v8921_v17 = vld [vmem:[#allocation2 + $0x20c] ss:$16 sps:$4 sm:$0xff]  }
  0x63   :  { %5655 = vmatpush1.bf16.msra.mxu0 %v8855_v31  ;;  %v8916_v18 = vld [vmem:[#allocation2 + $0x220] ss:$16 sps:$4 sm:$0xff]   ;;  %v8919_v19 = vld [vmem:[#allocation2 + $0x208] ss:$16 sps:$4 sm:$0xff]   ;;  %v8924_v20 = vld [vmem:[#allocation2 + $0x244] ss:$16 sps:$4 sm:$0xff]  }
  0x64   :  { %6298 = vmatpush1.bf16.msra.mxu1 %v8852_v30  ;;  %5656 = vmatprep.subr.bf16.mxu0 %v8856_v32  ;;  %v8927_v21 = vld [vmem:[#allocation2 + $0x22c] ss:$16 sps:$4 sm:$0xff]   ;;  %v8922_v22 = vld [vmem:[#allocation2 + $0x240] ss:$16 sps:$4 sm:$0xff]   ;;  %v8925_v23 = vld [vmem:[#allocation2 + $0x228] ss:$16 sps:$4 sm:$0xff]  }
  0x65   :  { %6299 = vmatprep.subr.bf16.mxu1 %v8860_v33  ;;  %v8930_v24 = vld [vmem:[#allocation2 + $0x264] ss:$16 sps:$4 sm:$0xff]   ;;  %v8933_v25 = vld [vmem:[#allocation2 + $0x24c] ss:$16 sps:$4 sm:$0xff]   ;;  %v8928_v26 = vld [vmem:[#allocation2 + $0x260] ss:$16 sps:$4 sm:$0xff]  }
  0x66   :  { %v8931_v27 = vld [vmem:[#allocation2 + $0x248] ss:$16 sps:$4 sm:$0xff]   ;;  %v8936_v28 = vld [vmem:[#allocation2 + $0x284] ss:$16 sps:$4 sm:$0xff]   ;;  %v8939_v29 = vld [vmem:[#allocation2 + $0x26c] ss:$16 sps:$4 sm:$0xff]  }
  0x67   :  { %5657 = vmatpush1.bf16.msra.mxu0 %v8861_v35  ;;  %v8934_v30 = vld [vmem:[#allocation2 + $0x280] ss:$16 sps:$4 sm:$0xff]   ;;  %v8937_v31 = vld [vmem:[#allocation2 + $0x268] ss:$16 sps:$4 sm:$0xff]   ;;  %v8942_v32 = vld [vmem:[#allocation2 + $0x2a4] ss:$16 sps:$4 sm:$0xff]  }
  0x68   :  { %6300 = vmatpush1.bf16.msra.mxu1 %v8858_v34  ;;  %5658 = vmatprep.subr.bf16.mxu0 %v8862_v36  ;;  %v8945_v33 = vld [vmem:[#allocation2 + $0x28c] ss:$16 sps:$4 sm:$0xff]   ;;  %v8940_v34 = vld [vmem:[#allocation2 + $0x2a0] ss:$16 sps:$4 sm:$0xff]   ;;  %v8943_v35 = vld [vmem:[#allocation2 + $0x288] ss:$16 sps:$4 sm:$0xff]  }
  0x69   :  { %6301 = vmatprep.subr.bf16.mxu1 %v8866_v37  ;;  %v8948_v36 = vld [vmem:[#allocation2 + $0x2c4] ss:$16 sps:$4 sm:$0xff]   ;;  %v8951_v37 = vld [vmem:[#allocation2 + $0x2ac] ss:$16 sps:$4 sm:$0xff]   ;;  %v8964_v53 = vld [vmem:[#allocation2 + $0x320] ss:$16 sps:$4 sm:$0xff]  }
  0x6a   :  { %v8969_v52 = vld [vmem:[#allocation2 + $0x30c] ss:$16 sps:$4 sm:$0xff]   ;;  %v8972_v55 = vld [vmem:[#allocation2 + $0x344] ss:$16 sps:$4 sm:$0xff]  }
  0x6b   :  { %5659 = vmatpush1.bf16.msra.mxu0 %v8867_v39  ;;  %v8949_v39 = vld [vmem:[#allocation2 + $0x2a8] ss:$16 sps:$4 sm:$0xff]   ;;  %v8996_v9 = vld [vmem:[#allocation2 + $0x3c4] ss:$16 sps:$4 sm:$0xff]   ;;  %v8999_v10 = vld [vmem:[#allocation2 + $0x3ac] ss:$16 sps:$4 sm:$0xff]  }
  0x6c   :  { %6302 = vmatpush1.bf16.msra.mxu1 %v8864_v38  ;;  %5660 = vmatprep.subr.bf16.mxu0 %v8868_v40  ;;  %v8946_v38 = vld [vmem:[#allocation2 + $0x2c0] ss:$16 sps:$4 sm:$0xff]   ;;  %v133_v40 = vld [vmem:[%s10644_s0 + $0x18] sm:$0xff] }
  0x6d   :  { %6303 = vmatprep.subr.bf16.mxu1 %v8872_v41  ;;  %v162_v41 = vld [vmem:[%s10644_s0 + $0x100] sm:$0xff] }
  0x6f   :  { %5661 = vmatpush1.bf16.msra.mxu0 %v8873_v43  ;;  %v191_v43 = vpack.c.bf16 %v162_v41, %v133_v40  ;;  %v9035_v40 = vld [vmem:[#allocation2 + $0x46c] ss:$16 sps:$4 sm:$0xff]   ;;  %v9030_v41 = vld [vmem:[#allocation2 + $0x480] ss:$16 sps:$4 sm:$0xff]  }
  0x70   :  { %6304 = vmatpush1.bf16.msra.mxu1 %v8870_v42  ;;  %5662 = vmatprep.subr.bf16.mxu0 %v8874_v44  ;;  %v8954_v42 = vld [vmem:[#allocation2 + $0x2e4] ss:$16 sps:$4 sm:$0xff]   ;;  %v8957_v44 = vld [vmem:[#allocation2 + $0x2cc] ss:$16 sps:$4 sm:$0xff]  }
  0x71   :  { %6305 = vmatprep.subr.bf16.mxu1 %v8878_v45  ;;  %v8952_v45 = vld [vmem:[#allocation2 + $0x2e0] ss:$16 sps:$4 sm:$0xff]  }
  0x73   :  { %5663 = vmatpush1.bf16.msra.mxu0 %v8879_v47  ;;  %v8960_v47 = vld [vmem:[#allocation2 + $0x304] ss:$16 sps:$4 sm:$0xff]  }
  0x74   :  { %6306 = vmatpush1.bf16.msra.mxu1 %v8876_v46  ;;  %5664 = vmatprep.subr.bf16.mxu0 %v8880_v48  ;;  %v8955_v46 = vld [vmem:[#allocation2 + $0x2c8] ss:$16 sps:$4 sm:$0xff]   ;;  %v8963_v48 = vld [vmem:[#allocation2 + $0x2ec] ss:$16 sps:$4 sm:$0xff]  }
  0x75   :  { %6307 = vmatprep.subr.bf16.mxu1 %v8884_v49  ;;  %v8958_v49 = vld [vmem:[#allocation2 + $0x300] ss:$16 sps:$4 sm:$0xff]  }
  0x77   :  { %5665 = vmatpush1.bf16.msra.mxu0 %v8885_v51  ;;  %v8966_v51 = vld [vmem:[#allocation2 + $0x324] ss:$16 sps:$4 sm:$0xff]  }
  0x78   :  { %6308 = vmatpush1.bf16.msra.mxu1 %v8882_v50  ;;  %5666 = vmatprep.subr.bf16.mxu0 %v8886_v54  ;;  %v8961_v50 = vld [vmem:[#allocation2 + $0x2e8] ss:$16 sps:$4 sm:$0xff]  }
  0x79   :  { %6309 = vmatprep.subr.bf16.mxu1 %v8890_v56  ;;  %v8967_v54 = vld [vmem:[#allocation2 + $0x308] ss:$16 sps:$4 sm:$0xff]   ;;  %v8975_v56 = vld [vmem:[#allocation2 + $0x32c] ss:$16 sps:$4 sm:$0xff]  }
  0x7b   :  { %5667 = vmatpush1.bf16.msra.mxu0 %v8891_v58  ;;  %v8973_v58 = vld [vmem:[#allocation2 + $0x328] ss:$16 sps:$4 sm:$0xff]  }
  0x7c   :  { %6310 = vmatpush1.bf16.msra.mxu1 %v8888_v57  ;;  %5668 = vmatprep.subr.bf16.mxu0 %v8892_v59  ;;  %v8970_v57 = vld [vmem:[#allocation2 + $0x340] ss:$16 sps:$4 sm:$0xff]   ;;  %v8978_v59 = vld [vmem:[#allocation2 + $0x364] ss:$16 sps:$4 sm:$0xff]  }
  0x7d   :  { %6311 = vmatprep.subr.bf16.mxu1 %v8896_v60  ;;  %v8981_v60 = vld [vmem:[#allocation2 + $0x34c] ss:$16 sps:$4 sm:$0xff]  }
  0x7f   :  { %5669 = vmatpush1.bf16.msra.mxu0 %v8897_v62  ;;  %v8979_v62 = vld [vmem:[#allocation2 + $0x348] ss:$16 sps:$4 sm:$0xff]  }
  0x80   :  { %6312 = vmatpush1.bf16.msra.mxu1 %v8894_v61  ;;  %5670 = vmatprep.subr.bf16.mxu0 %v8898_v63  ;;  %v8976_v61 = vld [vmem:[#allocation2 + $0x360] ss:$16 sps:$4 sm:$0xff]   ;;  %v8984_v63 = vld [vmem:[#allocation2 + $0x384] ss:$16 sps:$4 sm:$0xff]  }
  0x81   :  { %6313 = vmatprep.subr.bf16.mxu1 %v8902_v1  ;;  %v8987_v1 = vld [vmem:[#allocation2 + $0x36c] ss:$16 sps:$4 sm:$0xff]  }
  0x83   :  { %5671 = vmatpush1.bf16.msra.mxu0 %v8903_v3  ;;  %v8985_v3 = vld [vmem:[#allocation2 + $0x368] ss:$16 sps:$4 sm:$0xff]  }
  0x84   :  { %6314 = vmatpush1.bf16.msra.mxu1 %v8900_v2  ;;  %5672 = vmatprep.subr.bf16.mxu0 %v8904_v4  ;;  %v8982_v2 = vld [vmem:[#allocation2 + $0x380] ss:$16 sps:$4 sm:$0xff]   ;;  %v8990_v4 = vld [vmem:[#allocation2 + $0x3a4] ss:$16 sps:$4 sm:$0xff]  }
  0x85   :  { %6315 = vmatprep.subr.bf16.mxu1 %v8908_v5  ;;  %v8993_v5 = vld [vmem:[#allocation2 + $0x38c] ss:$16 sps:$4 sm:$0xff]  }
  0x87   :  { %5673 = vmatpush1.bf16.msra.mxu0 %v8909_v7  ;;  %v8991_v7 = vld [vmem:[#allocation2 + $0x388] ss:$16 sps:$4 sm:$0xff]  }
  0x88   :  { %6316 = vmatpush1.bf16.msra.mxu1 %v8906_v6  ;;  %5685 = vmatprep.subr.bf16.mxu0 %v8912_v11  ;;  %v8988_v6 = vld [vmem:[#allocation2 + $0x3a0] ss:$16 sps:$4 sm:$0xff]  }
  0x89   :  { %6317 = vmatprep.subr.bf16.mxu1 %v8915_v12  ;;  %v8994_v11 = vld [vmem:[#allocation2 + $0x3c0] ss:$16 sps:$4 sm:$0xff]   ;;  %v8997_v12 = vld [vmem:[#allocation2 + $0x3a8] ss:$16 sps:$4 sm:$0xff]  }
  0x8a   :  { %5675 = vmatmul.mubr.bf16.vlgmr.msra.gmra.mrb[0].mxu0 %v188_v13 }
  0x8b   :  { %5686 = vmatpush1.bf16.msra.mxu0 %v8910_v14  ;;  %5717 = vmatprep.mubr.bf16.mxu0 %v191_v43  ;;  %v9005_v14 = vld [vmem:[#allocation2 + $0x3cc] ss:$16 sps:$4 sm:$0xff]  }
  0x8c   :  { %6318 = vmatpush1.bf16.msra.mxu1 %v8913_v15  ;;  %5687 = vmatprep.subr.bf16.mxu0 %v8918_v16  ;;  %v9000_v15 = vld [vmem:[#allocation2 + $0x3e0] ss:$16 sps:$4 sm:$0xff]   ;;  %v9003_v16 = vld [vmem:[#allocation2 + $0x3c8] ss:$16 sps:$4 sm:$0xff]  }
  0x8d   :  { %6330 = vmatprep.subr.bf16.mxu1 %v8921_v17  ;;  %v132_v17 = vld [vmem:[%s10644_s0 + $0x10] sm:$0xff] }
  0x8f   :  { %6320 = vmatmul.mubr.bf16.vlgmr.msra.gmra.mrb[4].mxu1 %v188_v13  ;;  %5688 = vmatpush1.bf16.msra.mxu0 %v8916_v18  ;;  %v9002_v13 = vld [vmem:[#allocation2 + $0x3e4] ss:$16 sps:$4 sm:$0xff]   ;;  %v161_v18 = vld [vmem:[%s10644_s0 + $0xf8] sm:$0xff] }
  0x90   :  { %6331 = vmatpush1.bf16.msra.mxu1 %v8919_v19  ;;  %5689 = vmatprep.subr.bf16.mxu0 %v8924_v20  ;;  %v9008_v19 = vld [vmem:[#allocation2 + $0x404] ss:$16 sps:$4 sm:$0xff]   ;;  %v9011_v20 = vld [vmem:[#allocation2 + $0x3ec] ss:$16 sps:$4 sm:$0xff]  }
  0x91   :  { %6332 = vmatprep.subr.bf16.mxu1 %v8927_v21  ;;  %6362 = vmatprep.mubr.bf16.mxu1 %v191_v43  ;;  %v190_v21 = vpack.c.bf16 %v161_v18, %v132_v17  ;;  %v9038_v43 = vld [vmem:[#allocation2 + $0x4a4] ss:$16 sps:$4 sm:$0xff]   ;;  %v9095_v18 = vld [vmem:[#allocation2 + $0x5ac] ss:$16 sps:$4 sm:$0xff]  }
  0x92   :  { %v9092_v17 = vld [vmem:[#allocation2 + $0x5c4] ss:$16 sps:$4 sm:$0xff]  }
  0x93   :  { %5690 = vmatpush1.bf16.msra.mxu0 %v8922_v22  ;;  %v9006_v22 = vld [vmem:[#allocation2 + $0x400] ss:$16 sps:$4 sm:$0xff]  }
  0x94   :  { %6333 = vmatpush1.bf16.msra.mxu1 %v8925_v23  ;;  %5691 = vmatprep.subr.bf16.mxu0 %v8930_v24  ;;  %v9009_v23 = vld [vmem:[#allocation2 + $0x3e8] ss:$16 sps:$4 sm:$0xff]   ;;  %v9014_v24 = vld [vmem:[#allocation2 + $0x424] ss:$16 sps:$4 sm:$0xff]  }
  0x95   :  { %6334 = vmatprep.subr.bf16.mxu1 %v8933_v25  ;;  %v9017_v25 = vld [vmem:[#allocation2 + $0x40c] ss:$16 sps:$4 sm:$0xff]  }
  0x97   :  { %5692 = vmatpush1.bf16.msra.mxu0 %v8928_v26  ;;  %v9012_v26 = vld [vmem:[#allocation2 + $0x420] ss:$16 sps:$4 sm:$0xff]  }
  0x98   :  { %6335 = vmatpush1.bf16.msra.mxu1 %v8931_v27  ;;  %5693 = vmatprep.subr.bf16.mxu0 %v8936_v28  ;;  %v9015_v27 = vld [vmem:[#allocation2 + $0x408] ss:$16 sps:$4 sm:$0xff]  }
  0x99   :  { %6336 = vmatprep.subr.bf16.mxu1 %v8939_v29  ;;  %v135_v28 = vld [vmem:[%s10644_s0 + $0x28] sm:$0xff]  ;;  %v164_v29 = vld [vmem:[%s10644_s0 + $0x110] sm:$0xff] }
  0x9b   :  { %5694 = vmatpush1.bf16.msra.mxu0 %v8934_v30  ;;  %v9020_v30 = vld [vmem:[#allocation2 + $0x444] ss:$16 sps:$4 sm:$0xff]  }
  0x9c   :  { %6337 = vmatpush1.bf16.msra.mxu1 %v8937_v31  ;;  %5695 = vmatprep.subr.bf16.mxu0 %v8942_v32  ;;  %v193_v31 = vpack.c.bf16 %v164_v29, %v135_v28  ;;  %v9023_v32 = vld [vmem:[#allocation2 + $0x42c] ss:$16 sps:$4 sm:$0xff]  }
  0x9d   :  { %6338 = vmatprep.subr.bf16.mxu1 %v8945_v33  ;;  %v9018_v33 = vld [vmem:[#allocation2 + $0x440] ss:$16 sps:$4 sm:$0xff]   ;;  %v9107_v28 = vld [vmem:[#allocation2 + $0x5ec] ss:$16 sps:$4 sm:$0xff]  }
  0x9e   :  { %v137_v29 = vld [vmem:[%s10644_s0 + $0x38] sm:$0xff] }
  0x9f   :  { %5696 = vmatpush1.bf16.msra.mxu0 %v8940_v34  ;;  %v9021_v34 = vld [vmem:[#allocation2 + $0x428] ss:$16 sps:$4 sm:$0xff]  }
  0xa0   :  { %6339 = vmatpush1.bf16.msra.mxu1 %v8943_v35  ;;  %5697 = vmatprep.subr.bf16.mxu0 %v8948_v36  ;;  %v9026_v35 = vld [vmem:[#allocation2 + $0x464] ss:$16 sps:$4 sm:$0xff]   ;;  %v9029_v36 = vld [vmem:[#allocation2 + $0x44c] ss:$16 sps:$4 sm:$0xff]  }
  0xa1   :  { %6340 = vmatprep.subr.bf16.mxu1 %v8951_v37  ;;  %v9024_v37 = vld [vmem:[#allocation2 + $0x460] ss:$16 sps:$4 sm:$0xff]  }
  0xa3   :  { %5698 = vmatpush1.bf16.msra.mxu0 %v8946_v38  ;;  %v9027_v38 = vld [vmem:[#allocation2 + $0x448] ss:$16 sps:$4 sm:$0xff]  }
  0xa4   :  { %6341 = vmatpush1.bf16.msra.mxu1 %v8949_v39  ;;  %5699 = vmatprep.subr.bf16.mxu0 %v8954_v42  ;;  %v9032_v39 = vld [vmem:[#allocation2 + $0x484] ss:$16 sps:$4 sm:$0xff]   ;;  %v9033_v42 = vld [vmem:[#allocation2 + $0x468] ss:$16 sps:$4 sm:$0xff]  }
  0xa5   :  { %6342 = vmatprep.subr.bf16.mxu1 %v8957_v44  ;;  %v9041_v44 = vld [vmem:[#allocation2 + $0x48c] ss:$16 sps:$4 sm:$0xff]  }
  0xa7   :  { %5700 = vmatpush1.bf16.msra.mxu0 %v8952_v45  ;;  %v9036_v45 = vld [vmem:[#allocation2 + $0x4a0] ss:$16 sps:$4 sm:$0xff]  }
  0xa8   :  { %6343 = vmatpush1.bf16.msra.mxu1 %v8955_v46  ;;  %5701 = vmatprep.subr.bf16.mxu0 %v8960_v47  ;;  %v9039_v46 = vld [vmem:[#allocation2 + $0x488] ss:$16 sps:$4 sm:$0xff]   ;;  %v9044_v47 = vld [vmem:[#allocation2 + $0x4c4] ss:$16 sps:$4 sm:$0xff]  }
  0xa9   :  { %6344 = vmatprep.subr.bf16.mxu1 %v8963_v48  ;;  %v9047_v48 = vld [vmem:[#allocation2 + $0x4ac] ss:$16 sps:$4 sm:$0xff]  }
  0xab   :  { %5702 = vmatpush1.bf16.msra.mxu0 %v8958_v49  ;;  %v9042_v49 = vld [vmem:[#allocation2 + $0x4c0] ss:$16 sps:$4 sm:$0xff]  }
  0xac   :  { %6345 = vmatpush1.bf16.msra.mxu1 %v8961_v50  ;;  %5703 = vmatprep.subr.bf16.mxu0 %v8966_v51  ;;  %v9045_v50 = vld [vmem:[#allocation2 + $0x4a8] ss:$16 sps:$4 sm:$0xff]   ;;  %v9050_v51 = vld [vmem:[#allocation2 + $0x4e4] ss:$16 sps:$4 sm:$0xff]  }
  0xad   :  { %6346 = vmatprep.subr.bf16.mxu1 %v8969_v52  ;;  %v9053_v52 = vld [vmem:[#allocation2 + $0x4cc] ss:$16 sps:$4 sm:$0xff]  }
  0xaf   :  { %5704 = vmatpush1.bf16.msra.mxu0 %v8964_v53  ;;  %v9048_v53 = vld [vmem:[#allocation2 + $0x4e0] ss:$16 sps:$4 sm:$0xff]  }
  0xb0   :  { %6347 = vmatpush1.bf16.msra.mxu1 %v8967_v54  ;;  %5705 = vmatprep.subr.bf16.mxu0 %v8972_v55  ;;  %v9051_v54 = vld [vmem:[#allocation2 + $0x4c8] ss:$16 sps:$4 sm:$0xff]   ;;  %v9056_v55 = vld [vmem:[#allocation2 + $0x504] ss:$16 sps:$4 sm:$0xff]  }
  0xb1   :  { %6348 = vmatprep.subr.bf16.mxu1 %v8975_v56  ;;  %v9059_v56 = vld [vmem:[#allocation2 + $0x4ec] ss:$16 sps:$4 sm:$0xff]  }
  0xb3   :  { %5706 = vmatpush1.bf16.msra.mxu0 %v8970_v57  ;;  %v9054_v57 = vld [vmem:[#allocation2 + $0x500] ss:$16 sps:$4 sm:$0xff]  }
  0xb4   :  { %6349 = vmatpush1.bf16.msra.mxu1 %v8973_v58  ;;  %5707 = vmatprep.subr.bf16.mxu0 %v8978_v59  ;;  %v9057_v58 = vld [vmem:[#allocation2 + $0x4e8] ss:$16 sps:$4 sm:$0xff]   ;;  %v9062_v59 = vld [vmem:[#allocation2 + $0x524] ss:$16 sps:$4 sm:$0xff]  }
  0xb5   :  { %6350 = vmatprep.subr.bf16.mxu1 %v8981_v60  ;;  %v9065_v60 = vld [vmem:[#allocation2 + $0x50c] ss:$16 sps:$4 sm:$0xff]  }
  0xb7   :  { %5708 = vmatpush1.bf16.msra.mxu0 %v8976_v61  ;;  %v9060_v61 = vld [vmem:[#allocation2 + $0x520] ss:$16 sps:$4 sm:$0xff]  }
  0xb8   :  { %6351 = vmatpush1.bf16.msra.mxu1 %v8979_v62  ;;  %5709 = vmatprep.subr.bf16.mxu0 %v8984_v63  ;;  %v9063_v62 = vld [vmem:[#allocation2 + $0x508] ss:$16 sps:$4 sm:$0xff]   ;;  %v9068_v63 = vld [vmem:[#allocation2 + $0x544] ss:$16 sps:$4 sm:$0xff]  }
  0xb9   :  { %6352 = vmatprep.subr.bf16.mxu1 %v8987_v1  ;;  %v9071_v1 = vld [vmem:[#allocation2 + $0x52c] ss:$16 sps:$4 sm:$0xff]  }
  0xbb   :  { %5710 = vmatpush1.bf16.msra.mxu0 %v8982_v2  ;;  %v9066_v2 = vld [vmem:[#allocation2 + $0x540] ss:$16 sps:$4 sm:$0xff]  }
  0xbc   :  { %6353 = vmatpush1.bf16.msra.mxu1 %v8985_v3  ;;  %5711 = vmatprep.subr.bf16.mxu0 %v8990_v4  ;;  %v9069_v3 = vld [vmem:[#allocation2 + $0x528] ss:$16 sps:$4 sm:$0xff]   ;;  %v9074_v4 = vld [vmem:[#allocation2 + $0x564] ss:$16 sps:$4 sm:$0xff]  }
  0xbd   :  { %6354 = vmatprep.subr.bf16.mxu1 %v8993_v5  ;;  %v9077_v5 = vld [vmem:[#allocation2 + $0x54c] ss:$16 sps:$4 sm:$0xff]  }
  0xbf   :  { %5712 = vmatpush1.bf16.msra.mxu0 %v8988_v6  ;;  %v9072_v6 = vld [vmem:[#allocation2 + $0x560] ss:$16 sps:$4 sm:$0xff]  }
  0xc0   :  { %6355 = vmatpush1.bf16.msra.mxu1 %v8991_v7  ;;  %5713 = vmatprep.subr.bf16.mxu0 %v8996_v9  ;;  %v9075_v7 = vld [vmem:[#allocation2 + $0x548] ss:$16 sps:$4 sm:$0xff]   ;;  %v9080_v9 = vld [vmem:[#allocation2 + $0x584] ss:$16 sps:$4 sm:$0xff]  }
  0xc1   :  { %6356 = vmatprep.subr.bf16.mxu1 %v8999_v10  ;;  %v9083_v10 = vld [vmem:[#allocation2 + $0x56c] ss:$16 sps:$4 sm:$0xff]  }
  0xc3   :  { %5714 = vmatpush1.bf16.msra.mxu0 %v8994_v11  ;;  %v9078_v11 = vld [vmem:[#allocation2 + $0x580] ss:$16 sps:$4 sm:$0xff]  }
  0xc4   :  { %6357 = vmatpush1.bf16.msra.mxu1 %v8997_v12  ;;  %5715 = vmatprep.subr.bf16.mxu0 %v9002_v13  ;;  %v9081_v12 = vld [vmem:[#allocation2 + $0x568] ss:$16 sps:$4 sm:$0xff]   ;;  %v9086_v13 = vld [vmem:[#allocation2 + $0x5a4] ss:$16 sps:$4 sm:$0xff]  }
  0xc5   :  { %6358 = vmatprep.subr.bf16.mxu1 %v9005_v14  ;;  %v9089_v14 = vld [vmem:[#allocation2 + $0x58c] ss:$16 sps:$4 sm:$0xff]  }
  0xc7   :  { %5716 = vmatpush1.bf16.msra.mxu0 %v9000_v15  ;;  %v9084_v15 = vld [vmem:[#allocation2 + $0x5a0] ss:$16 sps:$4 sm:$0xff]  }
  0xc8   :  { %6359 = vmatpush1.bf16.msra.mxu1 %v9003_v16  ;;  %5728 = vmatprep.subr.bf16.mxu0 %v9008_v19  ;;  %v9087_v16 = vld [vmem:[#allocation2 + $0x588] ss:$16 sps:$4 sm:$0xff]   ;;  %v9090_v19 = vld [vmem:[#allocation2 + $0x5c0] ss:$16 sps:$4 sm:$0xff]  }
  0xc9   :  { %6360 = vmatprep.subr.bf16.mxu1 %v9011_v20  ;;  %v9093_v20 = vld [vmem:[#allocation2 + $0x5a8] ss:$16 sps:$4 sm:$0xff]  }
  0xca   :  { %5718 = vmatmul.mubr.bf16.vlgmr.msra.gmra.mrb[0].mxu0 %v190_v21 }
  0xcb   :  { %5729 = vmatpush1.bf16.msra.mxu0 %v9006_v22  ;;  %5760 = vmatprep.mubr.bf16.mxu0 %v193_v31  ;;  %v9101_v22 = vld [vmem:[#allocation2 + $0x5cc] ss:$16 sps:$4 sm:$0xff]  }
  0xcc   :  { %6361 = vmatpush1.bf16.msra.mxu1 %v9009_v23  ;;  %5730 = vmatprep.subr.bf16.mxu0 %v9014_v24  ;;  %v9096_v23 = vld [vmem:[#allocation2 + $0x5e0] ss:$16 sps:$4 sm:$0xff]   ;;  %v9099_v24 = vld [vmem:[#allocation2 + $0x5c8] ss:$16 sps:$4 sm:$0xff]  }
  0xcd   :  { %6373 = vmatprep.subr.bf16.mxu1 %v9017_v25  ;;  %v134_v25 = vld [vmem:[%s10644_s0 + $0x20] sm:$0xff] }
  0xcf   :  { %6363 = vmatmul.mubr.bf16.vlgmr.msra.gmra.mrb[4].mxu1 %v190_v21  ;;  %5731 = vmatpush1.bf16.msra.mxu0 %v9012_v26  ;;  %v9098_v21 = vld [vmem:[#allocation2 + $0x5e4] ss:$16 sps:$4 sm:$0xff]   ;;  %v163_v26 = vld [vmem:[%s10644_s0 + $0x108] sm:$0xff] }
  0xd0   :  { %6374 = vmatpush1.bf16.msra.mxu1 %v9015_v27  ;;  %5732 = vmatprep.subr.bf16.mxu0 %v9020_v30  ;;  %v9104_v27 = vld [vmem:[#allocation2 + $0x604] ss:$16 sps:$4 sm:$0xff]   ;;  %v192_v30 = vpack.c.bf16 %v163_v26, %v134_v25  ;;  %v9185_v26 = vld [vmem:[#allocation2 + $0x78c] ss:$16 sps:$4 sm:$0xff]  }
  0xd1   :  { %6375 = vmatprep.subr.bf16.mxu1 %v9023_v32  ;;  %6405 = vmatprep.mubr.bf16.mxu1 %v193_v31  ;;  %v166_v31 = vld [vmem:[%s10644_s0 + $0x120] sm:$0xff] }
  0xd2   :  { %v9102_v32 = vld [vmem:[#allocation2 + $0x600] ss:$16 sps:$4 sm:$0xff]   ;;  %v9182_v25 = vld [vmem:[#allocation2 + $0x7a4] ss:$16 sps:$4 sm:$0xff]  }
  0xd3   :  { %5733 = vmatpush1.bf16.msra.mxu0 %v9018_v33  ;;  %v9105_v33 = vld [vmem:[#allocation2 + $0x5e8] ss:$16 sps:$4 sm:$0xff]  }
  0xd4   :  { %6376 = vmatpush1.bf16.msra.mxu1 %v9021_v34  ;;  %5734 = vmatprep.subr.bf16.mxu0 %v9026_v35  ;;  %v9110_v34 = vld [vmem:[#allocation2 + $0x624] ss:$16 sps:$4 sm:$0xff]   ;;  %v9113_v35 = vld [vmem:[#allocation2 + $0x60c] ss:$16 sps:$4 sm:$0xff]  }
  0xd5   :  { %6377 = vmatprep.subr.bf16.mxu1 %v9029_v36  ;;  %v195_v36 = vpack.c.bf16 %v166_v31, %v137_v29  ;;  %v9188_v29 = vld [vmem:[#allocation2 + $0x7c4] ss:$16 sps:$4 sm:$0xff]   ;;  %v9186_v31 = vld [vmem:[#allocation2 + $0x7c0] ss:$16 sps:$4 sm:$0xff]  }
  0xd7   :  { %5735 = vmatpush1.bf16.msra.mxu0 %v9024_v37  ;;  %v9108_v37 = vld [vmem:[#allocation2 + $0x620] ss:$16 sps:$4 sm:$0xff]  }
  0xd8   :  { %6378 = vmatpush1.bf16.msra.mxu1 %v9027_v38  ;;  %5736 = vmatprep.subr.bf16.mxu0 %v9032_v39  ;;  %v9111_v38 = vld [vmem:[#allocation2 + $0x608] ss:$16 sps:$4 sm:$0xff]   ;;  %v9116_v39 = vld [vmem:[#allocation2 + $0x644] ss:$16 sps:$4 sm:$0xff]  }
  0xd9   :  { %6379 = vmatprep.subr.bf16.mxu1 %v9035_v40  ;;  %v9119_v40 = vld [vmem:[#allocation2 + $0x62c] ss:$16 sps:$4 sm:$0xff]  }
  0xdb   :  { %5737 = vmatpush1.bf16.msra.mxu0 %v9030_v41  ;;  %v9114_v41 = vld [vmem:[#allocation2 + $0x640] ss:$16 sps:$4 sm:$0xff]  }
  0xdc   :  { %6380 = vmatpush1.bf16.msra.mxu1 %v9033_v42  ;;  %5738 = vmatprep.subr.bf16.mxu0 %v9038_v43  ;;  %v9117_v42 = vld [vmem:[#allocation2 + $0x628] ss:$16 sps:$4 sm:$0xff]   ;;  %v9122_v43 = vld [vmem:[#allocation2 + $0x664] ss:$16 sps:$4 sm:$0xff]  }
  0xdd   :  { %6381 = vmatprep.subr.bf16.mxu1 %v9041_v44  ;;  %v9125_v44 = vld [vmem:[#allocation2 + $0x64c] ss:$16 sps:$4 sm:$0xff]  }
  0xdf   :  { %5739 = vmatpush1.bf16.msra.mxu0 %v9036_v45  ;;  %v9120_v45 = vld [vmem:[#allocation2 + $0x660] ss:$16 sps:$4 sm:$0xff]  }
  0xe0   :  { %6382 = vmatpush1.bf16.msra.mxu1 %v9039_v46  ;;  %5740 = vmatprep.subr.bf16.mxu0 %v9044_v47  ;;  %v9123_v46 = vld [vmem:[#allocation2 + $0x648] ss:$16 sps:$4 sm:$0xff]   ;;  %v9128_v47 = vld [vmem:[#allocation2 + $0x684] ss:$16 sps:$4 sm:$0xff]  }
  0xe1   :  { %6383 = vmatprep.subr.bf16.mxu1 %v9047_v48  ;;  %v9131_v48 = vld [vmem:[#allocation2 + $0x66c] ss:$16 sps:$4 sm:$0xff]  }
  0xe3   :  { %5741 = vmatpush1.bf16.msra.mxu0 %v9042_v49  ;;  %v9126_v49 = vld [vmem:[#allocation2 + $0x680] ss:$16 sps:$4 sm:$0xff]  }
  0xe4   :  { %6384 = vmatpush1.bf16.msra.mxu1 %v9045_v50  ;;  %5742 = vmatprep.subr.bf16.mxu0 %v9050_v51  ;;  %v9129_v50 = vld [vmem:[#allocation2 + $0x668] ss:$16 sps:$4 sm:$0xff]   ;;  %v9134_v51 = vld [vmem:[#allocation2 + $0x6a4] ss:$16 sps:$4 sm:$0xff]  }
  0xe5   :  { %6385 = vmatprep.subr.bf16.mxu1 %v9053_v52  ;;  %v9137_v52 = vld [vmem:[#allocation2 + $0x68c] ss:$16 sps:$4 sm:$0xff]  }
  0xe7   :  { %5743 = vmatpush1.bf16.msra.mxu0 %v9048_v53  ;;  %v9132_v53 = vld [vmem:[#allocation2 + $0x6a0] ss:$16 sps:$4 sm:$0xff]  }
  0xe8   :  { %6386 = vmatpush1.bf16.msra.mxu1 %v9051_v54  ;;  %5744 = vmatprep.subr.bf16.mxu0 %v9056_v55  ;;  %v9135_v54 = vld [vmem:[#allocation2 + $0x688] ss:$16 sps:$4 sm:$0xff]   ;;  %v9140_v55 = vld [vmem:[#allocation2 + $0x6c4] ss:$16 sps:$4 sm:$0xff]  }
  0xe9   :  { %6387 = vmatprep.subr.bf16.mxu1 %v9059_v56  ;;  %v9143_v56 = vld [vmem:[#allocation2 + $0x6ac] ss:$16 sps:$4 sm:$0xff]  }
  0xeb   :  { %5745 = vmatpush1.bf16.msra.mxu0 %v9054_v57  ;;  %v9138_v57 = vld [vmem:[#allocation2 + $0x6c0] ss:$16 sps:$4 sm:$0xff]  }
  0xec   :  { %6388 = vmatpush1.bf16.msra.mxu1 %v9057_v58  ;;  %5746 = vmatprep.subr.bf16.mxu0 %v9062_v59  ;;  %v9141_v58 = vld [vmem:[#allocation2 + $0x6a8] ss:$16 sps:$4 sm:$0xff]   ;;  %v9146_v59 = vld [vmem:[#allocation2 + $0x6e4] ss:$16 sps:$4 sm:$0xff]  }
  0xed   :  { %6389 = vmatprep.subr.bf16.mxu1 %v9065_v60  ;;  %v9149_v60 = vld [vmem:[#allocation2 + $0x6cc] ss:$16 sps:$4 sm:$0xff]  }
  0xef   :  { %5747 = vmatpush1.bf16.msra.mxu0 %v9060_v61 }
  0xf0   :  { %6390 = vmatpush1.bf16.msra.mxu1 %v9063_v62  ;;  %5748 = vmatprep.subr.bf16.mxu0 %v9068_v63  ;;  %v9144_v63 = vld [vmem:[#allocation2 + $0x6e0] ss:$16 sps:$4 sm:$0xff]  }
  0xf1   :  { %6391 = vmatprep.subr.bf16.mxu1 %v9071_v1  ;;  %v9147_v1 = vld [vmem:[#allocation2 + $0x6c8] ss:$16 sps:$4 sm:$0xff]  }
  0xf3   :  { %5749 = vmatpush1.bf16.msra.mxu0 %v9066_v2 }
  0xf4   :  { %6392 = vmatpush1.bf16.msra.mxu1 %v9069_v3  ;;  %5750 = vmatprep.subr.bf16.mxu0 %v9074_v4  ;;  %v9152_v3 = vld [vmem:[#allocation2 + $0x704] ss:$16 sps:$4 sm:$0xff]  }
  0xf5   :  { %6393 = vmatprep.subr.bf16.mxu1 %v9077_v5  ;;  %v9155_v5 = vld [vmem:[#allocation2 + $0x6ec] ss:$16 sps:$4 sm:$0xff]  }
  0xf7   :  { %5751 = vmatpush1.bf16.msra.mxu0 %v9072_v6  ;;  %v9150_v6 = vld [vmem:[#allocation2 + $0x700] ss:$16 sps:$4 sm:$0xff]  }
  0xf8   :  { %6394 = vmatpush1.bf16.msra.mxu1 %v9075_v7  ;;  %5752 = vmatprep.subr.bf16.mxu0 %v9080_v9  ;;  %v9153_v7 = vld [vmem:[#allocation2 + $0x6e8] ss:$16 sps:$4 sm:$0xff]   ;;  %v9158_v9 = vld [vmem:[#allocation2 + $0x724] ss:$16 sps:$4 sm:$0xff]  }
  0xf9   :  { %6395 = vmatprep.subr.bf16.mxu1 %v9083_v10  ;;  %v9161_v10 = vld [vmem:[#allocation2 + $0x70c] ss:$16 sps:$4 sm:$0xff]  }
  0xfb   :  { %5753 = vmatpush1.bf16.msra.mxu0 %v9078_v11  ;;  %v9156_v11 = vld [vmem:[#allocation2 + $0x720] ss:$16 sps:$4 sm:$0xff]  }
  0xfc   :  { %6396 = vmatpush1.bf16.msra.mxu1 %v9081_v12  ;;  %5754 = vmatprep.subr.bf16.mxu0 %v9086_v13  ;;  %v9159_v12 = vld [vmem:[#allocation2 + $0x708] ss:$16 sps:$4 sm:$0xff]   ;;  %v9164_v13 = vld [vmem:[#allocation2 + $0x744] ss:$16 sps:$4 sm:$0xff]  }
  0xfd   :  { %6397 = vmatprep.subr.bf16.mxu1 %v9089_v14  ;;  %v9167_v14 = vld [vmem:[#allocation2 + $0x72c] ss:$16 sps:$4 sm:$0xff]  }
  0xff   :  { %5755 = vmatpush1.bf16.msra.mxu0 %v9084_v15  ;;  %v9162_v15 = vld [vmem:[#allocation2 + $0x740] ss:$16 sps:$4 sm:$0xff]  }
 0x100   :  { %6398 = vmatpush1.bf16.msra.mxu1 %v9087_v16  ;;  %5756 = vmatprep.subr.bf16.mxu0 %v9092_v17  ;;  %v9165_v16 = vld [vmem:[#allocation2 + $0x728] ss:$16 sps:$4 sm:$0xff]   ;;  %v9170_v17 = vld [vmem:[#allocation2 + $0x764] ss:$16 sps:$4 sm:$0xff]  }
 0x101   :  { %6399 = vmatprep.subr.bf16.mxu1 %v9095_v18  ;;  %v9173_v18 = vld [vmem:[#allocation2 + $0x74c] ss:$16 sps:$4 sm:$0xff]  }
 0x103   :  { %5757 = vmatpush1.bf16.msra.mxu0 %v9090_v19  ;;  %v9168_v19 = vld [vmem:[#allocation2 + $0x760] ss:$16 sps:$4 sm:$0xff]  }
 0x104   :  { %6400 = vmatpush1.bf16.msra.mxu1 %v9093_v20  ;;  %5758 = vmatprep.subr.bf16.mxu0 %v9098_v21  ;;  %v9171_v20 = vld [vmem:[#allocation2 + $0x748] ss:$16 sps:$4 sm:$0xff]   ;;  %v9176_v21 = vld [vmem:[#allocation2 + $0x784] ss:$16 sps:$4 sm:$0xff]  }
 0x105   :  { %6401 = vmatprep.subr.bf16.mxu1 %v9101_v22  ;;  %v9179_v22 = vld [vmem:[#allocation2 + $0x76c] ss:$16 sps:$4 sm:$0xff]  }
 0x107   :  { %5759 = vmatpush1.bf16.msra.mxu0 %v9096_v23  ;;  %v9174_v23 = vld [vmem:[#allocation2 + $0x780] ss:$16 sps:$4 sm:$0xff]  }
 0x108   :  { %6402 = vmatpush1.bf16.msra.mxu1 %v9099_v24  ;;  %5771 = vmatprep.subr.bf16.mxu0 %v9104_v27  ;;  %v9177_v24 = vld [vmem:[#allocation2 + $0x768] ss:$16 sps:$4 sm:$0xff]   ;;  %v9180_v27 = vld [vmem:[#allocation2 + $0x7a0] ss:$16 sps:$4 sm:$0xff]  }
 0x109   :  { %6403 = vmatprep.subr.bf16.mxu1 %v9107_v28  ;;  %v9183_v28 = vld [vmem:[#allocation2 + $0x788] ss:$16 sps:$4 sm:$0xff]  }
 0x10a   :  { %5761 = vmatmul.mubr.bf16.vlgmr.msra.gmra.mrb[0].mxu0 %v192_v30 }
 0x10b   :  { %5772 = vmatpush1.bf16.msra.mxu0 %v9102_v32  ;;  %5803 = vmatprep.mubr.bf16.mxu0 %v195_v36  ;;  %v9189_v32 = vld [vmem:[#allocation2 + $0x7a8] ss:$16 sps:$4 sm:$0xff]  }
 0x10c   :  { %6404 = vmatpush1.bf16.msra.mxu1 %v9105_v33  ;;  %5773 = vmatprep.subr.bf16.mxu0 %v9110_v34  ;;  %v9194_v33 = vld [vmem:[#allocation2 + $0x7e4] ss:$16 sps:$4 sm:$0xff]   ;;  %v9197_v34 = vld [vmem:[#allocation2 + $0x7cc] ss:$16 sps:$4 sm:$0xff]  }
 0x10d   :  { %6416 = vmatprep.subr.bf16.mxu1 %v9113_v35  ;;  %v9192_v35 = vld [vmem:[#allocation2 + $0x7e0] ss:$16 sps:$4 sm:$0xff]  }
 0x10f   :  { %6406 = vmatmul.mubr.bf16.vlgmr.msra.gmra.mrb[4].mxu1 %v192_v30  ;;  %5774 = vmatpush1.bf16.msra.mxu0 %v9108_v37  ;;  %v9191_v30 = vld [vmem:[#allocation2 + $0x7ac] ss:$16 sps:$4 sm:$0xff]   ;;  %v136_v37 = vld [vmem:[%s10644_s0 + $0x30] sm:$0xff] }
 0x110   :  { %6417 = vmatpush1.bf16.msra.mxu1 %v9111_v38  ;;  %5775 = vmatprep.subr.bf16.mxu0 %v9116_v39  ;;  %v165_v38 = vld [vmem:[%s10644_s0 + $0x118] sm:$0xff]  ;;  %v9200_v39 = vld [vmem:[#allocation2 + $0x804] ss:$16 sps:$4 sm:$0xff]  }
 0x111   :  { %6418 = vmatprep.subr.bf16.mxu1 %v9119_v40  ;;  %6448 = vmatprep.mubr.bf16.mxu1 %v195_v36  ;;  %v9195_v36 = vld [vmem:[#allocation2 + $0x7c8] ss:$16 sps:$4 sm:$0xff]   ;;  %v9203_v40 = vld [vmem:[#allocation2 + $0x7ec] ss:$16 sps:$4 sm:$0xff]  }
 0x113   :  { %5776 = vmatpush1.bf16.msra.mxu0 %v9114_v41  ;;  %v139_v41 = vld [vmem:[%s10644_s0 + $0x48] sm:$0xff] }
 0x114   :  { %6419 = vmatpush1.bf16.msra.mxu1 %v9117_v42  ;;  %5777 = vmatprep.subr.bf16.mxu0 %v9122_v43  ;;  %v194_v42 = vpack.c.bf16 %v165_v38, %v136_v37  ;;  %v168_v43 = vld [vmem:[%s10644_s0 + $0x130] sm:$0xff]  ;;  %v9281_v38 = vld [vmem:[#allocation2 + $0x98c] ss:$16 sps:$4 sm:$0xff]  }
 0x115   :  { %6420 = vmatprep.subr.bf16.mxu1 %v9125_v44  ;;  %v9198_v44 = vld [vmem:[#allocation2 + $0x800] ss:$16 sps:$4 sm:$0xff]   ;;  %v9278_v37 = vld [vmem:[#allocation2 + $0x9a4] ss:$16 sps:$4 sm:$0xff]  }
 0x117   :  { %5778 = vmatpush1.bf16.msra.mxu0 %v9120_v45  ;;  %v9201_v45 = vld [vmem:[#allocation2 + $0x7e8] ss:$16 sps:$4 sm:$0xff]  }
 0x118   :  { %6421 = vmatpush1.bf16.msra.mxu1 %v9123_v46  ;;  %5779 = vmatprep.subr.bf16.mxu0 %v9128_v47  ;;  %v9206_v46 = vld [vmem:[#allocation2 + $0x824] ss:$16 sps:$4 sm:$0xff]   ;;  %v9209_v47 = vld [vmem:[#allocation2 + $0x80c] ss:$16 sps:$4 sm:$0xff]  }
 0x119   :  { %6422 = vmatprep.subr.bf16.mxu1 %v9131_v48  ;;  %v197_v48 = vpack.c.bf16 %v168_v43, %v139_v41  ;;  %v9284_v41 = vld [vmem:[#allocation2 + $0x9c4] ss:$16 sps:$4 sm:$0xff]   ;;  %v9282_v43 = vld [vmem:[#allocation2 + $0x9c0] ss:$16 sps:$4 sm:$0xff]  }
 0x11b   :  { %5780 = vmatpush1.bf16.msra.mxu0 %v9126_v49  ;;  %v9204_v49 = vld [vmem:[#allocation2 + $0x820] ss:$16 sps:$4 sm:$0xff]  }
 0x11c   :  { %6423 = vmatpush1.bf16.msra.mxu1 %v9129_v50  ;;  %5781 = vmatprep.subr.bf16.mxu0 %v9134_v51  ;;  %v9207_v50 = vld [vmem:[#allocation2 + $0x808] ss:$16 sps:$4 sm:$0xff]   ;;  %v9212_v51 = vld [vmem:[#allocation2 + $0x844] ss:$16 sps:$4 sm:$0xff]  }
 0x11d   :  { %6424 = vmatprep.subr.bf16.mxu1 %v9137_v52  ;;  %v9215_v52 = vld [vmem:[#allocation2 + $0x82c] ss:$16 sps:$4 sm:$0xff]  }
 0x11f   :  { %5782 = vmatpush1.bf16.msra.mxu0 %v9132_v53  ;;  %v9210_v53 = vld [vmem:[#allocation2 + $0x840] ss:$16 sps:$4 sm:$0xff]  }
 0x120   :  { %6425 = vmatpush1.bf16.msra.mxu1 %v9135_v54  ;;  %5783 = vmatprep.subr.bf16.mxu0 %v9140_v55  ;;  %v9213_v54 = vld [vmem:[#allocation2 + $0x828] ss:$16 sps:$4 sm:$0xff]   ;;  %v9218_v55 = vld [vmem:[#allocation2 + $0x864] ss:$16 sps:$4 sm:$0xff]  }
 0x121   :  { %6426 = vmatprep.subr.bf16.mxu1 %v9143_v56  ;;  %v9221_v56 = vld [vmem:[#allocation2 + $0x84c] ss:$16 sps:$4 sm:$0xff]  }
 0x122   :  { %v10467_v61 = vpop.f32.mrb[0].mxu1 }
 0x123   :  { %v10469_v62 = vpop.f32.mrb[1].mxu1  ;;  %5784 = vmatpush1.bf16.msra.mxu0 %v9138_v57  ;;  %v9216_v57 = vld [vmem:[#allocation2 + $0x860] ss:$16 sps:$4 sm:$0xff]  }
 0x124   :  { %v10471_v2 = vpop.f32.mrb[2].mxu1  ;;  %6427 = vmatpush1.bf16.msra.mxu1 %v9141_v58  ;;  %5785 = vmatprep.subr.bf16.mxu0 %v9146_v59  ;;  %v9219_v58 = vld [vmem:[#allocation2 + $0x848] ss:$16 sps:$4 sm:$0xff]   ;;  %v9224_v59 = vld [vmem:[#allocation2 + $0x884] ss:$16 sps:$4 sm:$0xff]  }
 0x125   :  { %v10473_v4 = vpop.f32.mrb[3].mxu1  ;;  %6428 = vmatprep.subr.bf16.mxu1 %v9149_v60  ;;  %v9227_v60 = vld [vmem:[#allocation2 + $0x86c] ss:$16 sps:$4 sm:$0xff]  }
 0x127   :  { %5786 = vmatpush1.bf16.msra.mxu0 %v9144_v63  ;;  %v9222_v63 = vld [vmem:[#allocation2 + $0x880] ss:$16 sps:$4 sm:$0xff]  }
 0x128   :  { %6429 = vmatpush1.bf16.msra.mxu1 %v9147_v1  ;;  %5787 = vmatprep.subr.bf16.mxu0 %v9152_v3  ;;  %v9225_v1 = vld [vmem:[#allocation2 + $0x868] ss:$16 sps:$4 sm:$0xff]   ;;  %v9230_v3 = vld [vmem:[#allocation2 + $0x8a4] ss:$16 sps:$4 sm:$0xff]  }
 0x129   :  { %6430 = vmatprep.subr.bf16.mxu1 %v9155_v5  ;;  %v9233_v5 = vld [vmem:[#allocation2 + $0x88c] ss:$16 sps:$4 sm:$0xff]  }
 0x12b   :  { %5788 = vmatpush1.bf16.msra.mxu0 %v9150_v6  ;;  %v9228_v6 = vld [vmem:[#allocation2 + $0x8a0] ss:$16 sps:$4 sm:$0xff]  }
 0x12c   :  { %6431 = vmatpush1.bf16.msra.mxu1 %v9153_v7  ;;  %5789 = vmatprep.subr.bf16.mxu0 %v9158_v9  ;;  %v9231_v7 = vld [vmem:[#allocation2 + $0x888] ss:$16 sps:$4 sm:$0xff]   ;;  %v9236_v9 = vld [vmem:[#allocation2 + $0x8c4] ss:$16 sps:$4 sm:$0xff]  }
 0x12d   :  { %6432 = vmatprep.subr.bf16.mxu1 %v9161_v10  ;;  %v9239_v10 = vld [vmem:[#allocation2 + $0x8ac] ss:$16 sps:$4 sm:$0xff]  }
 0x12f   :  { %5790 = vmatpush1.bf16.msra.mxu0 %v9156_v11  ;;  %v9234_v11 = vld [vmem:[#allocation2 + $0x8c0] ss:$16 sps:$4 sm:$0xff]  }
 0x130   :  { %6433 = vmatpush1.bf16.msra.mxu1 %v9159_v12  ;;  %5791 = vmatprep.subr.bf16.mxu0 %v9164_v13  ;;  %v9237_v12 = vld [vmem:[#allocation2 + $0x8a8] ss:$16 sps:$4 sm:$0xff]   ;;  %v9242_v13 = vld [vmem:[#allocation2 + $0x8e4] ss:$16 sps:$4 sm:$0xff]  }
 0x131   :  { %6434 = vmatprep.subr.bf16.mxu1 %v9167_v14  ;;  %v9245_v14 = vld [vmem:[#allocation2 + $0x8cc] ss:$16 sps:$4 sm:$0xff]  }
 0x133   :  { %5792 = vmatpush1.bf16.msra.mxu0 %v9162_v15  ;;  %v9240_v15 = vld [vmem:[#allocation2 + $0x8e0] ss:$16 sps:$4 sm:$0xff]  }
 0x134   :  { %6435 = vmatpush1.bf16.msra.mxu1 %v9165_v16  ;;  %5793 = vmatprep.subr.bf16.mxu0 %v9170_v17  ;;  %v9243_v16 = vld [vmem:[#allocation2 + $0x8c8] ss:$16 sps:$4 sm:$0xff]   ;;  %v9248_v17 = vld [vmem:[#allocation2 + $0x904] ss:$16 sps:$4 sm:$0xff]  }
 0x135   :  { %6436 = vmatprep.subr.bf16.mxu1 %v9173_v18  ;;  %v9251_v18 = vld [vmem:[#allocation2 + $0x8ec] ss:$16 sps:$4 sm:$0xff]  }
 0x137   :  { %5794 = vmatpush1.bf16.msra.mxu0 %v9168_v19  ;;  %v9246_v19 = vld [vmem:[#allocation2 + $0x900] ss:$16 sps:$4 sm:$0xff]  }
 0x138   :  { %6437 = vmatpush1.bf16.msra.mxu1 %v9171_v20  ;;  %5795 = vmatprep.subr.bf16.mxu0 %v9176_v21  ;;  %v9249_v20 = vld [vmem:[#allocation2 + $0x8e8] ss:$16 sps:$4 sm:$0xff]   ;;  %v9254_v21 = vld [vmem:[#allocation2 + $0x924] ss:$16 sps:$4 sm:$0xff]  }
 0x139   :  { %6438 = vmatprep.subr.bf16.mxu1 %v9179_v22  ;;  %v9257_v22 = vld [vmem:[#allocation2 + $0x90c] ss:$16 sps:$4 sm:$0xff]  }
 0x13b   :  { %5796 = vmatpush1.bf16.msra.mxu0 %v9174_v23  ;;  %v9252_v23 = vld [vmem:[#allocation2 + $0x920] ss:$16 sps:$4 sm:$0xff]  }
 0x13c   :  { %6439 = vmatpush1.bf16.msra.mxu1 %v9177_v24  ;;  %5797 = vmatprep.subr.bf16.mxu0 %v9182_v25  ;;  %v9255_v24 = vld [vmem:[#allocation2 + $0x908] ss:$16 sps:$4 sm:$0xff]   ;;  %v9260_v25 = vld [vmem:[#allocation2 + $0x944] ss:$16 sps:$4 sm:$0xff]  }
 0x13d   :  { %6440 = vmatprep.subr.bf16.mxu1 %v9185_v26  ;;  %v9263_v26 = vld [vmem:[#allocation2 + $0x92c] ss:$16 sps:$4 sm:$0xff]  }
 0x13f   :  { %5798 = vmatpush1.bf16.msra.mxu0 %v9180_v27  ;;  %v9258_v27 = vld [vmem:[#allocation2 + $0x940] ss:$16 sps:$4 sm:$0xff]  }
 0x140   :  { %6441 = vmatpush1.bf16.msra.mxu1 %v9183_v28  ;;  %5799 = vmatprep.subr.bf16.mxu0 %v9188_v29  ;;  %v9261_v28 = vld [vmem:[#allocation2 + $0x928] ss:$16 sps:$4 sm:$0xff]   ;;  %v9266_v29 = vld [vmem:[#allocation2 + $0x964] ss:$16 sps:$4 sm:$0xff]  }
 0x141   :  { %6442 = vmatprep.subr.bf16.mxu1 %v9191_v30  ;;  %v9269_v30 = vld [vmem:[#allocation2 + $0x94c] ss:$16 sps:$4 sm:$0xff]  }
 0x143   :  { %5800 = vmatpush1.bf16.msra.mxu0 %v9186_v31  ;;  %v9264_v31 = vld [vmem:[#allocation2 + $0x960] ss:$16 sps:$4 sm:$0xff]  }
 0x144   :  { %6443 = vmatpush1.bf16.msra.mxu1 %v9189_v32  ;;  %5801 = vmatprep.subr.bf16.mxu0 %v9194_v33  ;;  %v9267_v32 = vld [vmem:[#allocation2 + $0x948] ss:$16 sps:$4 sm:$0xff]   ;;  %v9272_v33 = vld [vmem:[#allocation2 + $0x984] ss:$16 sps:$4 sm:$0xff]  }
 0x145   :  { %6444 = vmatprep.subr.bf16.mxu1 %v9197_v34  ;;  %v9275_v34 = vld [vmem:[#allocation2 + $0x96c] ss:$16 sps:$4 sm:$0xff]  }
 0x147   :  { %5802 = vmatpush1.bf16.msra.mxu0 %v9192_v35  ;;  %v9270_v35 = vld [vmem:[#allocation2 + $0x980] ss:$16 sps:$4 sm:$0xff]  }
 0x148   :  { %6445 = vmatpush1.bf16.msra.mxu1 %v9195_v36  ;;  %5814 = vmatprep.subr.bf16.mxu0 %v9200_v39  ;;  %v9273_v36 = vld [vmem:[#allocation2 + $0x968] ss:$16 sps:$4 sm:$0xff]   ;;  %v9276_v39 = vld [vmem:[#allocation2 + $0x9a0] ss:$16 sps:$4 sm:$0xff]  }
 0x149   :  { %6446 = vmatprep.subr.bf16.mxu1 %v9203_v40  ;;  %v9279_v40 = vld [vmem:[#allocation2 + $0x988] ss:$16 sps:$4 sm:$0xff]  }
 0x14a   :  { %5804 = vmatmul.mubr.bf16.vlgmr.msra.gmra.mrb[0].mxu0 %v194_v42 }
 0x14b   :  { %5815 = vmatpush1.bf16.msra.mxu0 %v9198_v44  ;;  %5846 = vmatprep.mubr.bf16.mxu0 %v197_v48  ;;  %v9285_v44 = vld [vmem:[#allocation2 + $0x9a8] ss:$16 sps:$4 sm:$0xff]  }
 0x14c   :  { %6447 = vmatpush1.bf16.msra.mxu1 %v9201_v45  ;;  %5816 = vmatprep.subr.bf16.mxu0 %v9206_v46  ;;  %v9290_v45 = vld [vmem:[#allocation2 + $0x9e4] ss:$16 sps:$4 sm:$0xff]   ;;  %v9293_v46 = vld [vmem:[#allocation2 + $0x9cc] ss:$16 sps:$4 sm:$0xff]  }
 0x14d   :  { %6459 = vmatprep.subr.bf16.mxu1 %v9209_v47  ;;  %v9288_v47 = vld [vmem:[#allocation2 + $0x9e0] ss:$16 sps:$4 sm:$0xff]  }
 0x14f   :  { %6449 = vmatmul.mubr.bf16.vlgmr.msra.gmra.mrb[4].mxu1 %v194_v42  ;;  %5817 = vmatpush1.bf16.msra.mxu0 %v9204_v49  ;;  %v9287_v42 = vld [vmem:[#allocation2 + $0x9ac] ss:$16 sps:$4 sm:$0xff]   ;;  %v9296_v49 = vld [vmem:[#allocation2 + $0xa04] ss:$16 sps:$4 sm:$0xff]  }
 0x150   :  { %6460 = vmatpush1.bf16.msra.mxu1 %v9207_v50  ;;  %5818 = vmatprep.subr.bf16.mxu0 %v9212_v51  ;;  %v9299_v50 = vld [vmem:[#allocation2 + $0x9ec] ss:$16 sps:$4 sm:$0xff]   ;;  %v138_v51 = vld [vmem:[%s10644_s0 + $0x40] sm:$0xff] }
 0x151   :  { %6461 = vmatprep.subr.bf16.mxu1 %v9215_v52  ;;  %6491 = vmatprep.mubr.bf16.mxu1 %v197_v48  ;;  %v9291_v48 = vld [vmem:[#allocation2 + $0x9c8] ss:$16 sps:$4 sm:$0xff]  }
 0x152   :  { %v167_v52 = vld [vmem:[%s10644_s0 + $0x128] sm:$0xff] }
 0x153   :  { %5819 = vmatpush1.bf16.msra.mxu0 %v9210_v53  ;;  %v141_v53 = vld [vmem:[%s10644_s0 + $0x58] sm:$0xff] }
 0x154   :  { %6462 = vmatpush1.bf16.msra.mxu1 %v9213_v54  ;;  %5820 = vmatprep.subr.bf16.mxu0 %v9218_v55  ;;  %v170_v54 = vld [vmem:[%s10644_s0 + $0x140] sm:$0xff]  ;;  %v196_v55 = vpack.c.bf16 %v167_v52, %v138_v51  ;;  %v9375_v52 = vld [vmem:[#allocation2 + $0xb88] ss:$16 sps:$4 sm:$0xff]  }
 0x155   :  { %6463 = vmatprep.subr.bf16.mxu1 %v9221_v56  ;;  %v9294_v56 = vld [vmem:[#allocation2 + $0xa00] ss:$16 sps:$4 sm:$0xff]  }
 0x156   :  { %v9372_v51 = vld [vmem:[#allocation2 + $0xba0] ss:$16 sps:$4 sm:$0xff]  }
 0x157   :  { %5821 = vmatpush1.bf16.msra.mxu0 %v9216_v57  ;;  %v9297_v57 = vld [vmem:[#allocation2 + $0x9e8] ss:$16 sps:$4 sm:$0xff]  }
 0x158   :  { %6464 = vmatpush1.bf16.msra.mxu1 %v9219_v58  ;;  %5822 = vmatprep.subr.bf16.mxu0 %v9224_v59  ;;  %v9302_v58 = vld [vmem:[#allocation2 + $0xa24] ss:$16 sps:$4 sm:$0xff]   ;;  %v9305_v59 = vld [vmem:[#allocation2 + $0xa0c] ss:$16 sps:$4 sm:$0xff]  }
 0x159   :  { %6465 = vmatprep.subr.bf16.mxu1 %v9227_v60  ;;  %v199_v60 = vpack.c.bf16 %v170_v54, %v141_v53  ;;  %v9380_v53 = vld [vmem:[#allocation2 + $0xbc4] ss:$16 sps:$4 sm:$0xff]   ;;  %v9383_v54 = vld [vmem:[#allocation2 + $0xbac] ss:$16 sps:$4 sm:$0xff]  }
 0x15b   :  { %5823 = vmatpush1.bf16.msra.mxu0 %v9222_v63  ;;  %v9300_v63 = vld [vmem:[#allocation2 + $0xa20] ss:$16 sps:$4 sm:$0xff]  }
 0x15c   :  { %6466 = vmatpush1.bf16.msra.mxu1 %v9225_v1  ;;  %5824 = vmatprep.subr.bf16.mxu0 %v9230_v3  ;;  %v9303_v1 = vld [vmem:[#allocation2 + $0xa08] ss:$16 sps:$4 sm:$0xff]   ;;  %v9308_v3 = vld [vmem:[#allocation2 + $0xa44] ss:$16 sps:$4 sm:$0xff]  }
 0x15d   :  { %6467 = vmatprep.subr.bf16.mxu1 %v9233_v5  ;;  %v9311_v5 = vld [vmem:[#allocation2 + $0xa2c] ss:$16 sps:$4 sm:$0xff]  }
 0x15f   :  { %5825 = vmatpush1.bf16.msra.mxu0 %v9228_v6  ;;  %v9306_v6 = vld [vmem:[#allocation2 + $0xa40] ss:$16 sps:$4 sm:$0xff]  }
 0x160   :  { %6468 = vmatpush1.bf16.msra.mxu1 %v9231_v7  ;;  %5826 = vmatprep.subr.bf16.mxu0 %v9236_v9  ;;  %v9309_v7 = vld [vmem:[#allocation2 + $0xa28] ss:$16 sps:$4 sm:$0xff]   ;;  %v9314_v9 = vld [vmem:[#allocation2 + $0xa64] ss:$16 sps:$4 sm:$0xff]  }
 0x161   :  { %6469 = vmatprep.subr.bf16.mxu1 %v9239_v10  ;;  %v9317_v10 = vld [vmem:[#allocation2 + $0xa4c] ss:$16 sps:$4 sm:$0xff]  }
 0x163   :  { %5827 = vmatpush1.bf16.msra.mxu0 %v9234_v11  ;;  %v9312_v11 = vld [vmem:[#allocation2 + $0xa60] ss:$16 sps:$4 sm:$0xff]  }
 0x164   :  { %6470 = vmatpush1.bf16.msra.mxu1 %v9237_v12  ;;  %5828 = vmatprep.subr.bf16.mxu0 %v9242_v13  ;;  %v9315_v12 = vld [vmem:[#allocation2 + $0xa48] ss:$16 sps:$4 sm:$0xff]   ;;  %v9320_v13 = vld [vmem:[#allocation2 + $0xa84] ss:$16 sps:$4 sm:$0xff]  }
 0x165   :  { %6471 = vmatprep.subr.bf16.mxu1 %v9245_v14  ;;  %v9323_v14 = vld [vmem:[#allocation2 + $0xa6c] ss:$16 sps:$4 sm:$0xff]  }
 0x167   :  { %5829 = vmatpush1.bf16.msra.mxu0 %v9240_v15  ;;  %v9318_v15 = vld [vmem:[#allocation2 + $0xa80] ss:$16 sps:$4 sm:$0xff]  }
 0x168   :  { %6472 = vmatpush1.bf16.msra.mxu1 %v9243_v16  ;;  %5830 = vmatprep.subr.bf16.mxu0 %v9248_v17  ;;  %v9321_v16 = vld [vmem:[#allocation2 + $0xa68] ss:$16 sps:$4 sm:$0xff]   ;;  %v9326_v17 = vld [vmem:[#allocation2 + $0xaa4] ss:$16 sps:$4 sm:$0xff]  }
 0x169   :  { %6473 = vmatprep.subr.bf16.mxu1 %v9251_v18  ;;  %v9329_v18 = vld [vmem:[#allocation2 + $0xa8c] ss:$16 sps:$4 sm:$0xff]  }
 0x16b   :  { %5831 = vmatpush1.bf16.msra.mxu0 %v9246_v19  ;;  %v9324_v19 = vld [vmem:[#allocation2 + $0xaa0] ss:$16 sps:$4 sm:$0xff]  }
 0x16c   :  { %6474 = vmatpush1.bf16.msra.mxu1 %v9249_v20  ;;  %5832 = vmatprep.subr.bf16.mxu0 %v9254_v21  ;;  %v9327_v20 = vld [vmem:[#allocation2 + $0xa88] ss:$16 sps:$4 sm:$0xff]   ;;  %v9332_v21 = vld [vmem:[#allocation2 + $0xac4] ss:$16 sps:$4 sm:$0xff]  }
 0x16d   :  { %6475 = vmatprep.subr.bf16.mxu1 %v9257_v22  ;;  %v9335_v22 = vld [vmem:[#allocation2 + $0xaac] ss:$16 sps:$4 sm:$0xff]  }
 0x16f   :  { %5833 = vmatpush1.bf16.msra.mxu0 %v9252_v23  ;;  %v9330_v23 = vld [vmem:[#allocation2 + $0xac0] ss:$16 sps:$4 sm:$0xff]  }
 0x170   :  { %6476 = vmatpush1.bf16.msra.mxu1 %v9255_v24  ;;  %5834 = vmatprep.subr.bf16.mxu0 %v9260_v25  ;;  %v9333_v24 = vld [vmem:[#allocation2 + $0xaa8] ss:$16 sps:$4 sm:$0xff]   ;;  %v9338_v25 = vld [vmem:[#allocation2 + $0xae4] ss:$16 sps:$4 sm:$0xff]  }
 0x171   :  { %6477 = vmatprep.subr.bf16.mxu1 %v9263_v26  ;;  %v9341_v26 = vld [vmem:[#allocation2 + $0xacc] ss:$16 sps:$4 sm:$0xff]  }
 0x173   :  { %5835 = vmatpush1.bf16.msra.mxu0 %v9258_v27  ;;  %v9336_v27 = vld [vmem:[#allocation2 + $0xae0] ss:$16 sps:$4 sm:$0xff]  }
 0x174   :  { %6478 = vmatpush1.bf16.msra.mxu1 %v9261_v28  ;;  %5836 = vmatprep.subr.bf16.mxu0 %v9266_v29  ;;  %v9339_v28 = vld [vmem:[#allocation2 + $0xac8] ss:$16 sps:$4 sm:$0xff]   ;;  %v9344_v29 = vld [vmem:[#allocation2 + $0xb04] ss:$16 sps:$4 sm:$0xff]  }
 0x175   :  { %6479 = vmatprep.subr.bf16.mxu1 %v9269_v30  ;;  %v9347_v30 = vld [vmem:[#allocation2 + $0xaec] ss:$16 sps:$4 sm:$0xff]  }
 0x177   :  { %5837 = vmatpush1.bf16.msra.mxu0 %v9264_v31  ;;  %v9342_v31 = vld [vmem:[#allocation2 + $0xb00] ss:$16 sps:$4 sm:$0xff]  }
 0x178   :  { %6480 = vmatpush1.bf16.msra.mxu1 %v9267_v32  ;;  %5838 = vmatprep.subr.bf16.mxu0 %v9272_v33  ;;  %v9345_v32 = vld [vmem:[#allocation2 + $0xae8] ss:$16 sps:$4 sm:$0xff]   ;;  %v9350_v33 = vld [vmem:[#allocation2 + $0xb24] ss:$16 sps:$4 sm:$0xff]  }
 0x179   :  { %6481 = vmatprep.subr.bf16.mxu1 %v9275_v34  ;;  %v9353_v34 = vld [vmem:[#allocation2 + $0xb0c] ss:$16 sps:$4 sm:$0xff]  }
 0x17b   :  { %5839 = vmatpush1.bf16.msra.mxu0 %v9270_v35  ;;  %v9348_v35 = vld [vmem:[#allocation2 + $0xb20] ss:$16 sps:$4 sm:$0xff]  }
 0x17c   :  { %6482 = vmatpush1.bf16.msra.mxu1 %v9273_v36  ;;  %5840 = vmatprep.subr.bf16.mxu0 %v9278_v37  ;;  %v9351_v36 = vld [vmem:[#allocation2 + $0xb08] ss:$16 sps:$4 sm:$0xff]   ;;  %v9356_v37 = vld [vmem:[#allocation2 + $0xb44] ss:$16 sps:$4 sm:$0xff]  }
 0x17d   :  { %6483 = vmatprep.subr.bf16.mxu1 %v9281_v38  ;;  %v9359_v38 = vld [vmem:[#allocation2 + $0xb2c] ss:$16 sps:$4 sm:$0xff]  }
 0x17f   :  { %5841 = vmatpush1.bf16.msra.mxu0 %v9276_v39  ;;  %v9354_v39 = vld [vmem:[#allocation2 + $0xb40] ss:$16 sps:$4 sm:$0xff]  }
 0x180   :  { %6484 = vmatpush1.bf16.msra.mxu1 %v9279_v40  ;;  %5842 = vmatprep.subr.bf16.mxu0 %v9284_v41  ;;  %v9357_v40 = vld [vmem:[#allocation2 + $0xb28] ss:$16 sps:$4 sm:$0xff]   ;;  %v9362_v41 = vld [vmem:[#allocation2 + $0xb64] ss:$16 sps:$4 sm:$0xff]  }
 0x181   :  { %6485 = vmatprep.subr.bf16.mxu1 %v9287_v42  ;;  %v9365_v42 = vld [vmem:[#allocation2 + $0xb4c] ss:$16 sps:$4 sm:$0xff]  }
 0x183   :  { %5843 = vmatpush1.bf16.msra.mxu0 %v9282_v43  ;;  %v9360_v43 = vld [vmem:[#allocation2 + $0xb60] ss:$16 sps:$4 sm:$0xff]  }
 0x184   :  { %6486 = vmatpush1.bf16.msra.mxu1 %v9285_v44  ;;  %5844 = vmatprep.subr.bf16.mxu0 %v9290_v45  ;;  %v9363_v44 = vld [vmem:[#allocation2 + $0xb48] ss:$16 sps:$4 sm:$0xff]   ;;  %v9368_v45 = vld [vmem:[#allocation2 + $0xb84] ss:$16 sps:$4 sm:$0xff]  }
 0x185   :  { %6487 = vmatprep.subr.bf16.mxu1 %v9293_v46  ;;  %v9371_v46 = vld [vmem:[#allocation2 + $0xb6c] ss:$16 sps:$4 sm:$0xff]  }
 0x187   :  { %5845 = vmatpush1.bf16.msra.mxu0 %v9288_v47  ;;  %v9366_v47 = vld [vmem:[#allocation2 + $0xb80] ss:$16 sps:$4 sm:$0xff]  }
 0x188   :  { %6488 = vmatpush1.bf16.msra.mxu1 %v9291_v48  ;;  %5857 = vmatprep.subr.bf16.mxu0 %v9296_v49  ;;  %v9369_v48 = vld [vmem:[#allocation2 + $0xb68] ss:$16 sps:$4 sm:$0xff]   ;;  %v9374_v49 = vld [vmem:[#allocation2 + $0xba4] ss:$16 sps:$4 sm:$0xff]  }
 0x189   :  { %6489 = vmatprep.subr.bf16.mxu1 %v9299_v50  ;;  %v9377_v50 = vld [vmem:[#allocation2 + $0xb8c] ss:$16 sps:$4 sm:$0xff]  }
 0x18a   :  { %5847 = vmatmul.mubr.bf16.vlgmr.msra.gmra.mrb[0].mxu0 %v196_v55 }
 0x18b   :  { %5858 = vmatpush1.bf16.msra.mxu0 %v9294_v56  ;;  %5889 = vmatprep.mubr.bf16.mxu0 %v199_v60  ;;  %v9381_v56 = vld [vmem:[#allocation2 + $0xba8] ss:$16 sps:$4 sm:$0xff]  }
 0x18c   :  { %6490 = vmatpush1.bf16.msra.mxu1 %v9297_v57  ;;  %5859 = vmatprep.subr.bf16.mxu0 %v9302_v58  ;;  %v9386_v57 = vld [vmem:[#allocation2 + $0xbe4] ss:$16 sps:$4 sm:$0xff]   ;;  %v9389_v58 = vld [vmem:[#allocation2 + $0xbcc] ss:$16 sps:$4 sm:$0xff]  }
 0x18d   :  { %6502 = vmatprep.subr.bf16.mxu1 %v9305_v59  ;;  %v9384_v59 = vld [vmem:[#allocation2 + $0xbe0] ss:$16 sps:$4 sm:$0xff]  }
 0x18f   :  { %6492 = vmatmul.mubr.bf16.vlgmr.msra.gmra.mrb[4].mxu1 %v196_v55  ;;  %5860 = vmatpush1.bf16.msra.mxu0 %v9300_v63  ;;  %v9378_v55 = vld [vmem:[#allocation2 + $0xbc0] ss:$16 sps:$4 sm:$0xff]   ;;  %v9392_v63 = vld [vmem:[#allocation2 + $0xc04] ss:$16 sps:$4 sm:$0xff]  }
 0x190   :  { %6503 = vmatpush1.bf16.msra.mxu1 %v9303_v1  ;;  %5861 = vmatprep.subr.bf16.mxu0 %v9308_v3  ;;  %v9395_v1 = vld [vmem:[#allocation2 + $0xbec] ss:$16 sps:$4 sm:$0xff]   ;;  %v140_v3 = vld [vmem:[%s10644_s0 + $0x50] sm:$0xff] }
 0x191   :  { %6504 = vmatprep.subr.bf16.mxu1 %v9311_v5  ;;  %6534 = vmatprep.mubr.bf16.mxu1 %v199_v60  ;;  %v9387_v60 = vld [vmem:[#allocation2 + $0xbc8] ss:$16 sps:$4 sm:$0xff]  }
 0x192   :  { %v169_v5 = vld [vmem:[%s10644_s0 + $0x138] sm:$0xff] }
 0x193   :  { %5862 = vmatpush1.bf16.msra.mxu0 %v9306_v6  ;;  %v143_v6 = vld [vmem:[%s10644_s0 + $0x68] sm:$0xff] }
 0x194   :  { %6505 = vmatpush1.bf16.msra.mxu1 %v9309_v7  ;;  %5863 = vmatprep.subr.bf16.mxu0 %v9314_v9  ;;  %v172_v7 = vld [vmem:[%s10644_s0 + $0x150] sm:$0xff]  ;;  %v198_v9 = vpack.c.bf16 %v169_v5, %v140_v3  ;;  %v9471_v5 = vld [vmem:[#allocation2 + $0xd88] ss:$16 sps:$4 sm:$0xff]  }
 0x195   :  { %6506 = vmatprep.subr.bf16.mxu1 %v9317_v10  ;;  %v9390_v10 = vld [vmem:[#allocation2 + $0xc00] ss:$16 sps:$4 sm:$0xff]  }
 0x196   :  { %v9468_v3 = vld [vmem:[#allocation2 + $0xda0] ss:$16 sps:$4 sm:$0xff]  }
 0x197   :  { %5864 = vmatpush1.bf16.msra.mxu0 %v9312_v11  ;;  %v9393_v11 = vld [vmem:[#allocation2 + $0xbe8] ss:$16 sps:$4 sm:$0xff]  }
 0x198   :  { %6507 = vmatpush1.bf16.msra.mxu1 %v9315_v12  ;;  %5865 = vmatprep.subr.bf16.mxu0 %v9320_v13  ;;  %v9398_v12 = vld [vmem:[#allocation2 + $0xc24] ss:$16 sps:$4 sm:$0xff]   ;;  %v9401_v13 = vld [vmem:[#allocation2 + $0xc0c] ss:$16 sps:$4 sm:$0xff]  }
 0x199   :  { %6508 = vmatprep.subr.bf16.mxu1 %v9323_v14  ;;  %v201_v14 = vpack.c.bf16 %v172_v7, %v143_v6  ;;  %v9476_v6 = vld [vmem:[#allocation2 + $0xdc4] ss:$16 sps:$4 sm:$0xff]   ;;  %v9479_v7 = vld [vmem:[#allocation2 + $0xdac] ss:$16 sps:$4 sm:$0xff]  }
 0x19b   :  { %5866 = vmatpush1.bf16.msra.mxu0 %v9318_v15  ;;  %v9396_v15 = vld [vmem:[#allocation2 + $0xc20] ss:$16 sps:$4 sm:$0xff]  }
 0x19c   :  { %6509 = vmatpush1.bf16.msra.mxu1 %v9321_v16  ;;  %5867 = vmatprep.subr.bf16.mxu0 %v9326_v17  ;;  %v9399_v16 = vld [vmem:[#allocation2 + $0xc08] ss:$16 sps:$4 sm:$0xff]   ;;  %v9404_v17 = vld [vmem:[#allocation2 + $0xc44] ss:$16 sps:$4 sm:$0xff]  }
 0x19d   :  { %6510 = vmatprep.subr.bf16.mxu1 %v9329_v18  ;;  %v9407_v18 = vld [vmem:[#allocation2 + $0xc2c] ss:$16 sps:$4 sm:$0xff]  }
 0x19f   :  { %5868 = vmatpush1.bf16.msra.mxu0 %v9324_v19  ;;  %v9402_v19 = vld [vmem:[#allocation2 + $0xc40] ss:$16 sps:$4 sm:$0xff]  }
 0x1a0   :  { %6511 = vmatpush1.bf16.msra.mxu1 %v9327_v20  ;;  %5869 = vmatprep.subr.bf16.mxu0 %v9332_v21  ;;  %v9405_v20 = vld [vmem:[#allocation2 + $0xc28] ss:$16 sps:$4 sm:$0xff]   ;;  %v9410_v21 = vld [vmem:[#allocation2 + $0xc64] ss:$16 sps:$4 sm:$0xff]  }
 0x1a1   :  { %6512 = vmatprep.subr.bf16.mxu1 %v9335_v22  ;;  %v9413_v22 = vld [vmem:[#allocation2 + $0xc4c] ss:$16 sps:$4 sm:$0xff]  }
 0x1a3   :  { %5870 = vmatpush1.bf16.msra.mxu0 %v9330_v23  ;;  %v9408_v23 = vld [vmem:[#allocation2 + $0xc60] ss:$16 sps:$4 sm:$0xff]  }
 0x1a4   :  { %6513 = vmatpush1.bf16.msra.mxu1 %v9333_v24  ;;  %5871 = vmatprep.subr.bf16.mxu0 %v9338_v25  ;;  %v9411_v24 = vld [vmem:[#allocation2 + $0xc48] ss:$16 sps:$4 sm:$0xff]   ;;  %v9416_v25 = vld [vmem:[#allocation2 + $0xc84] ss:$16 sps:$4 sm:$0xff]  }
 0x1a5   :  { %6514 = vmatprep.subr.bf16.mxu1 %v9341_v26  ;;  %v9419_v26 = vld [vmem:[#allocation2 + $0xc6c] ss:$16 sps:$4 sm:$0xff]  }
 0x1a7   :  { %5872 = vmatpush1.bf16.msra.mxu0 %v9336_v27  ;;  %v9414_v27 = vld [vmem:[#allocation2 + $0xc80] ss:$16 sps:$4 sm:$0xff]  }
 0x1a8   :  { %6515 = vmatpush1.bf16.msra.mxu1 %v9339_v28  ;;  %5873 = vmatprep.subr.bf16.mxu0 %v9344_v29  ;;  %v9417_v28 = vld [vmem:[#allocation2 + $0xc68] ss:$16 sps:$4 sm:$0xff]   ;;  %v9422_v29 = vld [vmem:[#allocation2 + $0xca4] ss:$16 sps:$4 sm:$0xff]  }
 0x1a9   :  { %6516 = vmatprep.subr.bf16.mxu1 %v9347_v30  ;;  %v9425_v30 = vld [vmem:[#allocation2 + $0xc8c] ss:$16 sps:$4 sm:$0xff]  }
 0x1ab   :  { %5874 = vmatpush1.bf16.msra.mxu0 %v9342_v31  ;;  %v9420_v31 = vld [vmem:[#allocation2 + $0xca0] ss:$16 sps:$4 sm:$0xff]  }
 0x1ac   :  { %6517 = vmatpush1.bf16.msra.mxu1 %v9345_v32  ;;  %5875 = vmatprep.subr.bf16.mxu0 %v9350_v33  ;;  %v9423_v32 = vld [vmem:[#allocation2 + $0xc88] ss:$16 sps:$4 sm:$0xff]   ;;  %v9428_v33 = vld [vmem:[#allocation2 + $0xcc4] ss:$16 sps:$4 sm:$0xff]  }
 0x1ad   :  { %6518 = vmatprep.subr.bf16.mxu1 %v9353_v34  ;;  %v9431_v34 = vld [vmem:[#allocation2 + $0xcac] ss:$16 sps:$4 sm:$0xff]  }
 0x1af   :  { %5876 = vmatpush1.bf16.msra.mxu0 %v9348_v35  ;;  %v9426_v35 = vld [vmem:[#allocation2 + $0xcc0] ss:$16 sps:$4 sm:$0xff]  }
 0x1b0   :  { %6519 = vmatpush1.bf16.msra.mxu1 %v9351_v36  ;;  %5877 = vmatprep.subr.bf16.mxu0 %v9356_v37  ;;  %v9429_v36 = vld [vmem:[#allocation2 + $0xca8] ss:$16 sps:$4 sm:$0xff]   ;;  %v9434_v37 = vld [vmem:[#allocation2 + $0xce4] ss:$16 sps:$4 sm:$0xff]  }
 0x1b1   :  { %6520 = vmatprep.subr.bf16.mxu1 %v9359_v38  ;;  %v9437_v38 = vld [vmem:[#allocation2 + $0xccc] ss:$16 sps:$4 sm:$0xff]  }
 0x1b3   :  { %5878 = vmatpush1.bf16.msra.mxu0 %v9354_v39  ;;  %v9432_v39 = vld [vmem:[#allocation2 + $0xce0] ss:$16 sps:$4 sm:$0xff]  }
 0x1b4   :  { %6521 = vmatpush1.bf16.msra.mxu1 %v9357_v40  ;;  %5879 = vmatprep.subr.bf16.mxu0 %v9362_v41  ;;  %v9435_v40 = vld [vmem:[#allocation2 + $0xcc8] ss:$16 sps:$4 sm:$0xff]   ;;  %v9440_v41 = vld [vmem:[#allocation2 + $0xd04] ss:$16 sps:$4 sm:$0xff]  }
 0x1b5   :  { %6522 = vmatprep.subr.bf16.mxu1 %v9365_v42  ;;  %v9443_v42 = vld [vmem:[#allocation2 + $0xcec] ss:$16 sps:$4 sm:$0xff]  }
 0x1b7   :  { %5880 = vmatpush1.bf16.msra.mxu0 %v9360_v43  ;;  %v9438_v43 = vld [vmem:[#allocation2 + $0xd00] ss:$16 sps:$4 sm:$0xff]  }
 0x1b8   :  { %6523 = vmatpush1.bf16.msra.mxu1 %v9363_v44  ;;  %5881 = vmatprep.subr.bf16.mxu0 %v9368_v45  ;;  %v9441_v44 = vld [vmem:[#allocation2 + $0xce8] ss:$16 sps:$4 sm:$0xff]   ;;  %v9446_v45 = vld [vmem:[#allocation2 + $0xd24] ss:$16 sps:$4 sm:$0xff]  }
 0x1b9   :  { %6524 = vmatprep.subr.bf16.mxu1 %v9371_v46  ;;  %v9449_v46 = vld [vmem:[#allocation2 + $0xd0c] ss:$16 sps:$4 sm:$0xff]  }
 0x1bb   :  { %5882 = vmatpush1.bf16.msra.mxu0 %v9366_v47  ;;  %v9444_v47 = vld [vmem:[#allocation2 + $0xd20] ss:$16 sps:$4 sm:$0xff]  }
 0x1bc   :  { %6525 = vmatpush1.bf16.msra.mxu1 %v9369_v48  ;;  %5883 = vmatprep.subr.bf16.mxu0 %v9374_v49  ;;  %v9447_v48 = vld [vmem:[#allocation2 + $0xd08] ss:$16 sps:$4 sm:$0xff]   ;;  %v9452_v49 = vld [vmem:[#allocation2 + $0xd44] ss:$16 sps:$4 sm:$0xff]  }
 0x1bd   :  { %6526 = vmatprep.subr.bf16.mxu1 %v9377_v50  ;;  %v9455_v50 = vld [vmem:[#allocation2 + $0xd2c] ss:$16 sps:$4 sm:$0xff]  }
 0x1bf   :  { %5884 = vmatpush1.bf16.msra.mxu0 %v9372_v51  ;;  %v9450_v51 = vld [vmem:[#allocation2 + $0xd40] ss:$16 sps:$4 sm:$0xff]  }
 0x1c0   :  { %6527 = vmatpush1.bf16.msra.mxu1 %v9375_v52  ;;  %5885 = vmatprep.subr.bf16.mxu0 %v9380_v53  ;;  %v9453_v52 = vld [vmem:[#allocation2 + $0xd28] ss:$16 sps:$4 sm:$0xff]   ;;  %v9458_v53 = vld [vmem:[#allocation2 + $0xd64] ss:$16 sps:$4 sm:$0xff]  }
 0x1c1   :  { %6528 = vmatprep.subr.bf16.mxu1 %v9383_v54  ;;  %v9461_v54 = vld [vmem:[#allocation2 + $0xd4c] ss:$16 sps:$4 sm:$0xff]  }
 0x1c3   :  { %5886 = vmatpush1.bf16.msra.mxu0 %v9378_v55  ;;  %v9456_v55 = vld [vmem:[#allocation2 + $0xd60] ss:$16 sps:$4 sm:$0xff]  }
 0x1c4   :  { %6529 = vmatpush1.bf16.msra.mxu1 %v9381_v56  ;;  %5887 = vmatprep.subr.bf16.mxu0 %v9386_v57  ;;  %v9459_v56 = vld [vmem:[#allocation2 + $0xd48] ss:$16 sps:$4 sm:$0xff]   ;;  %v9464_v57 = vld [vmem:[#allocation2 + $0xd84] ss:$16 sps:$4 sm:$0xff]  }
 0x1c5   :  { %6530 = vmatprep.subr.bf16.mxu1 %v9389_v58  ;;  %v9467_v58 = vld [vmem:[#allocation2 + $0xd6c] ss:$16 sps:$4 sm:$0xff]  }
 0x1c7   :  { %5888 = vmatpush1.bf16.msra.mxu0 %v9384_v59  ;;  %v9462_v59 = vld [vmem:[#allocation2 + $0xd80] ss:$16 sps:$4 sm:$0xff]  }
 0x1c8   :  { %6531 = vmatpush1.bf16.msra.mxu1 %v9387_v60  ;;  %5900 = vmatprep.subr.bf16.mxu0 %v9392_v63  ;;  %v9465_v60 = vld [vmem:[#allocation2 + $0xd68] ss:$16 sps:$4 sm:$0xff]   ;;  %v9470_v63 = vld [vmem:[#allocation2 + $0xda4] ss:$16 sps:$4 sm:$0xff]  }
 0x1c9   :  { %6532 = vmatprep.subr.bf16.mxu1 %v9395_v1  ;;  %v9473_v1 = vld [vmem:[#allocation2 + $0xd8c] ss:$16 sps:$4 sm:$0xff]  }
 0x1ca   :  { %5890 = vmatmul.mubr.bf16.vlgmr.msra.gmra.mrb[0].mxu0 %v198_v9 }
 0x1cb   :  { %5901 = vmatpush1.bf16.msra.mxu0 %v9390_v10  ;;  %5932 = vmatprep.mubr.bf16.mxu0 %v201_v14  ;;  %v9477_v10 = vld [vmem:[#allocation2 + $0xda8] ss:$16 sps:$4 sm:$0xff]  }
 0x1cc   :  { %6533 = vmatpush1.bf16.msra.mxu1 %v9393_v11  ;;  %5902 = vmatprep.subr.bf16.mxu0 %v9398_v12  ;;  %v9482_v11 = vld [vmem:[#allocation2 + $0xde4] ss:$16 sps:$4 sm:$0xff]   ;;  %v9485_v12 = vld [vmem:[#allocation2 + $0xdcc] ss:$16 sps:$4 sm:$0xff]  }
 0x1cd   :  { %6545 = vmatprep.subr.bf16.mxu1 %v9401_v13  ;;  %v9480_v13 = vld [vmem:[#allocation2 + $0xde0] ss:$16 sps:$4 sm:$0xff]  }
 0x1cf   :  { %6535 = vmatmul.mubr.bf16.vlgmr.msra.gmra.mrb[4].mxu1 %v198_v9  ;;  %5903 = vmatpush1.bf16.msra.mxu0 %v9396_v15  ;;  %v9474_v9 = vld [vmem:[#allocation2 + $0xdc0] ss:$16 sps:$4 sm:$0xff]   ;;  %v9488_v15 = vld [vmem:[#allocation2 + $0xe04] ss:$16 sps:$4 sm:$0xff]  }
 0x1d0   :  { %6546 = vmatpush1.bf16.msra.mxu1 %v9399_v16  ;;  %5904 = vmatprep.subr.bf16.mxu0 %v9404_v17  ;;  %v9491_v16 = vld [vmem:[#allocation2 + $0xdec] ss:$16 sps:$4 sm:$0xff]   ;;  %v142_v17 = vld [vmem:[%s10644_s0 + $0x60] sm:$0xff] }
 0x1d1   :  { %6547 = vmatprep.subr.bf16.mxu1 %v9407_v18  ;;  %6577 = vmatprep.mubr.bf16.mxu1 %v201_v14  ;;  %v9483_v14 = vld [vmem:[#allocation2 + $0xdc8] ss:$16 sps:$4 sm:$0xff]  }
 0x1d2   :  { %v171_v18 = vld [vmem:[%s10644_s0 + $0x148] sm:$0xff] }
 0x1d3   :  { %5905 = vmatpush1.bf16.msra.mxu0 %v9402_v19  ;;  %v145_v19 = vld [vmem:[%s10644_s0 + $0x78] sm:$0xff] }
 0x1d4   :  { %6548 = vmatpush1.bf16.msra.mxu1 %v9405_v20  ;;  %5906 = vmatprep.subr.bf16.mxu0 %v9410_v21  ;;  %v174_v20 = vld [vmem:[%s10644_s0 + $0x160] sm:$0xff]  ;;  %v200_v21 = vpack.c.bf16 %v171_v18, %v142_v17  ;;  %v9567_v18 = vld [vmem:[#allocation2 + $0xf88] ss:$16 sps:$4 sm:$0xff]  }
 0x1d5   :  { %6549 = vmatprep.subr.bf16.mxu1 %v9413_v22  ;;  %v9486_v22 = vld [vmem:[#allocation2 + $0xe00] ss:$16 sps:$4 sm:$0xff]  }
 0x1d6   :  { %v9564_v17 = vld [vmem:[#allocation2 + $0xfa0] ss:$16 sps:$4 sm:$0xff]  }
 0x1d7   :  { %5907 = vmatpush1.bf16.msra.mxu0 %v9408_v23  ;;  %v9489_v23 = vld [vmem:[#allocation2 + $0xde8] ss:$16 sps:$4 sm:$0xff]  }
 0x1d8   :  { %6550 = vmatpush1.bf16.msra.mxu1 %v9411_v24  ;;  %5908 = vmatprep.subr.bf16.mxu0 %v9416_v25  ;;  %v9494_v24 = vld [vmem:[#allocation2 + $0xe24] ss:$16 sps:$4 sm:$0xff]   ;;  %v9497_v25 = vld [vmem:[#allocation2 + $0xe0c] ss:$16 sps:$4 sm:$0xff]  }
 0x1d9   :  { %6551 = vmatprep.subr.bf16.mxu1 %v9419_v26  ;;  %v203_v26 = vpack.c.bf16 %v174_v20, %v145_v19  ;;  %v9572_v19 = vld [vmem:[#allocation2 + $0xfc4] ss:$16 sps:$4 sm:$0xff]   ;;  %v9575_v20 = vld [vmem:[#allocation2 + $0xfac] ss:$16 sps:$4 sm:$0xff]  }
 0x1db   :  { %5909 = vmatpush1.bf16.msra.mxu0 %v9414_v27  ;;  %v9492_v27 = vld [vmem:[#allocation2 + $0xe20] ss:$16 sps:$4 sm:$0xff]  }
 0x1dc   :  { %6552 = vmatpush1.bf16.msra.mxu1 %v9417_v28  ;;  %5910 = vmatprep.subr.bf16.mxu0 %v9422_v29  ;;  %v9495_v28 = vld [vmem:[#allocation2 + $0xe08] ss:$16 sps:$4 sm:$0xff]   ;;  %v9500_v29 = vld [vmem:[#allocation2 + $0xe44] ss:$16 sps:$4 sm:$0xff]  }
 0x1dd   :  { %6553 = vmatprep.subr.bf16.mxu1 %v9425_v30  ;;  %v9503_v30 = vld [vmem:[#allocation2 + $0xe2c] ss:$16 sps:$4 sm:$0xff]  }
 0x1df   :  { %5911 = vmatpush1.bf16.msra.mxu0 %v9420_v31  ;;  %v9498_v31 = vld [vmem:[#allocation2 + $0xe40] ss:$16 sps:$4 sm:$0xff]  }
 0x1e0   :  { %6554 = vmatpush1.bf16.msra.mxu1 %v9423_v32  ;;  %5912 = vmatprep.subr.bf16.mxu0 %v9428_v33  ;;  %v9501_v32 = vld [vmem:[#allocation2 + $0xe28] ss:$16 sps:$4 sm:$0xff]   ;;  %v9506_v33 = vld [vmem:[#allocation2 + $0xe64] ss:$16 sps:$4 sm:$0xff]  }
 0x1e1   :  { %6555 = vmatprep.subr.bf16.mxu1 %v9431_v34  ;;  %v9509_v34 = vld [vmem:[#allocation2 + $0xe4c] ss:$16 sps:$4 sm:$0xff]  }
 0x1e3   :  { %5913 = vmatpush1.bf16.msra.mxu0 %v9426_v35  ;;  %v9504_v35 = vld [vmem:[#allocation2 + $0xe60] ss:$16 sps:$4 sm:$0xff]  }
 0x1e4   :  { %6556 = vmatpush1.bf16.msra.mxu1 %v9429_v36  ;;  %5914 = vmatprep.subr.bf16.mxu0 %v9434_v37  ;;  %v9507_v36 = vld [vmem:[#allocation2 + $0xe48] ss:$16 sps:$4 sm:$0xff]   ;;  %v9512_v37 = vld [vmem:[#allocation2 + $0xe84] ss:$16 sps:$4 sm:$0xff]  }
 0x1e5   :  { %6557 = vmatprep.subr.bf16.mxu1 %v9437_v38  ;;  %v9515_v38 = vld [vmem:[#allocation2 + $0xe6c] ss:$16 sps:$4 sm:$0xff]  }
 0x1e7   :  { %5915 = vmatpush1.bf16.msra.mxu0 %v9432_v39  ;;  %v9510_v39 = vld [vmem:[#allocation2 + $0xe80] ss:$16 sps:$4 sm:$0xff]  }
 0x1e8   :  { %6558 = vmatpush1.bf16.msra.mxu1 %v9435_v40  ;;  %5916 = vmatprep.subr.bf16.mxu0 %v9440_v41  ;;  %v9513_v40 = vld [vmem:[#allocation2 + $0xe68] ss:$16 sps:$4 sm:$0xff]   ;;  %v9518_v41 = vld [vmem:[#allocation2 + $0xea4] ss:$16 sps:$4 sm:$0xff]  }
 0x1e9   :  { %6559 = vmatprep.subr.bf16.mxu1 %v9443_v42  ;;  %v9521_v42 = vld [vmem:[#allocation2 + $0xe8c] ss:$16 sps:$4 sm:$0xff]  }
 0x1eb   :  { %5917 = vmatpush1.bf16.msra.mxu0 %v9438_v43  ;;  %v9516_v43 = vld [vmem:[#allocation2 + $0xea0] ss:$16 sps:$4 sm:$0xff]  }
 0x1ec   :  { %6560 = vmatpush1.bf16.msra.mxu1 %v9441_v44  ;;  %5918 = vmatprep.subr.bf16.mxu0 %v9446_v45  ;;  %v9519_v44 = vld [vmem:[#allocation2 + $0xe88] ss:$16 sps:$4 sm:$0xff]   ;;  %v9524_v45 = vld [vmem:[#allocation2 + $0xec4] ss:$16 sps:$4 sm:$0xff]  }
 0x1ed   :  { %6561 = vmatprep.subr.bf16.mxu1 %v9449_v46  ;;  %v9527_v46 = vld [vmem:[#allocation2 + $0xeac] ss:$16 sps:$4 sm:$0xff]  }
 0x1ef   :  { %5919 = vmatpush1.bf16.msra.mxu0 %v9444_v47  ;;  %v9522_v47 = vld [vmem:[#allocation2 + $0xec0] ss:$16 sps:$4 sm:$0xff]  }
 0x1f0   :  { %6562 = vmatpush1.bf16.msra.mxu1 %v9447_v48  ;;  %5920 = vmatprep.subr.bf16.mxu0 %v9452_v49  ;;  %v9525_v48 = vld [vmem:[#allocation2 + $0xea8] ss:$16 sps:$4 sm:$0xff]   ;;  %v9530_v49 = vld [vmem:[#allocation2 + $0xee4] ss:$16 sps:$4 sm:$0xff]  }
 0x1f1   :  { %6563 = vmatprep.subr.bf16.mxu1 %v9455_v50  ;;  %v9533_v50 = vld [vmem:[#allocation2 + $0xecc] ss:$16 sps:$4 sm:$0xff]  }
 0x1f3   :  { %5921 = vmatpush1.bf16.msra.mxu0 %v9450_v51  ;;  %v9528_v51 = vld [vmem:[#allocation2 + $0xee0] ss:$16 sps:$4 sm:$0xff]  }
 0x1f4   :  { %6564 = vmatpush1.bf16.msra.mxu1 %v9453_v52  ;;  %5922 = vmatprep.subr.bf16.mxu0 %v9458_v53  ;;  %v9531_v52 = vld [vmem:[#allocation2 + $0xec8] ss:$16 sps:$4 sm:$0xff]   ;;  %v9536_v53 = vld [vmem:[#allocation2 + $0xf04] ss:$16 sps:$4 sm:$0xff]  }
 0x1f5   :  { %6565 = vmatprep.subr.bf16.mxu1 %v9461_v54  ;;  %v9539_v54 = vld [vmem:[#allocation2 + $0xeec] ss:$16 sps:$4 sm:$0xff]  }
 0x1f7   :  { %5923 = vmatpush1.bf16.msra.mxu0 %v9456_v55  ;;  %v9534_v55 = vld [vmem:[#allocation2 + $0xf00] ss:$16 sps:$4 sm:$0xff]  }
 0x1f8   :  { %6566 = vmatpush1.bf16.msra.mxu1 %v9459_v56  ;;  %5924 = vmatprep.subr.bf16.mxu0 %v9464_v57  ;;  %v9537_v56 = vld [vmem:[#allocation2 + $0xee8] ss:$16 sps:$4 sm:$0xff]   ;;  %v9542_v57 = vld [vmem:[#allocation2 + $0xf24] ss:$16 sps:$4 sm:$0xff]  }
 0x1f9   :  { %6567 = vmatprep.subr.bf16.mxu1 %v9467_v58  ;;  %v9545_v58 = vld [vmem:[#allocation2 + $0xf0c] ss:$16 sps:$4 sm:$0xff]  }
 0x1fb   :  { %5925 = vmatpush1.bf16.msra.mxu0 %v9462_v59  ;;  %v9540_v59 = vld [vmem:[#allocation2 + $0xf20] ss:$16 sps:$4 sm:$0xff]  }
 0x1fc   :  { %6568 = vmatpush1.bf16.msra.mxu1 %v9465_v60  ;;  %5926 = vmatprep.subr.bf16.mxu0 %v9470_v63  ;;  %v9543_v60 = vld [vmem:[#allocation2 + $0xf08] ss:$16 sps:$4 sm:$0xff]   ;;  %v9548_v63 = vld [vmem:[#allocation2 + $0xf44] ss:$16 sps:$4 sm:$0xff]  }
 0x1fd   :  { %6569 = vmatprep.subr.bf16.mxu1 %v9473_v1  ;;  %v9551_v1 = vld [vmem:[#allocation2 + $0xf2c] ss:$16 sps:$4 sm:$0xff]  }
 0x1ff   :  { %5927 = vmatpush1.bf16.msra.mxu0 %v9468_v3  ;;  %v9546_v3 = vld [vmem:[#allocation2 + $0xf40] ss:$16 sps:$4 sm:$0xff]  }
 0x200   :  { %6570 = vmatpush1.bf16.msra.mxu1 %v9471_v5  ;;  %5928 = vmatprep.subr.bf16.mxu0 %v9476_v6  ;;  %v9549_v5 = vld [vmem:[#allocation2 + $0xf28] ss:$16 sps:$4 sm:$0xff]   ;;  %v9554_v6 = vld [vmem:[#allocation2 + $0xf64] ss:$16 sps:$4 sm:$0xff]  }
 0x201   :  { %6571 = vmatprep.subr.bf16.mxu1 %v9479_v7  ;;  %v9557_v7 = vld [vmem:[#allocation2 + $0xf4c] ss:$16 sps:$4 sm:$0xff]  }
 0x203   :  { %5929 = vmatpush1.bf16.msra.mxu0 %v9474_v9  ;;  %v9552_v9 = vld [vmem:[#allocation2 + $0xf60] ss:$16 sps:$4 sm:$0xff]  }
 0x204   :  { %6572 = vmatpush1.bf16.msra.mxu1 %v9477_v10  ;;  %5930 = vmatprep.subr.bf16.mxu0 %v9482_v11  ;;  %v9555_v10 = vld [vmem:[#allocation2 + $0xf48] ss:$16 sps:$4 sm:$0xff]   ;;  %v9560_v11 = vld [vmem:[#allocation2 + $0xf84] ss:$16 sps:$4 sm:$0xff]  }
 0x205   :  { %6573 = vmatprep.subr.bf16.mxu1 %v9485_v12  ;;  %v9563_v12 = vld [vmem:[#allocation2 + $0xf6c] ss:$16 sps:$4 sm:$0xff]  }
 0x207   :  { %5931 = vmatpush1.bf16.msra.mxu0 %v9480_v13  ;;  %v9558_v13 = vld [vmem:[#allocation2 + $0xf80] ss:$16 sps:$4 sm:$0xff]  }
 0x208   :  { %6574 = vmatpush1.bf16.msra.mxu1 %v9483_v14  ;;  %5943 = vmatprep.subr.bf16.mxu0 %v9488_v15  ;;  %v9561_v14 = vld [vmem:[#allocation2 + $0xf68] ss:$16 sps:$4 sm:$0xff]   ;;  %v9566_v15 = vld [vmem:[#allocation2 + $0xfa4] ss:$16 sps:$4 sm:$0xff]  }
 0x209   :  { %6575 = vmatprep.subr.bf16.mxu1 %v9491_v16  ;;  %v9569_v16 = vld [vmem:[#allocation2 + $0xf8c] ss:$16 sps:$4 sm:$0xff]  }
 0x20a   :  { %5933 = vmatmul.mubr.bf16.vlgmr.msra.gmra.mrb[0].mxu0 %v200_v21 }
 0x20b   :  { %5944 = vmatpush1.bf16.msra.mxu0 %v9486_v22  ;;  %5975 = vmatprep.mubr.bf16.mxu0 %v203_v26  ;;  %v9573_v22 = vld [vmem:[#allocation2 + $0xfa8] ss:$16 sps:$4 sm:$0xff]  }
 0x20c   :  { %6576 = vmatpush1.bf16.msra.mxu1 %v9489_v23  ;;  %5945 = vmatprep.subr.bf16.mxu0 %v9494_v24  ;;  %v9578_v23 = vld [vmem:[#allocation2 + $0xfe4] ss:$16 sps:$4 sm:$0xff]   ;;  %v9581_v24 = vld [vmem:[#allocation2 + $0xfcc] ss:$16 sps:$4 sm:$0xff]  }
 0x20d   :  { %6588 = vmatprep.subr.bf16.mxu1 %v9497_v25  ;;  %v9576_v25 = vld [vmem:[#allocation2 + $0xfe0] ss:$16 sps:$4 sm:$0xff]  }
 0x20f   :  { %6578 = vmatmul.mubr.bf16.vlgmr.msra.gmra.mrb[4].mxu1 %v200_v21  ;;  %5946 = vmatpush1.bf16.msra.mxu0 %v9492_v27  ;;  %v9570_v21 = vld [vmem:[#allocation2 + $0xfc0] ss:$16 sps:$4 sm:$0xff]   ;;  %v9584_v27 = vld [vmem:[#allocation2 + $0x1004] ss:$16 sps:$4 sm:$0xff]  }
 0x210   :  { %6589 = vmatpush1.bf16.msra.mxu1 %v9495_v28  ;;  %5947 = vmatprep.subr.bf16.mxu0 %v9500_v29  ;;  %v9587_v28 = vld [vmem:[#allocation2 + $0xfec] ss:$16 sps:$4 sm:$0xff]   ;;  %v144_v29 = vld [vmem:[%s10644_s0 + $0x70] sm:$0xff] }
 0x211   :  { %6590 = vmatprep.subr.bf16.mxu1 %v9503_v30  ;;  %6620 = vmatprep.mubr.bf16.mxu1 %v203_v26  ;;  %v9579_v26 = vld [vmem:[#allocation2 + $0xfc8] ss:$16 sps:$4 sm:$0xff]  }
 0x212   :  { %v173_v30 = vld [vmem:[%s10644_s0 + $0x158] sm:$0xff] }
 0x213   :  { %5948 = vmatpush1.bf16.msra.mxu0 %v9498_v31  ;;  %v147_v31 = vld [vmem:[%s10644_s0 + $0x88] sm:$0xff] }
 0x214   :  { %6591 = vmatpush1.bf16.msra.mxu1 %v9501_v32  ;;  %5949 = vmatprep.subr.bf16.mxu0 %v9506_v33  ;;  %v176_v32 = vld [vmem:[%s10644_s0 + $0x170] sm:$0xff]  ;;  %v202_v33 = vpack.c.bf16 %v173_v30, %v144_v29  ;;  %v9663_v30 = vld [vmem:[#allocation2 + $0x1188] ss:$16 sps:$4 sm:$0xff]  }
 0x215   :  { %6592 = vmatprep.subr.bf16.mxu1 %v9509_v34  ;;  %v9582_v34 = vld [vmem:[#allocation2 + $0x1000] ss:$16 sps:$4 sm:$0xff]  }
 0x216   :  { %v9660_v29 = vld [vmem:[#allocation2 + $0x11a0] ss:$16 sps:$4 sm:$0xff]  }
 0x217   :  { %5950 = vmatpush1.bf16.msra.mxu0 %v9504_v35  ;;  %v9585_v35 = vld [vmem:[#allocation2 + $0xfe8] ss:$16 sps:$4 sm:$0xff]  }
 0x218   :  { %6593 = vmatpush1.bf16.msra.mxu1 %v9507_v36  ;;  %5951 = vmatprep.subr.bf16.mxu0 %v9512_v37  ;;  %v9590_v36 = vld [vmem:[#allocation2 + $0x1024] ss:$16 sps:$4 sm:$0xff]   ;;  %v9593_v37 = vld [vmem:[#allocation2 + $0x100c] ss:$16 sps:$4 sm:$0xff]  }
 0x219   :  { %6594 = vmatprep.subr.bf16.mxu1 %v9515_v38  ;;  %v205_v38 = vpack.c.bf16 %v176_v32, %v147_v31  ;;  %v9668_v31 = vld [vmem:[#allocation2 + $0x11c4] ss:$16 sps:$4 sm:$0xff]   ;;  %v9671_v32 = vld [vmem:[#allocation2 + $0x11ac] ss:$16 sps:$4 sm:$0xff]  }
 0x21b   :  { %5952 = vmatpush1.bf16.msra.mxu0 %v9510_v39  ;;  %v9588_v39 = vld [vmem:[#allocation2 + $0x1020] ss:$16 sps:$4 sm:$0xff]  }
 0x21c   :  { %6595 = vmatpush1.bf16.msra.mxu1 %v9513_v40  ;;  %5953 = vmatprep.subr.bf16.mxu0 %v9518_v41  ;;  %v9591_v40 = vld [vmem:[#allocation2 + $0x1008] ss:$16 sps:$4 sm:$0xff]   ;;  %v9596_v41 = vld [vmem:[#allocation2 + $0x1044] ss:$16 sps:$4 sm:$0xff]  }
 0x21d   :  { %6596 = vmatprep.subr.bf16.mxu1 %v9521_v42  ;;  %v9599_v42 = vld [vmem:[#allocation2 + $0x102c] ss:$16 sps:$4 sm:$0xff]  }
 0x21f   :  { %5954 = vmatpush1.bf16.msra.mxu0 %v9516_v43  ;;  %v9594_v43 = vld [vmem:[#allocation2 + $0x1040] ss:$16 sps:$4 sm:$0xff]  }
 0x220   :  { %6597 = vmatpush1.bf16.msra.mxu1 %v9519_v44  ;;  %5955 = vmatprep.subr.bf16.mxu0 %v9524_v45  ;;  %v9597_v44 = vld [vmem:[#allocation2 + $0x1028] ss:$16 sps:$4 sm:$0xff]   ;;  %v9602_v45 = vld [vmem:[#allocation2 + $0x1064] ss:$16 sps:$4 sm:$0xff]  }
 0x221   :  { %6598 = vmatprep.subr.bf16.mxu1 %v9527_v46  ;;  %v9605_v46 = vld [vmem:[#allocation2 + $0x104c] ss:$16 sps:$4 sm:$0xff]  }
 0x223   :  { %5956 = vmatpush1.bf16.msra.mxu0 %v9522_v47  ;;  %v9600_v47 = vld [vmem:[#allocation2 + $0x1060] ss:$16 sps:$4 sm:$0xff]  }
 0x224   :  { %6599 = vmatpush1.bf16.msra.mxu1 %v9525_v48  ;;  %5957 = vmatprep.subr.bf16.mxu0 %v9530_v49  ;;  %v9603_v48 = vld [vmem:[#allocation2 + $0x1048] ss:$16 sps:$4 sm:$0xff]   ;;  %v9608_v49 = vld [vmem:[#allocation2 + $0x1084] ss:$16 sps:$4 sm:$0xff]  }
 0x225   :  { %6600 = vmatprep.subr.bf16.mxu1 %v9533_v50  ;;  %v9611_v50 = vld [vmem:[#allocation2 + $0x106c] ss:$16 sps:$4 sm:$0xff]  }
 0x227   :  { %5958 = vmatpush1.bf16.msra.mxu0 %v9528_v51  ;;  %v9606_v51 = vld [vmem:[#allocation2 + $0x1080] ss:$16 sps:$4 sm:$0xff]  }
 0x228   :  { %6601 = vmatpush1.bf16.msra.mxu1 %v9531_v52  ;;  %5959 = vmatprep.subr.bf16.mxu0 %v9536_v53  ;;  %v9609_v52 = vld [vmem:[#allocation2 + $0x1068] ss:$16 sps:$4 sm:$0xff]   ;;  %v9614_v53 = vld [vmem:[#allocation2 + $0x10a4] ss:$16 sps:$4 sm:$0xff]  }
 0x229   :  { %6602 = vmatprep.subr.bf16.mxu1 %v9539_v54  ;;  %v9617_v54 = vld [vmem:[#allocation2 + $0x108c] ss:$16 sps:$4 sm:$0xff]  }
 0x22b   :  { %5960 = vmatpush1.bf16.msra.mxu0 %v9534_v55  ;;  %v9612_v55 = vld [vmem:[#allocation2 + $0x10a0] ss:$16 sps:$4 sm:$0xff]  }
 0x22c   :  { %6603 = vmatpush1.bf16.msra.mxu1 %v9537_v56  ;;  %5961 = vmatprep.subr.bf16.mxu0 %v9542_v57  ;;  %v9615_v56 = vld [vmem:[#allocation2 + $0x1088] ss:$16 sps:$4 sm:$0xff]   ;;  %v9620_v57 = vld [vmem:[#allocation2 + $0x10c4] ss:$16 sps:$4 sm:$0xff]  }
 0x22d   :  { %6604 = vmatprep.subr.bf16.mxu1 %v9545_v58  ;;  %v9623_v58 = vld [vmem:[#allocation2 + $0x10ac] ss:$16 sps:$4 sm:$0xff]  }
 0x22f   :  { %5962 = vmatpush1.bf16.msra.mxu0 %v9540_v59  ;;  %v9618_v59 = vld [vmem:[#allocation2 + $0x10c0] ss:$16 sps:$4 sm:$0xff]  }
 0x230   :  { %6605 = vmatpush1.bf16.msra.mxu1 %v9543_v60  ;;  %5963 = vmatprep.subr.bf16.mxu0 %v9548_v63  ;;  %v9621_v60 = vld [vmem:[#allocation2 + $0x10a8] ss:$16 sps:$4 sm:$0xff]   ;;  %v9626_v63 = vld [vmem:[#allocation2 + $0x10e4] ss:$16 sps:$4 sm:$0xff]  }
 0x231   :  { %6606 = vmatprep.subr.bf16.mxu1 %v9551_v1  ;;  %v9629_v1 = vld [vmem:[#allocation2 + $0x10cc] ss:$16 sps:$4 sm:$0xff]  }
 0x233   :  { %5964 = vmatpush1.bf16.msra.mxu0 %v9546_v3  ;;  %v9624_v3 = vld [vmem:[#allocation2 + $0x10e0] ss:$16 sps:$4 sm:$0xff]  }
 0x234   :  { %6607 = vmatpush1.bf16.msra.mxu1 %v9549_v5  ;;  %5965 = vmatprep.subr.bf16.mxu0 %v9554_v6  ;;  %v9627_v5 = vld [vmem:[#allocation2 + $0x10c8] ss:$16 sps:$4 sm:$0xff]   ;;  %v9632_v6 = vld [vmem:[#allocation2 + $0x1104] ss:$16 sps:$4 sm:$0xff]  }
 0x235   :  { %6608 = vmatprep.subr.bf16.mxu1 %v9557_v7  ;;  %v9635_v7 = vld [vmem:[#allocation2 + $0x10ec] ss:$16 sps:$4 sm:$0xff]  }
 0x237   :  { %5966 = vmatpush1.bf16.msra.mxu0 %v9552_v9  ;;  %v9630_v9 = vld [vmem:[#allocation2 + $0x1100] ss:$16 sps:$4 sm:$0xff]  }
 0x238   :  { %6609 = vmatpush1.bf16.msra.mxu1 %v9555_v10  ;;  %5967 = vmatprep.subr.bf16.mxu0 %v9560_v11  ;;  %v9633_v10 = vld [vmem:[#allocation2 + $0x10e8] ss:$16 sps:$4 sm:$0xff]   ;;  %v9638_v11 = vld [vmem:[#allocation2 + $0x1124] ss:$16 sps:$4 sm:$0xff]  }
 0x239   :  { %6610 = vmatprep.subr.bf16.mxu1 %v9563_v12  ;;  %v9641_v12 = vld [vmem:[#allocation2 + $0x110c] ss:$16 sps:$4 sm:$0xff]  }
 0x23b   :  { %5968 = vmatpush1.bf16.msra.mxu0 %v9558_v13  ;;  %v9636_v13 = vld [vmem:[#allocation2 + $0x1120] ss:$16 sps:$4 sm:$0xff]  }
 0x23c   :  { %6611 = vmatpush1.bf16.msra.mxu1 %v9561_v14  ;;  %5969 = vmatprep.subr.bf16.mxu0 %v9566_v15  ;;  %v9639_v14 = vld [vmem:[#allocation2 + $0x1108] ss:$16 sps:$4 sm:$0xff]   ;;  %v9644_v15 = vld [vmem:[#allocation2 + $0x1144] ss:$16 sps:$4 sm:$0xff]  }
 0x23d   :  { %6612 = vmatprep.subr.bf16.mxu1 %v9569_v16  ;;  %v9647_v16 = vld [vmem:[#allocation2 + $0x112c] ss:$16 sps:$4 sm:$0xff]  }
 0x23f   :  { %5970 = vmatpush1.bf16.msra.mxu0 %v9564_v17  ;;  %v9642_v17 = vld [vmem:[#allocation2 + $0x1140] ss:$16 sps:$4 sm:$0xff]  }
 0x240   :  { %6613 = vmatpush1.bf16.msra.mxu1 %v9567_v18  ;;  %5971 = vmatprep.subr.bf16.mxu0 %v9572_v19  ;;  %v9645_v18 = vld [vmem:[#allocation2 + $0x1128] ss:$16 sps:$4 sm:$0xff]   ;;  %v9650_v19 = vld [vmem:[#allocation2 + $0x1164] ss:$16 sps:$4 sm:$0xff]  }
 0x241   :  { %6614 = vmatprep.subr.bf16.mxu1 %v9575_v20  ;;  %v9653_v20 = vld [vmem:[#allocation2 + $0x114c] ss:$16 sps:$4 sm:$0xff]  }
 0x243   :  { %5972 = vmatpush1.bf16.msra.mxu0 %v9570_v21  ;;  %v9648_v21 = vld [vmem:[#allocation2 + $0x1160] ss:$16 sps:$4 sm:$0xff]  }
 0x244   :  { %6615 = vmatpush1.bf16.msra.mxu1 %v9573_v22  ;;  %5973 = vmatprep.subr.bf16.mxu0 %v9578_v23  ;;  %v9651_v22 = vld [vmem:[#allocation2 + $0x1148] ss:$16 sps:$4 sm:$0xff]   ;;  %v9656_v23 = vld [vmem:[#allocation2 + $0x1184] ss:$16 sps:$4 sm:$0xff]  }
 0x245   :  { %6616 = vmatprep.subr.bf16.mxu1 %v9581_v24  ;;  %v9659_v24 = vld [vmem:[#allocation2 + $0x116c] ss:$16 sps:$4 sm:$0xff]  }
 0x247   :  { %5974 = vmatpush1.bf16.msra.mxu0 %v9576_v25  ;;  %v9654_v25 = vld [vmem:[#allocation2 + $0x1180] ss:$16 sps:$4 sm:$0xff]  }
 0x248   :  { %6617 = vmatpush1.bf16.msra.mxu1 %v9579_v26  ;;  %5986 = vmatprep.subr.bf16.mxu0 %v9584_v27  ;;  %v9657_v26 = vld [vmem:[#allocation2 + $0x1168] ss:$16 sps:$4 sm:$0xff]   ;;  %v9662_v27 = vld [vmem:[#allocation2 + $0x11a4] ss:$16 sps:$4 sm:$0xff]  }
 0x249   :  { %6618 = vmatprep.subr.bf16.mxu1 %v9587_v28  ;;  %v9665_v28 = vld [vmem:[#allocation2 + $0x118c] ss:$16 sps:$4 sm:$0xff]  }
 0x24a   :  { %5976 = vmatmul.mubr.bf16.vlgmr.msra.gmra.mrb[0].mxu0 %v202_v33 }
 0x24b   :  { %5987 = vmatpush1.bf16.msra.mxu0 %v9582_v34  ;;  %6018 = vmatprep.mubr.bf16.mxu0 %v205_v38  ;;  %v9669_v34 = vld [vmem:[#allocation2 + $0x11a8] ss:$16 sps:$4 sm:$0xff]  }
 0x24c   :  { %6619 = vmatpush1.bf16.msra.mxu1 %v9585_v35  ;;  %5988 = vmatprep.subr.bf16.mxu0 %v9590_v36  ;;  %v9674_v35 = vld [vmem:[#allocation2 + $0x11e4] ss:$16 sps:$4 sm:$0xff]   ;;  %v9677_v36 = vld [vmem:[#allocation2 + $0x11cc] ss:$16 sps:$4 sm:$0xff]  }
 0x24d   :  { %6631 = vmatprep.subr.bf16.mxu1 %v9593_v37  ;;  %v9672_v37 = vld [vmem:[#allocation2 + $0x11e0] ss:$16 sps:$4 sm:$0xff]  }
 0x24f   :  { %6621 = vmatmul.mubr.bf16.vlgmr.msra.gmra.mrb[4].mxu1 %v202_v33  ;;  %5989 = vmatpush1.bf16.msra.mxu0 %v9588_v39  ;;  %v9666_v33 = vld [vmem:[#allocation2 + $0x11c0] ss:$16 sps:$4 sm:$0xff]   ;;  %v9680_v39 = vld [vmem:[#allocation2 + $0x1204] ss:$16 sps:$4 sm:$0xff]  }
 0x250   :  { %6632 = vmatpush1.bf16.msra.mxu1 %v9591_v40  ;;  %5990 = vmatprep.subr.bf16.mxu0 %v9596_v41  ;;  %v9683_v40 = vld [vmem:[#allocation2 + $0x11ec] ss:$16 sps:$4 sm:$0xff]   ;;  %v146_v41 = vld [vmem:[%s10644_s0 + $0x80] sm:$0xff] }
 0x251   :  { %6633 = vmatprep.subr.bf16.mxu1 %v9599_v42  ;;  %6663 = vmatprep.mubr.bf16.mxu1 %v205_v38  ;;  %v9675_v38 = vld [vmem:[#allocation2 + $0x11c8] ss:$16 sps:$4 sm:$0xff]  }
 0x252   :  { %v175_v42 = vld [vmem:[%s10644_s0 + $0x168] sm:$0xff] }
 0x253   :  { %5991 = vmatpush1.bf16.msra.mxu0 %v9594_v43  ;;  %v149_v43 = vld [vmem:[%s10644_s0 + $0x98] sm:$0xff] }
 0x254   :  { %6634 = vmatpush1.bf16.msra.mxu1 %v9597_v44  ;;  %5992 = vmatprep.subr.bf16.mxu0 %v9602_v45  ;;  %v178_v44 = vld [vmem:[%s10644_s0 + $0x180] sm:$0xff]  ;;  %v204_v45 = vpack.c.bf16 %v175_v42, %v146_v41  ;;  %v9759_v42 = vld [vmem:[#allocation2 + $0x1388] ss:$16 sps:$4 sm:$0xff]  }
 0x255   :  { %6635 = vmatprep.subr.bf16.mxu1 %v9605_v46  ;;  %v9678_v46 = vld [vmem:[#allocation2 + $0x1200] ss:$16 sps:$4 sm:$0xff]  }
 0x256   :  { %v9756_v41 = vld [vmem:[#allocation2 + $0x13a0] ss:$16 sps:$4 sm:$0xff]  }
 0x257   :  { %5993 = vmatpush1.bf16.msra.mxu0 %v9600_v47  ;;  %v9681_v47 = vld [vmem:[#allocation2 + $0x11e8] ss:$16 sps:$4 sm:$0xff]  }
 0x258   :  { %6636 = vmatpush1.bf16.msra.mxu1 %v9603_v48  ;;  %5994 = vmatprep.subr.bf16.mxu0 %v9608_v49  ;;  %v9686_v48 = vld [vmem:[#allocation2 + $0x1224] ss:$16 sps:$4 sm:$0xff]   ;;  %v9689_v49 = vld [vmem:[#allocation2 + $0x120c] ss:$16 sps:$4 sm:$0xff]  }
 0x259   :  { %6637 = vmatprep.subr.bf16.mxu1 %v9611_v50  ;;  %v207_v50 = vpack.c.bf16 %v178_v44, %v149_v43  ;;  %v9764_v43 = vld [vmem:[#allocation2 + $0x13c4] ss:$16 sps:$4 sm:$0xff]   ;;  %v9767_v44 = vld [vmem:[#allocation2 + $0x13ac] ss:$16 sps:$4 sm:$0xff]  }
 0x25b   :  { %5995 = vmatpush1.bf16.msra.mxu0 %v9606_v51  ;;  %v9684_v51 = vld [vmem:[#allocation2 + $0x1220] ss:$16 sps:$4 sm:$0xff]  }
 0x25c   :  { %6638 = vmatpush1.bf16.msra.mxu1 %v9609_v52  ;;  %5996 = vmatprep.subr.bf16.mxu0 %v9614_v53  ;;  %v9687_v52 = vld [vmem:[#allocation2 + $0x1208] ss:$16 sps:$4 sm:$0xff]   ;;  %v9692_v53 = vld [vmem:[#allocation2 + $0x1244] ss:$16 sps:$4 sm:$0xff]  }
 0x25d   :  { %6639 = vmatprep.subr.bf16.mxu1 %v9617_v54  ;;  %v9695_v54 = vld [vmem:[#allocation2 + $0x122c] ss:$16 sps:$4 sm:$0xff]  }
 0x25f   :  { %5997 = vmatpush1.bf16.msra.mxu0 %v9612_v55  ;;  %v9690_v55 = vld [vmem:[#allocation2 + $0x1240] ss:$16 sps:$4 sm:$0xff]  }
 0x260   :  { %6640 = vmatpush1.bf16.msra.mxu1 %v9615_v56  ;;  %5998 = vmatprep.subr.bf16.mxu0 %v9620_v57  ;;  %v9693_v56 = vld [vmem:[#allocation2 + $0x1228] ss:$16 sps:$4 sm:$0xff]   ;;  %v9698_v57 = vld [vmem:[#allocation2 + $0x1264] ss:$16 sps:$4 sm:$0xff]  }
 0x261   :  { %6641 = vmatprep.subr.bf16.mxu1 %v9623_v58  ;;  %v9701_v58 = vld [vmem:[#allocation2 + $0x124c] ss:$16 sps:$4 sm:$0xff]  }
 0x263   :  { %5999 = vmatpush1.bf16.msra.mxu0 %v9618_v59  ;;  %v9696_v59 = vld [vmem:[#allocation2 + $0x1260] ss:$16 sps:$4 sm:$0xff]  }
 0x264   :  { %6642 = vmatpush1.bf16.msra.mxu1 %v9621_v60  ;;  %6000 = vmatprep.subr.bf16.mxu0 %v9626_v63  ;;  %v9699_v60 = vld [vmem:[#allocation2 + $0x1248] ss:$16 sps:$4 sm:$0xff]   ;;  %v9704_v63 = vld [vmem:[#allocation2 + $0x1284] ss:$16 sps:$4 sm:$0xff]  }
 0x265   :  { %6643 = vmatprep.subr.bf16.mxu1 %v9629_v1  ;;  %v9707_v1 = vld [vmem:[#allocation2 + $0x126c] ss:$16 sps:$4 sm:$0xff]  }
 0x267   :  { %6001 = vmatpush1.bf16.msra.mxu0 %v9624_v3  ;;  %v9702_v3 = vld [vmem:[#allocation2 + $0x1280] ss:$16 sps:$4 sm:$0xff]  }
 0x268   :  { %6644 = vmatpush1.bf16.msra.mxu1 %v9627_v5  ;;  %6002 = vmatprep.subr.bf16.mxu0 %v9632_v6  ;;  %v9705_v5 = vld [vmem:[#allocation2 + $0x1268] ss:$16 sps:$4 sm:$0xff]   ;;  %v9710_v6 = vld [vmem:[#allocation2 + $0x12a4] ss:$16 sps:$4 sm:$0xff]  }
 0x269   :  { %6645 = vmatprep.subr.bf16.mxu1 %v9635_v7  ;;  %v9713_v7 = vld [vmem:[#allocation2 + $0x128c] ss:$16 sps:$4 sm:$0xff]  }
 0x26b   :  { %6003 = vmatpush1.bf16.msra.mxu0 %v9630_v9  ;;  %v9708_v9 = vld [vmem:[#allocation2 + $0x12a0] ss:$16 sps:$4 sm:$0xff]  }
 0x26c   :  { %6646 = vmatpush1.bf16.msra.mxu1 %v9633_v10  ;;  %6004 = vmatprep.subr.bf16.mxu0 %v9638_v11  ;;  %v9711_v10 = vld [vmem:[#allocation2 + $0x1288] ss:$16 sps:$4 sm:$0xff]   ;;  %v9716_v11 = vld [vmem:[#allocation2 + $0x12c4] ss:$16 sps:$4 sm:$0xff]  }
 0x26d   :  { %6647 = vmatprep.subr.bf16.mxu1 %v9641_v12  ;;  %v9719_v12 = vld [vmem:[#allocation2 + $0x12ac] ss:$16 sps:$4 sm:$0xff]  }
 0x26f   :  { %6005 = vmatpush1.bf16.msra.mxu0 %v9636_v13  ;;  %v9714_v13 = vld [vmem:[#allocation2 + $0x12c0] ss:$16 sps:$4 sm:$0xff]  }
 0x270   :  { %6648 = vmatpush1.bf16.msra.mxu1 %v9639_v14  ;;  %6006 = vmatprep.subr.bf16.mxu0 %v9644_v15  ;;  %v9717_v14 = vld [vmem:[#allocation2 + $0x12a8] ss:$16 sps:$4 sm:$0xff]   ;;  %v9722_v15 = vld [vmem:[#allocation2 + $0x12e4] ss:$16 sps:$4 sm:$0xff]  }
 0x271   :  { %6649 = vmatprep.subr.bf16.mxu1 %v9647_v16  ;;  %v9725_v16 = vld [vmem:[#allocation2 + $0x12cc] ss:$16 sps:$4 sm:$0xff]  }
 0x273   :  { %6007 = vmatpush1.bf16.msra.mxu0 %v9642_v17  ;;  %v9720_v17 = vld [vmem:[#allocation2 + $0x12e0] ss:$16 sps:$4 sm:$0xff]  }
 0x274   :  { %6650 = vmatpush1.bf16.msra.mxu1 %v9645_v18  ;;  %6008 = vmatprep.subr.bf16.mxu0 %v9650_v19  ;;  %v9723_v18 = vld [vmem:[#allocation2 + $0x12c8] ss:$16 sps:$4 sm:$0xff]   ;;  %v9728_v19 = vld [vmem:[#allocation2 + $0x1304] ss:$16 sps:$4 sm:$0xff]  }
 0x275   :  { %6651 = vmatprep.subr.bf16.mxu1 %v9653_v20  ;;  %v9731_v20 = vld [vmem:[#allocation2 + $0x12ec] ss:$16 sps:$4 sm:$0xff]  }
 0x277   :  { %6009 = vmatpush1.bf16.msra.mxu0 %v9648_v21  ;;  %v9726_v21 = vld [vmem:[#allocation2 + $0x1300] ss:$16 sps:$4 sm:$0xff]  }
 0x278   :  { %6652 = vmatpush1.bf16.msra.mxu1 %v9651_v22  ;;  %6010 = vmatprep.subr.bf16.mxu0 %v9656_v23  ;;  %v9729_v22 = vld [vmem:[#allocation2 + $0x12e8] ss:$16 sps:$4 sm:$0xff]   ;;  %v9734_v23 = vld [vmem:[#allocation2 + $0x1324] ss:$16 sps:$4 sm:$0xff]  }
 0x279   :  { %6653 = vmatprep.subr.bf16.mxu1 %v9659_v24  ;;  %v9737_v24 = vld [vmem:[#allocation2 + $0x130c] ss:$16 sps:$4 sm:$0xff]  }
 0x27b   :  { %6011 = vmatpush1.bf16.msra.mxu0 %v9654_v25  ;;  %v9732_v25 = vld [vmem:[#allocation2 + $0x1320] ss:$16 sps:$4 sm:$0xff]  }
 0x27c   :  { %6654 = vmatpush1.bf16.msra.mxu1 %v9657_v26  ;;  %6012 = vmatprep.subr.bf16.mxu0 %v9662_v27  ;;  %v9735_v26 = vld [vmem:[#allocation2 + $0x1308] ss:$16 sps:$4 sm:$0xff]   ;;  %v9740_v27 = vld [vmem:[#allocation2 + $0x1344] ss:$16 sps:$4 sm:$0xff]  }
 0x27d   :  { %6655 = vmatprep.subr.bf16.mxu1 %v9665_v28  ;;  %v9743_v28 = vld [vmem:[#allocation2 + $0x132c] ss:$16 sps:$4 sm:$0xff]  }
 0x27f   :  { %6013 = vmatpush1.bf16.msra.mxu0 %v9660_v29  ;;  %v9738_v29 = vld [vmem:[#allocation2 + $0x1340] ss:$16 sps:$4 sm:$0xff]  }
 0x280   :  { %6656 = vmatpush1.bf16.msra.mxu1 %v9663_v30  ;;  %6014 = vmatprep.subr.bf16.mxu0 %v9668_v31  ;;  %v9741_v30 = vld [vmem:[#allocation2 + $0x1328] ss:$16 sps:$4 sm:$0xff]   ;;  %v9746_v31 = vld [vmem:[#allocation2 + $0x1364] ss:$16 sps:$4 sm:$0xff]  }
 0x281   :  { %6657 = vmatprep.subr.bf16.mxu1 %v9671_v32  ;;  %v9749_v32 = vld [vmem:[#allocation2 + $0x134c] ss:$16 sps:$4 sm:$0xff]  }
 0x283   :  { %6015 = vmatpush1.bf16.msra.mxu0 %v9666_v33  ;;  %v9744_v33 = vld [vmem:[#allocation2 + $0x1360] ss:$16 sps:$4 sm:$0xff]  }
 0x284   :  { %6658 = vmatpush1.bf16.msra.mxu1 %v9669_v34  ;;  %6016 = vmatprep.subr.bf16.mxu0 %v9674_v35  ;;  %v9747_v34 = vld [vmem:[#allocation2 + $0x1348] ss:$16 sps:$4 sm:$0xff]   ;;  %v9752_v35 = vld [vmem:[#allocation2 + $0x1384] ss:$16 sps:$4 sm:$0xff]  }
 0x285   :  { %6659 = vmatprep.subr.bf16.mxu1 %v9677_v36  ;;  %v9755_v36 = vld [vmem:[#allocation2 + $0x136c] ss:$16 sps:$4 sm:$0xff]  }
 0x287   :  { %6017 = vmatpush1.bf16.msra.mxu0 %v9672_v37  ;;  %v9750_v37 = vld [vmem:[#allocation2 + $0x1380] ss:$16 sps:$4 sm:$0xff]  }
 0x288   :  { %6660 = vmatpush1.bf16.msra.mxu1 %v9675_v38  ;;  %6029 = vmatprep.subr.bf16.mxu0 %v9680_v39  ;;  %v9753_v38 = vld [vmem:[#allocation2 + $0x1368] ss:$16 sps:$4 sm:$0xff]   ;;  %v9758_v39 = vld [vmem:[#allocation2 + $0x13a4] ss:$16 sps:$4 sm:$0xff]  }
 0x289   :  { %6661 = vmatprep.subr.bf16.mxu1 %v9683_v40  ;;  %v9761_v40 = vld [vmem:[#allocation2 + $0x138c] ss:$16 sps:$4 sm:$0xff]  }
 0x28a   :  { %6019 = vmatmul.mubr.bf16.vlgmr.msra.gmra.mrb[0].mxu0 %v204_v45 }
 0x28b   :  { %6030 = vmatpush1.bf16.msra.mxu0 %v9678_v46  ;;  %6061 = vmatprep.mubr.bf16.mxu0 %v207_v50  ;;  %v9765_v46 = vld [vmem:[#allocation2 + $0x13a8] ss:$16 sps:$4 sm:$0xff]  }
 0x28c   :  { %6662 = vmatpush1.bf16.msra.mxu1 %v9681_v47  ;;  %6031 = vmatprep.subr.bf16.mxu0 %v9686_v48  ;;  %v9770_v47 = vld [vmem:[#allocation2 + $0x13e4] ss:$16 sps:$4 sm:$0xff]   ;;  %v9773_v48 = vld [vmem:[#allocation2 + $0x13cc] ss:$16 sps:$4 sm:$0xff]  }
 0x28d   :  { %6674 = vmatprep.subr.bf16.mxu1 %v9689_v49  ;;  %v9768_v49 = vld [vmem:[#allocation2 + $0x13e0] ss:$16 sps:$4 sm:$0xff]  }
 0x28f   :  { %6664 = vmatmul.mubr.bf16.vlgmr.msra.gmra.mrb[4].mxu1 %v204_v45  ;;  %6032 = vmatpush1.bf16.msra.mxu0 %v9684_v51  ;;  %v9762_v45 = vld [vmem:[#allocation2 + $0x13c0] ss:$16 sps:$4 sm:$0xff]  }
 0x290   :  { %6675 = vmatpush1.bf16.msra.mxu1 %v9687_v52  ;;  %6033 = vmatprep.subr.bf16.mxu0 %v9692_v53  ;;  %v148_v51 = vld [vmem:[%s10644_s0 + $0x90] sm:$0xff]  ;;  %v177_v52 = vld [vmem:[%s10644_s0 + $0x178] sm:$0xff] }
 0x291   :  { %6676 = vmatprep.subr.bf16.mxu1 %v9695_v54  ;;  %6706 = vmatprep.mubr.bf16.mxu1 %v207_v50  ;;  %v9771_v50 = vld [vmem:[#allocation2 + $0x13c8] ss:$16 sps:$4 sm:$0xff]   ;;  %v9776_v53 = vld [vmem:[#allocation2 + $0x1404] ss:$16 sps:$4 sm:$0xff]   ;;  %v9779_v54 = vld [vmem:[#allocation2 + $0x13ec] ss:$16 sps:$4 sm:$0xff]  }
 0x293   :  { %6034 = vmatpush1.bf16.msra.mxu0 %v9690_v55  ;;  %v206_v55 = vpack.c.bf16 %v177_v52, %v148_v51  ;;  %v9854_v51 = vld [vmem:[#allocation2 + $0x15a4] ss:$16 sps:$4 sm:$0xff]   ;;  %v9857_v52 = vld [vmem:[#allocation2 + $0x158c] ss:$16 sps:$4 sm:$0xff]  }
 0x294   :  { %6677 = vmatpush1.bf16.msra.mxu1 %v9693_v56  ;;  %6035 = vmatprep.subr.bf16.mxu0 %v9698_v57  ;;  %v151_v56 = vld [vmem:[%s10644_s0 + $0xa8] sm:$0xff]  ;;  %v180_v57 = vld [vmem:[%s10644_s0 + $0x190] sm:$0xff] }
 0x295   :  { %6678 = vmatprep.subr.bf16.mxu1 %v9701_v58  ;;  %v9774_v58 = vld [vmem:[#allocation2 + $0x1400] ss:$16 sps:$4 sm:$0xff]  }
 0x297   :  { %6036 = vmatpush1.bf16.msra.mxu0 %v9696_v59  ;;  %v9777_v59 = vld [vmem:[#allocation2 + $0x13e8] ss:$16 sps:$4 sm:$0xff]  }
 0x298   :  { %6679 = vmatpush1.bf16.msra.mxu1 %v9699_v60  ;;  %6037 = vmatprep.subr.bf16.mxu0 %v9704_v63  ;;  %v9782_v60 = vld [vmem:[#allocation2 + $0x1424] ss:$16 sps:$4 sm:$0xff]   ;;  %v9785_v63 = vld [vmem:[#allocation2 + $0x140c] ss:$16 sps:$4 sm:$0xff]  }
 0x299   :  { %6680 = vmatprep.subr.bf16.mxu1 %v9707_v1  ;;  %v209_v1 = vpack.c.bf16 %v180_v57, %v151_v56  ;;  %v9863_v56 = vld [vmem:[#allocation2 + $0x15ac] ss:$16 sps:$4 sm:$0xff]   ;;  %v9858_v57 = vld [vmem:[#allocation2 + $0x15c0] ss:$16 sps:$4 sm:$0xff]  }
 0x29b   :  { %6038 = vmatpush1.bf16.msra.mxu0 %v9702_v3  ;;  %v9780_v3 = vld [vmem:[#allocation2 + $0x1420] ss:$16 sps:$4 sm:$0xff]  }
 0x29c   :  { %6681 = vmatpush1.bf16.msra.mxu1 %v9705_v5  ;;  %6039 = vmatprep.subr.bf16.mxu0 %v9710_v6  ;;  %v9783_v5 = vld [vmem:[#allocation2 + $0x1408] ss:$16 sps:$4 sm:$0xff]   ;;  %v9788_v6 = vld [vmem:[#allocation2 + $0x1444] ss:$16 sps:$4 sm:$0xff]  }
 0x29d   :  { %6682 = vmatprep.subr.bf16.mxu1 %v9713_v7  ;;  %v9791_v7 = vld [vmem:[#allocation2 + $0x142c] ss:$16 sps:$4 sm:$0xff]  }
 0x29f   :  { %6040 = vmatpush1.bf16.msra.mxu0 %v9708_v9  ;;  %v9786_v9 = vld [vmem:[#allocation2 + $0x1440] ss:$16 sps:$4 sm:$0xff]  }
 0x2a0   :  { %6683 = vmatpush1.bf16.msra.mxu1 %v9711_v10  ;;  %6041 = vmatprep.subr.bf16.mxu0 %v9716_v11  ;;  %v9789_v10 = vld [vmem:[#allocation2 + $0x1428] ss:$16 sps:$4 sm:$0xff]   ;;  %v9794_v11 = vld [vmem:[#allocation2 + $0x1464] ss:$16 sps:$4 sm:$0xff]  }
 0x2a1   :  { %6684 = vmatprep.subr.bf16.mxu1 %v9719_v12  ;;  %v9797_v12 = vld [vmem:[#allocation2 + $0x144c] ss:$16 sps:$4 sm:$0xff]  }
 0x2a3   :  { %6042 = vmatpush1.bf16.msra.mxu0 %v9714_v13  ;;  %v9792_v13 = vld [vmem:[#allocation2 + $0x1460] ss:$16 sps:$4 sm:$0xff]  }
 0x2a4   :  { %6685 = vmatpush1.bf16.msra.mxu1 %v9717_v14  ;;  %6043 = vmatprep.subr.bf16.mxu0 %v9722_v15  ;;  %v9795_v14 = vld [vmem:[#allocation2 + $0x1448] ss:$16 sps:$4 sm:$0xff]   ;;  %v9800_v15 = vld [vmem:[#allocation2 + $0x1484] ss:$16 sps:$4 sm:$0xff]  }
 0x2a5   :  { %6686 = vmatprep.subr.bf16.mxu1 %v9725_v16  ;;  %v9803_v16 = vld [vmem:[#allocation2 + $0x146c] ss:$16 sps:$4 sm:$0xff]  }
 0x2a7   :  { %6044 = vmatpush1.bf16.msra.mxu0 %v9720_v17  ;;  %v9798_v17 = vld [vmem:[#allocation2 + $0x1480] ss:$16 sps:$4 sm:$0xff]  }
 0x2a8   :  { %6687 = vmatpush1.bf16.msra.mxu1 %v9723_v18  ;;  %6045 = vmatprep.subr.bf16.mxu0 %v9728_v19  ;;  %v9801_v18 = vld [vmem:[#allocation2 + $0x1468] ss:$16 sps:$4 sm:$0xff]   ;;  %v9806_v19 = vld [vmem:[#allocation2 + $0x14a4] ss:$16 sps:$4 sm:$0xff]  }
 0x2a9   :  { %6688 = vmatprep.subr.bf16.mxu1 %v9731_v20  ;;  %v9809_v20 = vld [vmem:[#allocation2 + $0x148c] ss:$16 sps:$4 sm:$0xff]  }
 0x2ab   :  { %6046 = vmatpush1.bf16.msra.mxu0 %v9726_v21  ;;  %v9804_v21 = vld [vmem:[#allocation2 + $0x14a0] ss:$16 sps:$4 sm:$0xff]  }
 0x2ac   :  { %6689 = vmatpush1.bf16.msra.mxu1 %v9729_v22  ;;  %6047 = vmatprep.subr.bf16.mxu0 %v9734_v23  ;;  %v9807_v22 = vld [vmem:[#allocation2 + $0x1488] ss:$16 sps:$4 sm:$0xff]   ;;  %v9812_v23 = vld [vmem:[#allocation2 + $0x14c4] ss:$16 sps:$4 sm:$0xff]  }
 0x2ad   :  { %6690 = vmatprep.subr.bf16.mxu1 %v9737_v24  ;;  %v9815_v24 = vld [vmem:[#allocation2 + $0x14ac] ss:$16 sps:$4 sm:$0xff]  }
 0x2af   :  { %6048 = vmatpush1.bf16.msra.mxu0 %v9732_v25  ;;  %v9810_v25 = vld [vmem:[#allocation2 + $0x14c0] ss:$16 sps:$4 sm:$0xff]  }
 0x2b0   :  { %6691 = vmatpush1.bf16.msra.mxu1 %v9735_v26  ;;  %6049 = vmatprep.subr.bf16.mxu0 %v9740_v27  ;;  %v9813_v26 = vld [vmem:[#allocation2 + $0x14a8] ss:$16 sps:$4 sm:$0xff]   ;;  %v9818_v27 = vld [vmem:[#allocation2 + $0x14e4] ss:$16 sps:$4 sm:$0xff]  }
 0x2b1   :  { %6692 = vmatprep.subr.bf16.mxu1 %v9743_v28  ;;  %v9821_v28 = vld [vmem:[#allocation2 + $0x14cc] ss:$16 sps:$4 sm:$0xff]  }
 0x2b3   :  { %6050 = vmatpush1.bf16.msra.mxu0 %v9738_v29  ;;  %v9816_v29 = vld [vmem:[#allocation2 + $0x14e0] ss:$16 sps:$4 sm:$0xff]  }
 0x2b4   :  { %6693 = vmatpush1.bf16.msra.mxu1 %v9741_v30  ;;  %6051 = vmatprep.subr.bf16.mxu0 %v9746_v31  ;;  %v9819_v30 = vld [vmem:[#allocation2 + $0x14c8] ss:$16 sps:$4 sm:$0xff]   ;;  %v9824_v31 = vld [vmem:[#allocation2 + $0x1504] ss:$16 sps:$4 sm:$0xff]  }
 0x2b5   :  { %6694 = vmatprep.subr.bf16.mxu1 %v9749_v32  ;;  %v9827_v32 = vld [vmem:[#allocation2 + $0x14ec] ss:$16 sps:$4 sm:$0xff]  }
 0x2b7   :  { %6052 = vmatpush1.bf16.msra.mxu0 %v9744_v33  ;;  %v9822_v33 = vld [vmem:[#allocation2 + $0x1500] ss:$16 sps:$4 sm:$0xff]  }
 0x2b8   :  { %6695 = vmatpush1.bf16.msra.mxu1 %v9747_v34  ;;  %6053 = vmatprep.subr.bf16.mxu0 %v9752_v35  ;;  %v9825_v34 = vld [vmem:[#allocation2 + $0x14e8] ss:$16 sps:$4 sm:$0xff]   ;;  %v9830_v35 = vld [vmem:[#allocation2 + $0x1524] ss:$16 sps:$4 sm:$0xff]  }
 0x2b9   :  { %6696 = vmatprep.subr.bf16.mxu1 %v9755_v36  ;;  %v9833_v36 = vld [vmem:[#allocation2 + $0x150c] ss:$16 sps:$4 sm:$0xff]  }
 0x2bb   :  { %6054 = vmatpush1.bf16.msra.mxu0 %v9750_v37  ;;  %v9828_v37 = vld [vmem:[#allocation2 + $0x1520] ss:$16 sps:$4 sm:$0xff]  }
 0x2bc   :  { %6697 = vmatpush1.bf16.msra.mxu1 %v9753_v38  ;;  %6055 = vmatprep.subr.bf16.mxu0 %v9758_v39  ;;  %v9831_v38 = vld [vmem:[#allocation2 + $0x1508] ss:$16 sps:$4 sm:$0xff]   ;;  %v9836_v39 = vld [vmem:[#allocation2 + $0x1544] ss:$16 sps:$4 sm:$0xff]  }
 0x2bd   :  { %6698 = vmatprep.subr.bf16.mxu1 %v9761_v40  ;;  %v9839_v40 = vld [vmem:[#allocation2 + $0x152c] ss:$16 sps:$4 sm:$0xff]  }
 0x2bf   :  { %6056 = vmatpush1.bf16.msra.mxu0 %v9756_v41  ;;  %v9834_v41 = vld [vmem:[#allocation2 + $0x1540] ss:$16 sps:$4 sm:$0xff]  }
 0x2c0   :  { %6699 = vmatpush1.bf16.msra.mxu1 %v9759_v42  ;;  %6057 = vmatprep.subr.bf16.mxu0 %v9764_v43  ;;  %v9837_v42 = vld [vmem:[#allocation2 + $0x1528] ss:$16 sps:$4 sm:$0xff]   ;;  %v9842_v43 = vld [vmem:[#allocation2 + $0x1564] ss:$16 sps:$4 sm:$0xff]  }
 0x2c1   :  { %6700 = vmatprep.subr.bf16.mxu1 %v9767_v44  ;;  %v9845_v44 = vld [vmem:[#allocation2 + $0x154c] ss:$16 sps:$4 sm:$0xff]  }
 0x2c3   :  { %6058 = vmatpush1.bf16.msra.mxu0 %v9762_v45  ;;  %v9840_v45 = vld [vmem:[#allocation2 + $0x1560] ss:$16 sps:$4 sm:$0xff]  }
 0x2c4   :  { %6701 = vmatpush1.bf16.msra.mxu1 %v9765_v46  ;;  %6059 = vmatprep.subr.bf16.mxu0 %v9770_v47  ;;  %v9843_v46 = vld [vmem:[#allocation2 + $0x1548] ss:$16 sps:$4 sm:$0xff]   ;;  %v9848_v47 = vld [vmem:[#allocation2 + $0x1584] ss:$16 sps:$4 sm:$0xff]  }
 0x2c5   :  { %6702 = vmatprep.subr.bf16.mxu1 %v9773_v48  ;;  %v9851_v48 = vld [vmem:[#allocation2 + $0x156c] ss:$16 sps:$4 sm:$0xff]  }
 0x2c7   :  { %6060 = vmatpush1.bf16.msra.mxu0 %v9768_v49  ;;  %v9846_v49 = vld [vmem:[#allocation2 + $0x1580] ss:$16 sps:$4 sm:$0xff]  }
 0x2c8   :  { %6703 = vmatpush1.bf16.msra.mxu1 %v9771_v50  ;;  %6072 = vmatprep.subr.bf16.mxu0 %v9776_v53  ;;  %v9849_v50 = vld [vmem:[#allocation2 + $0x1568] ss:$16 sps:$4 sm:$0xff]   ;;  %v9852_v53 = vld [vmem:[#allocation2 + $0x15a0] ss:$16 sps:$4 sm:$0xff]  }
 0x2c9   :  { %6704 = vmatprep.subr.bf16.mxu1 %v9779_v54  ;;  %v9855_v54 = vld [vmem:[#allocation2 + $0x1588] ss:$16 sps:$4 sm:$0xff]  }
 0x2ca   :  { %6062 = vmatmul.mubr.bf16.vlgmr.msra.gmra.mrb[0].mxu0 %v206_v55 }
 0x2cb   :  { %6073 = vmatpush1.bf16.msra.mxu0 %v9774_v58  ;;  %6104 = vmatprep.mubr.bf16.mxu0 %v209_v1  ;;  %v9861_v58 = vld [vmem:[#allocation2 + $0x15a8] ss:$16 sps:$4 sm:$0xff]  }
 0x2cc   :  { %6705 = vmatpush1.bf16.msra.mxu1 %v9777_v59  ;;  %6074 = vmatprep.subr.bf16.mxu0 %v9782_v60  ;;  %v9866_v59 = vld [vmem:[#allocation2 + $0x15e4] ss:$16 sps:$4 sm:$0xff]   ;;  %v9869_v60 = vld [vmem:[#allocation2 + $0x15cc] ss:$16 sps:$4 sm:$0xff]  }
 0x2cd   :  { %6717 = vmatprep.subr.bf16.mxu1 %v9785_v63  ;;  %v9864_v63 = vld [vmem:[#allocation2 + $0x15e0] ss:$16 sps:$4 sm:$0xff]  }
 0x2cf   :  { %6707 = vmatmul.mubr.bf16.vlgmr.msra.gmra.mrb[4].mxu1 %v206_v55  ;;  %6075 = vmatpush1.bf16.msra.mxu0 %v9780_v3  ;;  %v9860_v55 = vld [vmem:[#allocation2 + $0x15c4] ss:$16 sps:$4 sm:$0xff]  }
 0x2d0   :  { %6718 = vmatpush1.bf16.msra.mxu1 %v9783_v5  ;;  %6076 = vmatprep.subr.bf16.mxu0 %v9788_v6  ;;  %v150_v3 = vld [vmem:[%s10644_s0 + $0xa0] sm:$0xff]  ;;  %v179_v5 = vld [vmem:[%s10644_s0 + $0x188] sm:$0xff] }
 0x2d1   :  { %6719 = vmatprep.subr.bf16.mxu1 %v9791_v7  ;;  %6749 = vmatprep.mubr.bf16.mxu1 %v209_v1  ;;  %v9867_v1 = vld [vmem:[#allocation2 + $0x15c8] ss:$16 sps:$4 sm:$0xff]   ;;  %v9872_v6 = vld [vmem:[#allocation2 + $0x1604] ss:$16 sps:$4 sm:$0xff]   ;;  %v9875_v7 = vld [vmem:[#allocation2 + $0x15ec] ss:$16 sps:$4 sm:$0xff]  }
 0x2d3   :  { %6077 = vmatpush1.bf16.msra.mxu0 %v9786_v9  ;;  %v208_v9 = vpack.c.bf16 %v179_v5, %v150_v3  ;;  %v9950_v3 = vld [vmem:[#allocation2 + $0x17a4] ss:$16 sps:$4 sm:$0xff]   ;;  %v9953_v5 = vld [vmem:[#allocation2 + $0x178c] ss:$16 sps:$4 sm:$0xff]  }
 0x2d4   :  { %6720 = vmatpush1.bf16.msra.mxu1 %v9789_v10  ;;  %6078 = vmatprep.subr.bf16.mxu0 %v9794_v11  ;;  %v153_v10 = vld [vmem:[%s10644_s0 + $0xb8] sm:$0xff]  ;;  %v182_v11 = vld [vmem:[%s10644_s0 + $0x1a0] sm:$0xff] }
 0x2d5   :  { %6721 = vmatprep.subr.bf16.mxu1 %v9797_v12  ;;  %v9870_v12 = vld [vmem:[#allocation2 + $0x1600] ss:$16 sps:$4 sm:$0xff]  }
 0x2d7   :  { %6079 = vmatpush1.bf16.msra.mxu0 %v9792_v13  ;;  %v9873_v13 = vld [vmem:[#allocation2 + $0x15e8] ss:$16 sps:$4 sm:$0xff]  }
 0x2d8   :  { %6722 = vmatpush1.bf16.msra.mxu1 %v9795_v14  ;;  %6080 = vmatprep.subr.bf16.mxu0 %v9800_v15  ;;  %v9878_v14 = vld [vmem:[#allocation2 + $0x1624] ss:$16 sps:$4 sm:$0xff]   ;;  %v9881_v15 = vld [vmem:[#allocation2 + $0x160c] ss:$16 sps:$4 sm:$0xff]  }
 0x2d9   :  { %6723 = vmatprep.subr.bf16.mxu1 %v9803_v16  ;;  %v211_v16 = vpack.c.bf16 %v182_v11, %v153_v10  ;;  %v9959_v10 = vld [vmem:[#allocation2 + $0x17ac] ss:$16 sps:$4 sm:$0xff]   ;;  %v9954_v11 = vld [vmem:[#allocation2 + $0x17c0] ss:$16 sps:$4 sm:$0xff]  }
 0x2db   :  { %6081 = vmatpush1.bf16.msra.mxu0 %v9798_v17  ;;  %v9876_v17 = vld [vmem:[#allocation2 + $0x1620] ss:$16 sps:$4 sm:$0xff]  }
 0x2dc   :  { %6724 = vmatpush1.bf16.msra.mxu1 %v9801_v18  ;;  %6082 = vmatprep.subr.bf16.mxu0 %v9806_v19  ;;  %v9879_v18 = vld [vmem:[#allocation2 + $0x1608] ss:$16 sps:$4 sm:$0xff]   ;;  %v9884_v19 = vld [vmem:[#allocation2 + $0x1644] ss:$16 sps:$4 sm:$0xff]  }
 0x2dd   :  { %6725 = vmatprep.subr.bf16.mxu1 %v9809_v20  ;;  %v9887_v20 = vld [vmem:[#allocation2 + $0x162c] ss:$16 sps:$4 sm:$0xff]  }
 0x2df   :  { %6083 = vmatpush1.bf16.msra.mxu0 %v9804_v21  ;;  %v9882_v21 = vld [vmem:[#allocation2 + $0x1640] ss:$16 sps:$4 sm:$0xff]  }
 0x2e0   :  { %6726 = vmatpush1.bf16.msra.mxu1 %v9807_v22  ;;  %6084 = vmatprep.subr.bf16.mxu0 %v9812_v23  ;;  %v9885_v22 = vld [vmem:[#allocation2 + $0x1628] ss:$16 sps:$4 sm:$0xff]   ;;  %v9890_v23 = vld [vmem:[#allocation2 + $0x1664] ss:$16 sps:$4 sm:$0xff]  }
 0x2e1   :  { %6727 = vmatprep.subr.bf16.mxu1 %v9815_v24  ;;  %v9893_v24 = vld [vmem:[#allocation2 + $0x164c] ss:$16 sps:$4 sm:$0xff]  }
 0x2e3   :  { %6085 = vmatpush1.bf16.msra.mxu0 %v9810_v25  ;;  %v9888_v25 = vld [vmem:[#allocation2 + $0x1660] ss:$16 sps:$4 sm:$0xff]  }
 0x2e4   :  { %6728 = vmatpush1.bf16.msra.mxu1 %v9813_v26  ;;  %6086 = vmatprep.subr.bf16.mxu0 %v9818_v27  ;;  %v9891_v26 = vld [vmem:[#allocation2 + $0x1648] ss:$16 sps:$4 sm:$0xff]   ;;  %v9896_v27 = vld [vmem:[#allocation2 + $0x1684] ss:$16 sps:$4 sm:$0xff]  }
 0x2e5   :  { %6729 = vmatprep.subr.bf16.mxu1 %v9821_v28  ;;  %v9899_v28 = vld [vmem:[#allocation2 + $0x166c] ss:$16 sps:$4 sm:$0xff]  }
 0x2e7   :  { %6087 = vmatpush1.bf16.msra.mxu0 %v9816_v29  ;;  %v9894_v29 = vld [vmem:[#allocation2 + $0x1680] ss:$16 sps:$4 sm:$0xff]  }
 0x2e8   :  { %6730 = vmatpush1.bf16.msra.mxu1 %v9819_v30  ;;  %6088 = vmatprep.subr.bf16.mxu0 %v9824_v31  ;;  %v9897_v30 = vld [vmem:[#allocation2 + $0x1668] ss:$16 sps:$4 sm:$0xff]   ;;  %v9902_v31 = vld [vmem:[#allocation2 + $0x16a4] ss:$16 sps:$4 sm:$0xff]  }
 0x2e9   :  { %6731 = vmatprep.subr.bf16.mxu1 %v9827_v32  ;;  %v9905_v32 = vld [vmem:[#allocation2 + $0x168c] ss:$16 sps:$4 sm:$0xff]  }
 0x2eb   :  { %6089 = vmatpush1.bf16.msra.mxu0 %v9822_v33  ;;  %v9900_v33 = vld [vmem:[#allocation2 + $0x16a0] ss:$16 sps:$4 sm:$0xff]  }
 0x2ec   :  { %6732 = vmatpush1.bf16.msra.mxu1 %v9825_v34  ;;  %6090 = vmatprep.subr.bf16.mxu0 %v9830_v35  ;;  %v9903_v34 = vld [vmem:[#allocation2 + $0x1688] ss:$16 sps:$4 sm:$0xff]   ;;  %v9908_v35 = vld [vmem:[#allocation2 + $0x16c4] ss:$16 sps:$4 sm:$0xff]  }
 0x2ed   :  { %6733 = vmatprep.subr.bf16.mxu1 %v9833_v36  ;;  %v9911_v36 = vld [vmem:[#allocation2 + $0x16ac] ss:$16 sps:$4 sm:$0xff]  }
 0x2ef   :  { %6091 = vmatpush1.bf16.msra.mxu0 %v9828_v37  ;;  %v9906_v37 = vld [vmem:[#allocation2 + $0x16c0] ss:$16 sps:$4 sm:$0xff]  }
 0x2f0   :  { %6734 = vmatpush1.bf16.msra.mxu1 %v9831_v38  ;;  %6092 = vmatprep.subr.bf16.mxu0 %v9836_v39  ;;  %v9909_v38 = vld [vmem:[#allocation2 + $0x16a8] ss:$16 sps:$4 sm:$0xff]   ;;  %v9914_v39 = vld [vmem:[#allocation2 + $0x16e4] ss:$16 sps:$4 sm:$0xff]  }
 0x2f1   :  { %6735 = vmatprep.subr.bf16.mxu1 %v9839_v40  ;;  %v9917_v40 = vld [vmem:[#allocation2 + $0x16cc] ss:$16 sps:$4 sm:$0xff]  }
 0x2f3   :  { %6093 = vmatpush1.bf16.msra.mxu0 %v9834_v41  ;;  %v9912_v41 = vld [vmem:[#allocation2 + $0x16e0] ss:$16 sps:$4 sm:$0xff]  }
 0x2f4   :  { %6736 = vmatpush1.bf16.msra.mxu1 %v9837_v42  ;;  %6094 = vmatprep.subr.bf16.mxu0 %v9842_v43  ;;  %v9915_v42 = vld [vmem:[#allocation2 + $0x16c8] ss:$16 sps:$4 sm:$0xff]   ;;  %v9920_v43 = vld [vmem:[#allocation2 + $0x1704] ss:$16 sps:$4 sm:$0xff]  }
 0x2f5   :  { %6737 = vmatprep.subr.bf16.mxu1 %v9845_v44  ;;  %v9923_v44 = vld [vmem:[#allocation2 + $0x16ec] ss:$16 sps:$4 sm:$0xff]  }
 0x2f7   :  { %6095 = vmatpush1.bf16.msra.mxu0 %v9840_v45  ;;  %v9918_v45 = vld [vmem:[#allocation2 + $0x1700] ss:$16 sps:$4 sm:$0xff]  }
 0x2f8   :  { %6738 = vmatpush1.bf16.msra.mxu1 %v9843_v46  ;;  %6096 = vmatprep.subr.bf16.mxu0 %v9848_v47  ;;  %v9921_v46 = vld [vmem:[#allocation2 + $0x16e8] ss:$16 sps:$4 sm:$0xff]   ;;  %v9926_v47 = vld [vmem:[#allocation2 + $0x1724] ss:$16 sps:$4 sm:$0xff]  }
 0x2f9   :  { %6739 = vmatprep.subr.bf16.mxu1 %v9851_v48  ;;  %v9929_v48 = vld [vmem:[#allocation2 + $0x170c] ss:$16 sps:$4 sm:$0xff]  }
 0x2fb   :  { %6097 = vmatpush1.bf16.msra.mxu0 %v9846_v49  ;;  %v9924_v49 = vld [vmem:[#allocation2 + $0x1720] ss:$16 sps:$4 sm:$0xff]  }
 0x2fc   :  { %6740 = vmatpush1.bf16.msra.mxu1 %v9849_v50  ;;  %6098 = vmatprep.subr.bf16.mxu0 %v9854_v51  ;;  %v9927_v50 = vld [vmem:[#allocation2 + $0x1708] ss:$16 sps:$4 sm:$0xff]   ;;  %v9932_v51 = vld [vmem:[#allocation2 + $0x1744] ss:$16 sps:$4 sm:$0xff]  }
 0x2fd   :  { %6741 = vmatprep.subr.bf16.mxu1 %v9857_v52  ;;  %v9935_v52 = vld [vmem:[#allocation2 + $0x172c] ss:$16 sps:$4 sm:$0xff]  }
 0x2ff   :  { %6099 = vmatpush1.bf16.msra.mxu0 %v9852_v53  ;;  %v9930_v53 = vld [vmem:[#allocation2 + $0x1740] ss:$16 sps:$4 sm:$0xff]  }
 0x300   :  { %6742 = vmatpush1.bf16.msra.mxu1 %v9855_v54  ;;  %6100 = vmatprep.subr.bf16.mxu0 %v9860_v55  ;;  %v9933_v54 = vld [vmem:[#allocation2 + $0x1728] ss:$16 sps:$4 sm:$0xff]   ;;  %v9938_v55 = vld [vmem:[#allocation2 + $0x1764] ss:$16 sps:$4 sm:$0xff]  }
 0x301   :  { %6743 = vmatprep.subr.bf16.mxu1 %v9863_v56  ;;  %v9941_v56 = vld [vmem:[#allocation2 + $0x174c] ss:$16 sps:$4 sm:$0xff]  }
 0x303   :  { %6101 = vmatpush1.bf16.msra.mxu0 %v9858_v57  ;;  %v9936_v57 = vld [vmem:[#allocation2 + $0x1760] ss:$16 sps:$4 sm:$0xff]  }
 0x304   :  { %6744 = vmatpush1.bf16.msra.mxu1 %v9861_v58  ;;  %6102 = vmatprep.subr.bf16.mxu0 %v9866_v59  ;;  %v9939_v58 = vld [vmem:[#allocation2 + $0x1748] ss:$16 sps:$4 sm:$0xff]   ;;  %v9944_v59 = vld [vmem:[#allocation2 + $0x1784] ss:$16 sps:$4 sm:$0xff]  }
 0x305   :  { %6745 = vmatprep.subr.bf16.mxu1 %v9869_v60  ;;  %v9947_v60 = vld [vmem:[#allocation2 + $0x176c] ss:$16 sps:$4 sm:$0xff]  }
 0x307   :  { %6103 = vmatpush1.bf16.msra.mxu0 %v9864_v63  ;;  %v9942_v63 = vld [vmem:[#allocation2 + $0x1780] ss:$16 sps:$4 sm:$0xff]  }
 0x308   :  { %6746 = vmatpush1.bf16.msra.mxu1 %v9867_v1  ;;  %6115 = vmatprep.subr.bf16.mxu0 %v9872_v6  ;;  %v9945_v1 = vld [vmem:[#allocation2 + $0x1768] ss:$16 sps:$4 sm:$0xff]   ;;  %v9948_v6 = vld [vmem:[#allocation2 + $0x17a0] ss:$16 sps:$4 sm:$0xff]  }
 0x309   :  { %6747 = vmatprep.subr.bf16.mxu1 %v9875_v7  ;;  %v9951_v7 = vld [vmem:[#allocation2 + $0x1788] ss:$16 sps:$4 sm:$0xff]  }
 0x30a   :  { %6105 = vmatmul.mubr.bf16.vlgmr.msra.gmra.mrb[0].mxu0 %v208_v9 }
 0x30b   :  { %6116 = vmatpush1.bf16.msra.mxu0 %v9870_v12  ;;  %6147 = vmatprep.mubr.bf16.mxu0 %v211_v16  ;;  %v9957_v12 = vld [vmem:[#allocation2 + $0x17a8] ss:$16 sps:$4 sm:$0xff]  }
 0x30c   :  { %6748 = vmatpush1.bf16.msra.mxu1 %v9873_v13  ;;  %6117 = vmatprep.subr.bf16.mxu0 %v9878_v14  ;;  %v9962_v13 = vld [vmem:[#allocation2 + $0x17e4] ss:$16 sps:$4 sm:$0xff]   ;;  %v9965_v14 = vld [vmem:[#allocation2 + $0x17cc] ss:$16 sps:$4 sm:$0xff]  }
 0x30d   :  { %6760 = vmatprep.subr.bf16.mxu1 %v9881_v15  ;;  %v9960_v15 = vld [vmem:[#allocation2 + $0x17e0] ss:$16 sps:$4 sm:$0xff]  }
 0x30f   :  { %6750 = vmatmul.mubr.bf16.vlgmr.msra.gmra.mrb[4].mxu1 %v208_v9  ;;  %6118 = vmatpush1.bf16.msra.mxu0 %v9876_v17  ;;  %v9956_v9 = vld [vmem:[#allocation2 + $0x17c4] ss:$16 sps:$4 sm:$0xff]  }
 0x310   :  { %6761 = vmatpush1.bf16.msra.mxu1 %v9879_v18  ;;  %6119 = vmatprep.subr.bf16.mxu0 %v9884_v19  ;;  %v152_v17 = vld [vmem:[%s10644_s0 + $0xb0] sm:$0xff]  ;;  %v181_v18 = vld [vmem:[%s10644_s0 + $0x198] sm:$0xff] }
 0x311   :  { %6762 = vmatprep.subr.bf16.mxu1 %v9887_v20  ;;  %6792 = vmatprep.mubr.bf16.mxu1 %v211_v16  ;;  %v9963_v16 = vld [vmem:[#allocation2 + $0x17c8] ss:$16 sps:$4 sm:$0xff]   ;;  %v9968_v19 = vld [vmem:[#allocation2 + $0x1804] ss:$16 sps:$4 sm:$0xff]   ;;  %v9971_v20 = vld [vmem:[#allocation2 + $0x17ec] ss:$16 sps:$4 sm:$0xff]  }
 0x313   :  { %6120 = vmatpush1.bf16.msra.mxu0 %v9882_v21  ;;  %v210_v21 = vpack.c.bf16 %v181_v18, %v152_v17  ;;  %v10046_v17 = vld [vmem:[#allocation2 + $0x19a4] ss:$16 sps:$4 sm:$0xff]   ;;  %v10049_v18 = vld [vmem:[#allocation2 + $0x198c] ss:$16 sps:$4 sm:$0xff]  }
 0x314   :  { %6763 = vmatpush1.bf16.msra.mxu1 %v9885_v22  ;;  %6121 = vmatprep.subr.bf16.mxu0 %v9890_v23  ;;  %v155_v22 = vld [vmem:[%s10644_s0 + $0xc8] sm:$0xff]  ;;  %v184_v23 = vld [vmem:[%s10644_s0 + $0x1b0] sm:$0xff] }
 0x315   :  { %6764 = vmatprep.subr.bf16.mxu1 %v9893_v24  ;;  %v9966_v24 = vld [vmem:[#allocation2 + $0x1800] ss:$16 sps:$4 sm:$0xff]  }
 0x317   :  { %6122 = vmatpush1.bf16.msra.mxu0 %v9888_v25  ;;  %v9969_v25 = vld [vmem:[#allocation2 + $0x17e8] ss:$16 sps:$4 sm:$0xff]  }
 0x318   :  { %6765 = vmatpush1.bf16.msra.mxu1 %v9891_v26  ;;  %6123 = vmatprep.subr.bf16.mxu0 %v9896_v27  ;;  %v9974_v26 = vld [vmem:[#allocation2 + $0x1824] ss:$16 sps:$4 sm:$0xff]   ;;  %v9977_v27 = vld [vmem:[#allocation2 + $0x180c] ss:$16 sps:$4 sm:$0xff]  }
 0x319   :  { %6766 = vmatprep.subr.bf16.mxu1 %v9899_v28  ;;  %v213_v28 = vpack.c.bf16 %v184_v23, %v155_v22  ;;  %v10055_v22 = vld [vmem:[#allocation2 + $0x19ac] ss:$16 sps:$4 sm:$0xff]   ;;  %v10050_v23 = vld [vmem:[#allocation2 + $0x19c0] ss:$16 sps:$4 sm:$0xff]  }
 0x31b   :  { %6124 = vmatpush1.bf16.msra.mxu0 %v9894_v29  ;;  %v9972_v29 = vld [vmem:[#allocation2 + $0x1820] ss:$16 sps:$4 sm:$0xff]  }
 0x31c   :  { %6767 = vmatpush1.bf16.msra.mxu1 %v9897_v30  ;;  %6125 = vmatprep.subr.bf16.mxu0 %v9902_v31  ;;  %v9975_v30 = vld [vmem:[#allocation2 + $0x1808] ss:$16 sps:$4 sm:$0xff]   ;;  %v9980_v31 = vld [vmem:[#allocation2 + $0x1844] ss:$16 sps:$4 sm:$0xff]  }
 0x31d   :  { %6768 = vmatprep.subr.bf16.mxu1 %v9905_v32  ;;  %v9983_v32 = vld [vmem:[#allocation2 + $0x182c] ss:$16 sps:$4 sm:$0xff]  }
 0x31f   :  { %6126 = vmatpush1.bf16.msra.mxu0 %v9900_v33  ;;  %v9978_v33 = vld [vmem:[#allocation2 + $0x1840] ss:$16 sps:$4 sm:$0xff]  }
 0x320   :  { %6769 = vmatpush1.bf16.msra.mxu1 %v9903_v34  ;;  %6127 = vmatprep.subr.bf16.mxu0 %v9908_v35  ;;  %v9981_v34 = vld [vmem:[#allocation2 + $0x1828] ss:$16 sps:$4 sm:$0xff]   ;;  %v9986_v35 = vld [vmem:[#allocation2 + $0x1864] ss:$16 sps:$4 sm:$0xff]  }
 0x321   :  { %6770 = vmatprep.subr.bf16.mxu1 %v9911_v36  ;;  %v9989_v36 = vld [vmem:[#allocation2 + $0x184c] ss:$16 sps:$4 sm:$0xff]  }
 0x323   :  { %6128 = vmatpush1.bf16.msra.mxu0 %v9906_v37  ;;  %v9984_v37 = vld [vmem:[#allocation2 + $0x1860] ss:$16 sps:$4 sm:$0xff]  }
 0x324   :  { %6771 = vmatpush1.bf16.msra.mxu1 %v9909_v38  ;;  %6129 = vmatprep.subr.bf16.mxu0 %v9914_v39  ;;  %v9987_v38 = vld [vmem:[#allocation2 + $0x1848] ss:$16 sps:$4 sm:$0xff]   ;;  %v9992_v39 = vld [vmem:[#allocation2 + $0x1884] ss:$16 sps:$4 sm:$0xff]  }
 0x325   :  { %6772 = vmatprep.subr.bf16.mxu1 %v9917_v40  ;;  %v9995_v40 = vld [vmem:[#allocation2 + $0x186c] ss:$16 sps:$4 sm:$0xff]  }
 0x327   :  { %6130 = vmatpush1.bf16.msra.mxu0 %v9912_v41  ;;  %v9990_v41 = vld [vmem:[#allocation2 + $0x1880] ss:$16 sps:$4 sm:$0xff]  }
 0x328   :  { %6773 = vmatpush1.bf16.msra.mxu1 %v9915_v42  ;;  %6131 = vmatprep.subr.bf16.mxu0 %v9920_v43  ;;  %v9993_v42 = vld [vmem:[#allocation2 + $0x1868] ss:$16 sps:$4 sm:$0xff]   ;;  %v9998_v43 = vld [vmem:[#allocation2 + $0x18a4] ss:$16 sps:$4 sm:$0xff]  }
 0x329   :  { %6774 = vmatprep.subr.bf16.mxu1 %v9923_v44  ;;  %v10001_v44 = vld [vmem:[#allocation2 + $0x188c] ss:$16 sps:$4 sm:$0xff]  }
 0x32b   :  { %6132 = vmatpush1.bf16.msra.mxu0 %v9918_v45  ;;  %v9996_v45 = vld [vmem:[#allocation2 + $0x18a0] ss:$16 sps:$4 sm:$0xff]  }
 0x32c   :  { %6775 = vmatpush1.bf16.msra.mxu1 %v9921_v46  ;;  %6133 = vmatprep.subr.bf16.mxu0 %v9926_v47  ;;  %v9999_v46 = vld [vmem:[#allocation2 + $0x1888] ss:$16 sps:$4 sm:$0xff]   ;;  %v10004_v47 = vld [vmem:[#allocation2 + $0x18c4] ss:$16 sps:$4 sm:$0xff]  }
 0x32d   :  { %6776 = vmatprep.subr.bf16.mxu1 %v9929_v48  ;;  %v10007_v48 = vld [vmem:[#allocation2 + $0x18ac] ss:$16 sps:$4 sm:$0xff]  }
 0x32f   :  { %6134 = vmatpush1.bf16.msra.mxu0 %v9924_v49  ;;  %v10002_v49 = vld [vmem:[#allocation2 + $0x18c0] ss:$16 sps:$4 sm:$0xff]  }
 0x330   :  { %6777 = vmatpush1.bf16.msra.mxu1 %v9927_v50  ;;  %6135 = vmatprep.subr.bf16.mxu0 %v9932_v51  ;;  %v10005_v50 = vld [vmem:[#allocation2 + $0x18a8] ss:$16 sps:$4 sm:$0xff]   ;;  %v10010_v51 = vld [vmem:[#allocation2 + $0x18e4] ss:$16 sps:$4 sm:$0xff]  }
 0x331   :  { %6778 = vmatprep.subr.bf16.mxu1 %v9935_v52  ;;  %v10013_v52 = vld [vmem:[#allocation2 + $0x18cc] ss:$16 sps:$4 sm:$0xff]  }
 0x333   :  { %6136 = vmatpush1.bf16.msra.mxu0 %v9930_v53  ;;  %v10008_v53 = vld [vmem:[#allocation2 + $0x18e0] ss:$16 sps:$4 sm:$0xff]  }
 0x334   :  { %6779 = vmatpush1.bf16.msra.mxu1 %v9933_v54  ;;  %6137 = vmatprep.subr.bf16.mxu0 %v9938_v55  ;;  %v10011_v54 = vld [vmem:[#allocation2 + $0x18c8] ss:$16 sps:$4 sm:$0xff]   ;;  %v10016_v55 = vld [vmem:[#allocation2 + $0x1904] ss:$16 sps:$4 sm:$0xff]  }
 0x335   :  { %6780 = vmatprep.subr.bf16.mxu1 %v9941_v56  ;;  %v10019_v56 = vld [vmem:[#allocation2 + $0x18ec] ss:$16 sps:$4 sm:$0xff]  }
 0x337   :  { %6138 = vmatpush1.bf16.msra.mxu0 %v9936_v57  ;;  %v10014_v57 = vld [vmem:[#allocation2 + $0x1900] ss:$16 sps:$4 sm:$0xff]  }
 0x338   :  { %6781 = vmatpush1.bf16.msra.mxu1 %v9939_v58  ;;  %6139 = vmatprep.subr.bf16.mxu0 %v9944_v59  ;;  %v10017_v58 = vld [vmem:[#allocation2 + $0x18e8] ss:$16 sps:$4 sm:$0xff]   ;;  %v10022_v59 = vld [vmem:[#allocation2 + $0x1924] ss:$16 sps:$4 sm:$0xff]  }
 0x339   :  { %6782 = vmatprep.subr.bf16.mxu1 %v9947_v60  ;;  %v10025_v60 = vld [vmem:[#allocation2 + $0x190c] ss:$16 sps:$4 sm:$0xff]  }
 0x33b   :  { %6140 = vmatpush1.bf16.msra.mxu0 %v9942_v63  ;;  %v10020_v63 = vld [vmem:[#allocation2 + $0x1920] ss:$16 sps:$4 sm:$0xff]  }
 0x33c   :  { %6783 = vmatpush1.bf16.msra.mxu1 %v9945_v1  ;;  %6141 = vmatprep.subr.bf16.mxu0 %v9950_v3  ;;  %v10023_v1 = vld [vmem:[#allocation2 + $0x1908] ss:$16 sps:$4 sm:$0xff]   ;;  %v10028_v3 = vld [vmem:[#allocation2 + $0x1944] ss:$16 sps:$4 sm:$0xff]  }
 0x33d   :  { %6784 = vmatprep.subr.bf16.mxu1 %v9953_v5  ;;  %v10031_v5 = vld [vmem:[#allocation2 + $0x192c] ss:$16 sps:$4 sm:$0xff]  }
 0x33f   :  { %6142 = vmatpush1.bf16.msra.mxu0 %v9948_v6  ;;  %v10026_v6 = vld [vmem:[#allocation2 + $0x1940] ss:$16 sps:$4 sm:$0xff]  }
 0x340   :  { %6785 = vmatpush1.bf16.msra.mxu1 %v9951_v7  ;;  %6143 = vmatprep.subr.bf16.mxu0 %v9956_v9  ;;  %v10029_v7 = vld [vmem:[#allocation2 + $0x1928] ss:$16 sps:$4 sm:$0xff]   ;;  %v10034_v9 = vld [vmem:[#allocation2 + $0x1964] ss:$16 sps:$4 sm:$0xff]  }
 0x341   :  { %6786 = vmatprep.subr.bf16.mxu1 %v9959_v10  ;;  %v10037_v10 = vld [vmem:[#allocation2 + $0x194c] ss:$16 sps:$4 sm:$0xff]  }
 0x343   :  { %6144 = vmatpush1.bf16.msra.mxu0 %v9954_v11  ;;  %v10032_v11 = vld [vmem:[#allocation2 + $0x1960] ss:$16 sps:$4 sm:$0xff]  }
 0x344   :  { %6787 = vmatpush1.bf16.msra.mxu1 %v9957_v12  ;;  %6145 = vmatprep.subr.bf16.mxu0 %v9962_v13  ;;  %v10035_v12 = vld [vmem:[#allocation2 + $0x1948] ss:$16 sps:$4 sm:$0xff]   ;;  %v10040_v13 = vld [vmem:[#allocation2 + $0x1984] ss:$16 sps:$4 sm:$0xff]  }
 0x345   :  { %6788 = vmatprep.subr.bf16.mxu1 %v9965_v14  ;;  %v10043_v14 = vld [vmem:[#allocation2 + $0x196c] ss:$16 sps:$4 sm:$0xff]  }
 0x347   :  { %6146 = vmatpush1.bf16.msra.mxu0 %v9960_v15  ;;  %v10038_v15 = vld [vmem:[#allocation2 + $0x1980] ss:$16 sps:$4 sm:$0xff]  }
 0x348   :  { %6789 = vmatpush1.bf16.msra.mxu1 %v9963_v16  ;;  %6158 = vmatprep.subr.bf16.mxu0 %v9968_v19  ;;  %v10041_v16 = vld [vmem:[#allocation2 + $0x1968] ss:$16 sps:$4 sm:$0xff]   ;;  %v10044_v19 = vld [vmem:[#allocation2 + $0x19a0] ss:$16 sps:$4 sm:$0xff]  }
 0x349   :  { %6790 = vmatprep.subr.bf16.mxu1 %v9971_v20  ;;  %v10047_v20 = vld [vmem:[#allocation2 + $0x1988] ss:$16 sps:$4 sm:$0xff]  }
 0x34a   :  { %6148 = vmatmul.mubr.bf16.vlgmr.msra.gmra.mrb[0].mxu0 %v210_v21 }
 0x34b   :  { %6159 = vmatpush1.bf16.msra.mxu0 %v9966_v24  ;;  %6190 = vmatprep.mubr.bf16.mxu0 %v213_v28  ;;  %v10053_v24 = vld [vmem:[#allocation2 + $0x19a8] ss:$16 sps:$4 sm:$0xff]  }
 0x34c   :  { %6791 = vmatpush1.bf16.msra.mxu1 %v9969_v25  ;;  %6160 = vmatprep.subr.bf16.mxu0 %v9974_v26  ;;  %v10058_v25 = vld [vmem:[#allocation2 + $0x19e4] ss:$16 sps:$4 sm:$0xff]   ;;  %v10061_v26 = vld [vmem:[#allocation2 + $0x19cc] ss:$16 sps:$4 sm:$0xff]  }
 0x34d   :  { %6803 = vmatprep.subr.bf16.mxu1 %v9977_v27  ;;  %v10056_v27 = vld [vmem:[#allocation2 + $0x19e0] ss:$16 sps:$4 sm:$0xff]  }
 0x34f   :  { %6793 = vmatmul.mubr.bf16.vlgmr.msra.gmra.mrb[4].mxu1 %v210_v21  ;;  %6161 = vmatpush1.bf16.msra.mxu0 %v9972_v29  ;;  %v10052_v21 = vld [vmem:[#allocation2 + $0x19c4] ss:$16 sps:$4 sm:$0xff]  }
 0x350   :  { %6804 = vmatpush1.bf16.msra.mxu1 %v9975_v30  ;;  %6162 = vmatprep.subr.bf16.mxu0 %v9980_v31  ;;  %v154_v29 = vld [vmem:[%s10644_s0 + $0xc0] sm:$0xff]  ;;  %v183_v30 = vld [vmem:[%s10644_s0 + $0x1a8] sm:$0xff] }
 0x351   :  { %6805 = vmatprep.subr.bf16.mxu1 %v9983_v32  ;;  %6835 = vmatprep.mubr.bf16.mxu1 %v213_v28  ;;  %v10059_v28 = vld [vmem:[#allocation2 + $0x19c8] ss:$16 sps:$4 sm:$0xff]   ;;  %v10064_v31 = vld [vmem:[#allocation2 + $0x1a04] ss:$16 sps:$4 sm:$0xff]   ;;  %v10067_v32 = vld [vmem:[#allocation2 + $0x19ec] ss:$16 sps:$4 sm:$0xff]  }
 0x353   :  { %6163 = vmatpush1.bf16.msra.mxu0 %v9978_v33  ;;  %v212_v33 = vpack.c.bf16 %v183_v30, %v154_v29  ;;  %v10142_v29 = vld [vmem:[#allocation2 + $0x1ba4] ss:$16 sps:$4 sm:$0xff]   ;;  %v10145_v30 = vld [vmem:[#allocation2 + $0x1b8c] ss:$16 sps:$4 sm:$0xff]  }
 0x354   :  { %6806 = vmatpush1.bf16.msra.mxu1 %v9981_v34  ;;  %6164 = vmatprep.subr.bf16.mxu0 %v9986_v35  ;;  %v157_v34 = vld [vmem:[%s10644_s0 + $0xd8] sm:$0xff]  ;;  %v186_v35 = vld [vmem:[%s10644_s0 + $0x1c0] sm:$0xff] }
 0x355   :  { %6807 = vmatprep.subr.bf16.mxu1 %v9989_v36  ;;  %v10062_v36 = vld [vmem:[#allocation2 + $0x1a00] ss:$16 sps:$4 sm:$0xff]  }
 0x357   :  { %6165 = vmatpush1.bf16.msra.mxu0 %v9984_v37  ;;  %v10065_v37 = vld [vmem:[#allocation2 + $0x19e8] ss:$16 sps:$4 sm:$0xff]  }
 0x358   :  { %6808 = vmatpush1.bf16.msra.mxu1 %v9987_v38  ;;  %6166 = vmatprep.subr.bf16.mxu0 %v9992_v39  ;;  %v10070_v38 = vld [vmem:[#allocation2 + $0x1a24] ss:$16 sps:$4 sm:$0xff]   ;;  %v10073_v39 = vld [vmem:[#allocation2 + $0x1a0c] ss:$16 sps:$4 sm:$0xff]  }
 0x359   :  { %6809 = vmatprep.subr.bf16.mxu1 %v9995_v40  ;;  %v215_v40 = vpack.c.bf16 %v186_v35, %v157_v34  ;;  %v10151_v34 = vld [vmem:[#allocation2 + $0x1bac] ss:$16 sps:$4 sm:$0xff]   ;;  %v10146_v35 = vld [vmem:[#allocation2 + $0x1bc0] ss:$16 sps:$4 sm:$0xff]  }
 0x35b   :  { %6167 = vmatpush1.bf16.msra.mxu0 %v9990_v41  ;;  %v10068_v41 = vld [vmem:[#allocation2 + $0x1a20] ss:$16 sps:$4 sm:$0xff]  }
 0x35c   :  { %6810 = vmatpush1.bf16.msra.mxu1 %v9993_v42  ;;  %6168 = vmatprep.subr.bf16.mxu0 %v9998_v43  ;;  %v10071_v42 = vld [vmem:[#allocation2 + $0x1a08] ss:$16 sps:$4 sm:$0xff]   ;;  %v10076_v43 = vld [vmem:[#allocation2 + $0x1a44] ss:$16 sps:$4 sm:$0xff]  }
 0x35d   :  { %6811 = vmatprep.subr.bf16.mxu1 %v10001_v44  ;;  %v10079_v44 = vld [vmem:[#allocation2 + $0x1a2c] ss:$16 sps:$4 sm:$0xff]  }
 0x35f   :  { %6169 = vmatpush1.bf16.msra.mxu0 %v9996_v45  ;;  %v10074_v45 = vld [vmem:[#allocation2 + $0x1a40] ss:$16 sps:$4 sm:$0xff]  }
 0x360   :  { %6812 = vmatpush1.bf16.msra.mxu1 %v9999_v46  ;;  %6170 = vmatprep.subr.bf16.mxu0 %v10004_v47  ;;  %v10077_v46 = vld [vmem:[#allocation2 + $0x1a28] ss:$16 sps:$4 sm:$0xff]   ;;  %v10082_v47 = vld [vmem:[#allocation2 + $0x1a64] ss:$16 sps:$4 sm:$0xff]  }
 0x361   :  { %6813 = vmatprep.subr.bf16.mxu1 %v10007_v48  ;;  %v10085_v48 = vld [vmem:[#allocation2 + $0x1a4c] ss:$16 sps:$4 sm:$0xff]  }
 0x363   :  { %6171 = vmatpush1.bf16.msra.mxu0 %v10002_v49  ;;  %v10080_v49 = vld [vmem:[#allocation2 + $0x1a60] ss:$16 sps:$4 sm:$0xff]  }
 0x364   :  { %6814 = vmatpush1.bf16.msra.mxu1 %v10005_v50  ;;  %6172 = vmatprep.subr.bf16.mxu0 %v10010_v51  ;;  %v10083_v50 = vld [vmem:[#allocation2 + $0x1a48] ss:$16 sps:$4 sm:$0xff]   ;;  %v10088_v51 = vld [vmem:[#allocation2 + $0x1a84] ss:$16 sps:$4 sm:$0xff]  }
 0x365   :  { %6815 = vmatprep.subr.bf16.mxu1 %v10013_v52  ;;  %v10091_v52 = vld [vmem:[#allocation2 + $0x1a6c] ss:$16 sps:$4 sm:$0xff]  }
 0x367   :  { %6173 = vmatpush1.bf16.msra.mxu0 %v10008_v53  ;;  %v10086_v53 = vld [vmem:[#allocation2 + $0x1a80] ss:$16 sps:$4 sm:$0xff]  }
 0x368   :  { %6816 = vmatpush1.bf16.msra.mxu1 %v10011_v54  ;;  %6174 = vmatprep.subr.bf16.mxu0 %v10016_v55  ;;  %v10089_v54 = vld [vmem:[#allocation2 + $0x1a68] ss:$16 sps:$4 sm:$0xff]   ;;  %v10094_v55 = vld [vmem:[#allocation2 + $0x1aa4] ss:$16 sps:$4 sm:$0xff]  }
 0x369   :  { %6817 = vmatprep.subr.bf16.mxu1 %v10019_v56  ;;  %v10097_v56 = vld [vmem:[#allocation2 + $0x1a8c] ss:$16 sps:$4 sm:$0xff]  }
 0x36b   :  { %6175 = vmatpush1.bf16.msra.mxu0 %v10014_v57  ;;  %v10092_v57 = vld [vmem:[#allocation2 + $0x1aa0] ss:$16 sps:$4 sm:$0xff]  }
 0x36c   :  { %6818 = vmatpush1.bf16.msra.mxu1 %v10017_v58  ;;  %6176 = vmatprep.subr.bf16.mxu0 %v10022_v59  ;;  %v10095_v58 = vld [vmem:[#allocation2 + $0x1a88] ss:$16 sps:$4 sm:$0xff]   ;;  %v10100_v59 = vld [vmem:[#allocation2 + $0x1ac4] ss:$16 sps:$4 sm:$0xff]  }
 0x36d   :  { %6819 = vmatprep.subr.bf16.mxu1 %v10025_v60  ;;  %v10103_v60 = vld [vmem:[#allocation2 + $0x1aac] ss:$16 sps:$4 sm:$0xff]  }
 0x36f   :  { %6177 = vmatpush1.bf16.msra.mxu0 %v10020_v63  ;;  %v10098_v63 = vld [vmem:[#allocation2 + $0x1ac0] ss:$16 sps:$4 sm:$0xff]  }
 0x370   :  { %6820 = vmatpush1.bf16.msra.mxu1 %v10023_v1  ;;  %6178 = vmatprep.subr.bf16.mxu0 %v10028_v3  ;;  %v10101_v1 = vld [vmem:[#allocation2 + $0x1aa8] ss:$16 sps:$4 sm:$0xff]   ;;  %v10106_v3 = vld [vmem:[#allocation2 + $0x1ae4] ss:$16 sps:$4 sm:$0xff]  }
 0x371   :  { %6821 = vmatprep.subr.bf16.mxu1 %v10031_v5  ;;  %v10109_v5 = vld [vmem:[#allocation2 + $0x1acc] ss:$16 sps:$4 sm:$0xff]  }
 0x373   :  { %6179 = vmatpush1.bf16.msra.mxu0 %v10026_v6  ;;  %v10104_v6 = vld [vmem:[#allocation2 + $0x1ae0] ss:$16 sps:$4 sm:$0xff]  }
 0x374   :  { %6822 = vmatpush1.bf16.msra.mxu1 %v10029_v7  ;;  %6180 = vmatprep.subr.bf16.mxu0 %v10034_v9  ;;  %v10107_v7 = vld [vmem:[#allocation2 + $0x1ac8] ss:$16 sps:$4 sm:$0xff]   ;;  %v10112_v9 = vld [vmem:[#allocation2 + $0x1b04] ss:$16 sps:$4 sm:$0xff]  }
 0x375   :  { %6823 = vmatprep.subr.bf16.mxu1 %v10037_v10  ;;  %v10115_v10 = vld [vmem:[#allocation2 + $0x1aec] ss:$16 sps:$4 sm:$0xff]  }
 0x377   :  { %6181 = vmatpush1.bf16.msra.mxu0 %v10032_v11  ;;  %v10110_v11 = vld [vmem:[#allocation2 + $0x1b00] ss:$16 sps:$4 sm:$0xff]  }
 0x378   :  { %6824 = vmatpush1.bf16.msra.mxu1 %v10035_v12  ;;  %6182 = vmatprep.subr.bf16.mxu0 %v10040_v13  ;;  %v10113_v12 = vld [vmem:[#allocation2 + $0x1ae8] ss:$16 sps:$4 sm:$0xff]   ;;  %v10118_v13 = vld [vmem:[#allocation2 + $0x1b24] ss:$16 sps:$4 sm:$0xff]  }
 0x379   :  { %6825 = vmatprep.subr.bf16.mxu1 %v10043_v14  ;;  %v10121_v14 = vld [vmem:[#allocation2 + $0x1b0c] ss:$16 sps:$4 sm:$0xff]  }
 0x37b   :  { %6183 = vmatpush1.bf16.msra.mxu0 %v10038_v15  ;;  %v10116_v15 = vld [vmem:[#allocation2 + $0x1b20] ss:$16 sps:$4 sm:$0xff]  }
 0x37c   :  { %6826 = vmatpush1.bf16.msra.mxu1 %v10041_v16  ;;  %6184 = vmatprep.subr.bf16.mxu0 %v10046_v17  ;;  %v10119_v16 = vld [vmem:[#allocation2 + $0x1b08] ss:$16 sps:$4 sm:$0xff]   ;;  %v10124_v17 = vld [vmem:[#allocation2 + $0x1b44] ss:$16 sps:$4 sm:$0xff]  }
 0x37d   :  { %6827 = vmatprep.subr.bf16.mxu1 %v10049_v18  ;;  %v10127_v18 = vld [vmem:[#allocation2 + $0x1b2c] ss:$16 sps:$4 sm:$0xff]  }
 0x37f   :  { %6185 = vmatpush1.bf16.msra.mxu0 %v10044_v19  ;;  %v10122_v19 = vld [vmem:[#allocation2 + $0x1b40] ss:$16 sps:$4 sm:$0xff]  }
 0x380   :  { %6828 = vmatpush1.bf16.msra.mxu1 %v10047_v20  ;;  %6186 = vmatprep.subr.bf16.mxu0 %v10052_v21  ;;  %v10125_v20 = vld [vmem:[#allocation2 + $0x1b28] ss:$16 sps:$4 sm:$0xff]   ;;  %v10130_v21 = vld [vmem:[#allocation2 + $0x1b64] ss:$16 sps:$4 sm:$0xff]  }
 0x381   :  { %6829 = vmatprep.subr.bf16.mxu1 %v10055_v22  ;;  %v10133_v22 = vld [vmem:[#allocation2 + $0x1b4c] ss:$16 sps:$4 sm:$0xff]  }
 0x383   :  { %6187 = vmatpush1.bf16.msra.mxu0 %v10050_v23  ;;  %v10128_v23 = vld [vmem:[#allocation2 + $0x1b60] ss:$16 sps:$4 sm:$0xff]  }
 0x384   :  { %6830 = vmatpush1.bf16.msra.mxu1 %v10053_v24  ;;  %6188 = vmatprep.subr.bf16.mxu0 %v10058_v25  ;;  %v10131_v24 = vld [vmem:[#allocation2 + $0x1b48] ss:$16 sps:$4 sm:$0xff]   ;;  %v10136_v25 = vld [vmem:[#allocation2 + $0x1b84] ss:$16 sps:$4 sm:$0xff]  }
 0x385   :  { %6831 = vmatprep.subr.bf16.mxu1 %v10061_v26  ;;  %v10139_v26 = vld [vmem:[#allocation2 + $0x1b6c] ss:$16 sps:$4 sm:$0xff]  }
 0x387   :  { %6189 = vmatpush1.bf16.msra.mxu0 %v10056_v27  ;;  %v10134_v27 = vld [vmem:[#allocation2 + $0x1b80] ss:$16 sps:$4 sm:$0xff]  }
 0x388   :  { %6832 = vmatpush1.bf16.msra.mxu1 %v10059_v28  ;;  %6201 = vmatprep.subr.bf16.mxu0 %v10064_v31  ;;  %v10137_v28 = vld [vmem:[#allocation2 + $0x1b68] ss:$16 sps:$4 sm:$0xff]   ;;  %v10140_v31 = vld [vmem:[#allocation2 + $0x1ba0] ss:$16 sps:$4 sm:$0xff]  }
 0x389   :  { %6833 = vmatprep.subr.bf16.mxu1 %v10067_v32  ;;  %v10143_v32 = vld [vmem:[#allocation2 + $0x1b88] ss:$16 sps:$4 sm:$0xff]  }
 0x38a   :  { %6191 = vmatmul.mubr.bf16.vlgmr.msra.gmra.mrb[0].mxu0 %v212_v33 }
 0x38b   :  { %6202 = vmatpush1.bf16.msra.mxu0 %v10062_v36  ;;  %6233 = vmatprep.mubr.bf16.mxu0 %v215_v40  ;;  %v10149_v36 = vld [vmem:[#allocation2 + $0x1ba8] ss:$16 sps:$4 sm:$0xff]  }
 0x38c   :  { %6834 = vmatpush1.bf16.msra.mxu1 %v10065_v37  ;;  %6203 = vmatprep.subr.bf16.mxu0 %v10070_v38  ;;  %v10154_v37 = vld [vmem:[#allocation2 + $0x1be4] ss:$16 sps:$4 sm:$0xff]   ;;  %v10157_v38 = vld [vmem:[#allocation2 + $0x1bcc] ss:$16 sps:$4 sm:$0xff]  }
 0x38d   :  { %6846 = vmatprep.subr.bf16.mxu1 %v10073_v39  ;;  %v10152_v39 = vld [vmem:[#allocation2 + $0x1be0] ss:$16 sps:$4 sm:$0xff]  }
 0x38f   :  { %6836 = vmatmul.mubr.bf16.vlgmr.msra.gmra.mrb[4].mxu1 %v212_v33  ;;  %6204 = vmatpush1.bf16.msra.mxu0 %v10068_v41  ;;  %v10148_v33 = vld [vmem:[#allocation2 + $0x1bc4] ss:$16 sps:$4 sm:$0xff]  }
 0x390   :  { %6847 = vmatpush1.bf16.msra.mxu1 %v10071_v42  ;;  %6205 = vmatprep.subr.bf16.mxu0 %v10076_v43  ;;  %v156_v41 = vld [vmem:[%s10644_s0 + $0xd0] sm:$0xff]  ;;  %v185_v42 = vld [vmem:[%s10644_s0 + $0x1b8] sm:$0xff] }
 0x391   :  { %6848 = vmatprep.subr.bf16.mxu1 %v10079_v44  ;;  %6878 = vmatprep.mubr.bf16.mxu1 %v215_v40  ;;  %v10155_v40 = vld [vmem:[#allocation2 + $0x1bc8] ss:$16 sps:$4 sm:$0xff]   ;;  %v10160_v43 = vld [vmem:[#allocation2 + $0x1bec] ss:$16 sps:$4 sm:$0xff]   ;;  %v10164_v44 = vld [vmem:[#allocation4 + $0x40] sm:$0xff]  }
 0x393   :  { %6206 = vmatpush1.bf16.msra.mxu0 %v10074_v45  ;;  %v214_v45 = vpack.c.bf16 %v185_v42, %v156_v41 }
 0x394   :  { %6849 = vmatpush1.bf16.msra.mxu1 %v10077_v46  ;;  %6207 = vmatprep.subr.bf16.mxu0 %v10082_v47  ;;  %v10158_v46 = vld [vmem:[#allocation2 + $0x1be8] ss:$16 sps:$4 sm:$0xff]   ;;  %v10165_v47 = vld [vmem:[#allocation4] sm:$0xff]  }
 0x395   :  { %6850 = vmatprep.subr.bf16.mxu1 %v10085_v48  ;;  %v10163_v48 = vld [vmem:[#allocation2 + $0x1c0c] ss:$16 sps:$4 sm:$0xff]  }
 0x397   :  { %6208 = vmatpush1.bf16.msra.mxu0 %v10080_v49  ;;  %v10166_v49 = vld [vmem:[#allocation4 + $0x48] sm:$0xff]  }
 0x398   :  { %6851 = vmatpush1.bf16.msra.mxu1 %v10083_v50  ;;  %6209 = vmatprep.subr.bf16.mxu0 %v10088_v51  ;;  %v10161_v50 = vld [vmem:[#allocation2 + $0x1c08] ss:$16 sps:$4 sm:$0xff]  }
 0x399   :  { %6852 = vmatprep.subr.bf16.mxu1 %v10091_v52  ;;  %v10167_v51 = vld [vmem:[#allocation4 + $0x8] sm:$0xff]   ;;  %v10172_v52 = vld [vmem:[#allocation4 + $0xc0] sm:$0xff]  }
 0x39b   :  { %6210 = vmatpush1.bf16.msra.mxu0 %v10086_v53  ;;  %v10168_v53 = vld [vmem:[#allocation4 + $0x50] sm:$0xff]  }
 0x39c   :  { %6853 = vmatpush1.bf16.msra.mxu1 %v10089_v54  ;;  %6211 = vmatprep.subr.bf16.mxu0 %v10094_v55  ;;  %v10169_v54 = vld [vmem:[#allocation4 + $0x10] sm:$0xff]   ;;  %v10170_v55 = vld [vmem:[#allocation4 + $0x58] sm:$0xff]  }
 0x39d   :  { %6854 = vmatprep.subr.bf16.mxu1 %v10097_v56  ;;  %v10171_v56 = vld [vmem:[#allocation4 + $0x18] sm:$0xff]  }
 0x39f   :  { %6212 = vmatpush1.bf16.msra.mxu0 %v10092_v57  ;;  %v10174_v57 = vld [vmem:[#allocation4 + $0x60] sm:$0xff]  }
 0x3a0   :  { %6855 = vmatpush1.bf16.msra.mxu1 %v10095_v58  ;;  %6213 = vmatprep.subr.bf16.mxu0 %v10100_v59  ;;  %v10173_v58 = vld [vmem:[#allocation4 + $0x80] sm:$0xff]  }
 0x3a1   :  { %6856 = vmatprep.subr.bf16.mxu1 %v10103_v60  ;;  %v10175_v59 = vld [vmem:[#allocation4 + $0x20] sm:$0xff]   ;;  %v10176_v60 = vld [vmem:[#allocation4 + $0xc8] sm:$0xff]  }
 0x3a3   :  { %6214 = vmatpush1.bf16.msra.mxu0 %v10098_v63  ;;  %v10178_v63 = vld [vmem:[#allocation4 + $0x68] sm:$0xff]  }
 0x3a4   :  { %6857 = vmatpush1.bf16.msra.mxu1 %v10101_v1  ;;  %6215 = vmatprep.subr.bf16.mxu0 %v10106_v3  ;;  %v10179_v1 = vld [vmem:[#allocation4 + $0x28] sm:$0xff]   ;;  %v10180_v3 = vld [vmem:[#allocation4 + $0xd0] sm:$0xff]  }
 0x3a5   :  { %6858 = vmatprep.subr.bf16.mxu1 %v10109_v5  ;;  %v10181_v5 = vld [vmem:[#allocation4 + $0x90] sm:$0xff]  }
 0x3a7   :  { %6216 = vmatpush1.bf16.msra.mxu0 %v10104_v6  ;;  %v10182_v6 = vld [vmem:[#allocation4 + $0x70] sm:$0xff]  }
 0x3a8   :  { %6859 = vmatpush1.bf16.msra.mxu1 %v10107_v7  ;;  %6217 = vmatprep.subr.bf16.mxu0 %v10112_v9  ;;  %v10183_v7 = vld [vmem:[#allocation4 + $0x30] sm:$0xff]   ;;  %v10184_v9 = vld [vmem:[#allocation4 + $0xd8] sm:$0xff]  }
 0x3a9   :  { %6860 = vmatprep.subr.bf16.mxu1 %v10115_v10  ;;  %v10185_v10 = vld [vmem:[#allocation4 + $0x98] sm:$0xff]  }
 0x3ab   :  { %6218 = vmatpush1.bf16.msra.mxu0 %v10110_v11  ;;  %v10187_v11 = vld [vmem:[#allocation4 + $0x38] sm:$0xff]  }
 0x3ac   :  { %6861 = vmatpush1.bf16.msra.mxu1 %v10113_v12  ;;  %6219 = vmatprep.subr.bf16.mxu0 %v10118_v13  ;;  %v10188_v12 = vld [vmem:[#allocation4 + $0xe0] sm:$0xff]  }
 0x3ad   :  { %6862 = vmatprep.subr.bf16.mxu1 %v10121_v14  ;;  %v10189_v13 = vld [vmem:[#allocation4 + $0xa0] sm:$0xff]   ;;  %v10190_v14 = vld [vmem:[#allocation4 + $0xe8] sm:$0xff]  }
 0x3af   :  { %6220 = vmatpush1.bf16.msra.mxu0 %v10116_v15  ;;  %v10191_v15 = vld [vmem:[#allocation4 + $0xa8] sm:$0xff]  }
 0x3b0   :  { %6863 = vmatpush1.bf16.msra.mxu1 %v10119_v16  ;;  %6221 = vmatprep.subr.bf16.mxu0 %v10124_v17  ;;  %v10192_v16 = vld [vmem:[#allocation4 + $0xf0] sm:$0xff]  }
 0x3b1   :  { %6864 = vmatprep.subr.bf16.mxu1 %v10127_v18  ;;  %v10193_v17 = vld [vmem:[#allocation4 + $0xb0] sm:$0xff]   ;;  %v10194_v18 = vld [vmem:[#allocation4 + $0xf8] sm:$0xff]  }
 0x3b3   :  { %6222 = vmatpush1.bf16.msra.mxu0 %v10122_v19  ;;  %v10195_v19 = vld [vmem:[#allocation4 + $0xb8] sm:$0xff]  }
 0x3b4   :  { %6865 = vmatpush1.bf16.msra.mxu1 %v10125_v20  ;;  %6223 = vmatprep.subr.bf16.mxu0 %v10130_v21  ;;  %v10323_v20 = vmov 0.0   ;;  %v1118_v21 = vlaneseq }
 0x3b5   :  { %6866 = vmatprep.subr.bf16.mxu1 %v10133_v22 }
 0x3b6   :  { %v1119_v22 = vshrl.u32 %v1118_v21, 7  ;;  %v126_v21 = vld [vmem:[#allocation7 + $0x1] ss:$0 sm:$0xff] }
 0x3b7   :  { %6224 = vmatpush1.bf16.msra.mxu0 %v10128_v23 }
 0x3b8   :  { %6867 = vmatpush1.bf16.msra.mxu1 %v10131_v24  ;;  %6225 = vmatprep.subr.bf16.mxu0 %v10136_v25  ;;  %v1120_v23 = vsub.s32 0, %v1119_v22  ;;  %v125_v24 = vld [vmem:[#allocation7] ss:$8 sm:$0xf]  ;;  %v1124_v25 = vsub.s32 1, %v1119_v22 }
 0x3b9   :  { %6868 = vmatprep.subr.bf16.mxu1 %v10139_v26 }
 0x3ba   :  { %v1121_v26 = vrot.slane %v125_v24, %v1120_v23 }
 0x3bb   :  { %6226 = vmatpush1.bf16.msra.mxu0 %v10134_v27  ;;  %v1125_v27 = vrot.slane %v125_v24, %v1124_v25 }
 0x3bc   :  { %6869 = vmatpush1.bf16.msra.mxu1 %v10137_v28  ;;  %6227 = vmatprep.subr.bf16.mxu0 %v10142_v29 }
 0x3bd   :  { %6870 = vmatprep.subr.bf16.mxu1 %v10145_v30 }
 0x3bf   :  { %6228 = vmatpush1.bf16.msra.mxu0 %v10140_v31 }
 0x3c0   :  { %6871 = vmatpush1.bf16.msra.mxu1 %v10143_v32  ;;  %6229 = vmatprep.subr.bf16.mxu0 %v10148_v33 }
 0x3c1   :  { %6872 = vmatprep.subr.bf16.mxu1 %v10151_v34 }
 0x3c3   :  { %6230 = vmatpush1.bf16.msra.mxu0 %v10146_v35 }
 0x3c4   :  { %6873 = vmatpush1.bf16.msra.mxu1 %v10149_v36  ;;  %6231 = vmatprep.subr.bf16.mxu0 %v10154_v37 }
 0x3c5   :  { %6874 = vmatprep.subr.bf16.mxu1 %v10157_v38 }
 0x3c7   :  { %6232 = vmatpush1.bf16.msra.mxu0 %v10152_v39 }
 0x3c8   :  { %6875 = vmatpush1.bf16.msra.mxu1 %v10155_v40  ;;  %8552 = vmatprep.subr.bf16.mxu0 %v10164_v44 }
 0x3c9   :  { %6876 = vmatprep.subr.bf16.mxu1 %v10160_v43 }
 0x3ca   :  { %6234 = vmatmul.mubr.bf16.vlgmr.msra.gmra.mrb[0].mxu0 %v214_v45 }
 0x3cb   :  { %8553 = vmatpush3.bf16.msra.mxu0 %v10165_v47  ;;  %v1132_v47 = vsub.s32 3, %v1119_v22 }
 0x3cc   :  { %6877 = vmatpush1.bf16.msra.mxu1 %v10158_v46  ;;  %8554 = vmatprep.subr.bf16.mxu0 %v10166_v49 }
 0x3cd   :  { %6889 = vmatprep.subr.bf16.mxu1 %v10163_v48  ;;  %v10196_v48 = vld [vmem:[#allocation6] sm:$0xff]   ;;  %v1133_v49 = vrot.slane %v125_v24, %v1132_v47 }
 0x3cf   :  { %6879 = vmatmul.mubr.bf16.vlgmr.msra.gmra.mrb[4].mxu1 %v214_v45  ;;  %8555 = vmatpush3.bf16.msra.mxu0 %v10167_v51  ;;  %v1128_v45 = vsub.s32 2, %v1119_v22 }
 0x3d0   :  { %6890 = vmatpush1.bf16.msra.mxu1 %v10161_v50  ;;  %6921 = vmatprep.mubr.bf16.mxu1 %v10322_v0  ;;  %v10177_v0 = vld [vmem:[#allocation4 + $0x88] sm:$0xff]  }
 0x3d1   :  { %8574 = vmatprep.subr.bf16.mxu1 %v10172_v52  ;;  %8556 = vmatprep.subr.bf16.mxu0 %v10168_v53 }
 0x3d3   :  { %8557 = vmatpush3.bf16.msra.mxu0 %v10169_v54 }
 0x3d4   :  { %8558 = vmatprep.subr.bf16.mxu0 %v10170_v55 }
 0x3d7   :  { %8559 = vmatpush3.bf16.msra.mxu0 %v10171_v56 }
 0x3d8   :  { %8560 = vmatprep.subr.bf16.mxu0 %v10174_v57 }
 0x3db   :  { %8482 = vmatmul.mubr.msk.bf16.vlgmr.msra.gmra.mrb[4].mxu1 %vm5638_vm0, %v10421_v8  ;;  %8561 = vmatpush3.bf16.msra.mxu0 %v10175_v59  ;;  %v10186_v8 = vld [vmem:[#allocation4 + $0x78] sm:$0xff]  }
 0x3dc   :  { %8575 = vmatpush3.bf16.msra.mxu1 %v10173_v58  ;;  %8562 = vmatprep.subr.bf16.mxu0 %v10178_v63  ;;  %v10198_v63 = vld [vmem:[#allocation6 + $0x10] sm:$0xff]  }
 0x3dd   :  { %8576 = vmatprep.subr.bf16.mxu1 %v10176_v60 }
 0x3df   :  { %8563 = vmatpush3.bf16.msra.mxu0 %v10179_v1  ;;  %v10199_v1 = vld [vmem:[#allocation6 + $0x18] sm:$0xff]  }
 0x3e0   :  { %8577 = vmatpush3.bf16.msra.mxu1 %v10177_v0  ;;  %8564 = vmatprep.subr.bf16.mxu0 %v10182_v6  ;;  %v10202_v6 = vld [vmem:[#allocation6 + $0x30] sm:$0xff]  }
 0x3e1   :  { %8578 = vmatprep.subr.bf16.mxu1 %v10180_v3  ;;  %v10200_v3 = vld [vmem:[#allocation6 + $0x20] sm:$0xff]  }
 0x3e3   :  { %8565 = vmatpush3.bf16.msra.mxu0 %v10183_v7  ;;  %v10203_v7 = vld [vmem:[#allocation6 + $0x38] sm:$0xff]  }
 0x3e4   :  { %8579 = vmatpush3.bf16.msra.mxu1 %v10181_v5  ;;  %8566 = vmatprep.subr.bf16.mxu0 %v10186_v8  ;;  %v10201_v5 = vld [vmem:[#allocation6 + $0x28] sm:$0xff]   ;;  %v10206_v8 = vld [vmem:[#allocation6 + $0x50] sm:$0xff]  }
 0x3e5   :  { %8580 = vmatprep.subr.bf16.mxu1 %v10184_v9  ;;  %v10204_v9 = vld [vmem:[#allocation6 + $0x40] sm:$0xff]  }
 0x3e7   :  { %8567 = vmatpush3.bf16.msra.mxu0 %v10187_v11  ;;  %v10207_v11 = vld [vmem:[#allocation6 + $0x58] sm:$0xff]  }
 0x3e8   :  { %8581 = vmatpush3.bf16.msra.mxu1 %v10185_v10  ;;  %8623 = vmatprep.subr.bf16.mxu0 %v10323_v20  ;;  %v10205_v10 = vld [vmem:[#allocation6 + $0x48] sm:$0xff]  }
 0x3e9   :  { %8582 = vmatprep.subr.bf16.mxu1 %v10188_v12  ;;  %v10208_v12 = vld [vmem:[#allocation6 + $0x60] sm:$0xff]  }
 0x3ec   :  { %8583 = vmatpush3.bf16.msra.mxu1 %v10189_v13  ;;  %v10209_v13 = vld [vmem:[#allocation6 + $0x68] sm:$0xff]  }
 0x3ed   :  { %8584 = vmatprep.subr.bf16.mxu1 %v10190_v14 }
 0x3f0   :  { %8585 = vmatpush3.bf16.msra.mxu1 %v10191_v15 }
 0x3f1   :  { %8586 = vmatprep.subr.bf16.mxu1 %v10192_v16 }
 0x3f4   :  { %8587 = vmatpush3.bf16.msra.mxu1 %v10193_v17 }
 0x3f5   :  { %8588 = vmatprep.subr.bf16.mxu1 %v10194_v18 }
 0x3f8   :  { %8589 = vmatpush3.bf16.msra.mxu1 %v10195_v19 }
 0x3f9   :  { %8643 = vmatprep.subr.bf16.mxu1 %v10323_v20 }
 0x49d   :  { %v6235_v28 = vpop.f32.mrb[0].mxu0 }
 0x49e   :  { %v8683_v29 = vadd.f32 %v6235_v28, %v1121_v26  ;;  %v6237_v30 = vpop.f32.mrb[1].mxu0 }
 0x49f   :  { %v8685_v31 = vadd.f32 %v6237_v30, %v1125_v27  ;;  %v6239_v32 = vpop.f32.mrb[2].mxu0 }
 0x4a0   :  { %v8684_v33 = vadd.f32 %v8683_v29, %v10467_v61  ;;  %v8687_v34 = vadd.f32 %v6239_v32, %v1121_v26  ;;  %v6241_v35 = vpop.f32.mrb[3].mxu0  ;;  %v1129_v61 = vrot.slane %v125_v24, %v1128_v45 }
 0x4a1   :  { %v8686_v36 = vadd.f32 %v8685_v31, %v10469_v62  ;;  %v8689_v37 = vadd.f32 %v6241_v35, %v1125_v27  ;;  %v10197_v62 = vld [vmem:[#allocation6 + $0x8] sm:$0xff]   ;;  %v10210_v35 = vld [vmem:[#allocation6 + $0x70] sm:$0xff]  }
 0x4a2   :  { %v8688_v38 = vadd.f32 %v8687_v34, %v10471_v2  ;;  %v6932_v40 = vmax.f32 %v8684_v33, 0.0 }
 0x4a3   :  { %v8690_v39 = vadd.f32 %v8689_v37, %v10473_v4  ;;  %v6933_v42 = vmax.f32 %v8686_v36, 0.0  ;;  %v10211_v36 = vld [vmem:[#allocation6 + $0x78] sm:$0xff]   ;;  %v10212_v37 = vld [vmem:[#allocation6 + $0x80] sm:$0xff]  }
 0x4a4   :  { %v6936_v41 = vmax.f32 %v8688_v38, 0.0  ;;  %v10213_v38 = vld [vmem:[#allocation6 + $0x88] sm:$0xff]  }
 0x4a5   :  { %v6937_v43 = vmax.f32 %v8690_v39, 0.0  ;;  %v10214_v39 = vld [vmem:[#allocation6 + $0x90] sm:$0xff]  }
 0x4a6   :  { %v6940_v44 = vpack.c.bf16 %v6936_v41, %v6932_v40  ;;  %v10215_v40 = vld [vmem:[#allocation6 + $0x98] sm:$0xff]   ;;  %v10216_v41 = vld [vmem:[#allocation6 + $0xa0] sm:$0xff]  }
 0x4a7   :  { %v6941_v46 = vpack.c.bf16 %v6937_v43, %v6933_v42  ;;  %v127_v42 = vld [vmem:[#allocation7 + $0x9] ss:$0 sm:$0xff] }
 0x4a9   :  { %7232 = vmatprep.mubr.bf16.mxu0 %v6941_v46 }
 0x4aa   :  { %7233 = vmatmul.mubr.bf16.vlgmr.msra.gmra.mrb[4].mxu0 %v6940_v44 }
 0x4ab   :  { %8624 = vmatpush3.bf16.msra.mxu0 %v10196_v48  ;;  %8639 = vmatprep.mubr.msk.bf16.mxu0 %vm10324_vm1, %v10323_v20 }
 0x4ac   :  { %8625 = vmatprep.subr.bf16.mxu0 %v10323_v20 }
 0x4ae   :  { %v6923_v2 = vpop.f32.mrb[4].mxu1 }
 0x4af   :  { %v8691_v50 = vadd.f32 %v6923_v2, %v1129_v61  ;;  %v6925_v4 = vpop.f32.mrb[5].mxu1  ;;  %8626 = vmatpush3.bf16.msra.mxu0 %v10197_v62  ;;  %v10217_v2 = vld [vmem:[#allocation6 + $0xa8] sm:$0xff]  }
 0x4b0   :  { %v8692_v51 = vadd.f32 %v6925_v4, %v1133_v49  ;;  %v6927_v52 = vpop.f32.mrb[6].mxu1  ;;  %8627 = vmatprep.subr.bf16.mxu0 %v10323_v20  ;;  %v10219_v4 = vld [vmem:[#allocation6 + $0xb8] sm:$0xff]  }
 0x4b1   :  { %v8693_v53 = vadd.f32 %v6927_v52, %v1129_v61  ;;  %v6929_v54 = vpop.f32.mrb[7].mxu1  ;;  %v6934_v56 = vmax.f32 %v8691_v50, 0.0  ;;  %v10218_v50 = vld [vmem:[#allocation6 + $0xb0] sm:$0xff]  }
 0x4b2   :  { %v8694_v55 = vadd.f32 %v6929_v54, %v1133_v49  ;;  %v6935_v58 = vmax.f32 %v8692_v51, 0.0  ;;  %v128_v51 = vld [vmem:[#allocation7 + $0x11] ss:$0 sm:$0xff] }
 0x4b3   :  { %v6938_v57 = vmax.f32 %v8693_v53, 0.0  ;;  %8628 = vmatpush3.bf16.msra.mxu0 %v10198_v63  ;;  %v8544_v53 = vld [vmem:[%s10645_s1] sm:$0xff]  }
 0x4b4   :  { %v6939_v59 = vmax.f32 %v8694_v55, 0.0  ;;  %8629 = vmatprep.subr.bf16.mxu0 %v10323_v20 }
 0x4b5   :  { %v6942_v60 = vpack.c.bf16 %v6938_v57, %v6934_v56 }
 0x4b6   :  { %v6943_v0 = vpack.c.bf16 %v6939_v59, %v6935_v58  ;;  %v8545_v58 = vunpack.c.l.bf16 %v8544_v53 }
 0x4b7   :  { %8630 = vmatpush3.bf16.msra.mxu0 %v10199_v1 }
 0x4b8   :  { %7273 = vmatprep.mubr.bf16.mxu1 %v6943_v0  ;;  %8631 = vmatprep.subr.bf16.mxu0 %v10323_v20 }
 0x4b9   :  { %7274 = vmatmul.mubr.bf16.vlgmr.msra.gmra.mrb[8].mxu1 %v6942_v60  ;;  %v8546_v60 = vunpack.c.h.bf16 %v8544_v53 }
 0x4ba   :  { %8659 = vmatprep.mubr.msk.bf16.mxu1 %vm10324_vm1, %v10323_v20  ;;  %8644 = vmatpush3.bf16.msra.mxu1 %v10204_v9 }
 0x4bb   :  { %8632 = vmatpush3.bf16.msra.mxu0 %v10200_v3  ;;  %8645 = vmatprep.subr.bf16.mxu1 %v10323_v20 }
 0x4bc   :  { %8633 = vmatprep.subr.bf16.mxu0 %v10323_v20 }
 0x4be   :  { %8646 = vmatpush3.bf16.msra.mxu1 %v10205_v10 }
 0x4bf   :  { %8634 = vmatpush3.bf16.msra.mxu0 %v10201_v5  ;;  %8647 = vmatprep.subr.bf16.mxu1 %v10323_v20  ;;  %v129_v5 = vld [vmem:[#allocation7 + $0x19] ss:$0 sm:$0xff] }
 0x4c0   :  { %8635 = vmatprep.subr.bf16.mxu0 %v10323_v20 }
 0x4c2   :  { %8648 = vmatpush3.bf16.msra.mxu1 %v10206_v8 }
 0x4c3   :  { %8636 = vmatpush3.bf16.msra.mxu0 %v10202_v6  ;;  %8649 = vmatprep.subr.bf16.mxu1 %v10323_v20 }
 0x4c4   :  { %8637 = vmatprep.subr.bf16.mxu0 %v10323_v20 }
 0x4c6   :  { %8650 = vmatpush3.bf16.msra.mxu1 %v10207_v11 }
 0x4c7   :  { %8638 = vmatpush3.bf16.msra.mxu0 %v10203_v7  ;;  %8651 = vmatprep.subr.bf16.mxu1 %v10323_v20 }
 0x4c8   :  { %8663 = vmatprep.subr.bf16.mxu0 %v10323_v20 }
 0x4ca   :  { %8652 = vmatpush3.bf16.msra.mxu1 %v10208_v12 }
 0x4cb   :  { %8653 = vmatprep.subr.bf16.mxu1 %v10323_v20 }
 0x4ce   :  { %8654 = vmatpush3.bf16.msra.mxu1 %v10209_v13 }
 0x4cf   :  { %8655 = vmatprep.subr.bf16.mxu1 %v10323_v20 }
 0x4d2   :  { %8656 = vmatpush3.bf16.msra.mxu1 %v10210_v35 }
 0x4d3   :  { %8657 = vmatprep.subr.bf16.mxu1 %v10323_v20 }
 0x4d6   :  { %8658 = vmatpush3.bf16.msra.mxu1 %v10211_v36 }
 0x57d   :  { %v8568_v14 = vpop.f32.mrb[4].mxu0 }
 0x57e   :  { %v8569_v15 = vpop.f32.mrb[5].mxu0 }
 0x57f   :  { %v8570_v16 = vadd.f32 %v8569_v15, %v8568_v14  ;;  %v8571_v17 = vpop.f32.mrb[6].mxu0 }
 0x580   :  { %v8572_v18 = vpop.f32.mrb[7].mxu0 }
 0x581   :  { %v8573_v19 = vadd.f32 %v8572_v18, %v8571_v17  ;;  %v7235_v24 = vadd.f32 %v8570_v16, %v126_v21 }
 0x583   :  { %v7238_v28 = vadd.f32 %v8573_v19, %v126_v21 }
 0x58c   :  { %v8590_v22 = vpop.f32.mrb[8].mxu1 }
 0x58d   :  { %v8591_v23 = vpop.f32.mrb[9].mxu1 }
 0x58e   :  { %v8592_v25 = vadd.f32 %v8591_v23, %v8590_v22  ;;  %v8593_v26 = vpop.f32.mrb[10].mxu1 }
 0x58f   :  { %v8594_v27 = vpop.f32.mrb[11].mxu1 }
 0x590   :  { %v7276_v29 = vadd.f32 %v8592_v25, %v7235_v24  ;;  %v8595_v30 = vadd.f32 %v8594_v27, %v8593_v26 }
 0x592   :  { %v7279_v31 = vadd.f32 %v8595_v30, %v7238_v28  ;;  %v7282_v32 = vmax.f32 %v7276_v29, 0.0 }
 0x594   :  { %v7283_v33 = vmax.f32 %v7279_v31, 0.0 }
 0x596   :  { %v7284_v34 = vpack.c.bf16 %v7283_v33, %v7282_v32 }
 0x598   :  { %8640 = vmatmul.mubr.bf16.vlgmr.msra.gmra.mrb[8].mxu0 %v7284_v34 }
 0x599   :  { %8679 = vmatprep.mubr.msk.bf16.mxu0 %vm10324_vm1, %v10323_v20  ;;  %8664 = vmatpush3.bf16.msra.mxu0 %v10212_v37 }
 0x59a   :  { %8665 = vmatprep.subr.bf16.mxu0 %v10323_v20 }
 0x59d   :  { %8666 = vmatpush3.bf16.msra.mxu0 %v10213_v38 }
 0x59e   :  { %8667 = vmatprep.subr.bf16.mxu0 %v10323_v20 }
 0x5a1   :  { %8668 = vmatpush3.bf16.msra.mxu0 %v10214_v39 }
 0x5a2   :  { %8669 = vmatprep.subr.bf16.mxu0 %v10323_v20 }
 0x5a5   :  { %8670 = vmatpush3.bf16.msra.mxu0 %v10215_v40 }
 0x5a6   :  { %8671 = vmatprep.subr.bf16.mxu0 %v10323_v20 }
 0x5a9   :  { %8672 = vmatpush3.bf16.msra.mxu0 %v10216_v41 }
 0x5aa   :  { %8673 = vmatprep.subr.bf16.mxu0 %v10323_v20 }
 0x5ad   :  { %8674 = vmatpush3.bf16.msra.mxu0 %v10217_v2 }
 0x5ae   :  { %8675 = vmatprep.subr.bf16.mxu0 %v10323_v20 }
 0x5b1   :  { %8676 = vmatpush3.bf16.msra.mxu0 %v10218_v50 }
 0x5b2   :  { %8677 = vmatprep.subr.bf16.mxu0 %v10323_v20 }
 0x5b5   :  { %8678 = vmatpush3.bf16.msra.mxu0 %v10219_v4 }
 0x66b   :  { %v7367_v43 = vpop.f32.mrb[8].mxu0 }
 0x66c   :  { %v7368_v44 = vadd.f32 %v7367_v43, %v127_v42  ;;  %v8641_v45 = vpop.f32.mrb[9].mxu0 }
 0x66d   :  { %v7370_v46 = vpop.f32.mrb[10].mxu0 }
 0x66e   :  { %v7371_v47 = vadd.f32 %v7370_v46, %v127_v42  ;;  %v8642_v48 = vpop.f32.mrb[11].mxu0  ;;  %v7374_v61 = vmax.f32 %v7368_v44, 0.0 }
 0x670   :  { %v7375_v49 = vmax.f32 %v7371_v47, 0.0 }
 0x672   :  { %v7376_v62 = vpack.c.bf16 %v7375_v49, %v7374_v61 }
 0x674   :  { %8660 = vmatmul.mubr.bf16.vlgmr.msra.gmra.mrb[12].mxu1 %v7376_v62 }
 0x747   :  { %v7459_v52 = vpop.f32.mrb[12].mxu1 }
 0x748   :  { %v7460_v54 = vadd.f32 %v7459_v52, %v128_v51  ;;  %v8661_v55 = vpop.f32.mrb[13].mxu1 }
 0x749   :  { %v7462_v56 = vpop.f32.mrb[14].mxu1 }
 0x74a   :  { %v7466_v57 = vmax.f32 %v7460_v54, 0.0  ;;  %v7463_v59 = vadd.f32 %v7462_v56, %v128_v51  ;;  %v8662_v0 = vpop.f32.mrb[15].mxu1 }
 0x74c   :  { %v7467_v63 = vmax.f32 %v7463_v59, 0.0  ;;  %v7472_v1 = vadd.f32 %v8545_v58, %v7466_v57 }
 0x74e   :  { %v7473_v3 = vadd.f32 %v8546_v60, %v7467_v63 }
 0x750   :  { %v7474_v20 = vpack.c.bf16 %v7473_v3, %v7472_v1 }
 0x752   :  { %8680 = vmatmul.mubr.bf16.vlgmr.msra.gmra.mrb[12].mxu0 %v7474_v20 }
 0x825   :  { %v7557_v6 = vpop.f32.mrb[12].mxu0 }
 0x826   :  { %v8681_v7 = vpop.f32.mrb[13].mxu0  ;;  %v7558_v10 = vadd.f32 %v7557_v6, %v129_v5 }
 0x827   :  { %v7560_v9 = vpop.f32.mrb[14].mxu0 }
 0x828   :  { %v7561_v8 = vadd.f32 %v7560_v9, %v129_v5  ;;  %v8682_v11 = vpop.f32.mrb[15].mxu0 }
 0x82a   :  { %v8550_v12 = vpack.c.bf16 %v7561_v8, %v7558_v10 }
 0x82c   :  { %8551 = vst [vmem:[%s10650_s6] sm:$0xff] %v8550_v12  }
 0x82d   :  { %7578 = vsyncpa [#allocation3], 1 }
 0x82e   :  { %7579 = vsyncpa [#allocation5], 1 }
 0x82f   :  { %7580 = vsyncpa [#allocation8], 1 }

</bundles_post_ra>
